<compile_context>
chip_gen: v7x
topology: tpu7x:2x2x1
jax: 0.10.0
libtpu: 0.0.40
codegen_flags: <defaults>
</compile_context>

<pallas_src>
import jax
import jax.numpy as jnp
from jax.experimental import pallas as pl
from jax.experimental.pallas import tpu as pltpu

# (in_features, out_features) per layer, PyTorch order fc1..fc9
LAYER_DIMS = [
    (8, 500),    # fc1
    (500, 500),  # fc2
    (500, 100),  # fc3
    (100, 100),  # fc4
    (100, 100),  # fc5
    (100, 100),  # fc6
    (100, 10),   # fc7
    (10, 1),     # fc8
    (8, 1),      # fc9 (skip branch on the original input)
]

IN_PAD = 128     # input feature dim 8 padded to one full lane tile (in VMEM only)
HID_PAD = 128    # 100/10-wide hiddens padded to one lane tile
OUT_PAD = 128    # final output dim 1 padded to one full lane tile (lane-dense vst)

# padded (in, out) per fc1..fc7 matmul
PAD_DIMS = [
    (IN_PAD, 512),    # fc1
    (512, 512),       # fc2
    (512, HID_PAD),   # fc3
    (HID_PAD, HID_PAD),  # fc4
    (HID_PAD, HID_PAD),  # fc5
    (HID_PAD, HID_PAD),  # fc6
    (HID_PAD, HID_PAD),  # fc7
]
# head: two separate K=128 dots (fc8 on h7, fc9 on x), accumulated in f32
HEAD_DIMS = [(HID_PAD, OUT_PAD), (IN_PAD, OUT_PAD)]


def willohnet_kernel(x_ref,
                     w1, b1, w2, b2, w3, b3, w4, b4, w5, b5, w6, b6, w7, b7,
                     w8, w9, b89,
                     out_ref, x_scr):
    """x_ref: (TB, 8) f32.  w*: bf16 padded (in,out).  b*: f32 (1,out).
    out_ref: (TB, 128) f32 (column 0 is the result).  x_scr: (TB, 128) f32."""
    # Build the 128-lane padded input tile entirely in VMEM (the HBM-side
    # input stays at its natural (B, 8) f32 shape).
    x_scr[...] = jnp.zeros_like(x_scr)
    x_scr[:, 0:8] = x_ref[...]
    x = x_scr[...].astype(jnp.bfloat16)          # (TB, 128) bf16, lanes 8..127 == 0

    ws = (w1, w2, w3, w4, w5, w6, w7)
    bs = (b1, b2, b3, b4, b5, b6, b7)

    h = x
    # fc1..fc7: bf16 matmul (f32 accumulate on the MXU), f32 bias+ReLU
    for w_r, b_r in zip(ws, bs):
        acc = jnp.dot(h, w_r[...], preferred_element_type=jnp.float32)
        acc = jnp.maximum(acc + b_r[...], 0.0)
        h = acc.astype(jnp.bfloat16)

    # head: fc8(h7) + fc9(x) as two K=128 dots accumulated in f32 (no concat)
    out = jnp.dot(h, w8[...], preferred_element_type=jnp.float32)
    out = out + jnp.dot(x, w9[...], preferred_element_type=jnp.float32)
    out_ref[...] = out + b89[...]                # (TB, 128) f32, col 0 is the result


def init_params(key):
    """Deterministic init mimicking PyTorch nn.Linear default (U[-1/sqrt(fan_in), +])."""
    params = []
    for fin, fout in LAYER_DIMS:
        key, kw, kb = jax.random.split(key, 3)
        bound = 1.0 / (fin ** 0.5)
        W = jax.random.uniform(kw, (fout, fin), jnp.float32, -bound, bound)  # PyTorch (out, in)
        bvec = jax.random.uniform(kb, (fout,), jnp.float32, -bound, bound)
        params.append((W, bvec))
    return params


def prepare_params(params):
    """One-time prep: transpose to (in,out), zero-pad to lane multiples, cast
    weights to bf16, keep biases f32 as (1, out_pad).  fc8 and fc9 are kept as
    separate (128,128) blocks (the kernel does two accumulated dots); their
    biases are pre-summed into a single (1, OUT_PAD) vector."""
    flat = []
    # fc1..fc7
    for i in range(7):
        W, bvec = params[i]
        fin_p, fout_p = PAD_DIMS[i]
        Wt = jnp.asarray(W, jnp.float32).T                      # (in, out)
        Wp = jnp.zeros((fin_p, fout_p), jnp.float32)
        Wp = Wp.at[: Wt.shape[0], : Wt.shape[1]].set(Wt)
        bp = jnp.zeros((1, fout_p), jnp.float32)
        bp = bp.at[0, : bvec.shape[0]].set(bvec)
        flat.append(Wp.astype(jnp.bfloat16))
        flat.append(bp)
    # fc8 (rows 0..9 of a (128,128) block) and fc9 (rows 0..7 of a (128,128) block)
    W8, b8 = params[7]
    W9, b9 = params[8]
    W8p = jnp.zeros(HEAD_DIMS[0], jnp.float32)
    W8p = W8p.at[: W8.shape[1], :1].set(jnp.asarray(W8, jnp.float32).T)
    W9p = jnp.zeros(HEAD_DIMS[1], jnp.float32)
    W9p = W9p.at[: W9.shape[1], :1].set(jnp.asarray(W9, jnp.float32).T)
    b89 = jnp.zeros((1, OUT_PAD), jnp.float32)
    b89 = b89.at[0, 0].set(b8[0] + b9[0])
    flat.append(W8p.astype(jnp.bfloat16))
    flat.append(W9p.astype(jnp.bfloat16))
    flat.append(b89)
    return flat


def _choose_tb(batch, tb_request):
    """Pick the batch tile: TB=tb_request (default 512) for large batches, but
    shrink so the grid keeps >=2 steps when the batch allows it (keeps both
    v7x TensorCores busy under dimension_semantics=('parallel',))."""
    tb = max(8, (int(tb_request) // 8) * 8)     # sublane multiple
    tb_min = min(tb, 128)
    while tb > tb_min and pl.cdiv(batch, tb) < 2:
        tb //= 2
    return max(tb, 8)


def willohnet_forward(x, flat_params, *, tb=512):
    """x: (B, 8) f32.  flat_params: output of prepare_params (built once)."""
    B = x.shape[0]
    tb = _choose_tb(B, tb)
    n_steps = pl.cdiv(B, tb)
    B_pad = n_steps * tb

    # Pad only the batch dim; features stay at their natural width of 8.
    if B_pad != B:
        x = jnp.pad(x, ((0, B_pad - B), (0, 0)))

    grid = (n_steps,)

    in_specs = [pl.BlockSpec((tb, 8), lambda i: (i, 0))]
    for p in flat_params:
        # full-shape block + constant index_map -> VMEM-resident across grid steps
        in_specs.append(pl.BlockSpec(p.shape, lambda i: (0, 0)))
    out_specs = pl.BlockSpec((tb, OUT_PAD), lambda i: (i, 0))

    # Advisory cost estimate (padded matmul FLOPs; natural-width input bytes).
    matmul_dims = PAD_DIMS + HEAD_DIMS
    flops = 2 * B_pad * sum(fi * fo for fi, fo in matmul_dims)
    param_bytes = sum(int(p.size) * p.dtype.itemsize for p in flat_params)
    bytes_accessed = param_bytes + B_pad * 8 * 4 + B_pad * OUT_PAD * 4
    cost = pl.CostEstimate(flops=flops, transcendentals=0,
                           bytes_accessed=bytes_accessed)

    # VMEM budget sized from the actual buffers (double-buffered tiles +
    # weights, padded-input scratch, activation/accumulator headroom), with a
    # floor at the smallest default scoped limit (16 MiB, v5e) and a cap at
    # 32 MiB so the same setting is safe on v5e/v6e/v7x.
    x_tile_bytes = tb * 8 * 4
    out_tile_bytes = tb * OUT_PAD * 4
    scratch_bytes = tb * IN_PAD * 4
    act_bytes = tb * 512 * (4 + 2) * 2      # f32 acc + bf16 act, x2 for temps
    vmem_need = (2 * (param_bytes + x_tile_bytes + out_tile_bytes)
                 + scratch_bytes + act_bytes + (2 << 20))
    vmem_limit = int(min(max(vmem_need, 16 << 20), 32 << 20))

    out = pl.pallas_call(
        willohnet_kernel,
        out_shape=jax.ShapeDtypeStruct((B_pad, OUT_PAD), jnp.float32),
        grid_spec=pltpu.PrefetchScalarGridSpec(
            num_scalar_prefetch=0,
            grid=grid,
            in_specs=in_specs,
            out_specs=out_specs,
            scratch_shapes=[pltpu.VMEM((tb, IN_PAD), jnp.float32)],
        ),
        compiler_params=pltpu.CompilerParams(
            dimension_semantics=("parallel",),   # batch tiles shard across TCs (v7x)
            vmem_limit_bytes=vmem_limit,
        ),
        cost_estimate=cost,
    )(x, *flat_params)

    return out[:B, :1]


def willohnet_ref(x, params):
    """Reference matching the kernel's precision (bf16 weights/activations,
    f32 accumulation + f32 bias/ReLU) — mirrors the PyTorch forward."""
    y = x.astype(jnp.bfloat16)
    h = y
    for i in range(7):
        W, bvec = params[i]
        acc = jnp.dot(h, W.T.astype(jnp.bfloat16),
                      preferred_element_type=jnp.float32) + bvec
        h = jnp.maximum(acc, 0.0).astype(jnp.bfloat16)
    W8, b8 = params[7]
    W9, b9 = params[8]
    out8 = jnp.dot(h, W8.T.astype(jnp.bfloat16),
                   preferred_element_type=jnp.float32) + b8
    out9 = jnp.dot(y, W9.T.astype(jnp.bfloat16),
                   preferred_element_type=jnp.float32) + b9
    return out8 + out9


if __name__ == "__main__":
    key = jax.random.PRNGKey(0)
    key, kx = jax.random.split(key)

    # B=1000 -> B_pad=1024 at TB=512: 2 grid steps (even, so both v7x TCs are
    # used) and exercises the batch-padding path.
    B = 1000
    x = jax.random.normal(kx, (B, 8), dtype=jnp.float32)

    params = init_params(key)
    flat = prepare_params(params)        # one-time: transpose/pad/bf16

    out = willohnet_forward(x, flat)     # default tb=512
    out = jax.block_until_ready(out)

    ref = willohnet_ref(x, params)
    assert out.shape == (B, 1), out.shape
    assert jnp.allclose(out, ref, atol=1e-2, rtol=1e-2), (out, ref)

    print("KERNEL_OK")
</pallas_src>

<mosaic_0001>
module attributes {stable_mosaic.version = 11 : i64} {
  func.func @willohnet_kernel(%arg0: i32, %arg1: memref<512x8xf32, #tpu.memory_space<vmem>>, %arg2: memref<128x512xbf16, #tpu.memory_space<vmem>>, %arg3: memref<1x512xf32, #tpu.memory_space<vmem>>, %arg4: memref<512x512xbf16, #tpu.memory_space<vmem>>, %arg5: memref<1x512xf32, #tpu.memory_space<vmem>>, %arg6: memref<512x128xbf16, #tpu.memory_space<vmem>>, %arg7: memref<1x128xf32, #tpu.memory_space<vmem>>, %arg8: memref<128x128xbf16, #tpu.memory_space<vmem>>, %arg9: memref<1x128xf32, #tpu.memory_space<vmem>>, %arg10: memref<128x128xbf16, #tpu.memory_space<vmem>>, %arg11: memref<1x128xf32, #tpu.memory_space<vmem>>, %arg12: memref<128x128xbf16, #tpu.memory_space<vmem>>, %arg13: memref<1x128xf32, #tpu.memory_space<vmem>>, %arg14: memref<128x128xbf16, #tpu.memory_space<vmem>>, %arg15: memref<1x128xf32, #tpu.memory_space<vmem>>, %arg16: memref<128x128xbf16, #tpu.memory_space<vmem>>, %arg17: memref<128x128xbf16, #tpu.memory_space<vmem>>, %arg18: memref<1x128xf32, #tpu.memory_space<vmem>>, %arg19: memref<512x128xf32, #tpu.memory_space<vmem>>, %arg20: memref<512x128xf32, #tpu.memory_space<vmem>>) attributes {dimension_semantics = [#tpu.dimension_semantics<parallel>], iteration_bounds = array<i64: 2>, scalar_prefetch = 0 : i64, scratch_operands = 1 : i64, tpu.core_type = #tpu.core_type<tc>, window_params = [{transform_indices = @transform_0, window_bounds = array<i64: 512, 8>}, {pipeline_mode = #tpu.pipeline_mode<synchronous>, transform_indices = @transform_1, window_bounds = array<i64: 128, 512>}, {pipeline_mode = #tpu.pipeline_mode<synchronous>, transform_indices = @transform_2, window_bounds = array<i64: 1, 512>}, {pipeline_mode = #tpu.pipeline_mode<synchronous>, transform_indices = @transform_3, window_bounds = array<i64: 512, 512>}, {pipeline_mode = #tpu.pipeline_mode<synchronous>, transform_indices = @transform_4, window_bounds = array<i64: 1, 512>}, {pipeline_mode = #tpu.pipeline_mode<synchronous>, transform_indices = @transform_5, window_bounds = array<i64: 512, 128>}, {pipeline_mode = #tpu.pipeline_mode<synchronous>, transform_indices = @transform_6, window_bounds = array<i64: 1, 128>}, {pipeline_mode = #tpu.pipeline_mode<synchronous>, transform_indices = @transform_7, window_bounds = array<i64: 128, 128>}, {pipeline_mode = #tpu.pipeline_mode<synchronous>, transform_indices = @transform_8, window_bounds = array<i64: 1, 128>}, {pipeline_mode = #tpu.pipeline_mode<synchronous>, transform_indices = @transform_9, window_bounds = array<i64: 128, 128>}, {pipeline_mode = #tpu.pipeline_mode<synchronous>, transform_indices = @transform_10, window_bounds = array<i64: 1, 128>}, {pipeline_mode = #tpu.pipeline_mode<synchronous>, transform_indices = @transform_11, window_bounds = array<i64: 128, 128>}, {pipeline_mode = #tpu.pipeline_mode<synchronous>, transform_indices = @transform_12, window_bounds = array<i64: 1, 128>}, {pipeline_mode = #tpu.pipeline_mode<synchronous>, transform_indices = @transform_13, window_bounds = array<i64: 128, 128>}, {pipeline_mode = #tpu.pipeline_mode<synchronous>, transform_indices = @transform_14, window_bounds = array<i64: 1, 128>}, {pipeline_mode = #tpu.pipeline_mode<synchronous>, transform_indices = @transform_15, window_bounds = array<i64: 128, 128>}, {pipeline_mode = #tpu.pipeline_mode<synchronous>, transform_indices = @transform_16, window_bounds = array<i64: 128, 128>}, {pipeline_mode = #tpu.pipeline_mode<synchronous>, transform_indices = @transform_17, window_bounds = array<i64: 1, 128>}, {transform_indices = @transform_18, window_bounds = array<i64: 512, 128>}]} {
    %cst = arith.constant 0.000000e+00 : f32
    %0 = vector.broadcast %cst : f32 to vector<512x128xf32>
    %c0 = arith.constant 0 : index
    %c0_0 = arith.constant 0 : index
    %1 = vector.load %arg20[%c0, %c0_0] : memref<512x128xf32, #tpu.memory_space<vmem>>, vector<512x128xf32>
    tpu.vector_store %arg20[%c0, %c0_0], %0 {strides = array<i32>} : memref<512x128xf32, #tpu.memory_space<vmem>>, vector<512x128xf32>,
    %c0_1 = arith.constant 0 : index
    %c0_2 = arith.constant 0 : index
    %2 = vector.load %arg1[%c0_1, %c0_2] : memref<512x8xf32, #tpu.memory_space<vmem>>, vector<512x8xf32>
    %c0_3 = arith.constant 0 : index
    %c0_4 = arith.constant 0 : index
    %3 = vector.load %arg20[%c0_3, %c0_4] : memref<512x128xf32, #tpu.memory_space<vmem>>, vector<512x8xf32>
    tpu.vector_store %arg20[%c0_3, %c0_4], %2 {strides = array<i32>} : memref<512x128xf32, #tpu.memory_space<vmem>>, vector<512x8xf32>,
    %c0_5 = arith.constant 0 : index
    %c0_6 = arith.constant 0 : index
    %4 = vector.load %arg20[%c0_5, %c0_6] : memref<512x128xf32, #tpu.memory_space<vmem>>, vector<512x128xf32>
    %5 = arith.truncf %4 : vector<512x128xf32> to vector<512x128xbf16>
    %c0_7 = arith.constant 0 : index
    %c0_8 = arith.constant 0 : index
    %6 = vector.load %arg2[%c0_7, %c0_8] : memref<128x512xbf16, #tpu.memory_space<vmem>>, vector<128x512xbf16>
    %cst_9 = arith.constant dense<0.000000e+00> : vector<512x512xf32>
    %7 = tpu.matmul %5, %6, %cst_9 {dimension_numbers = #tpu.dot_dimension_numbers<[1], [0], [0], [1], [0, 0, 1, 1], [], []>} : vector<512x128xbf16>, vector<128x512xbf16>, vector<512x512xf32> -> vector<512x512xf32>
    %c0_10 = arith.constant 0 : index
    %c0_11 = arith.constant 0 : index
    %8 = vector.load %arg3[%c0_10, %c0_11] : memref<1x512xf32, #tpu.memory_space<vmem>>, vector<1x512xf32>
    %9 = vector.broadcast %8 : vector<1x512xf32> to vector<512x512xf32>
    %10 = arith.addf %7, %9 : vector<512x512xf32>
    %cst_12 = arith.constant 0.000000e+00 : f32
    %11 = vector.broadcast %cst_12 : f32 to vector<512x512xf32>
    %12 = arith.maximumf %10, %11 : vector<512x512xf32>
    %13 = arith.truncf %12 : vector<512x512xf32> to vector<512x512xbf16>
    %c0_13 = arith.constant 0 : index
    %c0_14 = arith.constant 0 : index
    %14 = vector.load %arg4[%c0_13, %c0_14] : memref<512x512xbf16, #tpu.memory_space<vmem>>, vector<512x512xbf16>
    %cst_15 = arith.constant dense<0.000000e+00> : vector<512x512xf32>
    %15 = tpu.matmul %13, %14, %cst_15 {dimension_numbers = #tpu.dot_dimension_numbers<[1], [0], [0], [1], [0, 0, 1, 1], [], []>} : vector<512x512xbf16>, vector<512x512xbf16>, vector<512x512xf32> -> vector<512x512xf32>
    %c0_16 = arith.constant 0 : index
    %c0_17 = arith.constant 0 : index
    %16 = vector.load %arg5[%c0_16, %c0_17] : memref<1x512xf32, #tpu.memory_space<vmem>>, vector<1x512xf32>
    %17 = vector.broadcast %16 : vector<1x512xf32> to vector<512x512xf32>
    %18 = arith.addf %15, %17 : vector<512x512xf32>
    %cst_18 = arith.constant 0.000000e+00 : f32
    %19 = vector.broadcast %cst_18 : f32 to vector<512x512xf32>
    %20 = arith.maximumf %18, %19 : vector<512x512xf32>
    %21 = arith.truncf %20 : vector<512x512xf32> to vector<512x512xbf16>
    %c0_19 = arith.constant 0 : index
    %c0_20 = arith.constant 0 : index
    %22 = vector.load %arg6[%c0_19, %c0_20] : memref<512x128xbf16, #tpu.memory_space<vmem>>, vector<512x128xbf16>
    %cst_21 = arith.constant dense<0.000000e+00> : vector<512x128xf32>
    %23 = tpu.matmul %21, %22, %cst_21 {dimension_numbers = #tpu.dot_dimension_numbers<[1], [0], [0], [1], [0, 0, 1, 1], [], []>} : vector<512x512xbf16>, vector<512x128xbf16>, vector<512x128xf32> -> vector<512x128xf32>
    %c0_22 = arith.constant 0 : index
    %c0_23 = arith.constant 0 : index
    %24 = vector.load %arg7[%c0_22, %c0_23] : memref<1x128xf32, #tpu.memory_space<vmem>>, vector<1x128xf32>
    %25 = vector.broadcast %24 : vector<1x128xf32> to vector<512x128xf32>
    %26 = arith.addf %23, %25 : vector<512x128xf32>
    %cst_24 = arith.constant 0.000000e+00 : f32
    %27 = vector.broadcast %cst_24 : f32 to vector<512x128xf32>
    %28 = arith.maximumf %26, %27 : vector<512x128xf32>
    %29 = arith.truncf %28 : vector<512x128xf32> to vector<512x128xbf16>
    %c0_25 = arith.constant 0 : index
    %c0_26 = arith.constant 0 : index
    %30 = vector.load %arg8[%c0_25, %c0_26] : memref<128x128xbf16, #tpu.memory_space<vmem>>, vector<128x128xbf16>
    %cst_27 = arith.constant dense<0.000000e+00> : vector<512x128xf32>
    %31 = tpu.matmul %29, %30, %cst_27 {dimension_numbers = #tpu.dot_dimension_numbers<[1], [0], [0], [1], [0, 0, 1, 1], [], []>} : vector<512x128xbf16>, vector<128x128xbf16>, vector<512x128xf32> -> vector<512x128xf32>
    %c0_28 = arith.constant 0 : index
    %c0_29 = arith.constant 0 : index
    %32 = vector.load %arg9[%c0_28, %c0_29] : memref<1x128xf32, #tpu.memory_space<vmem>>, vector<1x128xf32>
    %33 = vector.broadcast %32 : vector<1x128xf32> to vector<512x128xf32>
    %34 = arith.addf %31, %33 : vector<512x128xf32>
    %cst_30 = arith.constant 0.000000e+00 : f32
    %35 = vector.broadcast %cst_30 : f32 to vector<512x128xf32>
    %36 = arith.maximumf %34, %35 : vector<512x128xf32>
    %37 = arith.truncf %36 : vector<512x128xf32> to vector<512x128xbf16>
    %c0_31 = arith.constant 0 : index
    %c0_32 = arith.constant 0 : index
    %38 = vector.load %arg10[%c0_31, %c0_32] : memref<128x128xbf16, #tpu.memory_space<vmem>>, vector<128x128xbf16>
    %cst_33 = arith.constant dense<0.000000e+00> : vector<512x128xf32>
    %39 = tpu.matmul %37, %38, %cst_33 {dimension_numbers = #tpu.dot_dimension_numbers<[1], [0], [0], [1], [0, 0, 1, 1], [], []>} : vector<512x128xbf16>, vector<128x128xbf16>, vector<512x128xf32> -> vector<512x128xf32>
    %c0_34 = arith.constant 0 : index
    %c0_35 = arith.constant 0 : index
    %40 = vector.load %arg11[%c0_34, %c0_35] : memref<1x128xf32, #tpu.memory_space<vmem>>, vector<1x128xf32>
    %41 = vector.broadcast %40 : vector<1x128xf32> to vector<512x128xf32>
    %42 = arith.addf %39, %41 : vector<512x128xf32>
    %cst_36 = arith.constant 0.000000e+00 : f32
    %43 = vector.broadcast %cst_36 : f32 to vector<512x128xf32>
    %44 = arith.maximumf %42, %43 : vector<512x128xf32>
    %45 = arith.truncf %44 : vector<512x128xf32> to vector<512x128xbf16>
    %c0_37 = arith.constant 0 : index
    %c0_38 = arith.constant 0 : index
    %46 = vector.load %arg12[%c0_37, %c0_38] : memref<128x128xbf16, #tpu.memory_space<vmem>>, vector<128x128xbf16>
    %cst_39 = arith.constant dense<0.000000e+00> : vector<512x128xf32>
    %47 = tpu.matmul %45, %46, %cst_39 {dimension_numbers = #tpu.dot_dimension_numbers<[1], [0], [0], [1], [0, 0, 1, 1], [], []>} : vector<512x128xbf16>, vector<128x128xbf16>, vector<512x128xf32> -> vector<512x128xf32>
    %c0_40 = arith.constant 0 : index
    %c0_41 = arith.constant 0 : index
    %48 = vector.load %arg13[%c0_40, %c0_41] : memref<1x128xf32, #tpu.memory_space<vmem>>, vector<1x128xf32>
    %49 = vector.broadcast %48 : vector<1x128xf32> to vector<512x128xf32>
    %50 = arith.addf %47, %49 : vector<512x128xf32>
    %cst_42 = arith.constant 0.000000e+00 : f32
    %51 = vector.broadcast %cst_42 : f32 to vector<512x128xf32>
    %52 = arith.maximumf %50, %51 : vector<512x128xf32>
    %53 = arith.truncf %52 : vector<512x128xf32> to vector<512x128xbf16>
    %c0_43 = arith.constant 0 : index
    %c0_44 = arith.constant 0 : index
    %54 = vector.load %arg14[%c0_43, %c0_44] : memref<128x128xbf16, #tpu.memory_space<vmem>>, vector<128x128xbf16>
    %cst_45 = arith.constant dense<0.000000e+00> : vector<512x128xf32>
    %55 = tpu.matmul %53, %54, %cst_45 {dimension_numbers = #tpu.dot_dimension_numbers<[1], [0], [0], [1], [0, 0, 1, 1], [], []>} : vector<512x128xbf16>, vector<128x128xbf16>, vector<512x128xf32> -> vector<512x128xf32>
    %c0_46 = arith.constant 0 : index
    %c0_47 = arith.constant 0 : index
    %56 = vector.load %arg15[%c0_46, %c0_47] : memref<1x128xf32, #tpu.memory_space<vmem>>, vector<1x128xf32>
    %57 = vector.broadcast %56 : vector<1x128xf32> to vector<512x128xf32>
    %58 = arith.addf %55, %57 : vector<512x128xf32>
    %cst_48 = arith.constant 0.000000e+00 : f32
    %59 = vector.broadcast %cst_48 : f32 to vector<512x128xf32>
    %60 = arith.maximumf %58, %59 : vector<512x128xf32>
    %61 = arith.truncf %60 : vector<512x128xf32> to vector<512x128xbf16>
    %c0_49 = arith.constant 0 : index
    %c0_50 = arith.constant 0 : index
    %62 = vector.load %arg16[%c0_49, %c0_50] : memref<128x128xbf16, #tpu.memory_space<vmem>>, vector<128x128xbf16>
    %cst_51 = arith.constant dense<0.000000e+00> : vector<512x128xf32>
    %63 = tpu.matmul %61, %62, %cst_51 {dimension_numbers = #tpu.dot_dimension_numbers<[1], [0], [0], [1], [0, 0, 1, 1], [], []>} : vector<512x128xbf16>, vector<128x128xbf16>, vector<512x128xf32> -> vector<512x128xf32>
    %c0_52 = arith.constant 0 : index
    %c0_53 = arith.constant 0 : index
    %64 = vector.load %arg17[%c0_52, %c0_53] : memref<128x128xbf16, #tpu.memory_space<vmem>>, vector<128x128xbf16>
    %cst_54 = arith.constant dense<0.000000e+00> : vector<512x128xf32>
    %65 = tpu.matmul %5, %64, %cst_54 {dimension_numbers = #tpu.dot_dimension_numbers<[1], [0], [0], [1], [0, 0, 1, 1], [], []>} : vector<512x128xbf16>, vector<128x128xbf16>, vector<512x128xf32> -> vector<512x128xf32>
    %66 = arith.addf %63, %65 : vector<512x128xf32>
    %c0_55 = arith.constant 0 : index
    %c0_56 = arith.constant 0 : index
    %67 = vector.load %arg18[%c0_55, %c0_56] : memref<1x128xf32, #tpu.memory_space<vmem>>, vector<1x128xf32>
    %68 = vector.broadcast %67 : vector<1x128xf32> to vector<512x128xf32>
    %69 = arith.addf %66, %68 : vector<512x128xf32>
    %c0_57 = arith.constant 0 : index
    %c0_58 = arith.constant 0 : index
    %70 = vector.load %arg19[%c0_57, %c0_58] : memref<512x128xf32, #tpu.memory_space<vmem>>, vector<512x128xf32>
    tpu.vector_store %arg19[%c0_57, %c0_58], %69 {strides = array<i32>} : memref<512x128xf32, #tpu.memory_space<vmem>>, vector<512x128xf32>,
    return
  }
  func.func @transform_0(%arg0: i32) -> (i32, i32) {
    %c0_i32 = arith.constant 0 : i32
    %c0_i32_0 = arith.constant 0 : i32
    return %arg0, %c0_i32 : i32, i32
  }
  func.func @transform_1(%arg0: i32) -> (i32, i32) {
    %c0_i32 = arith.constant 0 : i32
    %c0_i32_0 = arith.constant 0 : i32
    %c0_i32_1 = arith.constant 0 : i32
    return %c0_i32, %c0_i32_0 : i32, i32
  }
  func.func @transform_2(%arg0: i32) -> (i32, i32) {
    %c0_i32 = arith.constant 0 : i32
    %c0_i32_0 = arith.constant 0 : i32
    %c0_i32_1 = arith.constant 0 : i32
    return %c0_i32, %c0_i32_0 : i32, i32
  }
  func.func @transform_3(%arg0: i32) -> (i32, i32) {
    %c0_i32 = arith.constant 0 : i32
    %c0_i32_0 = arith.constant 0 : i32
    %c0_i32_1 = arith.constant 0 : i32
    return %c0_i32, %c0_i32_0 : i32, i32
  }
  func.func @transform_4(%arg0: i32) -> (i32, i32) {
    %c0_i32 = arith.constant 0 : i32
    %c0_i32_0 = arith.constant 0 : i32
    %c0_i32_1 = arith.constant 0 : i32
    return %c0_i32, %c0_i32_0 : i32, i32
  }
  func.func @transform_5(%arg0: i32) -> (i32, i32) {
    %c0_i32 = arith.constant 0 : i32
    %c0_i32_0 = arith.constant 0 : i32
    %c0_i32_1 = arith.constant 0 : i32
    return %c0_i32, %c0_i32_0 : i32, i32
  }
  func.func @transform_6(%arg0: i32) -> (i32, i32) {
    %c0_i32 = arith.constant 0 : i32
    %c0_i32_0 = arith.constant 0 : i32
    %c0_i32_1 = arith.constant 0 : i32
    return %c0_i32, %c0_i32_0 : i32, i32
  }
  func.func @transform_7(%arg0: i32) -> (i32, i32) {
    %c0_i32 = arith.constant 0 : i32
    %c0_i32_0 = arith.constant 0 : i32
    %c0_i32_1 = arith.constant 0 : i32
    return %c0_i32, %c0_i32_0 : i32, i32
  }
  func.func @transform_8(%arg0: i32) -> (i32, i32) {
    %c0_i32 = arith.constant 0 : i32
    %c0_i32_0 = arith.constant 0 : i32
    %c0_i32_1 = arith.constant 0 : i32
    return %c0_i32, %c0_i32_0 : i32, i32
  }
  func.func @transform_9(%arg0: i32) -> (i32, i32) {
    %c0_i32 = arith.constant 0 : i32
    %c0_i32_0 = arith.constant 0 : i32
    %c0_i32_1 = arith.constant 0 : i32
    return %c0_i32, %c0_i32_0 : i32, i32
  }
  func.func @transform_10(%arg0: i32) -> (i32, i32) {
    %c0_i32 = arith.constant 0 : i32
    %c0_i32_0 = arith.constant 0 : i32
    %c0_i32_1 = arith.constant 0 : i32
    return %c0_i32, %c0_i32_0 : i32, i32
  }
  func.func @transform_11(%arg0: i32) -> (i32, i32) {
    %c0_i32 = arith.constant 0 : i32
    %c0_i32_0 = arith.constant 0 : i32
    %c0_i32_1 = arith.constant 0 : i32
    return %c0_i32, %c0_i32_0 : i32, i32
  }
  func.func @transform_12(%arg0: i32) -> (i32, i32) {
    %c0_i32 = arith.constant 0 : i32
    %c0_i32_0 = arith.constant 0 : i32
    %c0_i32_1 = arith.constant 0 : i32
    return %c0_i32, %c0_i32_0 : i32, i32
  }
  func.func @transform_13(%arg0: i32) -> (i32, i32) {
    %c0_i32 = arith.constant 0 : i32
    %c0_i32_0 = arith.constant 0 : i32
    %c0_i32_1 = arith.constant 0 : i32
    return %c0_i32, %c0_i32_0 : i32, i32
  }
  func.func @transform_14(%arg0: i32) -> (i32, i32) {
    %c0_i32 = arith.constant 0 : i32
    %c0_i32_0 = arith.constant 0 : i32
    %c0_i32_1 = arith.constant 0 : i32
    return %c0_i32, %c0_i32_0 : i32, i32
  }
  func.func @transform_15(%arg0: i32) -> (i32, i32) {
    %c0_i32 = arith.constant 0 : i32
    %c0_i32_0 = arith.constant 0 : i32
    %c0_i32_1 = arith.constant 0 : i32
    return %c0_i32, %c0_i32_0 : i32, i32
  }
  func.func @transform_16(%arg0: i32) -> (i32, i32) {
    %c0_i32 = arith.constant 0 : i32
    %c0_i32_0 = arith.constant 0 : i32
    %c0_i32_1 = arith.constant 0 : i32
    return %c0_i32, %c0_i32_0 : i32, i32
  }
  func.func @transform_17(%arg0: i32) -> (i32, i32) {
    %c0_i32 = arith.constant 0 : i32
    %c0_i32_0 = arith.constant 0 : i32
    %c0_i32_1 = arith.constant 0 : i32
    return %c0_i32, %c0_i32_0 : i32, i32
  }
  func.func @transform_18(%arg0: i32) -> (i32, i32) {
    %c0_i32 = arith.constant 0 : i32
    %c0_i32_0 = arith.constant 0 : i32
    return %arg0, %c0_i32 : i32, i32
  }
}

</mosaic_0001>

<bundles_post_ra>
// kernel: tpu_custom_call.1
= control target key start
LH: loop header
LB: loop body
LE: loop exit
PB: predicated region body
PF: predicated region fallthrough
CT: control target
= control target key end

     0   :  { %s14324_s0 = inlined_call_operand.vmem [shape: f32[1024,8], index: 0, kind: input, shape index: {}]   ;;  %s14325_s1 = inlined_call_operand.hbm [shape: bf16[128,512], index: 1, kind: input, shape index: {}]   ;;  %s14326_s2 = inlined_call_operand.vmem [shape: f32[1,512], index: 2, kind: input, shape index: {}]   ;;  %s14327_s3 = inlined_call_operand.vmem [shape: bf16[512,512], index: 3, kind: input, shape index: {}]   ;;  %s14328_s4 = inlined_call_operand.vmem [shape: f32[1,512], index: 4, kind: input, shape index: {}]   ;;  %s14329_s5 = inlined_call_operand.hbm [shape: bf16[512,128], index: 5, kind: input, shape index: {}]   ;;  %s14330_s6 = inlined_call_operand.vmem [shape: f32[1,128], index: 6, kind: input, shape index: {}]   ;;  %s14331_s7 = inlined_call_operand.vmem [shape: bf16[128,128], index: 7, kind: input, shape index: {}]   ;;  %s14332_s8 = inlined_call_operand.vmem [shape: f32[1,128], index: 8, kind: input, shape index: {}]   ;;  %s14333_s9 = inlined_call_operand.hbm [shape: bf16[128,128], index: 9, kind: input, shape index: {}]   ;;  %s14334_s10 = inlined_call_operand.vmem [shape: f32[1,128], index: 10, kind: input, shape index: {}]   ;;  %s14335_s11 = inlined_call_operand.hbm [shape: bf16[128,128], index: 11, kind: input, shape index: {}]   ;;  %s14336_s12 = inlined_call_operand.vmem [shape: f32[1,128], index: 12, kind: input, shape index: {}]   ;;  %s14337_s13 = inlined_call_operand.hbm [shape: bf16[128,128], index: 13, kind: input, shape index: {}]   ;;  %s14338_s14 = inlined_call_operand.vmem [shape: f32[1,128], index: 14, kind: input, shape index: {}]   ;;  %s14339_s15 = inlined_call_operand.hbm [shape: bf16[128,128], index: 15, kind: input, shape index: {}]   ;;  %s14340_s16 = inlined_call_operand.hbm [shape: bf16[128,128], index: 16, kind: input, shape index: {}]   ;;  %s14341_s17 = inlined_call_operand.vmem [shape: f32[1,128], index: 17, kind: input, shape index: {}]   ;;  %s14342_s18 = inlined_call_operand.hbm [shape: f32[1024,128], index: 18, kind: output, shape index: {}]  }
   0x1   :  { %14459 = sst [smem:[#allocation110_spill]] %s14324_s0 }
   0x2   :  { %14460 = sst [smem:[#allocation111_spill]] %s14325_s1 }
   0x3   :  { %14461 = sst [smem:[#allocation112_spill]] %s14326_s2 }
   0x4   :  { %14462 = sst [smem:[#allocation113_spill]] %s14329_s5 }
   0x5   :  { %14463 = sst [smem:[#allocation114_spill]] %s14338_s14 }
   0x6   :  { %14464 = sst [smem:[#allocation115_spill]] %s14341_s17 }
   0x7   :  { %14465 = sst [smem:[#allocation116_spill]] %s14342_s18 }
   0x8   :  { %23 = vsyncpa [#allocation4], 0 }
   0x9   :  { %24 = vsyncpa [#allocation7], 0 }
   0xa   :  { %25 = vsyncpa [#allocation10], 0 }
   0xb   :  { %26 = vsyncpa [#allocation13], 0 }
   0xc   :  { %27 = vsyncpa [#allocation5], 0 }
   0xd   :  { %29 = vsyncpa [#allocation5 + $0x1], 0  ;;  %s11209_s27 = smov 0   ;;  %s11211_s28 = smov 0  }
   0xe   :  { %s11213_s29 = smov 0   ;;  %s11215_s30 = smov 0  }
   0xf LB: > { %14466 = sst [smem:[#allocation21_spill]] %s11084_s27  ;;  %s11230_s0 = sadd.s32 4294967295, %s11096_s30   ;;  %s11096_s30 = sphi %s11215_s30, %s14693_s30   ;;  %s11092_s29 = sphi %s11213_s29, %s14696_s29   ;;  %s11088_s28 = sphi %s11211_s28, %s14695_s28   ;;  %s11084_s27 = sphi %s11209_s27, %s14694_s27  }
  0x10   : > { %14467 = sst [smem:[#allocation22_spill]] %s11088_s28  ;;  %s8606_s19 = sadd.s32 4294967294, %s11096_s30  }
  0x11   : > { %14468 = sst [smem:[#allocation23_spill]] %s11092_s29  ;;  %s11234_s1 = sadd.s32 1, %s11096_s30  }
  0x12   : > { %14469 = sst [smem:[#allocation24_spill]] %s11096_s30  ;;  %s425_s20 = sadd.s32 1, %s11092_s29 }
  0x13   : > { %14470 = sst [smem:[#allocation25_spill]] %s11234_s1  ;;  %s422_s21 = ssub.s32 %s11096_s30, %s11234_s1 }
  0x14   : > { %p435_p0 = scmp.ne.s32.totalorder %s11092_s29, %s11088_s28  ;;  %p423_p1 = scmp.eq.s32.totalorder %s422_s21, 0 }
  0x15   : > { %p436_p2 = scmp.eq.s32.totalorder %s11230_s0, 1  ;;  %p441_p3 = scmp.ne.s32.totalorder %s11088_s28, %s11084_s27 }
  0x16   : > { %p442_p4 = scmp.eq.s32.totalorder %s8606_s19, 1  ;;  %p8607_p7 = scmp.ge.s32.totalorder %s11096_s30, 1 }
  0x17   : > { %s11245_s22 = scalar_select %p423_p1, %s11092_s29, %s425_s20  }
  0x18   : > { %p11247_p5 = por %p436_p2, %p435_p0  ;;  %p11251_p6 = por %p442_p4, %p441_p3 }
  0x19   : > { %14471 = sst [smem:[#allocation26_spill]] %s11245_s22  ;;  %p449_p8 = scmp.lt.s32.totalorder %s11096_s30, 3 }
  0x1a   : > { %s14472_s2 = scalar_select %p11247_p5, 1, 0 }
  0x1b   : > { %s14474_s23 = scalar_select %p11251_p6, 1, 0 }
  0x1c   : > { %14473 = sst [smem:[#allocation27_spill]] %s14472_s2  ;;  %p14352_p9 = scmp.eq.s32.totalorder %s11230_s0, 0 }
  0x1d   : > { %14475 = sst [smem:[#allocation28_spill]] %s14474_s23  ;;  %p11258_p10 = pnand %p8607_p7, %p449_p8 }
  0x1e   : > { %s11098_s25 = smov [#allocation6]   ;;  %s11099_s20 = smov [#allocation9]  }
  0x1f   : > { %s14476_s24 = scalar_select %p11258_p10, 1, 0 }
  0x20   : > { %s483_s26 = sshll.u32 %s11098_s25, 4  ;;  %p10413_p11 = pneg %p11258_p10  ;;  %s11264_s26 = int_to_ptr.vmem [resolvable:$true] %s483_s26 }
  0x21   : > { %s521_s21 = sshll.u32 %s11099_s20, 4  ;;  %s11100_s22 = smov [#allocation12]   ;;  %s11272_s21 = int_to_ptr.vmem [resolvable:$true] %s521_s21 }
  0x22   : > { %p11268_p12 = pnand %p14352_p9, %p10413_p11  ;;  %s11274_s29 = sshll.u32 %s11100_s22, 4  ;;  %s554_s29 = int_to_ptr.vmem [resolvable:$true] %s11274_s29 }
  0x23   : > { %s14478_s5 = sld [smem:[#allocation113_spill]] }
  0x24   : > { %p11284_p0 = pneg %p11268_p12 }
  0x29   : > { %s10822_s25 = scalar_lea.hbm %s14478_s5, 4096 }
  0x2a   : > { %p10823_p13 = scmp.ne.s32.totalorder %s14478_s5, %s10822_s25  ;;  %p10829_p3 = scmp.lt.u32.totalorder %s10822_s25, %s14478_s5 }
  0x2c   : > { %p10825_p1 = pnand %p11284_p0, %p10823_p13 }
  0x2e   : > { %p10826_p2 = pneg %p10825_p1 }
  0x30   : > { %p10831_p4 = pnand %p10829_p3, %p10826_p2 }
  0x32   : > { %10834 = shalt.err (!%p10831_p4)
}
  0x33   : > { %s10835_s27 = scalar_lea.vmem %s11264_s26, 4096  ;;  %p10843_p9 = scmp.lt.s32.totalorder %s11264_s26, %s11264_s26 }
  0x34   : > { %p10836_p7 = scmp.ne.s32.totalorder %s11264_s26, %s10835_s27  ;;  %p10844_p6 = scmp.lt.s32.totalorder %s10835_s27, %s10835_s27 }
  0x36   : > { %p10838_p8 = pnand %p10836_p7, %p11284_p0  ;;  %p10845_p13 = por %p10844_p6, %p10843_p9 }
  0x38   : > { %p10839_p11 = pneg %p10838_p8 }
  0x3a   : > { %p10846_p1 = pnand %p10845_p13, %p10839_p11 }
  0x3c   : > { %10849 = shalt.err (!%p10846_p1)
}
  0x3d   : > { %s14359_s30 = smov 64   ;;  %s14361_s1 = smov 4  }
  0x3e   : > { %10419 = dma.hbm_to_vmem [thread:$0]  (!%p11268_p12), %s14478_s5, 4096, %s11264_s26, [#allocation7], %s14359_s30, %s14359_s30, %s14361_s1  }
  0x3f   : > { %s10850_s27 = scalar_lea.hbm %s14335_s11, 1024 }
  0x40   : > { %p10851_p6 = scmp.ne.s32.totalorder %s14335_s11, %s10850_s27  ;;  %p10857_p3 = scmp.lt.u32.totalorder %s10850_s27, %s14335_s11 }
  0x42   : > { %p10853_p9 = pnand %p10851_p6, %p11284_p0 }
  0x44   : > { %p10854_p2 = pneg %p10853_p9 }
  0x46   : > { %p10859_p4 = pnand %p10857_p3, %p10854_p2 }
  0x48   : > { %10862 = shalt.err (!%p10859_p4)
}
  0x49   : > { %s10863_s26 = scalar_lea.vmem %s11272_s21, 1024  ;;  %p10871_p13 = scmp.lt.s32.totalorder %s11272_s21, %s11272_s21 }
  0x4a   : > { %p10864_p7 = scmp.ne.s32.totalorder %s11272_s21, %s10863_s26  ;;  %p10872_p1 = scmp.lt.s32.totalorder %s10863_s26, %s10863_s26 }
  0x4c   : > { %p10866_p8 = pnand %p10864_p7, %p11284_p0  ;;  %p10873_p6 = por %p10872_p1, %p10871_p13 }
  0x4e   : > { %p10867_p11 = pneg %p10866_p8 }
  0x50   : > { %p10874_p9 = pnand %p10873_p6, %p10867_p11 }
  0x52   : > { %10877 = shalt.err (!%p10874_p9)
}
  0x53   : > { %10425 = dma.hbm_to_vmem [thread:$0]  (!%p11268_p12), %s14335_s11, 1024, %s11272_s21, [#allocation10], %s14359_s30, %s14359_s30, %s14361_s1  }
  0x54   : > { %s10878_s23 = scalar_lea.hbm %s14339_s15, 1024 }
  0x55   : > { %p10879_p2 = scmp.ne.s32.totalorder %s14339_s15, %s10878_s23  ;;  %p10885_p7 = scmp.lt.u32.totalorder %s10878_s23, %s14339_s15 }
  0x57   : > { %p10881_p3 = pnand %p10879_p2, %p11284_p0 }
  0x59   : > { %p10882_p4 = pneg %p10881_p3 }
  0x5b   : > { %p10887_p8 = pnand %p10885_p7, %p10882_p4 }
  0x5d   : > { %10890 = shalt.err (!%p10887_p8)
}
  0x5e   : > { %s10891_s26 = scalar_lea.vmem %s554_s29, 1024  ;;  %p10899_p6 = scmp.lt.s32.totalorder %s554_s29, %s554_s29 }
  0x5f   : > { %p10892_p11 = scmp.ne.s32.totalorder %s554_s29, %s10891_s26  ;;  %p10900_p9 = scmp.lt.s32.totalorder %s10891_s26, %s10891_s26 }
  0x61   : > { %p10894_p13 = pnand %p10892_p11, %p11284_p0  ;;  %p10901_p5 = por %p10900_p9, %p10899_p6 }
  0x63   : > { %p10895_p1 = pneg %p10894_p13 }
  0x65   : > { %p10902_p10 = pnand %p10901_p5, %p10895_p1 }
  0x67   : > { %10905 = shalt.err (!%p10902_p10)
}
  0x68   : > { %10431 = dma.hbm_to_vmem [thread:$0]  (!%p11268_p12), %s14339_s15, 1024, %s554_s29, [#allocation13], %s14359_s30, %s14359_s30, %s14361_s1  }
  0x69   : > { %s11103_s17 = smov [#allocation3]   ;;  %s14480_s25 = sld [smem:[#allocation111_spill]] }
  0x6a   : > { %s461_s28 = sshll.u32 %s11103_s17, 4  ;;  %s462_s28 = int_to_ptr.vmem [resolvable:$true] %s461_s28 }
  0x6f   : > { %s10906_s20 = scalar_lea.hbm %s14480_s25, 4096 }
  0x70   : > { %p10907_p5 = scmp.ne.s32.totalorder %s14480_s25, %s10906_s20  ;;  %p10913_p3 = scmp.lt.u32.totalorder %s10906_s20, %s14480_s25 }
  0x72   : > { %p10909_p10 = pnand %p10907_p5, %p11284_p0 }
  0x74   : > { %p10910_p2 = pneg %p10909_p10 }
  0x76   : > { %p10915_p4 = pnand %p10913_p3, %p10910_p2 }
  0x78   : > { %10918 = shalt.err (!%p10915_p4)
}
  0x79   : > { %s10919_s29 = scalar_lea.vmem %s462_s28, 4096  ;;  %p10927_p13 = scmp.lt.s32.totalorder %s462_s28, %s462_s28 }
  0x7a   : > { %p10920_p7 = scmp.ne.s32.totalorder %s462_s28, %s10919_s29  ;;  %p10928_p1 = scmp.lt.s32.totalorder %s10919_s29, %s10919_s29 }
  0x7c   : > { %p10922_p8 = pnand %p10920_p7, %p11284_p0  ;;  %p10929_p6 = por %p10928_p1, %p10927_p13 }
  0x7e   : > { %p10923_p11 = pneg %p10922_p8 }
  0x80   : > { %p10930_p9 = pnand %p10929_p6, %p10923_p11 }
  0x82   : > { %10933 = shalt.err (!%p10930_p9)
}
  0x83   : > { %s11104_s21 = smov 256   ;;  %s11105_s14 = smov 16  }
  0x84   : > { %10416 = dma.hbm_to_vmem [thread:$0]  (!%p11268_p12), %s14480_s25, 4096, %s462_s28, [#allocation4], %s11104_s21, %s11104_s21, %s11105_s14  }
  0x85   : > { %s11106_s2 = smov [#allocation8]   ;;  %s11107_s20 = smov [#allocation11]  }
  0x86   : > { %s505_s23 = sshll.u32 %s11106_s2, 4  ;;  %s537_s22 = sshll.u32 %s11107_s20, 4  ;;  %s506_s23 = int_to_ptr.vmem [resolvable:$true] %s505_s23  ;;  %s11374_s22 = int_to_ptr.vmem [resolvable:$true] %s537_s22 }
  0x87   : > { %s10934_s29 = scalar_lea.hbm %s14333_s9, 1024 }
  0x88   : > { %p10935_p5 = scmp.ne.s32.totalorder %s14333_s9, %s10934_s29  ;;  %p10941_p3 = scmp.lt.u32.totalorder %s10934_s29, %s14333_s9 }
  0x8a   : > { %p10937_p10 = pnand %p10935_p5, %p11284_p0 }
  0x8c   : > { %p10938_p2 = pneg %p10937_p10 }
  0x8e   : > { %p10943_p4 = pnand %p10941_p3, %p10938_p2 }
  0x90   : > { %10946 = shalt.err (!%p10943_p4)
}
  0x91   : > { %s10947_s21 = scalar_lea.vmem %s506_s23, 1024  ;;  %p10955_p13 = scmp.lt.s32.totalorder %s506_s23, %s506_s23 }
  0x92   : > { %p10948_p7 = scmp.ne.s32.totalorder %s506_s23, %s10947_s21  ;;  %p10956_p1 = scmp.lt.s32.totalorder %s10947_s21, %s10947_s21 }
  0x94   : > { %p10950_p8 = pnand %p10948_p7, %p11284_p0  ;;  %p10957_p6 = por %p10956_p1, %p10955_p13 }
  0x96   : > { %p10951_p11 = pneg %p10950_p8 }
  0x98   : > { %p10958_p9 = pnand %p10957_p6, %p10951_p11 }
  0x9a   : > { %10961 = shalt.err (!%p10958_p9)
}
  0x9b   : > { %s14481_s30 = smov 4   ;;  %s14482_s1 = smov 64  }
  0x9c   : > { %10422 = dma.hbm_to_vmem [thread:$0]  (!%p11268_p12), %s14333_s9, 1024, %s506_s23, [#allocation7], %s14482_s1, %s14482_s1, %s14481_s30  }
  0x9d   : > { %s10962_s27 = scalar_lea.hbm %s14337_s13, 1024 }
  0x9e   : > { %p10963_p5 = scmp.ne.s32.totalorder %s14337_s13, %s10962_s27  ;;  %p10969_p3 = scmp.lt.u32.totalorder %s10962_s27, %s14337_s13 }
  0xa0   : > { %p10965_p10 = pnand %p10963_p5, %p11284_p0 }
  0xa2   : > { %p10966_p2 = pneg %p10965_p10 }
  0xa4   : > { %p10971_p4 = pnand %p10969_p3, %p10966_p2 }
  0xa6   : > { %10974 = shalt.err (!%p10971_p4)
}
  0xa7   : > { %s10975_s23 = scalar_lea.vmem %s11374_s22, 1024  ;;  %p10983_p13 = scmp.lt.s32.totalorder %s11374_s22, %s11374_s22 }
  0xa8   : > { %p10976_p7 = scmp.ne.s32.totalorder %s11374_s22, %s10975_s23  ;;  %p10984_p1 = scmp.lt.s32.totalorder %s10975_s23, %s10975_s23 }
  0xaa   : > { %p10978_p8 = pnand %p10976_p7, %p11284_p0  ;;  %p10985_p6 = por %p10984_p1, %p10983_p13 }
  0xac   : > { %p10979_p11 = pneg %p10978_p8 }
  0xae   : > { %p10986_p9 = pnand %p10985_p6, %p10979_p11 }
  0xb0   : > { %10989 = shalt.err (!%p10986_p9)
}
  0xb1   : > { %10428 = dma.hbm_to_vmem [thread:$0]  (!%p11268_p12), %s14337_s13, 1024, %s11374_s22, [#allocation10], %s14482_s1, %s14482_s1, %s14481_s30  }
  0xb2   : > { %s11108_s17 = smov [#allocation14]   ;;  %s10990_s26 = scalar_lea.hbm %s14340_s16, 1024 }
  0xb3   : > { %s566_s2 = sshll.u32 %s11108_s17, 4  ;;  %p10991_p5 = scmp.ne.s32.totalorder %s14340_s16, %s10990_s26  ;;  %s567_s2 = int_to_ptr.vmem [resolvable:$true] %s566_s2 }
  0xb4   : > { %p10997_p3 = scmp.lt.u32.totalorder %s10990_s26, %s14340_s16 }
  0xb5   : > { %p10993_p10 = pnand %p10991_p5, %p11284_p0 }
  0xb7   : > { %p10994_p2 = pneg %p10993_p10 }
  0xb9   : > { %p10999_p4 = pnand %p10997_p3, %p10994_p2 }
  0xbb   : > { %11002 = shalt.err (!%p10999_p4)
}
  0xbc   : > { %s11003_s22 = scalar_lea.vmem %s567_s2, 1024  ;;  %p11011_p13 = scmp.lt.s32.totalorder %s567_s2, %s567_s2 }
  0xbd   : > { %p11004_p7 = scmp.ne.s32.totalorder %s567_s2, %s11003_s22  ;;  %p11012_p1 = scmp.lt.s32.totalorder %s11003_s22, %s11003_s22 }
  0xbf   : > { %p11006_p8 = pnand %p11004_p7, %p11284_p0  ;;  %p11013_p6 = por %p11012_p1, %p11011_p13 }
  0xc1   : > { %p11007_p11 = pneg %p11006_p8 }
  0xc3   : > { %p11014_p9 = pnand %p11013_p6, %p11007_p11 }
  0xc5   : > { %11017 = shalt.err (!%p11014_p9)
}
  0xc6   : > { %10434 = dma.hbm_to_vmem [thread:$0]  (!%p11268_p12), %s14340_s16, 1024, %s567_s2, [#allocation13], %s14482_s1, %s14482_s1, %s14481_s30  }
  0xc7   : > { %p14483_p5 = scmp.ne.s32.totalorder %s14476_s24, 0 }
  0xc9   : > { %594 = sbr.rel (%p14483_p5) target bundleno = 2842 (0xb1a), region = 92 }
  0xd0   : > { %p14484_p0 = scmp.eq.s32.totalorder %s11230_s0, 0 }
  0xd2   : > { %11063 = dma.done.wait (%p14484_p0), [#allocation4], 4096   ;;  %p14485_p10 = pmov %p14484_p0 }
  0xd3   : > { %p14486_p2 = pmov %p14484_p0 }
  0xd4   : > { %11065 = vsyncadd (%p14485_p10), [#allocation4], 4294963200 }
  0xd5   : > { %11067 = dma.done.wait (%p14486_p2), [#allocation7], 5120   ;;  %p14487_p3 = pmov %p14484_p0 }
  0xd6   : > { %p14488_p4 = pmov %p14484_p0 }
  0xd7   : > { %11069 = vsyncadd (%p14487_p3), [#allocation7], 4294962176 }
  0xd8   : > { %11071 = dma.done.wait (%p14488_p4), [#allocation10], 2048   ;;  %p14489_p12 = pmov %p14484_p0 }
  0xd9   : > { %p14490_p7 = pmov %p14484_p0 }
  0xda   : > { %11073 = vsyncadd (%p14489_p12), [#allocation10], 4294965248 }
  0xdb   : > { %11075 = dma.done.wait (%p14490_p7), [#allocation13], 2048   ;;  %p14491_p8 = pmov %p14484_p0 }
  0xdc   : > { %s8625_s18 = sshll.u32 %s11230_s0, 6  ;;  %v14365_v0 = vmov 0   ;;  %v11110_v1 = vmov 0.0   ;;  %v10501_v2 = vld [vmem:[#allocation3 + $0x4] ss:$16 sps:$4 sm:$0xff]   ;;  %s14492_s1 = sld [smem:[#allocation110_spill]] }
  0xdd   : > { %11077 = vsyncadd (%p14491_p8), [#allocation13], 4294965248  ;;  %1215 = vmatprep.mubr.bf16.mxu0 %v14365_v0  ;;  %1375 = vmatprep.mubr.bf16.mxu1 %v14365_v0  ;;  %680 = vst [vmem:[#allocation2] sm:$0xff] %v11110_v1  ;;  %p673_p11 = scmp.lt.s32.totalorder %s8625_s18, 127  ;;  %v10503_v3 = vld [vmem:[#allocation3] ss:$16 sps:$4 sm:$0xff]  }
  0xde   : > { %681 = vst [vmem:[#allocation2 + $0x8] sm:$0xff] %v11110_v1  ;;  %682 = vst [vmem:[#allocation2 + $0x10] sm:$0xff] %v11110_v1  ;;  %1183 = vmatprep.subr.bf16.mxu0 %v10501_v2  ;;  %9599 = vmatprep.subr.bf16.mxu1 %v10501_v2  ;;  %v10504_v4 = vld [vmem:[#allocation3 + $0x24] ss:$16 sps:$4 sm:$0xff]   ;;  %v10506_v5 = vld [vmem:[#allocation3 + $0x20] ss:$16 sps:$4 sm:$0xff]  }
  0xdf   : > { %683 = vst [vmem:[#allocation2 + $0x18] sm:$0xff] %v11110_v1  ;;  %684 = vst [vmem:[#allocation2 + $0x20] sm:$0xff] %v11110_v1  ;;  %s14698_s18 = smov (!%p673_p11, %s8625_s18), 127  ;;  %1184 = vmatpush1.bf16.msra.mxu0 %v10503_v3  ;;  %9607 = vmatpush1.bf16.msra.mxu1 %v10503_v3  ;;  %v10507_v6 = vld [vmem:[#allocation3 + $0x44] ss:$16 sps:$4 sm:$0xff]   ;;  %vm808_vm0 = vcmask 64512  }
  0xe0   : > { %685 = vst [vmem:[#allocation2 + $0x28] sm:$0xff] %v11110_v1  ;;  %686 = vst [vmem:[#allocation2 + $0x30] sm:$0xff] %v11110_v1  ;;  %1185 = vmatprep.subr.bf16.mxu0 %v10504_v4  ;;  %9600 = vmatprep.subr.bf16.mxu1 %v10504_v4  ;;  %s8626_s24 = sshll.u32 %s14698_s18, 3  ;;  %v10509_v7 = vld [vmem:[#allocation3 + $0x40] ss:$16 sps:$4 sm:$0xff]   ;;  %s14526_s26 = sld [smem:[#allocation112_spill]] }
  0xe1   : > { %687 = vst [vmem:[#allocation2 + $0x38] sm:$0xff] %v11110_v1  ;;  %688 = vst [vmem:[#allocation2 + $0x40] sm:$0xff] %v11110_v1  ;;  %v10510_v8 = vld [vmem:[#allocation3 + $0x64] ss:$16 sps:$4 sm:$0xff]   ;;  %v10512_v9 = vld [vmem:[#allocation3 + $0x60] ss:$16 sps:$4 sm:$0xff]  }
  0xe2   : > { %689 = vst [vmem:[#allocation2 + $0x48] sm:$0xff] %v11110_v1  ;;  %690 = vst [vmem:[#allocation2 + $0x50] sm:$0xff] %v11110_v1  ;;  %s11536_s17 = scalar_lea.vmem %s14492_s1, %s8626_s24  ;;  %v10513_v10 = vld [vmem:[#allocation3 + $0x84] ss:$16 sps:$4 sm:$0xff]   ;;  %v10515_v18 = vld [vmem:[#allocation3 + $0x80] ss:$16 sps:$4 sm:$0xff]  }
  0xe3   : > { %691 = vst [vmem:[#allocation2 + $0x58] sm:$0xff] %v11110_v1  ;;  %692 = vst [vmem:[#allocation2 + $0x60] sm:$0xff] %v11110_v1  ;;  %1186 = vmatpush1.bf16.msra.mxu0 %v10506_v5  ;;  %9608 = vmatpush1.bf16.msra.mxu1 %v10506_v5  ;;  %v744_v11 = vld [vmem:[%s11536_s17] sm:$0xff]  ;;  %v745_v12 = vld [vmem:[%s11536_s17 + $0x8] sm:$0xff]  ;;  %s14683_s24 = sld [smem:[#allocation114_spill]]  ;;  %s14684_s19 = sld [smem:[#allocation22_spill]] }
  0xe4   : > { %693 = vst [vmem:[#allocation2 + $0x68] sm:$0xff] %v11110_v1  ;;  %694 = vst [vmem:[#allocation2 + $0x70] sm:$0xff] %v11110_v1  ;;  %1187 = vmatprep.subr.bf16.mxu0 %v10507_v6  ;;  %9601 = vmatprep.subr.bf16.mxu1 %v10507_v6  ;;  %v776_v13 = vld [vmem:[%s11536_s17 + $0x100] sm:$0xff]  ;;  %v777_v14 = vld [vmem:[%s11536_s17 + $0x108] sm:$0xff]  ;;  %s14685_s20 = sld [smem:[#allocation115_spill]]  ;;  %s8878_s29 = sshll.u32 %s11230_s0, 13 }
  0xe5   : > { %695 = vst [vmem:[#allocation2 + $0x78] sm:$0xff] %v11110_v1  ;;  %696 = vst [vmem:[#allocation2 + $0x80] sm:$0xff] %v11110_v1  ;;  %v746_v15 = vld [vmem:[%s11536_s17 + $0x10] sm:$0xff]  ;;  %v747_v16 = vld [vmem:[%s11536_s17 + $0x18] sm:$0xff]  ;;  %s14686_s28 = sld [smem:[#allocation27_spill]]  ;;  %s14687_s21 = sld [smem:[#allocation116_spill]] }
  0xe6   : > { %697 = vst [vmem:[#allocation2 + $0x88] sm:$0xff] %v11110_v1  ;;  %698 = vst [vmem:[#allocation2 + $0x90] sm:$0xff] %v11110_v1  ;;  %v778_v17 = vld [vmem:[%s11536_s17 + $0x110] sm:$0xff]  ;;  %v779_v19 = vld [vmem:[%s11536_s17 + $0x118] sm:$0xff] }
  0xe7   : > { %699 = vst [vmem:[#allocation2 + $0x98] sm:$0xff] %v11110_v1  ;;  %700 = vst [vmem:[#allocation2 + $0xa0] sm:$0xff] %v11110_v1  ;;  %1188 = vmatpush1.bf16.msra.mxu0 %v10509_v7  ;;  %9609 = vmatpush1.bf16.msra.mxu1 %v10509_v7  ;;  %v748_v20 = vld [vmem:[%s11536_s17 + $0x20] sm:$0xff]  ;;  %v749_v21 = vld [vmem:[%s11536_s17 + $0x28] sm:$0xff] }
  0xe8   : > { %701 = vst [vmem:[#allocation2 + $0xa8] sm:$0xff] %v11110_v1  ;;  %702 = vst [vmem:[#allocation2 + $0xb0] sm:$0xff] %v11110_v1  ;;  %1189 = vmatprep.subr.bf16.mxu0 %v10510_v8  ;;  %9602 = vmatprep.subr.bf16.mxu1 %v10510_v8  ;;  %v10516_v22 = vld [vmem:[#allocation3 + $0xa4] ss:$16 sps:$4 sm:$0xff]   ;;  %v781_v24 = vld [vmem:[%s11536_s17 + $0x128] sm:$0xff] }
  0xe9   : > { %703 = vst [vmem:[#allocation2 + $0xb8] sm:$0xff] %v11110_v1  ;;  %704 = vst [vmem:[#allocation2 + $0xc0] sm:$0xff] %v11110_v1  ;;  %v780_v23 = vld [vmem:[%s11536_s17 + $0x120] sm:$0xff]  ;;  %v750_v25 = vld [vmem:[%s11536_s17 + $0x30] sm:$0xff]  ;;  %s669_s30 = sand.u32 1, %s14684_s19  }
  0xea   : > { %705 = vst [vmem:[#allocation2 + $0xc8] sm:$0xff] %v11110_v1  ;;  %706 = vst [vmem:[#allocation2 + $0xd0] sm:$0xff] %v11110_v1  ;;  %v751_v26 = vld [vmem:[%s11536_s17 + $0x38] sm:$0xff]  ;;  %v782_v27 = vld [vmem:[%s11536_s17 + $0x130] sm:$0xff]  ;;  %s8624_s1 = sshll.u32 %s669_s30, 9  ;;  %s14283_s0 = scalar_lea.sflag [#allocation5], %s669_s30 }
  0xeb   : > { %707 = vst [vmem:[#allocation2 + $0xd8] sm:$0xff] %v11110_v1  ;;  %708 = vst [vmem:[#allocation2 + $0xe0] sm:$0xff] %v11110_v1  ;;  %1190 = vmatpush1.bf16.msra.mxu0 %v10512_v9  ;;  %9610 = vmatpush1.bf16.msra.mxu1 %v10512_v9  ;;  %v783_v28 = vld [vmem:[%s11536_s17 + $0x138] sm:$0xff]  ;;  %v752_v29 = vld [vmem:[%s11536_s17 + $0x40] sm:$0xff]  ;;  %s14144_s27 = scalar_lea.vmem [#allocation15], %s8624_s1  ;;  %s14273_s14 = scalar_lea.hbm %s14687_s21, %s8878_s29 }
  0xec   : > { %709 = vst [vmem:[#allocation2 + $0xe8] sm:$0xff] %v11110_v1  ;;  %710 = vst [vmem:[#allocation2 + $0xf0] sm:$0xff] %v11110_v1  ;;  %1191 = vmatprep.subr.bf16.mxu0 %v10513_v10  ;;  %9603 = vmatprep.subr.bf16.mxu1 %v10513_v10  ;;  %v753_v30 = vld [vmem:[%s11536_s17 + $0x48] sm:$0xff]  ;;  %v784_v31 = vld [vmem:[%s11536_s17 + $0x140] sm:$0xff]  ;;  %s8475_s5 = sshll.u32 %s14144_s27, 4  ;;  %p14688_p1 = scmp.ne.s32.totalorder %s14686_s28, 0  ;;  %s14275_s5 = int_to_ptr.vmem [resolvable:$true] %s8475_s5 }
  0xed   : > { %711 = vst [vmem:[#allocation2 + $0xf8] sm:$0xff] %v11110_v1  ;;  %712 = vst [vmem:[#allocation2 + $0x100] sm:$0xff] %v11110_v1  ;;  %v785_v32 = vld [vmem:[%s11536_s17 + $0x148] sm:$0xff]  ;;  %v754_v33 = vld [vmem:[%s11536_s17 + $0x50] sm:$0xff]  ;;  %s11018_s18 = scalar_lea.vmem %s14275_s5, 8192 }
  0xee   : > { %713 = vst [vmem:[#allocation2 + $0x108] sm:$0xff] %v11110_v1  ;;  %714 = vst [vmem:[#allocation2 + $0x110] sm:$0xff] %v11110_v1  ;;  %v755_v34 = vld [vmem:[%s11536_s17 + $0x58] sm:$0xff]  ;;  %v786_v35 = vld [vmem:[%s11536_s17 + $0x150] sm:$0xff]  ;;  %p11019_p13 = scmp.ne.s32.totalorder %s14275_s5, %s11018_s18 }
  0xef   : > { %715 = vst [vmem:[#allocation2 + $0x118] sm:$0xff] %v11110_v1  ;;  %716 = vst [vmem:[#allocation2 + $0x120] sm:$0xff] %v11110_v1  ;;  %v787_v36 = vld [vmem:[%s11536_s17 + $0x158] sm:$0xff]  ;;  %1192 = vmatpush1.bf16.msra.mxu0 %v10515_v18  ;;  %9611 = vmatpush1.bf16.msra.mxu1 %v10515_v18  ;;  %v10518_v37 = vld [vmem:[#allocation3 + $0xa0] ss:$16 sps:$4 sm:$0xff]  }
  0xf0   : > { %717 = vst [vmem:[#allocation2 + $0x128] sm:$0xff] %v11110_v1  ;;  %718 = vst [vmem:[#allocation2 + $0x130] sm:$0xff] %v11110_v1  ;;  %1193 = vmatprep.subr.bf16.mxu0 %v10516_v22  ;;  %9604 = vmatprep.subr.bf16.mxu1 %v10516_v22  ;;  %v10519_v38 = vld [vmem:[#allocation3 + $0xc4] ss:$16 sps:$4 sm:$0xff]   ;;  %v10521_v39 = vld [vmem:[#allocation3 + $0xc0] ss:$16 sps:$4 sm:$0xff]   ;;  %p11020_p6 = pnand %p11019_p13, %p14688_p1 }
  0xf1   : > { %719 = vst [vmem:[#allocation2 + $0x138] sm:$0xff] %v11110_v1  ;;  %720 = vst [vmem:[#allocation2 + $0x140] sm:$0xff] %v11110_v1  ;;  %v10522_v40 = vld [vmem:[#allocation3 + $0xe4] ss:$16 sps:$4 sm:$0xff]   ;;  %v10524_v41 = vld [vmem:[#allocation3 + $0xe0] ss:$16 sps:$4 sm:$0xff]  }
  0xf2   : > { %721 = vst [vmem:[#allocation2 + $0x148] sm:$0xff] %v11110_v1  ;;  %722 = vst [vmem:[#allocation2 + $0x150] sm:$0xff] %v11110_v1  ;;  %v756_v46 = vld [vmem:[%s11536_s17 + $0x60] sm:$0xff]  ;;  %v757_v47 = vld [vmem:[%s11536_s17 + $0x68] sm:$0xff]  ;;  %p11021_p9 = pneg %p11020_p6 }
  0xf3   : > { %723 = vst [vmem:[#allocation2 + $0x158] sm:$0xff] %v11110_v1  ;;  %724 = vst [vmem:[#allocation2 + $0x160] sm:$0xff] %v11110_v1  ;;  %1194 = vmatpush1.bf16.msra.mxu0 %v10518_v37  ;;  %9612 = vmatpush1.bf16.msra.mxu1 %v10518_v37  ;;  %v788_v48 = vld [vmem:[%s11536_s17 + $0x160] sm:$0xff]  ;;  %v789_v49 = vld [vmem:[%s11536_s17 + $0x168] sm:$0xff] }
  0xf4   : > { %725 = vst [vmem:[#allocation2 + $0x168] sm:$0xff] %v11110_v1  ;;  %726 = vst [vmem:[#allocation2 + $0x170] sm:$0xff] %v11110_v1  ;;  %1195 = vmatprep.subr.bf16.mxu0 %v10519_v38  ;;  %9605 = vmatprep.subr.bf16.mxu1 %v10519_v38  ;;  %v758_v50 = vld [vmem:[%s11536_s17 + $0x70] sm:$0xff]  ;;  %v759_v51 = vld [vmem:[%s11536_s17 + $0x78] sm:$0xff] }
  0xf5   : > { %727 = vst [vmem:[#allocation2 + $0x178] sm:$0xff] %v11110_v1  ;;  %728 = vst [vmem:[#allocation2 + $0x180] sm:$0xff] %v11110_v1  ;;  %v790_v52 = vld [vmem:[%s11536_s17 + $0x170] sm:$0xff]  ;;  %v791_v53 = vld [vmem:[%s11536_s17 + $0x178] sm:$0xff] }
  0xf6   : > { %729 = vst [vmem:[#allocation2 + $0x188] sm:$0xff] %v11110_v1  ;;  %730 = vst [vmem:[#allocation2 + $0x190] sm:$0xff] %v11110_v1  ;;  %v760_v54 = vld [vmem:[%s11536_s17 + $0x80] sm:$0xff]  ;;  %v761_v55 = vld [vmem:[%s11536_s17 + $0x88] sm:$0xff] }
  0xf7   : > { %731 = vst [vmem:[#allocation2 + $0x198] sm:$0xff] %v11110_v1  ;;  %732 = vst [vmem:[#allocation2 + $0x1a0] sm:$0xff] %v11110_v1  ;;  %1196 = vmatpush1.bf16.msra.mxu0 %v10521_v39  ;;  %9613 = vmatpush1.bf16.msra.mxu1 %v10521_v39  ;;  %v792_v58 = vld [vmem:[%s11536_s17 + $0x180] sm:$0xff]  ;;  %v793_v59 = vld [vmem:[%s11536_s17 + $0x188] sm:$0xff] }
  0xf8   : > { %733 = vst [vmem:[#allocation2 + $0x1a8] sm:$0xff] %v11110_v1  ;;  %734 = vst [vmem:[#allocation2 + $0x1b0] sm:$0xff] %v11110_v1  ;;  %1197 = vmatprep.subr.bf16.mxu0 %v10522_v40  ;;  %9606 = vmatprep.subr.bf16.mxu1 %v10522_v40  ;;  %v762_v60 = vld [vmem:[%s11536_s17 + $0x90] sm:$0xff]  ;;  %v763_v61 = vld [vmem:[%s11536_s17 + $0x98] sm:$0xff] }
  0xf9   : > { %735 = vst [vmem:[#allocation2 + $0x1b8] sm:$0xff] %v11110_v1  ;;  %736 = vst [vmem:[#allocation2 + $0x1c0] sm:$0xff] %v11110_v1  ;;  %v794_v62 = vld [vmem:[%s11536_s17 + $0x190] sm:$0xff]  ;;  %v795_v63 = vld [vmem:[%s11536_s17 + $0x198] sm:$0xff] }
  0xfa   : > { %737 = vst [vmem:[#allocation2 + $0x1c8] sm:$0xff] %v11110_v1  ;;  %738 = vst [vmem:[#allocation2 + $0x1d0] sm:$0xff] %v11110_v1  ;;  %v765_v2 = vld [vmem:[%s11536_s17 + $0xa8] sm:$0xff]  ;;  %v796_v3 = vld [vmem:[%s11536_s17 + $0x1a0] sm:$0xff] }
  0xfb   : > { %739 = vst [vmem:[#allocation2 + $0x1d8] sm:$0xff] %v11110_v1  ;;  %740 = vst [vmem:[#allocation2 + $0x1e0] sm:$0xff] %v11110_v1  ;;  %1198 = vmatpush1.bf16.msra.mxu0 %v10524_v41  ;;  %9614 = vmatpush1.bf16.msra.mxu1 %v10524_v41  ;;  %v797_v4 = vld [vmem:[%s11536_s17 + $0x1a8] sm:$0xff]  ;;  %v766_v5 = vld [vmem:[%s11536_s17 + $0xb0] sm:$0xff] }
  0xfc   : > { %741 = vst [vmem:[#allocation2 + $0x1e8] sm:$0xff] %v11110_v1  ;;  %742 = vst [vmem:[#allocation2 + $0x1f0] sm:$0xff] %v11110_v1  ;;  %v767_v6 = vld [vmem:[%s11536_s17 + $0xb8] sm:$0xff]  ;;  %v798_v8 = vld [vmem:[%s11536_s17 + $0x1b0] sm:$0xff] }
  0xfd   : > { %743 = vst [vmem:[#allocation2 + $0x1f8] sm:$0xff] %v11110_v1  ;;  %809 = vst.msk [vmem:[#allocation2] sm:$0xff] %vm808_vm0, %v744_v11  ;;  %v764_v1 = vld [vmem:[%s11536_s17 + $0xa0] sm:$0xff]  ;;  %v799_v9 = vld [vmem:[%s11536_s17 + $0x1b8] sm:$0xff] }
  0xfe   : > { %810 = vst.msk [vmem:[#allocation2 + $0x8] sm:$0xff] %vm808_vm0, %v745_v12  ;;  %841 = vst.msk [vmem:[#allocation2 + $0x100] sm:$0xff] %vm808_vm0, %v776_v13  ;;  %v769_v22 = vld [vmem:[%s11536_s17 + $0xc8] sm:$0xff]  ;;  %v771_v37 = vld [vmem:[%s11536_s17 + $0xd8] sm:$0xff] }
  0xff   : > { %842 = vst.msk [vmem:[#allocation2 + $0x108] sm:$0xff] %vm808_vm0, %v777_v14  ;;  %811 = vst.msk [vmem:[#allocation2 + $0x10] sm:$0xff] %vm808_vm0, %v746_v15  ;;  %v802_v38 = vld [vmem:[%s11536_s17 + $0x1d0] sm:$0xff]  ;;  %v803_v39 = vld [vmem:[%s11536_s17 + $0x1d8] sm:$0xff] }
 0x100   : > { %812 = vst.msk [vmem:[#allocation2 + $0x18] sm:$0xff] %vm808_vm0, %v747_v16  ;;  %843 = vst.msk [vmem:[#allocation2 + $0x110] sm:$0xff] %vm808_vm0, %v778_v17  ;;  %v10539_v41 = vld [vmem:[#allocation3 + $0x4c] ss:$16 sps:$4 sm:$0xff]  }
 0x101   : > { %844 = vst.msk [vmem:[#allocation2 + $0x118] sm:$0xff] %vm808_vm0, %v779_v19  ;;  %813 = vst.msk [vmem:[#allocation2 + $0x20] sm:$0xff] %vm808_vm0, %v748_v20  ;;  %v10525_v19 = vld [vmem:[%s14327_s3] ss:$16 sps:$4 sm:$0xff]   ;;  %v10527_v20 = vld [vmem:[%s14327_s3 + $0x4] ss:$16 sps:$4 sm:$0xff]  }
 0x102   : > { %814 = vst.msk [vmem:[#allocation2 + $0x28] sm:$0xff] %vm808_vm0, %v749_v21  ;;  %845 = vst.msk [vmem:[#allocation2 + $0x120] sm:$0xff] %vm808_vm0, %v780_v23  ;;  %v768_v21 = vld [vmem:[%s11536_s17 + $0xc0] sm:$0xff]  ;;  %3063 = vmatprep.subr.bf16.mxu0 %v10527_v20 }
 0x103   : > { %846 = vst.msk [vmem:[#allocation2 + $0x128] sm:$0xff] %vm808_vm0, %v781_v24  ;;  %815 = vst.msk [vmem:[#allocation2 + $0x30] sm:$0xff] %vm808_vm0, %v750_v25  ;;  %v800_v23 = vld [vmem:[%s11536_s17 + $0x1c0] sm:$0xff]  ;;  %v801_v24 = vld [vmem:[%s11536_s17 + $0x1c8] sm:$0xff] }
 0x104   : > { %816 = vst.msk [vmem:[#allocation2 + $0x38] sm:$0xff] %vm808_vm0, %v751_v26  ;;  %847 = vst.msk [vmem:[#allocation2 + $0x130] sm:$0xff] %vm808_vm0, %v782_v27  ;;  %v873_v42 = vld [vmem:[#allocation2] sm:$0xff]  ;;  %v10528_v27 = vld [vmem:[#allocation3 + $0x8] ss:$16 sps:$4 sm:$0xff]  }
 0x105   : > { %848 = vst.msk [vmem:[#allocation2 + $0x138] sm:$0xff] %vm808_vm0, %v783_v28  ;;  %817 = vst.msk [vmem:[#allocation2 + $0x40] sm:$0xff] %vm808_vm0, %v752_v29  ;;  %v874_v43 = vld [vmem:[#allocation2 + $0x8] sm:$0xff]  ;;  %v905_v44 = vld [vmem:[#allocation2 + $0x100] sm:$0xff] }
 0x106   : > { %818 = vst.msk [vmem:[#allocation2 + $0x48] sm:$0xff] %vm808_vm0, %v753_v30  ;;  %849 = vst.msk [vmem:[#allocation2 + $0x140] sm:$0xff] %vm808_vm0, %v784_v31  ;;  %v906_v45 = vld [vmem:[#allocation2 + $0x108] sm:$0xff]  ;;  %v11603_v56 = vpack.c.bf16 %v874_v43, %v873_v42  ;;  %v875_v7 = vld [vmem:[#allocation2 + $0x10] sm:$0xff] }
 0x107   : > { %850 = vst.msk [vmem:[#allocation2 + $0x148] sm:$0xff] %vm808_vm0, %v785_v32  ;;  %819 = vst.msk [vmem:[#allocation2 + $0x50] sm:$0xff] %vm808_vm0, %v754_v33  ;;  %v11605_v57 = vpack.c.bf16 %v906_v45, %v905_v44  ;;  %v876_v10 = vld [vmem:[#allocation2 + $0x18] sm:$0xff]  ;;  %v907_v11 = vld [vmem:[#allocation2 + $0x110] sm:$0xff] }
 0x108   : > { %820 = vst.msk [vmem:[#allocation2 + $0x58] sm:$0xff] %vm808_vm0, %v755_v34  ;;  %851 = vst.msk [vmem:[#allocation2 + $0x150] sm:$0xff] %vm808_vm0, %v786_v35  ;;  %1216 = vmatmul.mubr.bf16.vlgmr.msra.gmra.mrb[0].mxu0 %v11603_v56  ;;  %v908_v12 = vld [vmem:[#allocation2 + $0x118] sm:$0xff]  ;;  %v11642_v13 = vpack.c.bf16 %v876_v10, %v875_v7  ;;  %v877_v15 = vld [vmem:[#allocation2 + $0x20] sm:$0xff] }
 0x109   : > { %852 = vst.msk [vmem:[#allocation2 + $0x158] sm:$0xff] %vm808_vm0, %v787_v36  ;;  %821 = vst.msk [vmem:[#allocation2 + $0x60] sm:$0xff] %vm808_vm0, %v756_v46  ;;  %1376 = vmatmul.mubr.bf16.vlgmr.msra.gmra.mrb[0].mxu1 %v11605_v57  ;;  %1225 = vmatprep.mubr.bf16.mxu0 %v14365_v0  ;;  %v11644_v14 = vpack.c.bf16 %v908_v12, %v907_v11  ;;  %v878_v16 = vld [vmem:[#allocation2 + $0x28] sm:$0xff]  ;;  %v909_v17 = vld [vmem:[#allocation2 + $0x120] sm:$0xff] }
 0x10a   : > { %822 = vst.msk [vmem:[#allocation2 + $0x68] sm:$0xff] %vm808_vm0, %v757_v47  ;;  %853 = vst.msk [vmem:[#allocation2 + $0x160] sm:$0xff] %vm808_vm0, %v788_v48  ;;  %1385 = vmatprep.mubr.bf16.mxu1 %v14365_v0  ;;  %v910_v18 = vld [vmem:[#allocation2 + $0x128] sm:$0xff]  ;;  %v11663_v25 = vpack.c.bf16 %v878_v16, %v877_v15  ;;  %3064 = vmatpush1.bf16.msra.mxu0 %v10525_v19  ;;  %v10534_v31 = vld [vmem:[%s14327_s3 + $0x20] ss:$16 sps:$4 sm:$0xff]  }
 0x10b   : > { %854 = vst.msk [vmem:[#allocation2 + $0x168] sm:$0xff] %vm808_vm0, %v789_v49  ;;  %823 = vst.msk [vmem:[#allocation2 + $0x70] sm:$0xff] %vm808_vm0, %v758_v50  ;;  %v11665_v26 = vpack.c.bf16 %v910_v18, %v909_v17  ;;  %v10530_v28 = vld [vmem:[#allocation3 + $0xc] ss:$16 sps:$4 sm:$0xff]   ;;  %v10531_v29 = vld [vmem:[#allocation3 + $0x28] ss:$16 sps:$4 sm:$0xff]  }
 0x10c   : > { %824 = vst.msk [vmem:[#allocation2 + $0x78] sm:$0xff] %vm808_vm0, %v759_v51  ;;  %855 = vst.msk [vmem:[#allocation2 + $0x170] sm:$0xff] %vm808_vm0, %v790_v52  ;;  %v10533_v30 = vld [vmem:[#allocation3 + $0x2c] ss:$16 sps:$4 sm:$0xff]   ;;  %1536 = vmatprep.subr.bf16.mxu1 %v10530_v28  ;;  %v879_v32 = vld [vmem:[#allocation2 + $0x30] sm:$0xff] }
 0x10d   : > { %14493 = vst [vmem:[#allocation29_spill] sm:$0xff] %v11603_v56  ;;  %14494 = vst [vmem:[#allocation30_spill] sm:$0xff] %v11605_v57  ;;  %v880_v33 = vld [vmem:[#allocation2 + $0x38] sm:$0xff]  ;;  %v911_v34 = vld [vmem:[#allocation2 + $0x130] sm:$0xff]  ;;  %1537 = vmatpush1.bf16.msra.mxu1 %v10528_v27 }
 0x10e   : > { %856 = vst.msk [vmem:[#allocation2 + $0x178] sm:$0xff] %vm808_vm0, %v791_v53  ;;  %825 = vst.msk [vmem:[#allocation2 + $0x80] sm:$0xff] %vm808_vm0, %v760_v54  ;;  %v10536_v35 = vld [vmem:[%s14327_s3 + $0x24] ss:$16 sps:$4 sm:$0xff]   ;;  %v912_v40 = vld [vmem:[#allocation2 + $0x138] sm:$0xff]  ;;  %1538 = vmatprep.subr.bf16.mxu1 %v10533_v30  ;;  %v11686_v43 = vpack.c.bf16 %v880_v33, %v879_v32 }
 0x10f   : > { %826 = vst.msk [vmem:[#allocation2 + $0x88] sm:$0xff] %vm808_vm0, %v761_v55  ;;  %857 = vst.msk [vmem:[#allocation2 + $0x180] sm:$0xff] %vm808_vm0, %v792_v58  ;;  %v770_v36 = vld [vmem:[%s11536_s17 + $0xd0] sm:$0xff]  ;;  %3065 = vmatprep.subr.bf16.mxu0 %v10536_v35  ;;  %v10537_v42 = vld [vmem:[#allocation3 + $0x48] ss:$16 sps:$4 sm:$0xff]   ;;  %v11688_v44 = vpack.c.bf16 %v912_v40, %v911_v34 }
 0x110   : > { %858 = vst.msk [vmem:[#allocation2 + $0x188] sm:$0xff] %vm808_vm0, %v793_v59  ;;  %827 = vst.msk [vmem:[#allocation2 + $0x90] sm:$0xff] %vm808_vm0, %v762_v60  ;;  %1226 = vmatmul.mubr.bf16.gmra.mrb[4].mxu0 %v11642_v13  ;;  %v10542_v45 = vld [vmem:[#allocation3 + $0x6c] ss:$16 sps:$4 sm:$0xff]   ;;  %v10543_v46 = vld [vmem:[%s14327_s3 + $0x40] ss:$16 sps:$4 sm:$0xff]  }
 0x111   : > { %828 = vst.msk [vmem:[#allocation2 + $0x98] sm:$0xff] %vm808_vm0, %v763_v61  ;;  %859 = vst.msk [vmem:[#allocation2 + $0x190] sm:$0xff] %vm808_vm0, %v794_v62  ;;  %1386 = vmatmul.mubr.bf16.gmra.mrb[4].mxu1 %v11644_v14  ;;  %1235 = vmatprep.mubr.bf16.mxu0 %v14365_v0  ;;  %v10545_v47 = vld [vmem:[%s14327_s3 + $0x44] ss:$16 sps:$4 sm:$0xff]   ;;  %v773_v49 = vld [vmem:[%s11536_s17 + $0xe8] sm:$0xff] }
 0x112   : > { %860 = vst.msk [vmem:[#allocation2 + $0x198] sm:$0xff] %vm808_vm0, %v795_v63  ;;  %829 = vst.msk [vmem:[#allocation2 + $0xa0] sm:$0xff] %vm808_vm0, %v764_v1  ;;  %1395 = vmatprep.mubr.bf16.mxu1 %v14365_v0  ;;  %1539 = vmatpush1.bf16.msra.mxu1 %v10531_v29  ;;  %v772_v48 = vld [vmem:[%s11536_s17 + $0xe0] sm:$0xff]  ;;  %v10540_v52 = vld [vmem:[#allocation3 + $0x68] ss:$16 sps:$4 sm:$0xff]  }
 0x113   : > { %830 = vst.msk [vmem:[#allocation2 + $0xa8] sm:$0xff] %vm808_vm0, %v765_v2  ;;  %861 = vst.msk [vmem:[#allocation2 + $0x1a0] sm:$0xff] %vm808_vm0, %v796_v3  ;;  %3066 = vmatpush1.bf16.msra.mxu0 %v10534_v31  ;;  %1540 = vmatprep.subr.bf16.mxu1 %v10539_v41  ;;  %v804_v50 = vld [vmem:[%s11536_s17 + $0x1e0] sm:$0xff]  ;;  %v805_v53 = vld [vmem:[%s11536_s17 + $0x1e8] sm:$0xff] }
 0x114   : > { %862 = vst.msk [vmem:[#allocation2 + $0x1a8] sm:$0xff] %vm808_vm0, %v797_v4  ;;  %831 = vst.msk [vmem:[#allocation2 + $0xb0] sm:$0xff] %vm808_vm0, %v766_v5  ;;  %v881_v51 = vld [vmem:[#allocation2 + $0x40] sm:$0xff]  ;;  %3067 = vmatprep.subr.bf16.mxu0 %v10545_v47  ;;  %v882_v54 = vld [vmem:[#allocation2 + $0x48] sm:$0xff] }
 0x115   : > { %832 = vst.msk [vmem:[#allocation2 + $0xb8] sm:$0xff] %vm808_vm0, %v767_v6  ;;  %863 = vst.msk [vmem:[#allocation2 + $0x1b0] sm:$0xff] %vm808_vm0, %v798_v8  ;;  %v913_v55 = vld [vmem:[#allocation2 + $0x140] sm:$0xff]  ;;  %v914_v58 = vld [vmem:[#allocation2 + $0x148] sm:$0xff]  ;;  %v11708_v61 = vpack.c.bf16 %v882_v54, %v881_v51 }
 0x116   : > { %864 = vst.msk [vmem:[#allocation2 + $0x1b8] sm:$0xff] %vm808_vm0, %v799_v9  ;;  %14495 = vst [vmem:[#allocation31_spill] sm:$0xff] %v11642_v13  ;;  %1541 = vmatpush1.bf16.msra.mxu1 %v10537_v42  ;;  %v10548_v59 = vld [vmem:[#allocation3 + $0x8c] ss:$16 sps:$4 sm:$0xff]   ;;  %v10546_v60 = vld [vmem:[#allocation3 + $0x88] ss:$16 sps:$4 sm:$0xff]   ;;  %v11710_v62 = vpack.c.bf16 %v914_v58, %v913_v55 }
 0x117   : > { %14496 = vst [vmem:[#allocation32_spill] sm:$0xff] %v11644_v14  ;;  %833 = vst.msk [vmem:[#allocation2 + $0xc0] sm:$0xff] %vm808_vm0, %v768_v21  ;;  %1542 = vmatprep.subr.bf16.mxu1 %v10542_v45  ;;  %3068 = vmatpush1.bf16.msra.mxu0 %v10543_v46  ;;  %v10552_v63 = vld [vmem:[%s14327_s3 + $0x60] ss:$16 sps:$4 sm:$0xff]   ;;  %v10554_v1 = vld [vmem:[%s14327_s3 + $0x64] ss:$16 sps:$4 sm:$0xff]  }
 0x118   : > { %834 = vst.msk [vmem:[#allocation2 + $0xc8] sm:$0xff] %vm808_vm0, %v769_v22  ;;  %865 = vst.msk [vmem:[#allocation2 + $0x1c0] sm:$0xff] %vm808_vm0, %v800_v23  ;;  %1236 = vmatmul.mubr.bf16.gmra.mrb[8].mxu0 %v11663_v25  ;;  %v774_v2 = vld [vmem:[%s11536_s17 + $0xf0] sm:$0xff]  ;;  %v775_v3 = vld [vmem:[%s11536_s17 + $0xf8] sm:$0xff]  ;;  %3069 = vmatprep.subr.bf16.mxu0 %v10554_v1 }
 0x119   : > { %14497 = vst [vmem:[#allocation33_spill] sm:$0xff] %v11663_v25  ;;  %14498 = vst [vmem:[#allocation34_spill] sm:$0xff] %v11665_v26  ;;  %1396 = vmatmul.mubr.bf16.gmra.mrb[8].mxu1 %v11665_v26  ;;  %1245 = vmatprep.mubr.bf16.mxu0 %v14365_v0  ;;  %v806_v4 = vld [vmem:[%s11536_s17 + $0x1f0] sm:$0xff]  ;;  %v807_v5 = vld [vmem:[%s11536_s17 + $0x1f8] sm:$0xff] }
 0x11a   : > { %866 = vst.msk [vmem:[#allocation2 + $0x1c8] sm:$0xff] %vm808_vm0, %v801_v24  ;;  %835 = vst.msk [vmem:[#allocation2 + $0xd0] sm:$0xff] %vm808_vm0, %v770_v36  ;;  %1405 = vmatprep.mubr.bf16.mxu1 %v14365_v0  ;;  %1543 = vmatpush1.bf16.msra.mxu1 %v10540_v52  ;;  %v10551_v6 = vld [vmem:[#allocation3 + $0xac] ss:$16 sps:$4 sm:$0xff]   ;;  %v883_v7 = vld [vmem:[#allocation2 + $0x50] sm:$0xff] }
 0x11b   : > { %836 = vst.msk [vmem:[#allocation2 + $0xd8] sm:$0xff] %vm808_vm0, %v771_v37  ;;  %867 = vst.msk [vmem:[#allocation2 + $0x1d0] sm:$0xff] %vm808_vm0, %v802_v38  ;;  %1544 = vmatprep.subr.bf16.mxu1 %v10548_v59  ;;  %v884_v8 = vld [vmem:[#allocation2 + $0x58] sm:$0xff]  ;;  %3070 = vmatpush1.bf16.msra.mxu0 %v10552_v63  ;;  %v915_v10 = vld [vmem:[#allocation2 + $0x150] sm:$0xff] }
 0x11c   : > { %868 = vst.msk [vmem:[#allocation2 + $0x1d8] sm:$0xff] %vm808_vm0, %v803_v39  ;;  %14499 = vst [vmem:[#allocation35_spill] sm:$0xff] %v11686_v43  ;;  %v10549_v9 = vld [vmem:[#allocation3 + $0xa8] ss:$16 sps:$4 sm:$0xff]   ;;  %v10557_v11 = vld [vmem:[#allocation3 + $0xcc] ss:$16 sps:$4 sm:$0xff]   ;;  %v11736_v18 = vpack.c.bf16 %v884_v8, %v883_v7 }
 0x11d   : > { %14500 = vst [vmem:[#allocation36_spill] sm:$0xff] %v11688_v44  ;;  %837 = vst.msk [vmem:[#allocation2 + $0xe0] sm:$0xff] %vm808_vm0, %v772_v48  ;;  %v916_v12 = vld [vmem:[#allocation2 + $0x158] sm:$0xff]  ;;  %v10561_v16 = vld [vmem:[%s14327_s3 + $0x80] ss:$16 sps:$4 sm:$0xff]  }
 0x11e   : > { %838 = vst.msk [vmem:[#allocation2 + $0xe8] sm:$0xff] %vm808_vm0, %v773_v49  ;;  %869 = vst.msk [vmem:[#allocation2 + $0x1e0] sm:$0xff] %vm808_vm0, %v804_v50  ;;  %1545 = vmatpush1.bf16.msra.mxu1 %v10546_v60  ;;  %v10555_v15 = vld [vmem:[#allocation3 + $0xc8] ss:$16 sps:$4 sm:$0xff]   ;;  %v10563_v17 = vld [vmem:[%s14327_s3 + $0x84] ss:$16 sps:$4 sm:$0xff]   ;;  %v11738_v19 = vpack.c.bf16 %v916_v12, %v915_v10 }
 0x11f   : > { %870 = vst.msk [vmem:[#allocation2 + $0x1e8] sm:$0xff] %vm808_vm0, %v805_v53  ;;  %14501 = vst [vmem:[#allocation37_spill] sm:$0xff] %v11708_v61  ;;  %1546 = vmatprep.subr.bf16.mxu1 %v10551_v6  ;;  %v10566_v20 = vld [vmem:[%s14327_s3 + $0xa4] ss:$16 sps:$4 sm:$0xff]   ;;  %v10558_v21 = vld [vmem:[#allocation3 + $0xe8] ss:$16 sps:$4 sm:$0xff]   ;;  %3071 = vmatprep.subr.bf16.mxu0 %v10563_v17 }
 0x120   : > { %1246 = vmatmul.mubr.bf16.gmra.mrb[12].mxu0 %v11686_v43  ;;  %14502 = vst [vmem:[#allocation38_spill] sm:$0xff] %v11710_v62  ;;  %839 = vst.msk [vmem:[#allocation2 + $0xf0] sm:$0xff] %vm808_vm0, %v774_v2  ;;  %v10560_v22 = vld [vmem:[#allocation3 + $0xec] ss:$16 sps:$4 sm:$0xff]   ;;  %v10564_v23 = vld [vmem:[%s14327_s3 + $0xa0] ss:$16 sps:$4 sm:$0xff]  }
 0x121   : > { %1406 = vmatmul.mubr.bf16.gmra.mrb[12].mxu1 %v11688_v44  ;;  %1255 = vmatprep.mubr.bf16.mxu0 %v14365_v0  ;;  %840 = vst.msk [vmem:[#allocation2 + $0xf8] sm:$0xff] %vm808_vm0, %v775_v3  ;;  %871 = vst.msk [vmem:[#allocation2 + $0x1f0] sm:$0xff] %vm808_vm0, %v806_v4  ;;  %v10569_v24 = vld [vmem:[%s14327_s3 + $0xc4] ss:$16 sps:$4 sm:$0xff]   ;;  %v886_v28 = vld [vmem:[#allocation2 + $0x68] sm:$0xff] }
 0x122   : > { %1415 = vmatprep.mubr.bf16.mxu1 %v14365_v0  ;;  %872 = vst.msk [vmem:[#allocation2 + $0x1f8] sm:$0xff] %vm808_vm0, %v807_v5  ;;  %1547 = vmatpush1.bf16.msra.mxu1 %v10549_v9  ;;  %14503 = vst [vmem:[#allocation39_spill] sm:$0xff] %v11736_v18  ;;  %v885_v27 = vld [vmem:[#allocation2 + $0x60] sm:$0xff]  ;;  %v918_v30 = vld [vmem:[#allocation2 + $0x168] sm:$0xff] }
 0x123   : > { %14504 = vst [vmem:[#allocation40_spill] sm:$0xff] %v11738_v19  ;;  %1548 = vmatprep.subr.bf16.mxu1 %v10557_v11  ;;  %3072 = vmatpush1.bf16.msra.mxu0 %v10561_v16  ;;  %v917_v29 = vld [vmem:[#allocation2 + $0x160] sm:$0xff]  ;;  %v11759_v33 = vpack.c.bf16 %v886_v28, %v885_v27  ;;  %v887_v37 = vld [vmem:[#allocation2 + $0x70] sm:$0xff]  ;;  %v888_v38 = vld [vmem:[#allocation2 + $0x78] sm:$0xff] }
 0x124   : > { %3073 = vmatprep.subr.bf16.mxu0 %v10566_v20  ;;  %v10567_v31 = vld [vmem:[%s14327_s3 + $0xc0] ss:$16 sps:$4 sm:$0xff]   ;;  %v10572_v32 = vld [vmem:[%s14327_s3 + $0xe4] ss:$16 sps:$4 sm:$0xff]   ;;  %v11761_v34 = vpack.c.bf16 %v918_v30, %v917_v29  ;;  %v920_v40 = vld [vmem:[#allocation2 + $0x178] sm:$0xff]  ;;  %v11779_v45 = vpack.c.bf16 %v888_v38, %v887_v37 }
 0x125   : > { %14505 = vst [vmem:[#allocation41_spill] sm:$0xff] %v11759_v33  ;;  %v10570_v35 = vld [vmem:[%s14327_s3 + $0xe0] ss:$16 sps:$4 sm:$0xff]   ;;  %v10575_v36 = vld [vmem:[%s14327_s3 + $0x104] ss:$16 sps:$4 sm:$0xff]   ;;  %v890_v50 = vld [vmem:[#allocation2 + $0x88] sm:$0xff] }
 0x126   : > { %1549 = vmatpush1.bf16.msra.mxu1 %v10555_v15  ;;  %14506 = vst [vmem:[#allocation42_spill] sm:$0xff] %v11761_v34  ;;  %v919_v39 = vld [vmem:[#allocation2 + $0x170] sm:$0xff]  ;;  %14507 = vst [vmem:[#allocation43_spill] sm:$0xff] %v11779_v45  ;;  %v889_v49 = vld [vmem:[#allocation2 + $0x80] sm:$0xff] }
 0x127   : > { %1550 = vmatprep.subr.bf16.mxu1 %v10560_v22  ;;  %3074 = vmatpush1.bf16.msra.mxu0 %v10564_v23  ;;  %v10573_v41 = vld [vmem:[%s14327_s3 + $0x100] ss:$16 sps:$4 sm:$0xff]   ;;  %v10578_v42 = vld [vmem:[%s14327_s3 + $0x124] ss:$16 sps:$4 sm:$0xff]   ;;  %v11781_v46 = vpack.c.bf16 %v920_v40, %v919_v39  ;;  %v922_v52 = vld [vmem:[#allocation2 + $0x188] sm:$0xff]  ;;  %v11799_v55 = vpack.c.bf16 %v890_v50, %v889_v49 }
 0x128   : > { %1256 = vmatmul.mubr.bf16.gmra.mrb[16].mxu0 %v11708_v61  ;;  %3075 = vmatprep.subr.bf16.mxu0 %v10569_v24  ;;  %v10576_v47 = vld [vmem:[%s14327_s3 + $0x120] ss:$16 sps:$4 sm:$0xff]   ;;  %v10581_v48 = vld [vmem:[%s14327_s3 + $0x144] ss:$16 sps:$4 sm:$0xff]   ;;  %v892_v1 = vld [vmem:[#allocation2 + $0x98] sm:$0xff] }
 0x129   : > { %1416 = vmatmul.mubr.bf16.gmra.mrb[16].mxu1 %v11710_v62  ;;  %1265 = vmatprep.mubr.bf16.mxu0 %v14365_v0  ;;  %14508 = vst [vmem:[#allocation44_spill] sm:$0xff] %v11781_v46  ;;  %v921_v51 = vld [vmem:[#allocation2 + $0x180] sm:$0xff]  ;;  %14509 = vst [vmem:[#allocation45_spill] sm:$0xff] %v11799_v55  ;;  %v891_v63 = vld [vmem:[#allocation2 + $0x90] sm:$0xff] }
 0x12a   : > { %1425 = vmatprep.mubr.bf16.mxu1 %v14365_v0  ;;  %1551 = vmatpush1.bf16.msra.mxu1 %v10558_v21  ;;  %v10579_v53 = vld [vmem:[%s14327_s3 + $0x140] ss:$16 sps:$4 sm:$0xff]   ;;  %v10584_v54 = vld [vmem:[%s14327_s3 + $0x164] ss:$16 sps:$4 sm:$0xff]   ;;  %v11801_v58 = vpack.c.bf16 %v922_v52, %v921_v51  ;;  %v924_v3 = vld [vmem:[#allocation2 + $0x198] sm:$0xff]  ;;  %v11819_v6 = vpack.c.bf16 %v892_v1, %v891_v63 }
 0x12b   : > { %3076 = vmatpush1.bf16.msra.mxu0 %v10567_v31  ;;  %v10582_v59 = vld [vmem:[%s14327_s3 + $0x160] ss:$16 sps:$4 sm:$0xff]   ;;  %v10587_v60 = vld [vmem:[%s14327_s3 + $0x184] ss:$16 sps:$4 sm:$0xff]   ;;  %v894_v10 = vld [vmem:[#allocation2 + $0xa8] sm:$0xff] }
 0x12c   : > { %3077 = vmatprep.subr.bf16.mxu0 %v10572_v32  ;;  %14510 = vst [vmem:[#allocation46_spill] sm:$0xff] %v11801_v58  ;;  %v923_v2 = vld [vmem:[#allocation2 + $0x190] sm:$0xff]  ;;  %14511 = vst [vmem:[#allocation47_spill] sm:$0xff] %v11819_v6  ;;  %v893_v9 = vld [vmem:[#allocation2 + $0xa0] sm:$0xff] }
 0x12d   : > { %v10585_v4 = vld [vmem:[%s14327_s3 + $0x180] ss:$16 sps:$4 sm:$0xff]   ;;  %v10590_v5 = vld [vmem:[%s14327_s3 + $0x1a4] ss:$16 sps:$4 sm:$0xff]   ;;  %v11821_v7 = vpack.c.bf16 %v924_v3, %v923_v2  ;;  %v926_v12 = vld [vmem:[#allocation2 + $0x1a8] sm:$0xff]  ;;  %v11836_v17 = vpack.c.bf16 %v894_v10, %v893_v9 }
 0x12e   : > { %v10588_v8 = vld [vmem:[%s14327_s3 + $0x1a0] ss:$16 sps:$4 sm:$0xff]   ;;  %v10593_v16 = vld [vmem:[%s14327_s3 + $0x1c4] ss:$16 sps:$4 sm:$0xff]   ;;  %v896_v22 = vld [vmem:[#allocation2 + $0xb8] sm:$0xff] }
 0x12f   : > { %3078 = vmatpush1.bf16.msra.mxu0 %v10570_v35  ;;  %14512 = vst [vmem:[#allocation48_spill] sm:$0xff] %v11821_v7  ;;  %v925_v11 = vld [vmem:[#allocation2 + $0x1a0] sm:$0xff]  ;;  %14513 = vst [vmem:[#allocation49_spill] sm:$0xff] %v11836_v17  ;;  %v895_v21 = vld [vmem:[#allocation2 + $0xb0] sm:$0xff] }
 0x130   : > { %1266 = vmatmul.mubr.bf16.gmra.mrb[20].mxu0 %v11736_v18  ;;  %3079 = vmatprep.subr.bf16.mxu0 %v10575_v36  ;;  %v10591_v15 = vld [vmem:[%s14327_s3 + $0x1c0] ss:$16 sps:$4 sm:$0xff]   ;;  %v11838_v20 = vpack.c.bf16 %v926_v12, %v925_v11  ;;  %v928_v24 = vld [vmem:[#allocation2 + $0x1b8] sm:$0xff]  ;;  %v11844_v27 = vpack.c.bf16 %v896_v22, %v895_v21  ;;  %v898_v30 = vld [vmem:[#allocation2 + $0xc8] sm:$0xff] }
 0x131   : > { %1426 = vmatmul.mubr.bf16.gmra.mrb[20].mxu1 %v11738_v19  ;;  %1275 = vmatprep.mubr.bf16.mxu0 %v14365_v0  ;;  %v927_v23 = vld [vmem:[#allocation2 + $0x1b0] sm:$0xff]  ;;  %v897_v29 = vld [vmem:[#allocation2 + $0xc0] sm:$0xff]  ;;  %v930_v32 = vld [vmem:[#allocation2 + $0x1c8] sm:$0xff] }
 0x132   : > { %1435 = vmatprep.mubr.bf16.mxu1 %v14365_v0  ;;  %14514 = vst [vmem:[#allocation50_spill] sm:$0xff] %v11838_v20  ;;  %14515 = vst [vmem:[#allocation51_spill] sm:$0xff] %v11844_v27  ;;  %v11846_v28 = vpack.c.bf16 %v928_v24, %v927_v23  ;;  %v929_v31 = vld [vmem:[#allocation2 + $0x1c0] sm:$0xff]  ;;  %v11858_v37 = vpack.c.bf16 %v898_v30, %v897_v29  ;;  %v899_v40 = vld [vmem:[#allocation2 + $0xd0] sm:$0xff]  ;;  %v1003_v23 = vlaneseq }
 0x133   : > { %3080 = vmatpush1.bf16.msra.mxu0 %v10573_v41  ;;  %v10596_v35 = vld [vmem:[%s14327_s3 + $0x1e4] ss:$16 sps:$4 sm:$0xff]   ;;  %v10594_v36 = vld [vmem:[%s14327_s3 + $0x1e0] ss:$16 sps:$4 sm:$0xff]   ;;  %v11860_v38 = vpack.c.bf16 %v930_v32, %v929_v31  ;;  %v900_v41 = vld [vmem:[#allocation2 + $0xd8] sm:$0xff] }
 0x134   : > { %3081 = vmatprep.subr.bf16.mxu0 %v10578_v42  ;;  %14516 = vst [vmem:[#allocation52_spill] sm:$0xff] %v11846_v28  ;;  %14517 = vst [vmem:[#allocation53_spill] sm:$0xff] %v11858_v37  ;;  %v10599_v39 = vld [vmem:[%s14327_s3 + $0x204] ss:$16 sps:$4 sm:$0xff]   ;;  %v902_v51 = vld [vmem:[#allocation2 + $0xe8] sm:$0xff]  ;;  %v11941_v24 = vshrl.u32 %v1003_v23, 7 }
 0x135   : > { %14518 = vst [vmem:[#allocation54_spill] sm:$0xff] %v11860_v38  ;;  %v931_v42 = vld [vmem:[#allocation2 + $0x1d0] sm:$0xff]  ;;  %v901_v50 = vld [vmem:[#allocation2 + $0xe0] sm:$0xff]  ;;  %v904_v63 = vld [vmem:[#allocation2 + $0xf8] sm:$0xff] }
 0x136   : > { %v933_v52 = vld [vmem:[#allocation2 + $0x1e0] sm:$0xff]  ;;  %v935_v1 = vld [vmem:[#allocation2 + $0x1f0] sm:$0xff]  ;;  %v936_v2 = vld [vmem:[#allocation2 + $0x1f8] sm:$0xff]  ;;  %14525 = vst [vmem:[#allocation61_spill] sm:$0xff] %v11941_v24  ;;  %v14364_v29 = vsub.s32 0, %v11941_v24  ;;  %v14363_v31 = vsub.s32 1, %v11941_v24 }
 0x137   : > { %3082 = vmatpush1.bf16.msra.mxu0 %v10576_v47  ;;  %v932_v47 = vld [vmem:[#allocation2 + $0x1d8] sm:$0xff]  ;;  %v1001_v30 = vld [vmem:[%s14526_s26] sm:$0xf] }
 0x138   : > { %1276 = vmatmul.mubr.bf16.gmra.mrb[24].mxu0 %v11759_v33  ;;  %3083 = vmatprep.subr.bf16.mxu0 %v10581_v48  ;;  %v11869_v48 = vpack.c.bf16 %v900_v41, %v899_v40  ;;  %v11871_v49 = vpack.c.bf16 %v932_v47, %v931_v42  ;;  %v10612_v9 = vld [vmem:[%s14327_s3 + $0x28] ss:$16 sps:$4 sm:$0xff]   ;;  %v10614_v10 = vld [vmem:[%s14327_s3 + $0x2c] ss:$16 sps:$4 sm:$0xff]  }
 0x139   : > { %1436 = vmatmul.mubr.bf16.gmra.mrb[24].mxu1 %v11761_v34  ;;  %1285 = vmatprep.mubr.bf16.mxu0 %v14365_v0  ;;  %v10618_v11 = vld [vmem:[%s14327_s3 + $0x48] ss:$16 sps:$4 sm:$0xff]   ;;  %v10620_v12 = vld [vmem:[%s14327_s3 + $0x4c] ss:$16 sps:$4 sm:$0xff]  }
 0x13a   : > { %1445 = vmatprep.mubr.bf16.mxu1 %v14365_v0  ;;  %14519 = vst [vmem:[#allocation55_spill] sm:$0xff] %v11869_v48  ;;  %14520 = vst [vmem:[#allocation56_spill] sm:$0xff] %v11871_v49  ;;  %v10630_v21 = vld [vmem:[%s14327_s3 + $0x88] ss:$16 sps:$4 sm:$0xff]   ;;  %v10632_v22 = vld [vmem:[%s14327_s3 + $0x8c] ss:$16 sps:$4 sm:$0xff]  }
 0x13b   : > { %3084 = vmatpush1.bf16.msra.mxu0 %v10579_v53  ;;  %v934_v53 = vld [vmem:[#allocation2 + $0x1e8] sm:$0xff] }
 0x13c   : > { %3085 = vmatprep.subr.bf16.mxu0 %v10584_v54  ;;  %v11877_v54 = vpack.c.bf16 %v902_v51, %v901_v50  ;;  %v10636_v32 = vld [vmem:[%s14327_s3 + $0xa8] ss:$16 sps:$4 sm:$0xff]   ;;  %v10644_v23 = vld [vmem:[%s14327_s3 + $0xec] ss:$16 sps:$4 sm:$0xff]  }
 0x13e   : > { %14521 = vst [vmem:[#allocation57_spill] sm:$0xff] %v11877_v54 }
 0x13f   : > { %3086 = vmatpush1.bf16.msra.mxu0 %v10582_v59  ;;  %v11879_v59 = vpack.c.bf16 %v934_v53, %v933_v52 }
 0x140   : > { %1286 = vmatmul.mubr.bf16.gmra.mrb[28].mxu0 %v11779_v45  ;;  %3087 = vmatprep.subr.bf16.mxu0 %v10587_v60  ;;  %v903_v60 = vld [vmem:[#allocation2 + $0xf0] sm:$0xff] }
 0x141   : > { %1446 = vmatmul.mubr.bf16.gmra.mrb[28].mxu1 %v11781_v46  ;;  %1295 = vmatprep.mubr.bf16.mxu0 %v14365_v0  ;;  %14522 = vst [vmem:[#allocation58_spill] sm:$0xff] %v11879_v59  ;;  %v11885_v3 = vpack.c.bf16 %v904_v63, %v903_v60 }
 0x142   : > { %1455 = vmatprep.mubr.bf16.mxu1 %v14365_v0 }
 0x143   : > { %3088 = vmatpush1.bf16.msra.mxu0 %v10585_v4  ;;  %14523 = vst [vmem:[#allocation59_spill] sm:$0xff] %v11885_v3  ;;  %v11887_v4 = vpack.c.bf16 %v936_v2, %v935_v1 }
 0x144   : > { %3089 = vmatprep.subr.bf16.mxu0 %v10590_v5  ;;  %v10606_v5 = vld [vmem:[%s14327_s3 + $0x8] ss:$16 sps:$4 sm:$0xff]  }
 0x145   : > { %14524 = vst [vmem:[#allocation60_spill] sm:$0xff] %v11887_v4 }
 0x147   : > { %3090 = vmatpush1.bf16.msra.mxu0 %v10588_v8  ;;  %v10608_v8 = vld [vmem:[%s14327_s3 + $0xc] ss:$16 sps:$4 sm:$0xff]  }
 0x148   : > { %1296 = vmatmul.mubr.bf16.gmra.mrb[32].mxu0 %v11799_v55  ;;  %3091 = vmatprep.subr.bf16.mxu0 %v10593_v16  ;;  %v10626_v16 = vld [vmem:[%s14327_s3 + $0x6c] ss:$16 sps:$4 sm:$0xff]  }
 0x149   : > { %1456 = vmatmul.mubr.bf16.gmra.mrb[32].mxu1 %v11801_v58  ;;  %1305 = vmatprep.mubr.bf16.mxu0 %v14365_v0 }
 0x14a   : > { %1465 = vmatprep.mubr.bf16.mxu1 %v14365_v0  ;;  %3769 = vmatprep.subr.bf16.mxu1 %v10608_v8 }
 0x14b   : > { %3092 = vmatpush1.bf16.msra.mxu0 %v10591_v15  ;;  %v10624_v15 = vld [vmem:[%s14327_s3 + $0x68] ss:$16 sps:$4 sm:$0xff]  }
 0x14c   : > { %3093 = vmatprep.subr.bf16.mxu0 %v10596_v35  ;;  %v10638_v35 = vld [vmem:[%s14327_s3 + $0xac] ss:$16 sps:$4 sm:$0xff]  }
 0x14f   : > { %3094 = vmatpush1.bf16.msra.mxu0 %v10594_v36  ;;  %v11958_v36 = vrot.slane %v1001_v30, %v14364_v29 }
 0x150   : > { %1306 = vmatmul.mubr.bf16.gmra.mrb[36].mxu0 %v11819_v6  ;;  %3416 = vmatprep.subr.bf16.mxu0 %v10599_v39  ;;  %v11962_v39 = vrot.slane %v1001_v30, %v14363_v31 }
 0x151   : > { %1466 = vmatmul.mubr.bf16.gmra.mrb[36].mxu1 %v11821_v7  ;;  %1315 = vmatprep.mubr.bf16.mxu0 %v14365_v0 }
 0x152   : > { %1475 = vmatprep.mubr.bf16.mxu1 %v14365_v0 }
 0x158   : > { %1316 = vmatmul.mubr.bf16.gmra.mrb[40].mxu0 %v11836_v17 }
 0x159   : > { %1476 = vmatmul.mubr.bf16.gmra.mrb[40].mxu1 %v11838_v20  ;;  %1325 = vmatprep.mubr.bf16.mxu0 %v14365_v0 }
 0x15a   : > { %1485 = vmatprep.mubr.bf16.mxu1 %v14365_v0 }
 0x160   : > { %1326 = vmatmul.mubr.bf16.gmra.mrb[44].mxu0 %v11844_v27 }
 0x161   : > { %1486 = vmatmul.mubr.bf16.gmra.mrb[44].mxu1 %v11846_v28  ;;  %1335 = vmatprep.mubr.bf16.mxu0 %v14365_v0 }
 0x162   : > { %1495 = vmatprep.mubr.bf16.mxu1 %v14365_v0 }
 0x168   : > { %1336 = vmatmul.mubr.bf16.gmra.mrb[48].mxu0 %v11858_v37 }
 0x169   : > { %1496 = vmatmul.mubr.bf16.gmra.mrb[48].mxu1 %v11860_v38  ;;  %1345 = vmatprep.mubr.bf16.mxu0 %v14365_v0 }
 0x16a   : > { %1505 = vmatprep.mubr.bf16.mxu1 %v14365_v0 }
 0x170   : > { %1346 = vmatmul.mubr.bf16.gmra.mrb[52].mxu0 %v11869_v48 }
 0x171   : > { %1506 = vmatmul.mubr.bf16.gmra.mrb[52].mxu1 %v11871_v49  ;;  %1355 = vmatprep.mubr.bf16.mxu0 %v14365_v0 }
 0x172   : > { %1515 = vmatprep.mubr.bf16.mxu1 %v14365_v0 }
 0x178   : > { %1356 = vmatmul.mubr.bf16.gmra.mrb[56].mxu0 %v11877_v54 }
 0x179   : > { %1516 = vmatmul.mubr.bf16.gmra.mrb[56].mxu1 %v11879_v59  ;;  %1365 = vmatprep.mubr.bf16.mxu0 %v14365_v0 }
 0x17a   : > { %1525 = vmatprep.mubr.bf16.mxu1 %v14365_v0 }
 0x180   : > { %1366 = vmatmul.mubr.bf16.gmra.mrb[60].mxu0 %v11885_v3 }
 0x181   : > { %1526 = vmatmul.mubr.bf16.gmra.mrb[60].mxu1 %v11887_v4 }
 0x182   : > { %1568 = vmatprep.mubr.bf16.mxu1 %v14365_v0 }
 0x189   : > { %1569 = vmatmul.mubr.bf16.vlgmr.msra.gmra.mrb[64].mxu1 %v11603_v56 }
 0x18a   : > { %1578 = vmatprep.mubr.bf16.mxu1 %v14365_v0  ;;  %3770 = vmatpush1.bf16.msra.mxu1 %v10606_v5 }
 0x18b   : > { %3771 = vmatprep.subr.bf16.mxu1 %v10614_v10 }
 0x18e   : > { %3772 = vmatpush1.bf16.msra.mxu1 %v10612_v9  ;;  %v10641_v9 = vld [vmem:[%s14327_s3 + $0xcc] ss:$16 sps:$4 sm:$0xff]  }
 0x18f   : > { %3773 = vmatprep.subr.bf16.mxu1 %v10620_v12 }
 0x191   : > { %1579 = vmatmul.mubr.bf16.gmra.mrb[68].mxu1 %v11642_v13 }
 0x192   : > { %1588 = vmatprep.mubr.bf16.mxu1 %v14365_v0  ;;  %3774 = vmatpush1.bf16.msra.mxu1 %v10618_v11 }
 0x193   : > { %3775 = vmatprep.subr.bf16.mxu1 %v10626_v16 }
 0x196   : > { %3776 = vmatpush1.bf16.msra.mxu1 %v10624_v15  ;;  %v10639_v15 = vld [vmem:[%s14327_s3 + $0xc8] ss:$16 sps:$4 sm:$0xff]  }
 0x197   : > { %3777 = vmatprep.subr.bf16.mxu1 %v10632_v22 }
 0x199   : > { %1589 = vmatmul.mubr.bf16.gmra.mrb[72].mxu1 %v11663_v25 }
 0x19a   : > { %1598 = vmatprep.mubr.bf16.mxu1 %v14365_v0  ;;  %3778 = vmatpush1.bf16.msra.mxu1 %v10630_v21 }
 0x19b   : > { %3779 = vmatprep.subr.bf16.mxu1 %v10638_v35 }
 0x19e   : > { %3780 = vmatpush1.bf16.msra.mxu1 %v10636_v32 }
 0x19f   : > { %3781 = vmatprep.subr.bf16.mxu1 %v10641_v9 }
 0x1a1   : > { %1599 = vmatmul.mubr.bf16.gmra.mrb[76].mxu1 %v11686_v43 }
 0x1a2   : > { %1608 = vmatprep.mubr.bf16.mxu1 %v14365_v0  ;;  %3782 = vmatpush1.bf16.msra.mxu1 %v10639_v15 }
 0x1a3   : > { %3783 = vmatprep.subr.bf16.mxu1 %v10644_v23 }
 0x1a9   : > { %1609 = vmatmul.mubr.bf16.gmra.mrb[80].mxu1 %v11708_v61 }
 0x1aa   : > { %1618 = vmatprep.mubr.bf16.mxu1 %v14365_v0 }
 0x1b1   : > { %1619 = vmatmul.mubr.bf16.gmra.mrb[84].mxu1 %v11736_v18 }
 0x1b2   : > { %1628 = vmatprep.mubr.bf16.mxu1 %v14365_v0 }
 0x1b9   : > { %1629 = vmatmul.mubr.bf16.gmra.mrb[88].mxu1 %v11759_v33 }
 0x1ba   : > { %1638 = vmatprep.mubr.bf16.mxu1 %v14365_v0 }
 0x1c1   : > { %1639 = vmatmul.mubr.bf16.gmra.mrb[92].mxu1 %v11779_v45 }
 0x1c2   : > { %1648 = vmatprep.mubr.bf16.mxu1 %v14365_v0 }
 0x1c9   : > { %1649 = vmatmul.mubr.bf16.gmra.mrb[96].mxu1 %v11799_v55 }
 0x1ca   : > { %1658 = vmatprep.mubr.bf16.mxu1 %v14365_v0 }
 0x1d1   : > { %1659 = vmatmul.mubr.bf16.gmra.mrb[100].mxu1 %v11819_v6 }
 0x1d2   : > { %1668 = vmatprep.mubr.bf16.mxu1 %v14365_v0 }
 0x1d9   : > { %1669 = vmatmul.mubr.bf16.gmra.mrb[104].mxu1 %v11836_v17 }
 0x1da   : > { %1678 = vmatprep.mubr.bf16.mxu1 %v14365_v0 }
 0x1db   : > { %v1217_v40 = vpop.f32.mrb[0].mxu0 }
 0x1dc   : > { %v1377_v41 = vpop.f32.mrb[0].mxu1  ;;  %v1218_v42 = vadd.f32 %v1217_v40, %v11958_v36  ;;  %v1219_v47 = vpop.f32.mrb[1].mxu0 }
 0x1dd   : > { %v1378_v50 = vadd.f32 %v1377_v41, %v11958_v36  ;;  %v1379_v51 = vpop.f32.mrb[1].mxu1  ;;  %v1220_v52 = vadd.f32 %v1219_v47, %v11962_v39  ;;  %v1221_v53 = vpop.f32.mrb[2].mxu0  ;;  %v10642_v41 = vld [vmem:[%s14327_s3 + $0xe8] ss:$16 sps:$4 sm:$0xff]  }
 0x1de   : > { %v1380_v60 = vadd.f32 %v1379_v51, %v11962_v39  ;;  %v1381_v63 = vpop.f32.mrb[2].mxu1  ;;  %v1222_v1 = vadd.f32 %v1221_v53, %v11958_v36  ;;  %v1223_v2 = vpop.f32.mrb[3].mxu0  ;;  %v1889_v21 = vmax.f32 %v1218_v42, 0.0  ;;  %3784 = vmatpush1.bf16.msra.mxu1 %v10642_v41 }
 0x1df   : > { %v1382_v5 = vadd.f32 %v1381_v63, %v11958_v36  ;;  %v1383_v8 = vpop.f32.mrb[3].mxu1  ;;  %v2017_v10 = vmax.f32 %v1378_v50, 0.0  ;;  %v1224_v11 = vadd.f32 %v1223_v2, %v11962_v39  ;;  %v1890_v32 = vmax.f32 %v1220_v52, 0.0  ;;  %v10597_v52 = vld [vmem:[%s14327_s3 + $0x200] ss:$16 sps:$4 sm:$0xff]  }
 0x1e0   : > { %v1384_v12 = vadd.f32 %v1383_v8, %v11962_v39  ;;  %v2018_v16 = vmax.f32 %v1380_v60, 0.0  ;;  %v1893_v22 = vmax.f32 %v1222_v1, 0.0  ;;  %v10602_v2 = vld [vmem:[%s14327_s3 + $0x224] ss:$16 sps:$4 sm:$0xff]  }
 0x1e1   : > { %1679 = vmatmul.mubr.bf16.gmra.mrb[108].mxu1 %v11844_v27  ;;  %v2021_v30 = vmax.f32 %v1382_v5, 0.0  ;;  %v1894_v35 = vmax.f32 %v1224_v11, 0.0  ;;  %v10600_v11 = vld [vmem:[%s14327_s3 + $0x220] ss:$16 sps:$4 sm:$0xff]  }
 0x1e2   : > { %1688 = vmatprep.mubr.bf16.mxu1 %v14365_v0  ;;  %v2022_v40 = vmax.f32 %v1384_v12, 0.0  ;;  %v11987_v42 = vpack.c.bf16 %v1893_v22, %v1889_v21 }
 0x1e3   : > { %v11989_v47 = vpack.c.bf16 %v2021_v30, %v2017_v10  ;;  %v1227_v50 = vpop.f32.mrb[4].mxu0  ;;  %v11991_v51 = vpack.c.bf16 %v1894_v35, %v1890_v32  ;;  %v10650_v30 = vld [vmem:[%s14327_s3 + $0x10c] ss:$16 sps:$4 sm:$0xff]  }
 0x1e4   : > { %v1387_v53 = vpop.f32.mrb[4].mxu1  ;;  %v11996_v60 = vpack.c.bf16 %v2022_v40, %v2018_v16  ;;  %v1228_v63 = vadd.f32 %v1227_v50, %v11958_v36  ;;  %v1229_v1 = vpop.f32.mrb[5].mxu0  ;;  %v10605_v40 = vld [vmem:[%s14327_s3 + $0x244] ss:$16 sps:$4 sm:$0xff]   ;;  %v10648_v50 = vld [vmem:[%s14327_s3 + $0x108] ss:$16 sps:$4 sm:$0xff]   ;;  %3785 = vmatprep.subr.bf16.mxu1 %v10650_v30 }
 0x1e5   : > { %v1388_v5 = vadd.f32 %v1387_v53, %v11958_v36  ;;  %v1389_v8 = vpop.f32.mrb[5].mxu1  ;;  %v1230_v9 = vadd.f32 %v1229_v1, %v11962_v39  ;;  %v1231_v10 = vpop.f32.mrb[6].mxu0  ;;  %3095 = vmatprep.mubr.bf16.mxu0 %v11991_v51  ;;  %3786 = vmatpush1.bf16.msra.mxu1 %v10648_v50 }
 0x1e6   : > { %v1390_v12 = vadd.f32 %v1389_v8, %v11962_v39  ;;  %v1391_v15 = vpop.f32.mrb[6].mxu1  ;;  %v1232_v16 = vadd.f32 %v1231_v10, %v11958_v36  ;;  %v1233_v21 = vpop.f32.mrb[7].mxu0  ;;  %3096 = vmatmul.mubr.bf16.vlgmr.msra.gmra.mrb[64].mxu0 %v11987_v42  ;;  %v1897_v1 = vmax.f32 %v1228_v63, 0.0  ;;  %v10651_v63 = vld [vmem:[%s14327_s3 + $0x128] ss:$16 sps:$4 sm:$0xff]  }
 0x1e7   : > { %v1392_v22 = vadd.f32 %v1391_v15, %v11958_v36  ;;  %v1393_v23 = vpop.f32.mrb[7].mxu1  ;;  %v2025_v32 = vmax.f32 %v1388_v5, 0.0  ;;  %v1234_v35 = vadd.f32 %v1233_v21, %v11962_v39  ;;  %3417 = vmatpush1.bf16.msra.mxu0 %v10597_v52  ;;  %v10653_v52 = vld [vmem:[%s14327_s3 + $0x12c] ss:$16 sps:$4 sm:$0xff]   ;;  %v1898_v10 = vmax.f32 %v1230_v9, 0.0 }
 0x1e8   : > { %v1394_v41 = vadd.f32 %v1393_v23, %v11962_v39  ;;  %v2026_v53 = vmax.f32 %v1390_v12, 0.0  ;;  %v1901_v8 = vmax.f32 %v1232_v16, 0.0  ;;  %3418 = vmatprep.subr.bf16.mxu0 %v10602_v2  ;;  %v10603_v9 = vld [vmem:[%s14327_s3 + $0x240] ss:$16 sps:$4 sm:$0xff]   ;;  %3787 = vmatprep.subr.bf16.mxu1 %v10653_v52 }
 0x1e9   : > { %1689 = vmatmul.mubr.bf16.gmra.mrb[112].mxu1 %v11858_v37  ;;  %v2029_v5 = vmax.f32 %v1392_v22, 0.0  ;;  %v1902_v15 = vmax.f32 %v1234_v35, 0.0  ;;  %v14527_v37 = vmov 0  }
 0x1ea   : > { %1698 = vmatprep.mubr.bf16.mxu1 %v14365_v0  ;;  %v2030_v21 = vmax.f32 %v1394_v41, 0.0  ;;  %v12028_v23 = vpack.c.bf16 %v1901_v8, %v1897_v1  ;;  %3788 = vmatpush1.bf16.msra.mxu1 %v10651_v63 }
 0x1eb   : > { %v12033_v12 = vpack.c.bf16 %v2029_v5, %v2025_v32  ;;  %v1237_v2 = vpop.f32.mrb[8].mxu0  ;;  %v12035_v16 = vpack.c.bf16 %v1902_v15, %v1898_v10  ;;  %3419 = vmatpush1.bf16.msra.mxu0 %v10600_v11  ;;  %v10611_v32 = vld [vmem:[%s14327_s3 + $0x264] ss:$16 sps:$4 sm:$0xff]  }
 0x1ec   : > { %v1397_v22 = vpop.f32.mrb[8].mxu1  ;;  %v12040_v30 = vpack.c.bf16 %v2030_v21, %v2026_v53  ;;  %v1238_v35 = vadd.f32 %v1237_v2, %v11958_v36  ;;  %v1239_v41 = vpop.f32.mrb[9].mxu0  ;;  %3420 = vmatprep.subr.bf16.mxu0 %v10605_v40  ;;  %v10609_v53 = vld [vmem:[%s14327_s3 + $0x260] ss:$16 sps:$4 sm:$0xff]   ;;  %v10656_v2 = vld [vmem:[%s14327_s3 + $0x14c] ss:$16 sps:$4 sm:$0xff]  }
 0x1ed   : > { %v1398_v50 = vadd.f32 %v1397_v22, %v11958_v36  ;;  %v1399_v1 = vpop.f32.mrb[9].mxu1  ;;  %v1240_v11 = vadd.f32 %v1239_v41, %v11962_v39  ;;  %v1241_v8 = vpop.f32.mrb[10].mxu0  ;;  %3105 = vmatprep.mubr.bf16.mxu0 %v12035_v16  ;;  %3789 = vmatprep.subr.bf16.mxu1 %v10656_v2 }
 0x1ee   : > { %v1400_v52 = vadd.f32 %v1399_v1, %v11962_v39  ;;  %v1401_v5 = vpop.f32.mrb[10].mxu1  ;;  %v1242_v40 = vadd.f32 %v1241_v8, %v11958_v36  ;;  %v1243_v10 = vpop.f32.mrb[11].mxu0  ;;  %3106 = vmatmul.mubr.bf16.gmra.mrb[68].mxu0 %v12028_v23  ;;  %v10617_v1 = vld [vmem:[%s14327_s3 + $0x284] ss:$16 sps:$4 sm:$0xff]   ;;  %v1905_v63 = vmax.f32 %v1238_v35, 0.0 }
 0x1ef   : > { %v1402_v15 = vadd.f32 %v1401_v5, %v11958_v36  ;;  %v1403_v21 = vpop.f32.mrb[11].mxu1  ;;  %v2033_v22 = vmax.f32 %v1398_v50, 0.0  ;;  %v1244_v41 = vadd.f32 %v1243_v10, %v11962_v39  ;;  %3421 = vmatpush1.bf16.msra.mxu0 %v10603_v9  ;;  %v10654_v5 = vld [vmem:[%s14327_s3 + $0x148] ss:$16 sps:$4 sm:$0xff]   ;;  %v10659_v9 = vld [vmem:[%s14327_s3 + $0x16c] ss:$16 sps:$4 sm:$0xff]  }
 0x1f0   : > { %v1404_v8 = vadd.f32 %v1403_v21, %v11962_v39  ;;  %v2034_v31 = vmax.f32 %v1400_v52, 0.0  ;;  %v1909_v29 = vmax.f32 %v1242_v40, 0.0  ;;  %3422 = vmatprep.subr.bf16.mxu0 %v10611_v32  ;;  %v1906_v10 = vmax.f32 %v1240_v11, 0.0  ;;  %3790 = vmatpush1.bf16.msra.mxu1 %v10654_v5  ;;  %v10657_v35 = vld [vmem:[%s14327_s3 + $0x168] ss:$16 sps:$4 sm:$0xff]  }
 0x1f1   : > { %1699 = vmatmul.mubr.bf16.gmra.mrb[116].mxu1 %v11869_v48  ;;  %v2037_v50 = vmax.f32 %v1402_v15, 0.0  ;;  %v1910_v0 = vmax.f32 %v1244_v41, 0.0  ;;  %v10615_v11 = vld [vmem:[%s14327_s3 + $0x280] ss:$16 sps:$4 sm:$0xff]   ;;  %3791 = vmatprep.subr.bf16.mxu1 %v10659_v9 }
 0x1f2   : > { %1708 = vmatprep.mubr.bf16.mxu1 %v14527_v37  ;;  %v2038_v21 = vmax.f32 %v1404_v8, 0.0  ;;  %v12072_v27 = vpack.c.bf16 %v1909_v29, %v1905_v63 }
 0x1f3   : > { %v12077_v52 = vpack.c.bf16 %v2037_v50, %v2033_v22  ;;  %v1247_v32 = vpop.f32.mrb[12].mxu0  ;;  %v12079_v40 = vpack.c.bf16 %v1910_v0, %v1906_v10  ;;  %3423 = vmatpush1.bf16.msra.mxu0 %v10609_v53  ;;  %v10623_v22 = vld [vmem:[%s14327_s3 + $0x2a4] ss:$16 sps:$4 sm:$0xff]  }
 0x1f4   : > { %v1407_v15 = vpop.f32.mrb[12].mxu1  ;;  %v12084_v2 = vpack.c.bf16 %v2038_v21, %v2034_v31  ;;  %v1248_v29 = vadd.f32 %v1247_v32, %v11958_v36  ;;  %v1249_v41 = vpop.f32.mrb[13].mxu0  ;;  %3424 = vmatprep.subr.bf16.mxu0 %v10617_v1  ;;  %v10621_v31 = vld [vmem:[%s14327_s3 + $0x2a0] ss:$16 sps:$4 sm:$0xff]   ;;  %3792 = vmatpush1.bf16.msra.mxu1 %v10657_v35  ;;  %v10665_v32 = vld [vmem:[%s14327_s3 + $0x18c] ss:$16 sps:$4 sm:$0xff]  }
 0x1f5   : > { %v1408_v0 = vadd.f32 %v1407_v15, %v11958_v36  ;;  %v1409_v8 = vpop.f32.mrb[13].mxu1  ;;  %v1250_v53 = vadd.f32 %v1249_v41, %v11962_v39  ;;  %v1251_v5 = vpop.f32.mrb[14].mxu0  ;;  %3115 = vmatprep.mubr.bf16.mxu0 %v12079_v40  ;;  %3793 = vmatprep.subr.bf16.mxu1 %v10665_v32 }
 0x1f6   : > { %v1410_v63 = vadd.f32 %v1409_v8, %v11962_v39  ;;  %v1411_v9 = vpop.f32.mrb[14].mxu1  ;;  %v1252_v1 = vadd.f32 %v1251_v5, %v11958_v36  ;;  %v1253_v50 = vpop.f32.mrb[15].mxu0  ;;  %3116 = vmatmul.mubr.bf16.gmra.mrb[72].mxu0 %v12072_v27  ;;  %v10629_v8 = vld [vmem:[%s14327_s3 + $0x2c4] ss:$16 sps:$4 sm:$0xff]   ;;  %v1913_v35 = vmax.f32 %v1248_v29, 0.0 }
 0x1f7   : > { %v1412_v10 = vadd.f32 %v1411_v9, %v11958_v36  ;;  %v1413_v21 = vpop.f32.mrb[15].mxu1  ;;  %v2041_v15 = vmax.f32 %v1408_v0, 0.0  ;;  %v1254_v41 = vadd.f32 %v1253_v50, %v11962_v39  ;;  %3425 = vmatpush1.bf16.msra.mxu0 %v10615_v11  ;;  %v10663_v9 = vld [vmem:[%s14327_s3 + $0x188] ss:$16 sps:$4 sm:$0xff]   ;;  %v10668_v11 = vld [vmem:[%s14327_s3 + $0x1ac] ss:$16 sps:$4 sm:$0xff]  }
 0x1f8   : > { %v1414_v5 = vadd.f32 %v1413_v21, %v11962_v39  ;;  %v2042_v48 = vmax.f32 %v1410_v63, 0.0  ;;  %v1917_v17 = vmax.f32 %v1252_v1, 0.0  ;;  %3426 = vmatprep.subr.bf16.mxu0 %v10623_v22  ;;  %v1914_v50 = vmax.f32 %v1250_v53, 0.0  ;;  %3794 = vmatpush1.bf16.msra.mxu1 %v10663_v9  ;;  %v10666_v29 = vld [vmem:[%s14327_s3 + $0x1a8] ss:$16 sps:$4 sm:$0xff]  }
 0x1f9   : > { %1709 = vmatmul.mubr.bf16.gmra.mrb[120].mxu1 %v11877_v54  ;;  %v2045_v0 = vmax.f32 %v1412_v10, 0.0  ;;  %v1918_v6 = vmax.f32 %v1254_v41, 0.0  ;;  %v10627_v53 = vld [vmem:[%s14327_s3 + $0x2c0] ss:$16 sps:$4 sm:$0xff]   ;;  %3795 = vmatprep.subr.bf16.mxu1 %v10668_v11 }
 0x1fa   : > { %1718 = vmatprep.mubr.bf16.mxu1 %v14527_v37  ;;  %v2046_v21 = vmax.f32 %v1414_v5, 0.0  ;;  %v12116_v55 = vpack.c.bf16 %v1917_v17, %v1913_v35 }
 0x1fb   : > { %v12121_v63 = vpack.c.bf16 %v2045_v0, %v2041_v15  ;;  %v1257_v22 = vpop.f32.mrb[16].mxu0  ;;  %v12123_v1 = vpack.c.bf16 %v1918_v6, %v1914_v50  ;;  %3427 = vmatpush1.bf16.msra.mxu0 %v10621_v31  ;;  %v10635_v15 = vld [vmem:[%s14327_s3 + $0x2e4] ss:$16 sps:$4 sm:$0xff]  }
 0x1fc   : > { %v1417_v10 = vpop.f32.mrb[16].mxu1  ;;  %v12128_v32 = vpack.c.bf16 %v2046_v21, %v2042_v48  ;;  %v1258_v17 = vadd.f32 %v1257_v22, %v11958_v36  ;;  %v1259_v41 = vpop.f32.mrb[17].mxu0  ;;  %3428 = vmatprep.subr.bf16.mxu0 %v10629_v8  ;;  %3796 = vmatpush1.bf16.msra.mxu1 %v10666_v29  ;;  %v10671_v21 = vld [vmem:[%s14327_s3 + $0x1cc] ss:$16 sps:$4 sm:$0xff]  }
 0x1fd   : > { %v1418_v6 = vadd.f32 %v1417_v10, %v11958_v36  ;;  %v1419_v5 = vpop.f32.mrb[17].mxu1  ;;  %v1260_v31 = vadd.f32 %v1259_v41, %v11962_v39  ;;  %v1261_v9 = vpop.f32.mrb[18].mxu0  ;;  %3125 = vmatprep.mubr.bf16.mxu0 %v12123_v1  ;;  %v10633_v41 = vld [vmem:[%s14327_s3 + $0x2e0] ss:$16 sps:$4 sm:$0xff]   ;;  %3797 = vmatprep.subr.bf16.mxu1 %v10671_v21 }
 0x1fe   : > { %14528 = vst [vmem:[#allocation62_spill] sm:$0xff] %v12128_v32  ;;  %v1420_v48 = vadd.f32 %v1419_v5, %v11962_v39  ;;  %v1421_v35 = vpop.f32.mrb[18].mxu1  ;;  %v1262_v11 = vadd.f32 %v1261_v9, %v11958_v36  ;;  %v1263_v0 = vpop.f32.mrb[19].mxu0  ;;  %3126 = vmatmul.mubr.bf16.gmra.mrb[76].mxu0 %v12116_v55  ;;  %v10669_v9 = vld [vmem:[%s14327_s3 + $0x1c8] ss:$16 sps:$4 sm:$0xff]   ;;  %v1921_v29 = vmax.f32 %v1258_v17, 0.0 }
 0x1ff   : > { %v1422_v8 = vadd.f32 %v1421_v35, %v11958_v36  ;;  %v1423_v50 = vpop.f32.mrb[19].mxu1  ;;  %v2049_v22 = vmax.f32 %v1418_v6, 0.0  ;;  %v1264_v10 = vadd.f32 %v1263_v0, %v11962_v39  ;;  %3429 = vmatpush1.bf16.msra.mxu0 %v10627_v53  ;;  %v10647_v53 = vld [vmem:[%s14327_s3 + $0x304] ss:$16 sps:$4 sm:$0xff]   ;;  %v1922_v0 = vmax.f32 %v1260_v31, 0.0 }
 0x200   : > { %v1424_v5 = vadd.f32 %v1423_v50, %v11962_v39  ;;  %v2050_v35 = vmax.f32 %v1420_v48, 0.0  ;;  %v1925_v54 = vmax.f32 %v1262_v11, 0.0  ;;  %3430 = vmatprep.subr.bf16.mxu0 %v10635_v15  ;;  %v10674_v48 = vld [vmem:[%s14327_s3 + $0x1ec] ss:$16 sps:$4 sm:$0xff]   ;;  %3798 = vmatpush1.bf16.msra.mxu1 %v10669_v9  ;;  %v10672_v17 = vld [vmem:[%s14327_s3 + $0x1e8] ss:$16 sps:$4 sm:$0xff]  }
 0x201   : > { %1719 = vmatmul.mubr.bf16.gmra.mrb[124].mxu1 %v11885_v3  ;;  %v2053_v6 = vmax.f32 %v1422_v8, 0.0  ;;  %v1926_v45 = vmax.f32 %v1264_v10, 0.0  ;;  %v10645_v8 = vld [vmem:[%s14327_s3 + $0x300] ss:$16 sps:$4 sm:$0xff]   ;;  %3799 = vmatprep.subr.bf16.mxu1 %v10674_v48 }
 0x202   : > { %1728 = vmatprep.mubr.bf16.mxu1 %v14527_v37  ;;  %v2054_v50 = vmax.f32 %v1424_v5, 0.0  ;;  %v12160_v33 = vpack.c.bf16 %v1925_v54, %v1921_v29 }
 0x203   : > { %v12165_v15 = vpack.c.bf16 %v2053_v6, %v2049_v22  ;;  %v1267_v11 = vpop.f32.mrb[20].mxu0  ;;  %v12167_v31 = vpack.c.bf16 %v1926_v45, %v1922_v0  ;;  %3431 = vmatpush1.bf16.msra.mxu0 %v10633_v41  ;;  %v10662_v22 = vld [vmem:[%s14327_s3 + $0x324] ss:$16 sps:$4 sm:$0xff]  }
 0x204   : > { %14529 = vst [vmem:[#allocation63_spill] sm:$0xff] %v12160_v33  ;;  %v1427_v21 = vpop.f32.mrb[20].mxu1  ;;  %v12172_v10 = vpack.c.bf16 %v2054_v50, %v2050_v35  ;;  %v1268_v54 = vadd.f32 %v1267_v11, %v11958_v36  ;;  %v1269_v5 = vpop.f32.mrb[21].mxu0  ;;  %3432 = vmatprep.subr.bf16.mxu0 %v10647_v53  ;;  %3800 = vmatpush1.bf16.msra.mxu1 %v10672_v17  ;;  %v10677_v17 = vld [vmem:[%s14327_s3 + $0x344] ss:$16 sps:$4 sm:$0xff]  }
 0x205   : > { %v1428_v45 = vadd.f32 %v1427_v21, %v11958_v36  ;;  %v1429_v9 = vpop.f32.mrb[21].mxu1  ;;  %v1270_v41 = vadd.f32 %v1269_v5, %v11962_v39  ;;  %v1271_v29 = vpop.f32.mrb[22].mxu0  ;;  %3135 = vmatprep.mubr.bf16.mxu0 %v12167_v31  ;;  %v10660_v5 = vld [vmem:[%s14327_s3 + $0x320] ss:$16 sps:$4 sm:$0xff]  }
 0x206   : > { %14530 = vst [vmem:[#allocation64_spill] sm:$0xff] %v12172_v10  ;;  %v1430_v35 = vadd.f32 %v1429_v9, %v11962_v39  ;;  %v1431_v6 = vpop.f32.mrb[22].mxu1  ;;  %v1272_v0 = vadd.f32 %v1271_v29, %v11958_v36  ;;  %v1273_v50 = vpop.f32.mrb[23].mxu0  ;;  %3136 = vmatmul.mubr.bf16.gmra.mrb[80].mxu0 %v12160_v33  ;;  %v1929_v29 = vmax.f32 %v1268_v54, 0.0  ;;  %v10675_v54 = vld [vmem:[%s14327_s3 + $0x340] ss:$16 sps:$4 sm:$0xff]  }
 0x207   : > { %v1432_v53 = vadd.f32 %v1431_v6, %v11958_v36  ;;  %v1433_v48 = vpop.f32.mrb[23].mxu1  ;;  %v2057_v11 = vmax.f32 %v1428_v45, 0.0  ;;  %v1274_v21 = vadd.f32 %v1273_v50, %v11962_v39  ;;  %3433 = vmatpush1.bf16.msra.mxu0 %v10645_v8  ;;  %v1930_v6 = vmax.f32 %v1270_v41, 0.0 }
 0x208   : > { %v1434_v9 = vadd.f32 %v1433_v48, %v11962_v39  ;;  %v2058_v3 = vmax.f32 %v1430_v35, 0.0  ;;  %v1933_v18 = vmax.f32 %v1272_v0, 0.0  ;;  %3434 = vmatprep.subr.bf16.mxu0 %v10662_v22 }
 0x209   : > { %1729 = vmatmul.mubr.bf16.gmra.mrb[128].mxu1 %v11605_v57  ;;  %v2061_v45 = vmax.f32 %v1432_v53, 0.0  ;;  %v1934_v50 = vmax.f32 %v1274_v21, 0.0 }
 0x20a   : > { %1738 = vmatprep.mubr.bf16.mxu1 %v14527_v37  ;;  %v2062_v8 = vmax.f32 %v1434_v9, 0.0  ;;  %v12195_v61 = vpack.c.bf16 %v1933_v18, %v1929_v29 }
 0x20b   : > { %v12197_v43 = vpack.c.bf16 %v2061_v45, %v2057_v11  ;;  %v1277_v35 = vpop.f32.mrb[24].mxu0  ;;  %v12199_v48 = vpack.c.bf16 %v1934_v50, %v1930_v6  ;;  %3435 = vmatpush1.bf16.msra.mxu0 %v10660_v5 }
 0x20c   : > { %14531 = vst [vmem:[#allocation65_spill] sm:$0xff] %v12195_v61  ;;  %v1437_v22 = vpop.f32.mrb[24].mxu1  ;;  %v12204_v0 = vpack.c.bf16 %v2062_v8, %v2058_v3  ;;  %v1278_v41 = vadd.f32 %v1277_v35, %v11958_v36  ;;  %v1279_v53 = vpop.f32.mrb[25].mxu0  ;;  %3436 = vmatprep.subr.bf16.mxu0 %v10677_v17 }
 0x20d   : > { %14532 = vst [vmem:[#allocation66_spill] sm:$0xff] %v12199_v48  ;;  %v1438_v18 = vadd.f32 %v1437_v22, %v11958_v36  ;;  %v1439_v21 = vpop.f32.mrb[25].mxu1  ;;  %v1280_v11 = vadd.f32 %v1279_v53, %v11962_v39  ;;  %v1281_v9 = vpop.f32.mrb[26].mxu0  ;;  %3145 = vmatprep.mubr.bf16.mxu0 %v12199_v48 }
 0x20e   : > { %v1440_v5 = vadd.f32 %v1439_v21, %v11962_v39  ;;  %v1441_v29 = vpop.f32.mrb[26].mxu1  ;;  %v1282_v45 = vadd.f32 %v1281_v9, %v11958_v36  ;;  %v1283_v6 = vpop.f32.mrb[27].mxu0  ;;  %3146 = vmatmul.mubr.bf16.gmra.mrb[84].mxu0 %v12195_v61  ;;  %v1937_v21 = vmax.f32 %v1278_v41, 0.0 }
 0x20f   : > { %v1442_v3 = vadd.f32 %v1441_v29, %v11958_v36  ;;  %v1443_v50 = vpop.f32.mrb[27].mxu1  ;;  %v2065_v17 = vmax.f32 %v1438_v18, 0.0  ;;  %v1284_v8 = vadd.f32 %v1283_v6, %v11962_v39  ;;  %3437 = vmatpush1.bf16.msra.mxu0 %v10675_v54  ;;  %v1938_v53 = vmax.f32 %v1280_v11, 0.0  ;;  %v10678_v18 = vld [vmem:[%s14327_s3 + $0x360] ss:$16 sps:$4 sm:$0xff]  }
 0x210   : > { %v1444_v35 = vadd.f32 %v1443_v50, %v11962_v39  ;;  %v2066_v22 = vmax.f32 %v1440_v5, 0.0  ;;  %v1941_v57 = vmax.f32 %v1282_v45, 0.0  ;;  %v10680_v54 = vld [vmem:[%s14327_s3 + $0x364] ss:$16 sps:$4 sm:$0xff]  }
 0x211   : > { %1739 = vmatmul.mubr.bf16.gmra.mrb[132].mxu1 %v11644_v14  ;;  %v2069_v25 = vmax.f32 %v1442_v3, 0.0  ;;  %v1942_v9 = vmax.f32 %v1284_v8, 0.0  ;;  %3438 = vmatprep.subr.bf16.mxu0 %v10680_v54 }
 0x212   : > { %1748 = vmatprep.mubr.bf16.mxu1 %v14527_v37  ;;  %v2070_v13 = vmax.f32 %v1444_v35, 0.0  ;;  %v12224_v29 = vpack.c.bf16 %v1941_v57, %v1937_v21 }
 0x213   : > { %v12226_v5 = vpack.c.bf16 %v2069_v25, %v2065_v17  ;;  %v1287_v11 = vpop.f32.mrb[28].mxu0  ;;  %v12228_v41 = vpack.c.bf16 %v1942_v9, %v1938_v53  ;;  %3439 = vmatpush1.bf16.msra.mxu0 %v10678_v18 }
 0x214   : > { %14533 = vst [vmem:[#allocation67_spill] sm:$0xff] %v12224_v29  ;;  %v1447_v45 = vpop.f32.mrb[28].mxu1  ;;  %v12230_v6 = vpack.c.bf16 %v2070_v13, %v2066_v22  ;;  %v1288_v3 = vadd.f32 %v1287_v11, %v11958_v36  ;;  %v1289_v50 = vpop.f32.mrb[29].mxu0 }
 0x215   : > { %14534 = vst [vmem:[#allocation68_spill] sm:$0xff] %v12228_v41  ;;  %v1448_v8 = vadd.f32 %v1447_v45, %v11958_v36  ;;  %v1449_v35 = vpop.f32.mrb[29].mxu1  ;;  %v1290_v14 = vadd.f32 %v1289_v50, %v11962_v39  ;;  %v1291_v57 = vpop.f32.mrb[30].mxu0  ;;  %3155 = vmatprep.mubr.bf16.mxu0 %v12228_v41 }
 0x216   : > { %v1450_v25 = vadd.f32 %v1449_v35, %v11962_v39  ;;  %v1451_v17 = vpop.f32.mrb[30].mxu1  ;;  %v1292_v53 = vadd.f32 %v1291_v57, %v11958_v36  ;;  %v1293_v13 = vpop.f32.mrb[31].mxu0  ;;  %3156 = vmatmul.mubr.bf16.gmra.mrb[88].mxu0 %v12224_v29  ;;  %v1945_v45 = vmax.f32 %v1288_v3, 0.0 }
 0x217   : > { %v1452_v22 = vadd.f32 %v1451_v17, %v11958_v36  ;;  %v1453_v21 = vpop.f32.mrb[31].mxu1  ;;  %v2073_v9 = vmax.f32 %v1448_v8, 0.0  ;;  %v1294_v54 = vadd.f32 %v1293_v13, %v11962_v39  ;;  %v1946_v56 = vmax.f32 %v1290_v14, 0.0 }
 0x218   : > { %v1454_v18 = vadd.f32 %v1453_v21, %v11962_v39  ;;  %v2074_v11 = vmax.f32 %v1450_v25, 0.0  ;;  %v1949_v50 = vmax.f32 %v1292_v53, 0.0 }
 0x219   : > { %1749 = vmatmul.mubr.bf16.gmra.mrb[136].mxu1 %v11665_v26  ;;  %v2077_v35 = vmax.f32 %v1452_v22, 0.0  ;;  %v1950_v41 = vmax.f32 %v1294_v54, 0.0 }
 0x21a   : > { %1758 = vmatprep.mubr.bf16.mxu1 %v14527_v37  ;;  %v2078_v57 = vmax.f32 %v1454_v18, 0.0  ;;  %v12244_v29 = vpack.c.bf16 %v1949_v50, %v1945_v45 }
 0x21b   : > { %v12246_v17 = vpack.c.bf16 %v2077_v35, %v2073_v9  ;;  %v1297_v8 = vpop.f32.mrb[32].mxu0  ;;  %v12248_v61 = vpack.c.bf16 %v1950_v41, %v1946_v56 }
 0x21c   : > { %14535 = vst [vmem:[#allocation69_spill] sm:$0xff] %v12244_v29  ;;  %v1457_v13 = vpop.f32.mrb[32].mxu1  ;;  %v12250_v21 = vpack.c.bf16 %v2078_v57, %v2074_v11  ;;  %v1298_v25 = vadd.f32 %v1297_v8, %v11958_v36  ;;  %v1299_v3 = vpop.f32.mrb[33].mxu0 }
 0x21d   : > { %14536 = vst [vmem:[#allocation70_spill] sm:$0xff] %v12246_v17  ;;  %14537 = vst [vmem:[#allocation71_spill] sm:$0xff] %v12248_v61  ;;  %v1458_v53 = vadd.f32 %v1457_v13, %v11958_v36  ;;  %v1459_v14 = vpop.f32.mrb[33].mxu1  ;;  %v1300_v22 = vadd.f32 %v1299_v3, %v11962_v39  ;;  %v1301_v54 = vpop.f32.mrb[34].mxu0  ;;  %3165 = vmatprep.mubr.bf16.mxu0 %v12248_v61 }
 0x21e   : > { %v1460_v9 = vadd.f32 %v1459_v14, %v11962_v39  ;;  %v1461_v18 = vpop.f32.mrb[34].mxu1  ;;  %v1302_v56 = vadd.f32 %v1301_v54, %v11958_v36  ;;  %v1303_v41 = vpop.f32.mrb[35].mxu0  ;;  %3166 = vmatmul.mubr.bf16.gmra.mrb[92].mxu0 %v12244_v29  ;;  %v1953_v3 = vmax.f32 %v1298_v25, 0.0 }
 0x21f   : > { %v1462_v11 = vadd.f32 %v1461_v18, %v11958_v36  ;;  %v1463_v45 = vpop.f32.mrb[35].mxu1  ;;  %v2081_v50 = vmax.f32 %v1458_v53, 0.0  ;;  %v1304_v35 = vadd.f32 %v1303_v41, %v11962_v39  ;;  %v1954_v13 = vmax.f32 %v1300_v22, 0.0  ;;  %v10681_v18 = vld [vmem:[%s14327_s3 + $0x380] ss:$16 sps:$4 sm:$0xff]  }
 0x220   : > { %v1464_v57 = vadd.f32 %v1463_v45, %v11962_v39  ;;  %v2082_v8 = vmax.f32 %v1460_v9, 0.0  ;;  %v1957_v14 = vmax.f32 %v1302_v56, 0.0  ;;  %v10683_v53 = vld [vmem:[%s14327_s3 + $0x384] ss:$16 sps:$4 sm:$0xff]  }
 0x221   : > { %1759 = vmatmul.mubr.bf16.gmra.mrb[140].mxu1 %v11688_v44  ;;  %v2085_v26 = vmax.f32 %v1462_v11, 0.0  ;;  %v1958_v61 = vmax.f32 %v1304_v35, 0.0  ;;  %3440 = vmatprep.subr.bf16.mxu0 %v10683_v53 }
 0x222   : > { %1768 = vmatprep.mubr.bf16.mxu1 %v14527_v37  ;;  %v2086_v54 = vmax.f32 %v1464_v57, 0.0  ;;  %v12270_v41 = vpack.c.bf16 %v1957_v14, %v1953_v3  ;;  %3441 = vmatpush1.bf16.msra.mxu0 %v10681_v18 }
 0x223   : > { %v12272_v9 = vpack.c.bf16 %v2085_v26, %v2081_v50  ;;  %v1307_v22 = vpop.f32.mrb[36].mxu0  ;;  %v12274_v25 = vpack.c.bf16 %v1958_v61, %v1954_v13 }
 0x224   : > { %14538 = vst [vmem:[#allocation72_spill] sm:$0xff] %v12270_v41  ;;  %v1467_v56 = vpop.f32.mrb[36].mxu1  ;;  %v12276_v11 = vpack.c.bf16 %v2086_v54, %v2082_v8  ;;  %v1308_v45 = vadd.f32 %v1307_v22, %v11958_v36  ;;  %v1309_v35 = vpop.f32.mrb[37].mxu0 }
 0x225   : > { %14539 = vst [vmem:[#allocation73_spill] sm:$0xff] %v12272_v9  ;;  %14540 = vst [vmem:[#allocation74_spill] sm:$0xff] %v12274_v25  ;;  %v1468_v57 = vadd.f32 %v1467_v56, %v11958_v36  ;;  %v1469_v44 = vpop.f32.mrb[37].mxu1  ;;  %v1310_v29 = vadd.f32 %v1309_v35, %v11962_v39  ;;  %v1311_v3 = vpop.f32.mrb[38].mxu0  ;;  %3175 = vmatprep.mubr.bf16.mxu0 %v12274_v25 }
 0x226   : > { %14541 = vst [vmem:[#allocation75_spill] sm:$0xff] %v12276_v11  ;;  %v1470_v26 = vadd.f32 %v1469_v44, %v11962_v39  ;;  %v1471_v61 = vpop.f32.mrb[38].mxu1  ;;  %v1312_v50 = vadd.f32 %v1311_v3, %v11958_v36  ;;  %v1313_v8 = vpop.f32.mrb[39].mxu0  ;;  %3176 = vmatmul.mubr.bf16.gmra.mrb[96].mxu0 %v12270_v41  ;;  %v1961_v56 = vmax.f32 %v1308_v45, 0.0 }
 0x227   : > { %v1472_v13 = vadd.f32 %v1471_v61, %v11958_v36  ;;  %v1473_v14 = vpop.f32.mrb[39].mxu1  ;;  %v2089_v54 = vmax.f32 %v1468_v57, 0.0  ;;  %v1314_v53 = vadd.f32 %v1313_v8, %v11962_v39  ;;  %v1962_v25 = vmax.f32 %v1310_v29, 0.0 }
 0x228   : > { %v1474_v18 = vadd.f32 %v1473_v14, %v11962_v39  ;;  %v2090_v22 = vmax.f32 %v1470_v26, 0.0  ;;  %v1965_v35 = vmax.f32 %v1312_v50, 0.0 }
 0x229   : > { %1769 = vmatmul.mubr.bf16.gmra.mrb[144].mxu1 %v11710_v62  ;;  %v2093_v44 = vmax.f32 %v1472_v13, 0.0  ;;  %v1966_v48 = vmax.f32 %v1314_v53, 0.0 }
 0x22a   : > { %1778 = vmatprep.mubr.bf16.mxu1 %v14527_v37  ;;  %v2094_v3 = vmax.f32 %v1474_v18, 0.0  ;;  %v12290_v41 = vpack.c.bf16 %v1965_v35, %v1961_v56 }
 0x22b   : > { %v12292_v61 = vpack.c.bf16 %v2093_v44, %v2089_v54  ;;  %v1317_v57 = vpop.f32.mrb[40].mxu0  ;;  %v12294_v33 = vpack.c.bf16 %v1966_v48, %v1962_v25 }
 0x22c   : > { %14542 = vst [vmem:[#allocation76_spill] sm:$0xff] %v12290_v41  ;;  %v1477_v8 = vpop.f32.mrb[40].mxu1  ;;  %v12296_v14 = vpack.c.bf16 %v2094_v3, %v2090_v22  ;;  %v1318_v26 = vadd.f32 %v1317_v57, %v11958_v36  ;;  %v1319_v45 = vpop.f32.mrb[41].mxu0 }
 0x22d   : > { %14543 = vst [vmem:[#allocation77_spill] sm:$0xff] %v12292_v61  ;;  %14544 = vst [vmem:[#allocation78_spill] sm:$0xff] %v12294_v33  ;;  %v1478_v50 = vadd.f32 %v1477_v8, %v11958_v36  ;;  %v1479_v29 = vpop.f32.mrb[41].mxu1  ;;  %v1320_v13 = vadd.f32 %v1319_v45, %v11962_v39  ;;  %v1321_v53 = vpop.f32.mrb[42].mxu0  ;;  %3185 = vmatprep.mubr.bf16.mxu0 %v12294_v33 }
 0x22e   : > { %14545 = vst [vmem:[#allocation79_spill] sm:$0xff] %v12296_v14  ;;  %v1480_v54 = vadd.f32 %v1479_v29, %v11962_v39  ;;  %v1481_v18 = vpop.f32.mrb[42].mxu1  ;;  %v1322_v48 = vadd.f32 %v1321_v53, %v11958_v36  ;;  %v1323_v25 = vpop.f32.mrb[43].mxu0  ;;  %3186 = vmatmul.mubr.bf16.gmra.mrb[100].mxu0 %v12290_v41  ;;  %v1969_v45 = vmax.f32 %v1318_v26, 0.0 }
 0x22f   : > { %v1482_v22 = vadd.f32 %v1481_v18, %v11958_v36  ;;  %v1483_v56 = vpop.f32.mrb[43].mxu1  ;;  %v2097_v35 = vmax.f32 %v1478_v50, 0.0  ;;  %v1324_v44 = vadd.f32 %v1323_v25, %v11962_v39  ;;  %v1970_v8 = vmax.f32 %v1320_v13, 0.0  ;;  %v10684_v18 = vld [vmem:[%s14327_s3 + $0x3a0] ss:$16 sps:$4 sm:$0xff]  }
 0x230   : > { %v1484_v3 = vadd.f32 %v1483_v56, %v11962_v39  ;;  %v2098_v57 = vmax.f32 %v1480_v54, 0.0  ;;  %v1973_v29 = vmax.f32 %v1322_v48, 0.0  ;;  %v10686_v50 = vld [vmem:[%s14327_s3 + $0x3a4] ss:$16 sps:$4 sm:$0xff]  }
 0x231   : > { %1779 = vmatmul.mubr.bf16.gmra.mrb[148].mxu1 %v11738_v19  ;;  %v2101_v62 = vmax.f32 %v1482_v22, 0.0  ;;  %v1974_v33 = vmax.f32 %v1324_v44, 0.0  ;;  %3442 = vmatprep.subr.bf16.mxu0 %v10686_v50 }
 0x232   : > { %1788 = vmatprep.mubr.bf16.mxu1 %v14527_v37  ;;  %v2102_v53 = vmax.f32 %v1484_v3, 0.0  ;;  %v12316_v25 = vpack.c.bf16 %v1973_v29, %v1969_v45  ;;  %3443 = vmatpush1.bf16.msra.mxu0 %v10684_v18 }
 0x233   : > { %v12318_v54 = vpack.c.bf16 %v2101_v62, %v2097_v35  ;;  %v1327_v13 = vpop.f32.mrb[44].mxu0  ;;  %v12320_v26 = vpack.c.bf16 %v1974_v33, %v1970_v8 }
 0x234   : > { %14546 = vst [vmem:[#allocation80_spill] sm:$0xff] %v12316_v25  ;;  %v1487_v48 = vpop.f32.mrb[44].mxu1  ;;  %v12322_v22 = vpack.c.bf16 %v2102_v53, %v2098_v57  ;;  %v1328_v56 = vadd.f32 %v1327_v13, %v11958_v36  ;;  %v1329_v44 = vpop.f32.mrb[45].mxu0 }
 0x235   : > { %14547 = vst [vmem:[#allocation81_spill] sm:$0xff] %v12318_v54  ;;  %14548 = vst [vmem:[#allocation82_spill] sm:$0xff] %v12320_v26  ;;  %v1488_v3 = vadd.f32 %v1487_v48, %v11958_v36  ;;  %v1489_v19 = vpop.f32.mrb[45].mxu1  ;;  %v1330_v41 = vadd.f32 %v1329_v44, %v11962_v39  ;;  %v1331_v45 = vpop.f32.mrb[46].mxu0  ;;  %3195 = vmatprep.mubr.bf16.mxu0 %v12320_v26 }
 0x236   : > { %14549 = vst [vmem:[#allocation83_spill] sm:$0xff] %v12322_v22  ;;  %v1490_v62 = vadd.f32 %v1489_v19, %v11962_v39  ;;  %v1491_v33 = vpop.f32.mrb[46].mxu1  ;;  %v1332_v35 = vadd.f32 %v1331_v45, %v11958_v36  ;;  %v1333_v57 = vpop.f32.mrb[47].mxu0  ;;  %3196 = vmatmul.mubr.bf16.gmra.mrb[104].mxu0 %v12316_v25  ;;  %v1977_v48 = vmax.f32 %v1328_v56, 0.0 }
 0x237   : > { %v1492_v8 = vadd.f32 %v1491_v33, %v11958_v36  ;;  %v1493_v29 = vpop.f32.mrb[47].mxu1  ;;  %v2105_v53 = vmax.f32 %v1488_v3, 0.0  ;;  %v1334_v50 = vadd.f32 %v1333_v57, %v11962_v39  ;;  %v1978_v26 = vmax.f32 %v1330_v41, 0.0 }
 0x238   : > { %v1494_v18 = vadd.f32 %v1493_v29, %v11962_v39  ;;  %v2106_v13 = vmax.f32 %v1490_v62, 0.0  ;;  %v1981_v44 = vmax.f32 %v1332_v35, 0.0 }
 0x239   : > { %1789 = vmatmul.mubr.bf16.gmra.mrb[152].mxu1 %v11761_v34  ;;  %v2109_v19 = vmax.f32 %v1492_v8, 0.0  ;;  %v1982_v54 = vmax.f32 %v1334_v50, 0.0 }
 0x23a   : > { %1798 = vmatprep.mubr.bf16.mxu1 %v14527_v37  ;;  %v2110_v45 = vmax.f32 %v1494_v18, 0.0  ;;  %v12336_v25 = vpack.c.bf16 %v1981_v44, %v1977_v48 }
 0x23b   : > { %v12338_v33 = vpack.c.bf16 %v2109_v19, %v2105_v53  ;;  %v1337_v3 = vpop.f32.mrb[48].mxu0  ;;  %v12340_v22 = vpack.c.bf16 %v1982_v54, %v1978_v26 }
 0x23c   : > { %14550 = vst [vmem:[#allocation84_spill] sm:$0xff] %v12336_v25  ;;  %v1497_v57 = vpop.f32.mrb[48].mxu1  ;;  %v12342_v29 = vpack.c.bf16 %v2110_v45, %v2106_v13  ;;  %v1338_v62 = vadd.f32 %v1337_v3, %v11958_v36  ;;  %v1339_v56 = vpop.f32.mrb[49].mxu0 }
 0x23d   : > { %14551 = vst [vmem:[#allocation85_spill] sm:$0xff] %v12338_v33  ;;  %14552 = vst [vmem:[#allocation86_spill] sm:$0xff] %v12340_v22  ;;  %v1498_v35 = vadd.f32 %v1497_v57, %v11958_v36  ;;  %v1499_v41 = vpop.f32.mrb[49].mxu1  ;;  %v1340_v8 = vadd.f32 %v1339_v56, %v11962_v39  ;;  %v1341_v50 = vpop.f32.mrb[50].mxu0  ;;  %3205 = vmatprep.mubr.bf16.mxu0 %v12340_v22 }
 0x23e   : > { %14553 = vst [vmem:[#allocation87_spill] sm:$0xff] %v12342_v29  ;;  %v1500_v53 = vadd.f32 %v1499_v41, %v11962_v39  ;;  %v1501_v18 = vpop.f32.mrb[50].mxu1  ;;  %v1342_v54 = vadd.f32 %v1341_v50, %v11958_v36  ;;  %v1343_v26 = vpop.f32.mrb[51].mxu0  ;;  %3206 = vmatmul.mubr.bf16.gmra.mrb[108].mxu0 %v12336_v25  ;;  %v1985_v56 = vmax.f32 %v1338_v62, 0.0 }
 0x23f   : > { %v1502_v13 = vadd.f32 %v1501_v18, %v11958_v36  ;;  %v1503_v48 = vpop.f32.mrb[51].mxu1  ;;  %v2113_v44 = vmax.f32 %v1498_v35, 0.0  ;;  %v1344_v19 = vadd.f32 %v1343_v26, %v11962_v39  ;;  %v1986_v57 = vmax.f32 %v1340_v8, 0.0  ;;  %v10687_v18 = vld [vmem:[%s14327_s3 + $0x3c0] ss:$16 sps:$4 sm:$0xff]  }
 0x240   : > { %v1504_v45 = vadd.f32 %v1503_v48, %v11962_v39  ;;  %v2114_v3 = vmax.f32 %v1500_v53, 0.0  ;;  %v1989_v41 = vmax.f32 %v1342_v54, 0.0  ;;  %v10689_v35 = vld [vmem:[%s14327_s3 + $0x3c4] ss:$16 sps:$4 sm:$0xff]  }
 0x241   : > { %1799 = vmatmul.mubr.bf16.gmra.mrb[156].mxu1 %v11781_v46  ;;  %v2117_v34 = vmax.f32 %v1502_v13, 0.0  ;;  %v1990_v22 = vmax.f32 %v1344_v19, 0.0  ;;  %3444 = vmatprep.subr.bf16.mxu0 %v10689_v35 }
 0x242   : > { %1808 = vmatprep.mubr.bf16.mxu1 %v14527_v37  ;;  %v2118_v50 = vmax.f32 %v1504_v45, 0.0  ;;  %v12362_v26 = vpack.c.bf16 %v1989_v41, %v1985_v56  ;;  %3445 = vmatpush1.bf16.msra.mxu0 %v10687_v18 }
 0x243   : > { %v12364_v53 = vpack.c.bf16 %v2117_v34, %v2113_v44  ;;  %v1347_v8 = vpop.f32.mrb[52].mxu0  ;;  %v12366_v62 = vpack.c.bf16 %v1990_v22, %v1986_v57 }
 0x244   : > { %14554 = vst [vmem:[#allocation88_spill] sm:$0xff] %v12362_v26  ;;  %v1507_v54 = vpop.f32.mrb[52].mxu1  ;;  %v12368_v13 = vpack.c.bf16 %v2118_v50, %v2114_v3  ;;  %v1348_v48 = vadd.f32 %v1347_v8, %v11958_v36  ;;  %v1349_v19 = vpop.f32.mrb[53].mxu0 }
 0x245   : > { %14555 = vst [vmem:[#allocation89_spill] sm:$0xff] %v12364_v53  ;;  %14556 = vst [vmem:[#allocation90_spill] sm:$0xff] %v12366_v62  ;;  %v1508_v45 = vadd.f32 %v1507_v54, %v11958_v36  ;;  %v1509_v46 = vpop.f32.mrb[53].mxu1  ;;  %v1350_v25 = vadd.f32 %v1349_v19, %v11962_v39  ;;  %v1351_v56 = vpop.f32.mrb[54].mxu0  ;;  %3215 = vmatprep.mubr.bf16.mxu0 %v12366_v62 }
 0x246   : > { %14557 = vst [vmem:[#allocation91_spill] sm:$0xff] %v12368_v13  ;;  %v1510_v34 = vadd.f32 %v1509_v46, %v11962_v39  ;;  %v1511_v22 = vpop.f32.mrb[54].mxu1  ;;  %v1352_v44 = vadd.f32 %v1351_v56, %v11958_v36  ;;  %v1353_v3 = vpop.f32.mrb[55].mxu0  ;;  %3216 = vmatmul.mubr.bf16.gmra.mrb[112].mxu0 %v12362_v26  ;;  %v1993_v54 = vmax.f32 %v1348_v48, 0.0 }
 0x247   : > { %v1512_v57 = vadd.f32 %v1511_v22, %v11958_v36  ;;  %v1513_v41 = vpop.f32.mrb[55].mxu1  ;;  %v2121_v50 = vmax.f32 %v1508_v45, 0.0  ;;  %v1354_v35 = vadd.f32 %v1353_v3, %v11962_v39  ;;  %v1994_v62 = vmax.f32 %v1350_v25, 0.0 }
 0x248   : > { %v1514_v18 = vadd.f32 %v1513_v41, %v11962_v39  ;;  %v2122_v8 = vmax.f32 %v1510_v34, 0.0  ;;  %v1997_v19 = vmax.f32 %v1352_v44, 0.0 }
 0x249   : > { %1809 = vmatmul.mubr.bf16.gmra.mrb[160].mxu1 %v11801_v58  ;;  %v2125_v46 = vmax.f32 %v1512_v57, 0.0  ;;  %v1998_v53 = vmax.f32 %v1354_v35, 0.0 }
 0x24a   : > { %1818 = vmatprep.mubr.bf16.mxu1 %v14527_v37  ;;  %v2126_v56 = vmax.f32 %v1514_v18, 0.0  ;;  %v12382_v26 = vpack.c.bf16 %v1997_v19, %v1993_v54 }
 0x24b   : > { %v12384_v22 = vpack.c.bf16 %v2125_v46, %v2121_v50  ;;  %v1357_v45 = vpop.f32.mrb[56].mxu0  ;;  %v12386_v13 = vpack.c.bf16 %v1998_v53, %v1994_v62 }
 0x24c   : > { %14558 = vst [vmem:[#allocation92_spill] sm:$0xff] %v12382_v26  ;;  %v1517_v3 = vpop.f32.mrb[56].mxu1  ;;  %v12388_v41 = vpack.c.bf16 %v2126_v56, %v2122_v8  ;;  %v1358_v34 = vadd.f32 %v1357_v45, %v11958_v36  ;;  %v1359_v48 = vpop.f32.mrb[57].mxu0 }
 0x24d   : > { %14559 = vst [vmem:[#allocation93_spill] sm:$0xff] %v12384_v22  ;;  %14560 = vst [vmem:[#allocation94_spill] sm:$0xff] %v12386_v13  ;;  %v1518_v44 = vadd.f32 %v1517_v3, %v11958_v36  ;;  %v1519_v25 = vpop.f32.mrb[57].mxu1  ;;  %v1360_v57 = vadd.f32 %v1359_v48, %v11962_v39  ;;  %v1361_v35 = vpop.f32.mrb[58].mxu0  ;;  %3225 = vmatprep.mubr.bf16.mxu0 %v12386_v13 }
 0x24e   : > { %14561 = vst [vmem:[#allocation95_spill] sm:$0xff] %v12388_v41  ;;  %v1520_v50 = vadd.f32 %v1519_v25, %v11962_v39  ;;  %v1521_v18 = vpop.f32.mrb[58].mxu1  ;;  %v1362_v53 = vadd.f32 %v1361_v35, %v11958_v36  ;;  %v1363_v62 = vpop.f32.mrb[59].mxu0  ;;  %3226 = vmatmul.mubr.bf16.gmra.mrb[116].mxu0 %v12382_v26  ;;  %v2001_v48 = vmax.f32 %v1358_v34, 0.0 }
 0x24f   : > { %v1522_v8 = vadd.f32 %v1521_v18, %v11958_v36  ;;  %v1523_v54 = vpop.f32.mrb[59].mxu1  ;;  %v2129_v19 = vmax.f32 %v1518_v44, 0.0  ;;  %v1364_v46 = vadd.f32 %v1363_v62, %v11962_v39  ;;  %v2002_v3 = vmax.f32 %v1360_v57, 0.0  ;;  %v10690_v18 = vld [vmem:[%s14327_s3 + $0x3e0] ss:$16 sps:$4 sm:$0xff]  }
 0x250   : > { %v1524_v56 = vadd.f32 %v1523_v54, %v11962_v39  ;;  %v2130_v45 = vmax.f32 %v1520_v50, 0.0  ;;  %v2005_v25 = vmax.f32 %v1362_v53, 0.0  ;;  %v10692_v44 = vld [vmem:[%s14327_s3 + $0x3e4] ss:$16 sps:$4 sm:$0xff]  }
 0x251   : > { %1819 = vmatmul.mubr.bf16.gmra.mrb[164].mxu1 %v11821_v7  ;;  %v2133_v58 = vmax.f32 %v1522_v8, 0.0  ;;  %v2006_v13 = vmax.f32 %v1364_v46, 0.0  ;;  %3446 = vmatprep.subr.bf16.mxu0 %v10692_v44 }
 0x252   : > { %1828 = vmatprep.mubr.bf16.mxu1 %v14527_v37  ;;  %v2134_v35 = vmax.f32 %v1524_v56, 0.0  ;;  %v12408_v62 = vpack.c.bf16 %v2005_v25, %v2001_v48  ;;  %3447 = vmatpush1.bf16.msra.mxu0 %v10690_v18 }
 0x253   : > { %v12410_v50 = vpack.c.bf16 %v2133_v58, %v2129_v19  ;;  %v1367_v57 = vpop.f32.mrb[60].mxu0  ;;  %v12412_v34 = vpack.c.bf16 %v2006_v13, %v2002_v3  ;;  %5122 = vmatprep.subr.bf16.mxu0 %v14527_v37 }
 0x254   : > { %14562 = vst [vmem:[#allocation96_spill] sm:$0xff] %v12408_v62  ;;  %v1527_v53 = vpop.f32.mrb[60].mxu1  ;;  %v12414_v8 = vpack.c.bf16 %v2134_v35, %v2130_v45  ;;  %v1368_v54 = vadd.f32 %v1367_v57, %v11958_v36  ;;  %v1369_v46 = vpop.f32.mrb[61].mxu0  ;;  %v14418_v35 = vsub.s32 2, %v11941_v24 }
 0x255   : > { %14563 = vst [vmem:[#allocation97_spill] sm:$0xff] %v12410_v50  ;;  %14564 = vst [vmem:[#allocation98_spill] sm:$0xff] %v12412_v34  ;;  %v1528_v56 = vadd.f32 %v1527_v53, %v11958_v36  ;;  %v1529_v7 = vpop.f32.mrb[61].mxu1  ;;  %v1370_v26 = vadd.f32 %v1369_v46, %v11962_v39  ;;  %v1371_v48 = vpop.f32.mrb[62].mxu0  ;;  %3235 = vmatprep.mubr.bf16.mxu0 %v12412_v34  ;;  %v10821_v46 = vld [vmem:[%s14526_s26] sm:$0xf] }
 0x256   : > { %14565 = vst [vmem:[#allocation99_spill] sm:$0xff] %v12414_v8  ;;  %v1530_v58 = vadd.f32 %v1529_v7, %v11962_v39  ;;  %v1531_v13 = vpop.f32.mrb[62].mxu1  ;;  %v1372_v19 = vadd.f32 %v1371_v48, %v11958_v36  ;;  %v1373_v45 = vpop.f32.mrb[63].mxu0  ;;  %3236 = vmatmul.mubr.bf16.gmra.mrb[120].mxu0 %v12408_v62  ;;  %v2009_v44 = vmax.f32 %v1368_v54, 0.0  ;;  %v12434_v48 = vrot.slane %v10821_v46, %v14418_v35 }
 0x257   : > { %v1532_v3 = vadd.f32 %v1531_v13, %v11958_v36  ;;  %v1533_v25 = vpop.f32.mrb[63].mxu1  ;;  %v1374_v18 = vadd.f32 %v1373_v45, %v11962_v39  ;;  %v14420_v36 = vsub.s32 3, %v11941_v24  ;;  %v2137_v13 = vmax.f32 %v1528_v56, 0.0 }
 0x258   : > { %v1534_v57 = vadd.f32 %v1533_v25, %v11962_v39  ;;  %v2138_v53 = vmax.f32 %v1530_v58, 0.0  ;;  %v2013_v7 = vmax.f32 %v1372_v19, 0.0  ;;  %v2010_v62 = vmax.f32 %v1370_v26, 0.0 }
 0x259   : > { %1829 = vmatmul.mubr.bf16.gmra.mrb[168].mxu1 %v11838_v20  ;;  %v2014_v45 = vmax.f32 %v1374_v18, 0.0  ;;  %v2141_v54 = vmax.f32 %v1532_v3, 0.0  ;;  %v12442_v19 = vrot.slane %v10821_v46, %v14420_v36 }
 0x25a   : > { %1838 = vmatprep.mubr.bf16.mxu1 %v14527_v37  ;;  %v2142_v39 = vmax.f32 %v1534_v57, 0.0  ;;  %v12438_v58 = vpack.c.bf16 %v2013_v7, %v2009_v44 }
 0x25b   : > { %v12444_v25 = vpack.c.bf16 %v2014_v45, %v2010_v62  ;;  %v12448_v34 = vpack.c.bf16 %v2141_v54, %v2137_v13 }
 0x25c   : > { %v1570_v20 = vpop.f32.mrb[64].mxu1  ;;  %v12446_v35 = vpack.c.bf16 %v2142_v39, %v2138_v53 }
 0x25d   : > { %14567 = vst [vmem:[#allocation101_spill] sm:$0xff] %v12448_v34  ;;  %v1571_v26 = vadd.f32 %v1570_v20, %v12434_v48  ;;  %v1572_v56 = vpop.f32.mrb[65].mxu1  ;;  %3245 = vmatprep.mubr.bf16.mxu0 %v12444_v25 }
 0x25e   : > { %14566 = vst [vmem:[#allocation100_spill] sm:$0xff] %v12446_v35  ;;  %v1573_v3 = vadd.f32 %v1572_v56, %v12442_v19  ;;  %v1574_v18 = vpop.f32.mrb[66].mxu1  ;;  %3246 = vmatmul.mubr.bf16.gmra.mrb[124].mxu0 %v12438_v58 }
 0x25f   : > { %v1891_v44 = vmax.f32 %v1571_v26, 0.0  ;;  %v1575_v57 = vadd.f32 %v1574_v18, %v12434_v48  ;;  %v1576_v62 = vpop.f32.mrb[67].mxu1  ;;  %3255 = vmatprep.mubr.bf16.mxu0 %v11996_v60 }
 0x260   : > { %v1892_v53 = vmax.f32 %v1573_v3, 0.0  ;;  %v1577_v7 = vadd.f32 %v1576_v62, %v12442_v19 }
 0x261   : > { %1839 = vmatmul.mubr.bf16.gmra.mrb[172].mxu1 %v11846_v28  ;;  %v1895_v20 = vmax.f32 %v1575_v57, 0.0 }
 0x262   : > { %1848 = vmatprep.mubr.bf16.mxu1 %v14527_v37  ;;  %v1896_v46 = vmax.f32 %v1577_v7, 0.0 }
 0x263   : > { %v12459_v13 = vpack.c.bf16 %v1895_v20, %v1891_v44 }
 0x264   : > { %v1580_v45 = vpop.f32.mrb[68].mxu1  ;;  %v12461_v39 = vpack.c.bf16 %v1896_v46, %v1892_v53 }
 0x265   : > { %v1581_v54 = vadd.f32 %v1580_v45, %v12434_v48  ;;  %v1582_v26 = vpop.f32.mrb[69].mxu1 }
 0x266   : > { %14568 = vst [vmem:[#allocation102_spill] sm:$0xff] %v12461_v39  ;;  %v1583_v56 = vadd.f32 %v1582_v26, %v12442_v19  ;;  %v1584_v18 = vpop.f32.mrb[70].mxu1  ;;  %3256 = vmatmul.mubr.bf16.gmra.mrb[128].mxu0 %v11989_v47 }
 0x267   : > { %v1899_v3 = vmax.f32 %v1581_v54, 0.0  ;;  %v1585_v62 = vadd.f32 %v1584_v18, %v12434_v48  ;;  %v1586_v57 = vpop.f32.mrb[71].mxu1  ;;  %3265 = vmatprep.mubr.bf16.mxu0 %v12040_v30 }
 0x268   : > { %v1900_v7 = vmax.f32 %v1583_v56, 0.0  ;;  %v1587_v44 = vadd.f32 %v1586_v57, %v12442_v19 }
 0x269   : > { %1849 = vmatmul.mubr.bf16.gmra.mrb[176].mxu1 %v11860_v38  ;;  %v1903_v53 = vmax.f32 %v1585_v62, 0.0 }
 0x26a   : > { %1858 = vmatprep.mubr.bf16.mxu1 %v14527_v37  ;;  %v1904_v20 = vmax.f32 %v1587_v44, 0.0 }
 0x26b   : > { %v12471_v46 = vpack.c.bf16 %v1903_v53, %v1899_v3 }
 0x26c   : > { %v1590_v45 = vpop.f32.mrb[72].mxu1  ;;  %v12473_v26 = vpack.c.bf16 %v1904_v20, %v1900_v7 }
 0x26d   : > { %14569 = vst [vmem:[#allocation103_spill] sm:$0xff] %v12471_v46  ;;  %v1591_v54 = vadd.f32 %v1590_v45, %v12434_v48  ;;  %v1592_v18 = vpop.f32.mrb[73].mxu1 }
 0x26e   : > { %14570 = vst [vmem:[#allocation104_spill] sm:$0xff] %v12473_v26  ;;  %v1593_v36 = vadd.f32 %v1592_v18, %v12442_v19  ;;  %v1594_v28 = vpop.f32.mrb[74].mxu1  ;;  %3266 = vmatmul.mubr.bf16.gmra.mrb[132].mxu0 %v12033_v12 }
 0x26f   : > { %v1907_v56 = vmax.f32 %v1591_v54, 0.0  ;;  %v1595_v57 = vadd.f32 %v1594_v28, %v12434_v48  ;;  %v1596_v62 = vpop.f32.mrb[75].mxu1  ;;  %3275 = vmatprep.mubr.bf16.mxu0 %v12084_v2 }
 0x270   : > { %v1908_v44 = vmax.f32 %v1593_v36, 0.0  ;;  %v1597_v3 = vadd.f32 %v1596_v62, %v12442_v19 }
 0x271   : > { %1859 = vmatmul.mubr.bf16.gmra.mrb[180].mxu1 %v11871_v49  ;;  %v1911_v7 = vmax.f32 %v1595_v57, 0.0 }
 0x272   : > { %1868 = vmatprep.mubr.bf16.mxu1 %v14527_v37  ;;  %v1912_v53 = vmax.f32 %v1597_v3, 0.0 }
 0x273   : > { %v12483_v20 = vpack.c.bf16 %v1911_v7, %v1907_v56 }
 0x274   : > { %v1600_v45 = vpop.f32.mrb[76].mxu1  ;;  %v12485_v18 = vpack.c.bf16 %v1912_v53, %v1908_v44 }
 0x275   : > { %v1601_v54 = vadd.f32 %v1600_v45, %v12434_v48  ;;  %v1602_v28 = vpop.f32.mrb[77].mxu1 }
 0x276   : > { %14571 = vst [vmem:[#allocation105_spill] sm:$0xff] %v12485_v18  ;;  %v1603_v38 = vadd.f32 %v1602_v28, %v12442_v19  ;;  %v1604_v24 = vpop.f32.mrb[78].mxu1  ;;  %3276 = vmatmul.mubr.bf16.gmra.mrb[136].mxu0 %v12077_v52 }
 0x277   : > { %v1915_v36 = vmax.f32 %v1601_v54, 0.0  ;;  %v1605_v62 = vadd.f32 %v1604_v24, %v12434_v48  ;;  %v1606_v57 = vpop.f32.mrb[79].mxu1  ;;  %3285 = vmatprep.mubr.bf16.mxu0 %v12128_v32 }
 0x278   : > { %v1916_v3 = vmax.f32 %v1603_v38, 0.0  ;;  %v1607_v56 = vadd.f32 %v1606_v57, %v12442_v19 }
 0x279   : > { %1869 = vmatmul.mubr.bf16.gmra.mrb[184].mxu1 %v11879_v59  ;;  %v1919_v44 = vmax.f32 %v1605_v62, 0.0 }
 0x27a   : > { %1878 = vmatprep.mubr.bf16.mxu1 %v14527_v37  ;;  %v1920_v7 = vmax.f32 %v1607_v56, 0.0 }
 0x27b   : > { %v12495_v53 = vpack.c.bf16 %v1919_v44, %v1915_v36 }
 0x27c   : > { %v1610_v45 = vpop.f32.mrb[80].mxu1  ;;  %v12497_v28 = vpack.c.bf16 %v1920_v7, %v1916_v3 }
 0x27d   : > { %v1611_v54 = vadd.f32 %v1610_v45, %v12434_v48  ;;  %v1612_v24 = vpop.f32.mrb[81].mxu1 }
 0x27e   : > { %14572 = vst [vmem:[#allocation106_spill] sm:$0xff] %v12497_v28  ;;  %v1613_v49 = vadd.f32 %v1612_v24, %v12442_v19  ;;  %v1614_v32 = vpop.f32.mrb[82].mxu1  ;;  %3286 = vmatmul.mubr.bf16.gmra.mrb[140].mxu0 %v12121_v63 }
 0x27f   : > { %v1923_v38 = vmax.f32 %v1611_v54, 0.0  ;;  %v1615_v57 = vadd.f32 %v1614_v32, %v12434_v48  ;;  %v1616_v62 = vpop.f32.mrb[83].mxu1  ;;  %3295 = vmatprep.mubr.bf16.mxu0 %v12172_v10 }
 0x280   : > { %v1924_v56 = vmax.f32 %v1613_v49, 0.0  ;;  %v1617_v36 = vadd.f32 %v1616_v62, %v12442_v19 }
 0x281   : > { %1879 = vmatmul.mubr.bf16.gmra.mrb[188].mxu1 %v11887_v4  ;;  %v1927_v3 = vmax.f32 %v1615_v57, 0.0 }
 0x282   : > { %3801 = vmatprep.mubr.bf16.mxu1 %v11991_v51  ;;  %v1928_v44 = vmax.f32 %v1617_v36, 0.0  ;;  %v10696_v51 = vld [vmem:[%s14327_s3 + $0x208] ss:$16 sps:$4 sm:$0xff]   ;;  %v10698_v36 = vld [vmem:[%s14327_s3 + $0x20c] ss:$16 sps:$4 sm:$0xff]  }
 0x283   : > { %v12507_v7 = vpack.c.bf16 %v1927_v3, %v1923_v38  ;;  %4122 = vmatprep.subr.bf16.mxu1 %v10698_v36 }
 0x284   : > { %v1620_v45 = vpop.f32.mrb[84].mxu1  ;;  %v12509_v24 = vpack.c.bf16 %v1928_v44, %v1924_v56 }
 0x285   : > { %v1621_v54 = vadd.f32 %v1620_v45, %v12434_v48  ;;  %v1622_v32 = vpop.f32.mrb[85].mxu1 }
 0x286   : > { %v1623_v59 = vadd.f32 %v1622_v32, %v12442_v19  ;;  %v1624_v10 = vpop.f32.mrb[86].mxu1  ;;  %3296 = vmatmul.mubr.bf16.gmra.mrb[144].mxu0 %v12165_v15 }
 0x287   : > { %v1931_v49 = vmax.f32 %v1621_v54, 0.0  ;;  %v1625_v62 = vadd.f32 %v1624_v10, %v12434_v48  ;;  %v1626_v57 = vpop.f32.mrb[87].mxu1  ;;  %3305 = vmatprep.mubr.bf16.mxu0 %v12204_v0 }
 0x288   : > { %v1932_v38 = vmax.f32 %v1623_v59, 0.0  ;;  %v1627_v56 = vadd.f32 %v1626_v57, %v12442_v19 }
 0x289   : > { %3802 = vmatmul.mubr.bf16.vlgmr.msra.gmra.mrb[192].mxu1 %v11987_v42  ;;  %v1935_v3 = vmax.f32 %v1625_v62, 0.0 }
 0x28a   : > { %3811 = vmatprep.mubr.bf16.mxu1 %v12035_v16  ;;  %v1936_v10 = vmax.f32 %v1627_v56, 0.0  ;;  %4123 = vmatpush1.bf16.msra.mxu1 %v10696_v51 }
 0x28b   : > { %v12525_v44 = vpack.c.bf16 %v1935_v3, %v1931_v49 }
 0x28c   : > { %v1630_v45 = vpop.f32.mrb[88].mxu1  ;;  %v12527_v54 = vpack.c.bf16 %v1936_v10, %v1932_v38 }
 0x28d   : > { %v1631_v59 = vadd.f32 %v1630_v45, %v12434_v48  ;;  %v1632_v32 = vpop.f32.mrb[89].mxu1 }
 0x28e   : > { %v1633_v57 = vadd.f32 %v1632_v32, %v12442_v19  ;;  %v1634_v4 = vpop.f32.mrb[90].mxu1  ;;  %3306 = vmatmul.mubr.bf16.gmra.mrb[148].mxu0 %v12197_v43 }
 0x28f   : > { %v1939_v42 = vmax.f32 %v1631_v59, 0.0  ;;  %v1635_v62 = vadd.f32 %v1634_v4, %v12434_v48  ;;  %v1636_v16 = vpop.f32.mrb[91].mxu1  ;;  %3315 = vmatprep.mubr.bf16.mxu0 %v12230_v6 }
 0x290   : > { %v1940_v51 = vmax.f32 %v1633_v57, 0.0  ;;  %v1637_v49 = vadd.f32 %v1636_v16, %v12442_v19 }
 0x291   : > { %3812 = vmatmul.mubr.bf16.gmra.mrb[196].mxu1 %v12028_v23  ;;  %v1943_v38 = vmax.f32 %v1635_v62, 0.0 }
 0x292   : > { %3821 = vmatprep.mubr.bf16.mxu1 %v12079_v40  ;;  %v1944_v56 = vmax.f32 %v1637_v49, 0.0  ;;  %v10700_v40 = vld [vmem:[%s14327_s3 + $0x228] ss:$16 sps:$4 sm:$0xff]  }
 0x293   : > { %v12537_v36 = vpack.c.bf16 %v1943_v38, %v1939_v42 }
 0x294   : > { %v1640_v3 = vpop.f32.mrb[92].mxu1  ;;  %v12539_v10 = vpack.c.bf16 %v1944_v56, %v1940_v51  ;;  %v10702_v51 = vld [vmem:[%s14327_s3 + $0x22c] ss:$16 sps:$4 sm:$0xff]  }
 0x295   : > { %v1641_v45 = vadd.f32 %v1640_v3, %v12434_v48  ;;  %v1642_v4 = vpop.f32.mrb[93].mxu1  ;;  %4124 = vmatprep.subr.bf16.mxu1 %v10702_v51 }
 0x296   : > { %14573 = vst [vmem:[#allocation107_spill] sm:$0xff] %v12539_v10  ;;  %v1643_v59 = vadd.f32 %v1642_v4, %v12442_v19  ;;  %v1644_v32 = vpop.f32.mrb[94].mxu1  ;;  %3316 = vmatmul.mubr.bf16.gmra.mrb[152].mxu0 %v12226_v5  ;;  %4125 = vmatpush1.bf16.msra.mxu1 %v10700_v40 }
 0x297   : > { %v1947_v57 = vmax.f32 %v1641_v45, 0.0  ;;  %v1645_v23 = vadd.f32 %v1644_v32, %v12434_v48  ;;  %v1646_v62 = vpop.f32.mrb[95].mxu1  ;;  %3325 = vmatprep.mubr.bf16.mxu0 %v12250_v21 }
 0x298   : > { %v1948_v42 = vmax.f32 %v1643_v59, 0.0  ;;  %v1647_v16 = vadd.f32 %v1646_v62, %v12442_v19 }
 0x299   : > { %3822 = vmatmul.mubr.bf16.gmra.mrb[200].mxu1 %v12072_v27  ;;  %v1951_v49 = vmax.f32 %v1645_v23, 0.0 }
 0x29a   : > { %3831 = vmatprep.mubr.bf16.mxu1 %v12123_v1  ;;  %v1952_v38 = vmax.f32 %v1647_v16, 0.0 }
 0x29b   : > { %v12555_v56 = vpack.c.bf16 %v1951_v49, %v1947_v57 }
 0x29c   : > { %v1650_v3 = vpop.f32.mrb[96].mxu1  ;;  %v12557_v45 = vpack.c.bf16 %v1952_v38, %v1948_v42 }
 0x29d   : > { %14574 = vst [vmem:[#allocation108_spill] sm:$0xff] %v12555_v56  ;;  %v1651_v4 = vadd.f32 %v1650_v3, %v12434_v48  ;;  %v1652_v59 = vpop.f32.mrb[97].mxu1 }
 0x29e   : > { %v1653_v32 = vadd.f32 %v1652_v59, %v12442_v19  ;;  %v1654_v62 = vpop.f32.mrb[98].mxu1  ;;  %3326 = vmatmul.mubr.bf16.gmra.mrb[156].mxu0 %v12246_v17 }
 0x29f   : > { %v1955_v27 = vmax.f32 %v1651_v4, 0.0  ;;  %v1655_v23 = vadd.f32 %v1654_v62, %v12434_v48  ;;  %v1656_v1 = vpop.f32.mrb[99].mxu1  ;;  %3335 = vmatprep.mubr.bf16.mxu0 %v12276_v11 }
 0x2a0   : > { %v1956_v40 = vmax.f32 %v1653_v32, 0.0  ;;  %v1657_v57 = vadd.f32 %v1656_v1, %v12442_v19 }
 0x2a1   : > { %3832 = vmatmul.mubr.bf16.gmra.mrb[204].mxu1 %v12116_v55  ;;  %v1959_v42 = vmax.f32 %v1655_v23, 0.0 }
 0x2a2   : > { %3841 = vmatprep.mubr.bf16.mxu1 %v12167_v31  ;;  %v1960_v16 = vmax.f32 %v1657_v57, 0.0  ;;  %v10704_v31 = vld [vmem:[%s14327_s3 + $0x248] ss:$16 sps:$4 sm:$0xff]   ;;  %v14576_v57 = vld [vmem:[#allocation63_spill] sm:$0xff] }
 0x2a3   : > { %v12567_v51 = vpack.c.bf16 %v1959_v42, %v1955_v27 }
 0x2a4   : > { %v1660_v49 = vpop.f32.mrb[100].mxu1  ;;  %v12569_v38 = vpack.c.bf16 %v1960_v16, %v1956_v40  ;;  %v10706_v40 = vld [vmem:[%s14327_s3 + $0x24c] ss:$16 sps:$4 sm:$0xff]  }
 0x2a5   : > { %v1661_v3 = vadd.f32 %v1660_v49, %v12434_v48  ;;  %v1662_v4 = vpop.f32.mrb[101].mxu1  ;;  %v14577_v16 = vld [vmem:[#allocation66_spill] sm:$0xff]  ;;  %4126 = vmatprep.subr.bf16.mxu1 %v10706_v40  ;;  %v14579_v40 = vld [vmem:[#allocation65_spill] sm:$0xff] }
 0x2a6   : > { %14575 = vst [vmem:[#allocation109_spill] sm:$0xff] %v12569_v38  ;;  %v1663_v59 = vadd.f32 %v1662_v4, %v12442_v19  ;;  %v1664_v62 = vpop.f32.mrb[102].mxu1  ;;  %3336 = vmatmul.mubr.bf16.gmra.mrb[160].mxu0 %v12272_v9  ;;  %4127 = vmatpush1.bf16.msra.mxu1 %v10704_v31 }
 0x2a7   : > { %v1963_v32 = vmax.f32 %v1661_v3, 0.0  ;;  %v1665_v55 = vadd.f32 %v1664_v62, %v12434_v48  ;;  %v1666_v23 = vpop.f32.mrb[103].mxu1  ;;  %3345 = vmatprep.mubr.bf16.mxu0 %v12296_v14 }
 0x2a8   : > { %v1964_v27 = vmax.f32 %v1663_v59, 0.0  ;;  %v1667_v1 = vadd.f32 %v1666_v23, %v12442_v19 }
 0x2a9   : > { %3842 = vmatmul.mubr.bf16.gmra.mrb[208].mxu1 %v14576_v57  ;;  %v1967_v42 = vmax.f32 %v1665_v55, 0.0 }
 0x2aa   : > { %3851 = vmatprep.mubr.bf16.mxu1 %v14577_v16  ;;  %v1968_v49 = vmax.f32 %v1667_v1, 0.0  ;;  %v14578_v1 = vld [vmem:[#allocation83_spill] sm:$0xff] }
 0x2ab   : > { %v12585_v3 = vpack.c.bf16 %v1967_v42, %v1963_v32  ;;  %v14580_v42 = vld [vmem:[#allocation68_spill] sm:$0xff] }
 0x2ac   : > { %v1670_v4 = vpop.f32.mrb[104].mxu1  ;;  %v12587_v62 = vpack.c.bf16 %v1968_v49, %v1964_v27 }
 0x2ad   : > { %v1671_v59 = vadd.f32 %v1670_v4, %v12434_v48  ;;  %v1672_v23 = vpop.f32.mrb[105].mxu1 }
 0x2ae   : > { %v1673_v14 = vadd.f32 %v1672_v23, %v12442_v19  ;;  %v1674_v9 = vpop.f32.mrb[106].mxu1  ;;  %3346 = vmatmul.mubr.bf16.gmra.mrb[164].mxu0 %v12292_v61 }
 0x2af   : > { %v1971_v57 = vmax.f32 %v1671_v59, 0.0  ;;  %v1675_v55 = vadd.f32 %v1674_v9, %v12434_v48  ;;  %v1676_v16 = vpop.f32.mrb[107].mxu1  ;;  %3355 = vmatprep.mubr.bf16.mxu0 %v14578_v1 }
 0x2b0   : > { %v1972_v31 = vmax.f32 %v1673_v14, 0.0  ;;  %v1677_v32 = vadd.f32 %v1676_v16, %v12442_v19  ;;  %v14582_v14 = vld [vmem:[#allocation81_spill] sm:$0xff] }
 0x2b1   : > { %3852 = vmatmul.mubr.bf16.gmra.mrb[212].mxu1 %v14579_v40  ;;  %v1975_v27 = vmax.f32 %v1675_v55, 0.0 }
 0x2b2   : > { %3861 = vmatprep.mubr.bf16.mxu1 %v14580_v42  ;;  %v1976_v49 = vmax.f32 %v1677_v32, 0.0  ;;  %v14583_v42 = vld [vmem:[#allocation67_spill] sm:$0xff] }
 0x2b3   : > { %v12597_v4 = vpack.c.bf16 %v1975_v27, %v1971_v57  ;;  %v10708_v57 = vld [vmem:[%s14327_s3 + $0x268] ss:$16 sps:$4 sm:$0xff]   ;;  %v10710_v27 = vld [vmem:[%s14327_s3 + $0x26c] ss:$16 sps:$4 sm:$0xff]  }
 0x2b4   : > { %v1680_v23 = vpop.f32.mrb[108].mxu1  ;;  %v12599_v11 = vpack.c.bf16 %v1976_v49, %v1972_v31  ;;  %4128 = vmatprep.subr.bf16.mxu1 %v10710_v27  ;;  %v14588_v27 = vld [vmem:[#allocation69_spill] sm:$0xff] }
 0x2b5   : > { %14581 = vst [vmem:[#allocation63_spill] sm:$0xff] %v12597_v4  ;;  %v1681_v59 = vadd.f32 %v1680_v23, %v12434_v48  ;;  %v1682_v9 = vpop.f32.mrb[109].mxu1  ;;  %v14584_v23 = vld [vmem:[#allocation71_spill] sm:$0xff]  ;;  %4129 = vmatpush1.bf16.msra.mxu1 %v10708_v57 }
 0x2b6   : > { %v1683_v61 = vadd.f32 %v1682_v9, %v12442_v19  ;;  %v1684_v1 = vpop.f32.mrb[110].mxu1  ;;  %3356 = vmatmul.mubr.bf16.gmra.mrb[168].mxu0 %v14582_v14 }
 0x2b7   : > { %v1979_v16 = vmax.f32 %v1681_v59, 0.0  ;;  %v1685_v40 = vadd.f32 %v1684_v1, %v12434_v48  ;;  %v1686_v55 = vpop.f32.mrb[111].mxu1  ;;  %3365 = vmatprep.mubr.bf16.mxu0 %v12342_v29 }
 0x2b8   : > { %v1980_v31 = vmax.f32 %v1683_v61, 0.0  ;;  %v1687_v32 = vadd.f32 %v1686_v55, %v12442_v19 }
 0x2b9   : > { %3862 = vmatmul.mubr.bf16.gmra.mrb[216].mxu1 %v14583_v42  ;;  %v1983_v49 = vmax.f32 %v1685_v40, 0.0 }
 0x2ba   : > { %3871 = vmatprep.mubr.bf16.mxu1 %v14584_v23  ;;  %v1984_v1 = vmax.f32 %v1687_v32, 0.0  ;;  %v14587_v32 = vld [vmem:[#allocation91_spill] sm:$0xff] }
 0x2bb   : > { %v12615_v59 = vpack.c.bf16 %v1983_v49, %v1979_v16  ;;  %v14589_v49 = vld [vmem:[#allocation74_spill] sm:$0xff] }
 0x2bc   : > { %v1690_v9 = vpop.f32.mrb[112].mxu1  ;;  %v12617_v14 = vpack.c.bf16 %v1984_v1, %v1980_v31 }
 0x2bd   : > { %14585 = vst [vmem:[#allocation66_spill] sm:$0xff] %v12615_v59  ;;  %v1691_v61 = vadd.f32 %v1690_v9, %v12434_v48  ;;  %v1692_v55 = vpop.f32.mrb[113].mxu1 }
 0x2be   : > { %14586 = vst [vmem:[#allocation65_spill] sm:$0xff] %v12617_v14  ;;  %v1693_v29 = vadd.f32 %v1692_v55, %v12442_v19  ;;  %v1694_v17 = vpop.f32.mrb[114].mxu1  ;;  %3366 = vmatmul.mubr.bf16.gmra.mrb[172].mxu0 %v12338_v33 }
 0x2bf   : > { %v1987_v42 = vmax.f32 %v1691_v61, 0.0  ;;  %v1695_v40 = vadd.f32 %v1694_v17, %v12434_v48  ;;  %v1696_v23 = vpop.f32.mrb[115].mxu1  ;;  %3375 = vmatprep.mubr.bf16.mxu0 %v14587_v32 }
 0x2c0   : > { %v1988_v57 = vmax.f32 %v1693_v29, 0.0  ;;  %v1697_v16 = vadd.f32 %v1696_v23, %v12442_v19  ;;  %v14592_v29 = vld [vmem:[#allocation89_spill] sm:$0xff] }
 0x2c1   : > { %3872 = vmatmul.mubr.bf16.gmra.mrb[220].mxu1 %v14588_v27  ;;  %v1991_v31 = vmax.f32 %v1695_v40, 0.0 }
 0x2c2   : > { %3881 = vmatprep.mubr.bf16.mxu1 %v14589_v49  ;;  %v1992_v1 = vmax.f32 %v1697_v16, 0.0  ;;  %v14593_v49 = vld [vmem:[#allocation72_spill] sm:$0xff] }
 0x2c3   : > { %v12627_v9 = vpack.c.bf16 %v1991_v31, %v1987_v42  ;;  %v10712_v42 = vld [vmem:[%s14327_s3 + $0x288] ss:$16 sps:$4 sm:$0xff]   ;;  %v10714_v31 = vld [vmem:[%s14327_s3 + $0x28c] ss:$16 sps:$4 sm:$0xff]  }
 0x2c4   : > { %v1700_v55 = vpop.f32.mrb[116].mxu1  ;;  %v12629_v59 = vpack.c.bf16 %v1992_v1, %v1988_v57  ;;  %4130 = vmatprep.subr.bf16.mxu1 %v10714_v31  ;;  %v14598_v31 = vld [vmem:[#allocation82_spill] sm:$0xff] }
 0x2c5   : > { %14590 = vst [vmem:[#allocation68_spill] sm:$0xff] %v12627_v9  ;;  %v1701_v61 = vadd.f32 %v1700_v55, %v12434_v48  ;;  %v1702_v17 = vpop.f32.mrb[117].mxu1  ;;  %v14594_v55 = vld [vmem:[#allocation78_spill] sm:$0xff]  ;;  %4131 = vmatpush1.bf16.msra.mxu1 %v10712_v42 }
 0x2c6   : > { %14591 = vst [vmem:[#allocation67_spill] sm:$0xff] %v12629_v59  ;;  %v1703_v33 = vadd.f32 %v1702_v17, %v12442_v19  ;;  %v1704_v32 = vpop.f32.mrb[118].mxu1  ;;  %3376 = vmatmul.mubr.bf16.gmra.mrb[176].mxu0 %v14592_v29 }
 0x2c7   : > { %v1995_v23 = vmax.f32 %v1701_v61, 0.0  ;;  %v1705_v27 = vadd.f32 %v1704_v32, %v12434_v48  ;;  %v1706_v40 = vpop.f32.mrb[119].mxu1  ;;  %3385 = vmatprep.mubr.bf16.mxu0 %v12388_v41 }
 0x2c8   : > { %v1996_v57 = vmax.f32 %v1703_v33, 0.0  ;;  %v1707_v16 = vadd.f32 %v1706_v40, %v12442_v19 }
 0x2c9   : > { %3882 = vmatmul.mubr.bf16.gmra.mrb[224].mxu1 %v14593_v49  ;;  %v1999_v1 = vmax.f32 %v1705_v27, 0.0 }
 0x2ca   : > { %3891 = vmatprep.mubr.bf16.mxu1 %v14594_v55  ;;  %v2000_v32 = vmax.f32 %v1707_v16, 0.0  ;;  %v14597_v16 = vld [vmem:[#allocation76_spill] sm:$0xff] }
 0x2cb   : > { %v12645_v61 = vpack.c.bf16 %v1999_v1, %v1995_v23 }
 0x2cc   : > { %v1710_v17 = vpop.f32.mrb[120].mxu1  ;;  %v12647_v29 = vpack.c.bf16 %v2000_v32, %v1996_v57 }
 0x2cd   : > { %14595 = vst [vmem:[#allocation71_spill] sm:$0xff] %v12645_v61  ;;  %v1711_v33 = vadd.f32 %v1710_v17, %v12434_v48  ;;  %v1712_v40 = vpop.f32.mrb[121].mxu1 }
 0x2ce   : > { %14596 = vst [vmem:[#allocation69_spill] sm:$0xff] %v12647_v29  ;;  %v1713_v41 = vadd.f32 %v1712_v40, %v12442_v19  ;;  %v1714_v9 = vpop.f32.mrb[122].mxu1  ;;  %3386 = vmatmul.mubr.bf16.gmra.mrb[180].mxu0 %v12384_v22 }
 0x2cf   : > { %v2003_v49 = vmax.f32 %v1711_v33, 0.0  ;;  %v1715_v27 = vadd.f32 %v1714_v9, %v12434_v48  ;;  %v1716_v55 = vpop.f32.mrb[123].mxu1  ;;  %3395 = vmatprep.mubr.bf16.mxu0 %v12414_v8 }
 0x2d0   : > { %v2004_v42 = vmax.f32 %v1713_v41, 0.0  ;;  %v1717_v23 = vadd.f32 %v1716_v55, %v12442_v19 }
 0x2d1   : > { %3892 = vmatmul.mubr.bf16.gmra.mrb[228].mxu1 %v14597_v16  ;;  %v2007_v57 = vmax.f32 %v1715_v27, 0.0  ;;  %v10718_v16 = vld [vmem:[%s14327_s3 + $0x2ac] ss:$16 sps:$4 sm:$0xff]  }
 0x2d2   : > { %3901 = vmatprep.mubr.bf16.mxu1 %v14598_v31  ;;  %v2008_v1 = vmax.f32 %v1717_v23, 0.0  ;;  %4132 = vmatprep.subr.bf16.mxu1 %v10718_v16  ;;  %v14602_v16 = vld [vmem:[#allocation84_spill] sm:$0xff] }
 0x2d3   : > { %v12657_v32 = vpack.c.bf16 %v2007_v57, %v2003_v49  ;;  %v10716_v49 = vld [vmem:[%s14327_s3 + $0x2a8] ss:$16 sps:$4 sm:$0xff]  }
 0x2d4   : > { %v1720_v17 = vpop.f32.mrb[124].mxu1  ;;  %v12659_v40 = vpack.c.bf16 %v2008_v1, %v2004_v42  ;;  %v14600_v57 = vld [vmem:[#allocation80_spill] sm:$0xff]  ;;  %v14601_v1 = vld [vmem:[#allocation86_spill] sm:$0xff]  ;;  %4133 = vmatpush1.bf16.msra.mxu1 %v10716_v49 }
 0x2d5   : > { %v1721_v33 = vadd.f32 %v1720_v17, %v12434_v48  ;;  %v1722_v9 = vpop.f32.mrb[125].mxu1 }
 0x2d6   : > { %14599 = vst [vmem:[#allocation74_spill] sm:$0xff] %v12659_v40  ;;  %v1723_v22 = vadd.f32 %v1722_v9, %v12442_v19  ;;  %v1724_v8 = vpop.f32.mrb[126].mxu1  ;;  %3396 = vmatmul.mubr.bf16.gmra.mrb[184].mxu0 %v12410_v50 }
 0x2d7   : > { %v2011_v41 = vmax.f32 %v1721_v33, 0.0  ;;  %v1725_v55 = vadd.f32 %v1724_v8, %v12434_v48  ;;  %v1726_v27 = vpop.f32.mrb[127].mxu1  ;;  %3405 = vmatprep.mubr.bf16.mxu0 %v12446_v35 }
 0x2d8   : > { %v2012_v42 = vmax.f32 %v1723_v22, 0.0  ;;  %v1727_v23 = vadd.f32 %v1726_v27, %v12442_v19 }
 0x2d9   : > { %3902 = vmatmul.mubr.bf16.gmra.mrb[232].mxu1 %v14600_v57  ;;  %v2015_v31 = vmax.f32 %v1725_v55, 0.0 }
 0x2da   : > { %3911 = vmatprep.mubr.bf16.mxu1 %v14601_v1  ;;  %v2016_v8 = vmax.f32 %v1727_v23, 0.0  ;;  %v10719_v23 = vld [vmem:[%s14327_s3 + $0x2c8] ss:$16 sps:$4 sm:$0xff]  }
 0x2db   : > { %v12675_v17 = vpack.c.bf16 %v2015_v31, %v2011_v41  ;;  %v10721_v41 = vld [vmem:[%s14327_s3 + $0x2cc] ss:$16 sps:$4 sm:$0xff]  }
 0x2dc   : > { %v1730_v33 = vpop.f32.mrb[128].mxu1  ;;  %v12677_v9 = vpack.c.bf16 %v2016_v8, %v2012_v42  ;;  %4134 = vmatprep.subr.bf16.mxu1 %v10721_v41  ;;  %v14603_v8 = vld [vmem:[#allocation90_spill] sm:$0xff] }
 0x2dd   : > { %v1731_v22 = vadd.f32 %v1730_v33, %v12434_v48  ;;  %v1732_v27 = vpop.f32.mrb[129].mxu1  ;;  %4135 = vmatpush1.bf16.msra.mxu1 %v10719_v23  ;;  %v10722_v33 = vld [vmem:[%s14327_s3 + $0x2e8] ss:$16 sps:$4 sm:$0xff]  }
 0x2de   : > { %v1733_v35 = vadd.f32 %v1732_v27, %v12442_v19  ;;  %v1734_v50 = vpop.f32.mrb[130].mxu1  ;;  %3406 = vmatmul.mubr.bf16.gmra.mrb[188].mxu0 %v12448_v34  ;;  %v10693_v27 = vld [vmem:[#allocation6] sm:$0xff]  }
 0x2df   : > { %v2019_v57 = vmax.f32 %v1731_v22, 0.0  ;;  %v1735_v55 = vadd.f32 %v1734_v50, %v12434_v48  ;;  %v1736_v1 = vpop.f32.mrb[131].mxu1  ;;  %3448 = vmatprep.mubr.bf16.mxu0 %v12461_v39 }
 0x2e0   : > { %v2020_v49 = vmax.f32 %v1733_v35, 0.0  ;;  %v1737_v42 = vadd.f32 %v1736_v1, %v12442_v19  ;;  %v10724_v35 = vld [vmem:[%s14327_s3 + $0x2ec] ss:$16 sps:$4 sm:$0xff]  }
 0x2e1   : > { %3912 = vmatmul.mubr.bf16.gmra.mrb[236].mxu1 %v14602_v16  ;;  %v2023_v31 = vmax.f32 %v1735_v55, 0.0  ;;  %4136 = vmatprep.subr.bf16.mxu1 %v10724_v35  ;;  %v14604_v35 = vld [vmem:[#allocation88_spill] sm:$0xff] }
 0x2e2   : > { %3921 = vmatprep.mubr.bf16.mxu1 %v14603_v8  ;;  %v2024_v50 = vmax.f32 %v1737_v42, 0.0  ;;  %4137 = vmatpush1.bf16.msra.mxu1 %v10722_v33  ;;  %v10726_v33 = vld [vmem:[%s14327_s3 + $0x308] ss:$16 sps:$4 sm:$0xff]  }
 0x2e3   : > { %v12699_v22 = vpack.c.bf16 %v2023_v31, %v2019_v57  ;;  %v10728_v57 = vld [vmem:[%s14327_s3 + $0x30c] ss:$16 sps:$4 sm:$0xff]  }
 0x2e4   : > { %v1740_v1 = vpop.f32.mrb[132].mxu1  ;;  %v12701_v39 = vpack.c.bf16 %v2024_v50, %v2020_v49  ;;  %v10694_v49 = vld [vmem:[#allocation6 + $0x8] sm:$0xff]   ;;  %4138 = vmatprep.subr.bf16.mxu1 %v10728_v57 }
 0x2e5   : > { %v1741_v55 = vadd.f32 %v1740_v1, %v12434_v48  ;;  %v1742_v41 = vpop.f32.mrb[133].mxu1 }
 0x2e6   : > { %v1743_v42 = vadd.f32 %v1742_v41, %v12442_v19  ;;  %v1744_v23 = vpop.f32.mrb[134].mxu1  ;;  %3449 = vmatmul.mubr.bf16.vlgmr.msra.gmra.mrb[64].mxu0 %v12459_v13  ;;  %4139 = vmatpush1.bf16.msra.mxu1 %v10726_v33 }
 0x2e7   : > { %v2027_v16 = vmax.f32 %v1741_v55, 0.0  ;;  %v1745_v8 = vadd.f32 %v1744_v23, %v12434_v48  ;;  %v1746_v34 = vpop.f32.mrb[135].mxu1  ;;  %5123 = vmatpush1.bf16.msra.mxu0 %v10693_v27  ;;  %3458 = vmatprep.mubr.bf16.mxu0 %v12473_v26  ;;  %v14605_v55 = vld [vmem:[#allocation94_spill] sm:$0xff]  ;;  %v10695_v23 = vld [vmem:[#allocation6 + $0x10] sm:$0xff]  }
 0x2e8   : > { %v2028_v31 = vmax.f32 %v1743_v42, 0.0  ;;  %v1747_v50 = vadd.f32 %v1746_v34, %v12442_v19  ;;  %5124 = vmatprep.subr.bf16.mxu0 %v14527_v37  ;;  %v10731_v27 = vld [vmem:[%s14327_s3 + $0x32c] ss:$16 sps:$4 sm:$0xff]   ;;  %v10729_v34 = vld [vmem:[%s14327_s3 + $0x328] ss:$16 sps:$4 sm:$0xff]  }
 0x2e9   : > { %3922 = vmatmul.mubr.bf16.gmra.mrb[240].mxu1 %v14604_v35  ;;  %v2031_v1 = vmax.f32 %v1745_v8, 0.0  ;;  %4140 = vmatprep.subr.bf16.mxu1 %v10731_v27 }
 0x2ea   : > { %3931 = vmatprep.mubr.bf16.mxu1 %v14605_v55  ;;  %v2032_v41 = vmax.f32 %v1747_v50, 0.0  ;;  %4141 = vmatpush1.bf16.msra.mxu1 %v10729_v34 }
 0x2eb   : > { %v12724_v42 = vpack.c.bf16 %v2031_v1, %v2027_v16  ;;  %5125 = vmatpush1.bf16.msra.mxu0 %v10694_v49  ;;  %v10734_v49 = vld [vmem:[%s14327_s3 + $0x34c] ss:$16 sps:$4 sm:$0xff]  }
 0x2ec   : > { %v1750_v35 = vpop.f32.mrb[136].mxu1  ;;  %v12726_v26 = vpack.c.bf16 %v2032_v41, %v2028_v31  ;;  %5126 = vmatprep.subr.bf16.mxu0 %v14527_v37  ;;  %v10699_v31 = vld [vmem:[#allocation6 + $0x18] sm:$0xff]   ;;  %4142 = vmatprep.subr.bf16.mxu1 %v10734_v49 }
 0x2ed   : > { %v1751_v8 = vadd.f32 %v1750_v35, %v12434_v48  ;;  %v1752_v57 = vpop.f32.mrb[137].mxu1  ;;  %v10732_v35 = vld [vmem:[%s14327_s3 + $0x348] ss:$16 sps:$4 sm:$0xff]  }
 0x2ee   : > { %v1753_v50 = vadd.f32 %v1752_v57, %v12442_v19  ;;  %v1754_v33 = vpop.f32.mrb[138].mxu1  ;;  %3459 = vmatmul.mubr.bf16.gmra.mrb[68].mxu0 %v12471_v46  ;;  %v14607_v57 = vld [vmem:[#allocation98_spill] sm:$0xff]  ;;  %4143 = vmatpush1.bf16.msra.mxu1 %v10732_v35 }
 0x2ef   : > { %v2035_v55 = vmax.f32 %v1751_v8, 0.0  ;;  %v1755_v16 = vadd.f32 %v1754_v33, %v12434_v48  ;;  %v1756_v1 = vpop.f32.mrb[139].mxu1  ;;  %3468 = vmatprep.mubr.bf16.mxu0 %v12485_v18  ;;  %5127 = vmatpush1.bf16.msra.mxu0 %v10695_v23  ;;  %v14606_v8 = vld [vmem:[#allocation92_spill] sm:$0xff] }
 0x2f0   : > { %v2036_v41 = vmax.f32 %v1753_v50, 0.0  ;;  %v1757_v27 = vadd.f32 %v1756_v1, %v12442_v19  ;;  %5128 = vmatprep.subr.bf16.mxu0 %v14527_v37  ;;  %v10737_v23 = vld [vmem:[%s14327_s3 + $0x36c] ss:$16 sps:$4 sm:$0xff]   ;;  %v10735_v50 = vld [vmem:[%s14327_s3 + $0x368] ss:$16 sps:$4 sm:$0xff]  }
 0x2f1   : > { %3932 = vmatmul.mubr.bf16.gmra.mrb[244].mxu1 %v14606_v8  ;;  %v2039_v34 = vmax.f32 %v1755_v16, 0.0  ;;  %v10703_v8 = vld [vmem:[#allocation6 + $0x20] sm:$0xff]   ;;  %4144 = vmatprep.subr.bf16.mxu1 %v10737_v23  ;;  %v10739_v23 = vld [vmem:[%s14327_s3 + $0x388] ss:$16 sps:$4 sm:$0xff]  }
 0x2f2   : > { %3941 = vmatprep.mubr.bf16.mxu1 %v14607_v57  ;;  %v2040_v33 = vmax.f32 %v1757_v27, 0.0  ;;  %4145 = vmatpush1.bf16.msra.mxu1 %v10735_v50 }
 0x2f3   : > { %v12750_v1 = vpack.c.bf16 %v2039_v34, %v2035_v55  ;;  %5129 = vmatpush1.bf16.msra.mxu0 %v10699_v31  ;;  %v10741_v31 = vld [vmem:[%s14327_s3 + $0x38c] ss:$16 sps:$4 sm:$0xff]  }
 0x2f4   : > { %v1760_v18 = vpop.f32.mrb[140].mxu1  ;;  %v12752_v46 = vpack.c.bf16 %v2040_v33, %v2036_v41  ;;  %5130 = vmatprep.subr.bf16.mxu0 %v14527_v37  ;;  %v10707_v41 = vld [vmem:[#allocation6 + $0x28] sm:$0xff]   ;;  %4146 = vmatprep.subr.bf16.mxu1 %v10741_v31 }
 0x2f5   : > { %v1761_v16 = vadd.f32 %v1760_v18, %v12434_v48  ;;  %v1762_v49 = vpop.f32.mrb[141].mxu1 }
 0x2f6   : > { %v1763_v27 = vadd.f32 %v1762_v49, %v12442_v19  ;;  %v1764_v35 = vpop.f32.mrb[142].mxu1  ;;  %3469 = vmatmul.mubr.bf16.gmra.mrb[72].mxu0 %v12483_v20  ;;  %4147 = vmatpush1.bf16.msra.mxu1 %v10739_v23 }
 0x2f7   : > { %v2043_v57 = vmax.f32 %v1761_v16, 0.0  ;;  %v1765_v55 = vadd.f32 %v1764_v35, %v12434_v48  ;;  %v1766_v34 = vpop.f32.mrb[143].mxu1  ;;  %3478 = vmatprep.mubr.bf16.mxu0 %v12497_v28  ;;  %5131 = vmatpush1.bf16.msra.mxu0 %v10703_v8  ;;  %v14608_v16 = vld [vmem:[#allocation96_spill] sm:$0xff] }
 0x2f8   : > { %v2044_v18 = vmax.f32 %v1763_v27, 0.0  ;;  %v1767_v33 = vadd.f32 %v1766_v34, %v12442_v19  ;;  %5132 = vmatprep.subr.bf16.mxu0 %v14527_v37  ;;  %v10744_v8 = vld [vmem:[%s14327_s3 + $0x3ac] ss:$16 sps:$4 sm:$0xff]   ;;  %v10742_v27 = vld [vmem:[%s14327_s3 + $0x3a8] ss:$16 sps:$4 sm:$0xff]   ;;  %v10711_v34 = vld [vmem:[#allocation6 + $0x30] sm:$0xff]  }
 0x2f9   : > { %3942 = vmatmul.mubr.bf16.gmra.mrb[248].mxu1 %v14608_v16  ;;  %v2047_v50 = vmax.f32 %v1765_v55, 0.0  ;;  %4148 = vmatprep.subr.bf16.mxu1 %v10744_v8 }
 0x2fa   : > { %3951 = vmatprep.mubr.bf16.mxu1 %v12444_v25  ;;  %v2048_v49 = vmax.f32 %v1767_v33, 0.0  ;;  %4149 = vmatpush1.bf16.msra.mxu1 %v10742_v27 }
 0x2fb   : > { %v12776_v35 = vpack.c.bf16 %v2047_v50, %v2043_v57  ;;  %5133 = vmatpush1.bf16.msra.mxu0 %v10707_v41  ;;  %v10747_v41 = vld [vmem:[%s14327_s3 + $0x3cc] ss:$16 sps:$4 sm:$0xff]  }
 0x2fc   : > { %v1770_v16 = vpop.f32.mrb[144].mxu1  ;;  %v12778_v28 = vpack.c.bf16 %v2048_v49, %v2044_v18  ;;  %5134 = vmatprep.subr.bf16.mxu0 %v14527_v37  ;;  %v10715_v18 = vld [vmem:[#allocation6 + $0x38] sm:$0xff]   ;;  %4150 = vmatprep.subr.bf16.mxu1 %v10747_v41 }
 0x2fd   : > { %v1771_v25 = vadd.f32 %v1770_v16, %v12434_v48  ;;  %v1772_v55 = vpop.f32.mrb[145].mxu1  ;;  %v10745_v16 = vld [vmem:[%s14327_s3 + $0x3c8] ss:$16 sps:$4 sm:$0xff]  }
 0x2fe   : > { %v1773_v31 = vadd.f32 %v1772_v55, %v12442_v19  ;;  %v1774_v33 = vpop.f32.mrb[146].mxu1  ;;  %3479 = vmatmul.mubr.bf16.gmra.mrb[76].mxu0 %v12495_v53  ;;  %4151 = vmatpush1.bf16.msra.mxu1 %v10745_v16  ;;  %v10748_v55 = vld [vmem:[%s14327_s3 + $0x3e8] ss:$16 sps:$4 sm:$0xff]  }
 0x2ff   : > { %v2051_v23 = vmax.f32 %v1771_v25, 0.0  ;;  %v1775_v57 = vadd.f32 %v1774_v33, %v12434_v48  ;;  %v1776_v50 = vpop.f32.mrb[147].mxu1  ;;  %3488 = vmatprep.mubr.bf16.mxu0 %v12509_v24  ;;  %5135 = vmatpush1.bf16.msra.mxu0 %v10711_v34  ;;  %v10750_v34 = vld [vmem:[%s14327_s3 + $0x3ec] ss:$16 sps:$4 sm:$0xff]  }
 0x300   : > { %v2052_v49 = vmax.f32 %v1773_v31, 0.0  ;;  %v1777_v8 = vadd.f32 %v1776_v50, %v12442_v19  ;;  %5136 = vmatprep.subr.bf16.mxu0 %v14527_v37  ;;  %4152 = vmatprep.subr.bf16.mxu1 %v10750_v34 }
 0x301   : > { %3952 = vmatmul.mubr.bf16.gmra.mrb[252].mxu1 %v12438_v58  ;;  %v2055_v27 = vmax.f32 %v1775_v57, 0.0  ;;  %v10725_v58 = vld [vmem:[#allocation6 + $0x40] sm:$0xff]  }
 0x302   : > { %3961 = vmatprep.mubr.bf16.mxu1 %v11996_v60  ;;  %v2056_v25 = vmax.f32 %v1777_v8, 0.0  ;;  %4153 = vmatpush1.bf16.msra.mxu1 %v10748_v55 }
 0x303   : > { %v12802_v31 = vpack.c.bf16 %v2055_v27, %v2051_v23  ;;  %5137 = vmatpush1.bf16.msra.mxu0 %v10715_v18  ;;  %v10738_v18 = vld [vmem:[#allocation6 + $0x48] sm:$0xff]  }
 0x304   : > { %v1780_v33 = vpop.f32.mrb[148].mxu1  ;;  %v12804_v50 = vpack.c.bf16 %v2056_v25, %v2052_v49  ;;  %5138 = vmatprep.subr.bf16.mxu0 %v14527_v37 }
 0x305   : > { %v1781_v60 = vadd.f32 %v1780_v33, %v12434_v48  ;;  %v1782_v57 = vpop.f32.mrb[149].mxu1 }
 0x306   : > { %v1783_v41 = vadd.f32 %v1782_v57, %v12442_v19  ;;  %v1784_v8 = vpop.f32.mrb[150].mxu1  ;;  %3489 = vmatmul.mubr.bf16.gmra.mrb[80].mxu0 %v12507_v7  ;;  %v10751_v57 = vld [vmem:[#allocation6 + $0x50] sm:$0xff]  }
 0x307   : > { %v2059_v16 = vmax.f32 %v1781_v60, 0.0  ;;  %v1785_v23 = vadd.f32 %v1784_v8, %v12434_v48  ;;  %v1786_v27 = vpop.f32.mrb[151].mxu1  ;;  %3498 = vmatprep.mubr.bf16.mxu0 %v12527_v54  ;;  %5139 = vmatpush1.bf16.msra.mxu0 %v10725_v58 }
 0x308   : > { %v2060_v49 = vmax.f32 %v1783_v41, 0.0  ;;  %v1787_v25 = vadd.f32 %v1786_v27, %v12442_v19  ;;  %5140 = vmatprep.subr.bf16.mxu0 %v14527_v37 }
 0x309   : > { %3962 = vmatmul.mubr.bf16.gmra.mrb[0].mxu1 %v11989_v47  ;;  %v2063_v34 = vmax.f32 %v1785_v23, 0.0 }
 0x30a   : > { %3971 = vmatprep.mubr.bf16.mxu1 %v12040_v30  ;;  %v2064_v33 = vmax.f32 %v1787_v25, 0.0 }
 0x30b   : > { %v12816_v60 = vpack.c.bf16 %v2063_v34, %v2059_v16  ;;  %5141 = vmatpush1.bf16.msra.mxu0 %v10738_v18 }
 0x30c   : > { %v1790_v55 = vpop.f32.mrb[152].mxu1  ;;  %v12818_v8 = vpack.c.bf16 %v2064_v33, %v2060_v49  ;;  %5142 = vmatprep.subr.bf16.mxu0 %v14527_v37 }
 0x30d   : > { %v1791_v58 = vadd.f32 %v1790_v55, %v12434_v48  ;;  %v1792_v41 = vpop.f32.mrb[153].mxu1 }
 0x30e   : > { %v1793_v47 = vadd.f32 %v1792_v41, %v12442_v19  ;;  %v1794_v27 = vpop.f32.mrb[154].mxu1  ;;  %3499 = vmatmul.mubr.bf16.gmra.mrb[84].mxu0 %v12525_v44 }
 0x30f   : > { %v2067_v23 = vmax.f32 %v1791_v58, 0.0  ;;  %v1795_v30 = vadd.f32 %v1794_v27, %v12434_v48  ;;  %v1796_v16 = vpop.f32.mrb[155].mxu1  ;;  %3508 = vmatprep.mubr.bf16.mxu0 %v12539_v10  ;;  %5143 = vmatpush1.bf16.msra.mxu0 %v10751_v57  ;;  %v10752_v10 = vld [vmem:[#allocation6 + $0x58] sm:$0xff]  }
 0x310   : > { %v2068_v18 = vmax.f32 %v1793_v47, 0.0  ;;  %v1797_v49 = vadd.f32 %v1796_v16, %v12442_v19  ;;  %5144 = vmatprep.subr.bf16.mxu0 %v14527_v37 }
 0x311   : > { %3972 = vmatmul.mubr.bf16.gmra.mrb[4].mxu1 %v12033_v12  ;;  %v2071_v25 = vmax.f32 %v1795_v30, 0.0 }
 0x312   : > { %3981 = vmatprep.mubr.bf16.mxu1 %v12084_v2  ;;  %v2072_v34 = vmax.f32 %v1797_v49, 0.0  ;;  %v14609_v49 = vld [vmem:[#allocation62_spill] sm:$0xff] }
 0x313   : > { %v12830_v33 = vpack.c.bf16 %v2071_v25, %v2067_v23  ;;  %5145 = vmatpush1.bf16.msra.mxu0 %v10752_v10 }
 0x314   : > { %v1800_v55 = vpop.f32.mrb[156].mxu1  ;;  %v12832_v58 = vpack.c.bf16 %v2072_v34, %v2068_v18  ;;  %5146 = vmatprep.subr.bf16.mxu0 %v14527_v37 }
 0x315   : > { %v1801_v41 = vadd.f32 %v1800_v55, %v12434_v48  ;;  %v1802_v27 = vpop.f32.mrb[157].mxu1 }
 0x316   : > { %v1803_v57 = vadd.f32 %v1802_v27, %v12442_v19  ;;  %v1804_v47 = vpop.f32.mrb[158].mxu1  ;;  %3509 = vmatmul.mubr.bf16.gmra.mrb[88].mxu0 %v12537_v36 }
 0x317   : > { %v2075_v12 = vmax.f32 %v1801_v41, 0.0  ;;  %v1805_v30 = vadd.f32 %v1804_v47, %v12434_v48  ;;  %v1806_v16 = vpop.f32.mrb[159].mxu1  ;;  %3518 = vmatprep.mubr.bf16.mxu0 %v12557_v45 }
 0x318   : > { %v2076_v2 = vmax.f32 %v1803_v57, 0.0  ;;  %v1807_v23 = vadd.f32 %v1806_v16, %v12442_v19 }
 0x319   : > { %3982 = vmatmul.mubr.bf16.gmra.mrb[8].mxu1 %v12077_v52  ;;  %v2079_v18 = vmax.f32 %v1805_v30, 0.0 }
 0x31a   : > { %3991 = vmatprep.mubr.bf16.mxu1 %v14609_v49  ;;  %v2080_v25 = vmax.f32 %v1807_v23, 0.0 }
 0x31b   : > { %v12843_v34 = vpack.c.bf16 %v2079_v18, %v2075_v12  ;;  %v14610_v18 = vld [vmem:[#allocation64_spill] sm:$0xff] }
 0x31c   : > { %v1810_v55 = vpop.f32.mrb[160].mxu1  ;;  %v12845_v41 = vpack.c.bf16 %v2080_v25, %v2076_v2 }
 0x31d   : > { %v1811_v27 = vadd.f32 %v1810_v55, %v12434_v48  ;;  %v1812_v47 = vpop.f32.mrb[161].mxu1 }
 0x31e   : > { %v1813_v57 = vadd.f32 %v1812_v47, %v12442_v19  ;;  %v1814_v16 = vpop.f32.mrb[162].mxu1  ;;  %3519 = vmatmul.mubr.bf16.gmra.mrb[92].mxu0 %v12555_v56 }
 0x31f   : > { %v2083_v52 = vmax.f32 %v1811_v27, 0.0  ;;  %v1815_v10 = vadd.f32 %v1814_v16, %v12434_v48  ;;  %v1816_v30 = vpop.f32.mrb[163].mxu1  ;;  %3528 = vmatprep.mubr.bf16.mxu0 %v12569_v38 }
 0x320   : > { %v2084_v23 = vmax.f32 %v1813_v57, 0.0  ;;  %v1817_v12 = vadd.f32 %v1816_v30, %v12442_v19  ;;  %v10753_v30 = vld [vmem:[#allocation6 + $0x60] sm:$0xff]  }
 0x321   : > { %3992 = vmatmul.mubr.bf16.gmra.mrb[12].mxu1 %v12121_v63  ;;  %v2087_v2 = vmax.f32 %v1815_v10, 0.0  ;;  %5147 = vmatpush1.bf16.msra.mxu0 %v10753_v30 }
 0x322   : > { %4001 = vmatprep.mubr.bf16.mxu1 %v14610_v18  ;;  %v2088_v49 = vmax.f32 %v1817_v12, 0.0  ;;  %5148 = vmatprep.subr.bf16.mxu0 %v14527_v37 }
 0x323   : > { %v12855_v25 = vpack.c.bf16 %v2087_v2, %v2083_v52 }
 0x324   : > { %v1820_v55 = vpop.f32.mrb[164].mxu1  ;;  %v12857_v47 = vpack.c.bf16 %v2088_v49, %v2084_v23 }
 0x325   : > { %v1821_v27 = vadd.f32 %v1820_v55, %v12434_v48  ;;  %v1822_v16 = vpop.f32.mrb[165].mxu1 }
 0x326   : > { %v1823_v56 = vadd.f32 %v1822_v16, %v12442_v19  ;;  %v1824_v38 = vpop.f32.mrb[166].mxu1  ;;  %3529 = vmatmul.mubr.bf16.gmra.mrb[96].mxu0 %v12567_v51 }
 0x327   : > { %v2091_v57 = vmax.f32 %v1821_v27, 0.0  ;;  %v1825_v63 = vadd.f32 %v1824_v38, %v12434_v48  ;;  %v1826_v10 = vpop.f32.mrb[167].mxu1  ;;  %3538 = vmatprep.mubr.bf16.mxu0 %v12587_v62 }
 0x328   : > { %v2092_v52 = vmax.f32 %v1823_v56, 0.0  ;;  %v1827_v12 = vadd.f32 %v1826_v10, %v12442_v19 }
 0x329   : > { %4002 = vmatmul.mubr.bf16.gmra.mrb[16].mxu1 %v12165_v15  ;;  %v2095_v23 = vmax.f32 %v1825_v63, 0.0 }
 0x32a   : > { %4011 = vmatprep.mubr.bf16.mxu1 %v12204_v0  ;;  %v2096_v2 = vmax.f32 %v1827_v12, 0.0 }
 0x32b   : > { %v12868_v18 = vpack.c.bf16 %v2095_v23, %v2091_v57 }
 0x32c   : > { %v1830_v49 = vpop.f32.mrb[168].mxu1  ;;  %v12870_v38 = vpack.c.bf16 %v2096_v2, %v2092_v52 }
 0x32d   : > { %v1831_v55 = vadd.f32 %v1830_v49, %v12434_v48  ;;  %v1832_v27 = vpop.f32.mrb[169].mxu1 }
 0x32e   : > { %v1833_v56 = vadd.f32 %v1832_v27, %v12442_v19  ;;  %v1834_v16 = vpop.f32.mrb[170].mxu1  ;;  %3539 = vmatmul.mubr.bf16.gmra.mrb[100].mxu0 %v12585_v3 }
 0x32f   : > { %v2099_v15 = vmax.f32 %v1831_v55, 0.0  ;;  %v1835_v63 = vadd.f32 %v1834_v16, %v12434_v48  ;;  %v1836_v0 = vpop.f32.mrb[171].mxu1  ;;  %3548 = vmatprep.mubr.bf16.mxu0 %v12599_v11 }
 0x330   : > { %v2100_v10 = vmax.f32 %v1833_v56, 0.0  ;;  %v1837_v57 = vadd.f32 %v1836_v0, %v12442_v19  ;;  %v10754_v0 = vld [vmem:[#allocation6 + $0x68] sm:$0xff]  }
 0x331   : > { %4012 = vmatmul.mubr.bf16.gmra.mrb[20].mxu1 %v12197_v43  ;;  %v2103_v30 = vmax.f32 %v1835_v63, 0.0  ;;  %5149 = vmatpush1.bf16.msra.mxu0 %v10754_v0 }
 0x332   : > { %4021 = vmatprep.mubr.bf16.mxu1 %v12230_v6  ;;  %v2104_v52 = vmax.f32 %v1837_v57, 0.0  ;;  %5150 = vmatprep.subr.bf16.mxu0 %v14527_v37 }
 0x333   : > { %v12880_v12 = vpack.c.bf16 %v2103_v30, %v2099_v15 }
 0x334   : > { %v1840_v23 = vpop.f32.mrb[172].mxu1  ;;  %v12882_v2 = vpack.c.bf16 %v2104_v52, %v2100_v10 }
 0x335   : > { %v1841_v49 = vadd.f32 %v1840_v23, %v12434_v48  ;;  %v1842_v55 = vpop.f32.mrb[173].mxu1 }
 0x336   : > { %v1843_v27 = vadd.f32 %v1842_v55, %v12442_v19  ;;  %v1844_v16 = vpop.f32.mrb[174].mxu1  ;;  %3549 = vmatmul.mubr.bf16.gmra.mrb[104].mxu0 %v12597_v4  ;;  %v10755_v4 = vld [vmem:[#allocation6 + $0x70] sm:$0xff]  }
 0x337   : > { %v2107_v56 = vmax.f32 %v1841_v49, 0.0  ;;  %v1845_v43 = vadd.f32 %v1844_v16, %v12434_v48  ;;  %v1846_v63 = vpop.f32.mrb[175].mxu1  ;;  %3558 = vmatprep.mubr.bf16.mxu0 %v12617_v14  ;;  %5151 = vmatpush1.bf16.msra.mxu0 %v10755_v4 }
 0x338   : > { %v2108_v6 = vmax.f32 %v1843_v27, 0.0  ;;  %v1847_v15 = vadd.f32 %v1846_v63, %v12442_v19  ;;  %v14611_v63 = vld [vmem:[#allocation66_spill] sm:$0xff]  ;;  %5152 = vmatprep.subr.bf16.mxu0 %v14527_v37 }
 0x339   : > { %4022 = vmatmul.mubr.bf16.gmra.mrb[24].mxu1 %v12226_v5  ;;  %v2111_v10 = vmax.f32 %v1845_v43, 0.0 }
 0x33a   : > { %4031 = vmatprep.mubr.bf16.mxu1 %v12250_v21  ;;  %v2112_v57 = vmax.f32 %v1847_v15, 0.0  ;;  %v14612_v15 = vld [vmem:[#allocation70_spill] sm:$0xff] }
 0x33b   : > { %v12893_v30 = vpack.c.bf16 %v2111_v10, %v2107_v56  ;;  %v14613_v10 = vld [vmem:[#allocation75_spill] sm:$0xff] }
 0x33c   : > { %v1850_v52 = vpop.f32.mrb[176].mxu1  ;;  %v12895_v23 = vpack.c.bf16 %v2112_v57, %v2108_v6 }
 0x33d   : > { %v1851_v49 = vadd.f32 %v1850_v52, %v12434_v48  ;;  %v1852_v55 = vpop.f32.mrb[177].mxu1 }
 0x33e   : > { %v1853_v27 = vadd.f32 %v1852_v55, %v12442_v19  ;;  %v1854_v16 = vpop.f32.mrb[178].mxu1  ;;  %3559 = vmatmul.mubr.bf16.gmra.mrb[108].mxu0 %v14611_v63 }
 0x33f   : > { %v2115_v5 = vmax.f32 %v1851_v49, 0.0  ;;  %v1855_v43 = vadd.f32 %v1854_v16, %v12434_v48  ;;  %v1856_v21 = vpop.f32.mrb[179].mxu1  ;;  %3568 = vmatprep.mubr.bf16.mxu0 %v12629_v59 }
 0x340   : > { %v2116_v0 = vmax.f32 %v1853_v27, 0.0  ;;  %v1857_v56 = vadd.f32 %v1856_v21, %v12442_v19  ;;  %v14614_v27 = vld [vmem:[#allocation68_spill] sm:$0xff] }
 0x341   : > { %4032 = vmatmul.mubr.bf16.gmra.mrb[28].mxu1 %v14612_v15  ;;  %v2119_v6 = vmax.f32 %v1855_v43, 0.0 }
 0x342   : > { %4041 = vmatprep.mubr.bf16.mxu1 %v14613_v10  ;;  %v2120_v57 = vmax.f32 %v1857_v56, 0.0  ;;  %v14616_v10 = vld [vmem:[#allocation79_spill] sm:$0xff] }
 0x343   : > { %v12905_v52 = vpack.c.bf16 %v2119_v6, %v2115_v5 }
 0x344   : > { %v1860_v55 = vpop.f32.mrb[180].mxu1  ;;  %v12907_v14 = vpack.c.bf16 %v2120_v57, %v2116_v0  ;;  %v14615_v0 = vld [vmem:[#allocation73_spill] sm:$0xff] }
 0x345   : > { %v1861_v49 = vadd.f32 %v1860_v55, %v12434_v48  ;;  %v1862_v16 = vpop.f32.mrb[181].mxu1 }
 0x346   : > { %v1863_v63 = vadd.f32 %v1862_v16, %v12442_v19  ;;  %v1864_v59 = vpop.f32.mrb[182].mxu1  ;;  %3569 = vmatmul.mubr.bf16.gmra.mrb[112].mxu0 %v14614_v27 }
 0x347   : > { %v2123_v21 = vmax.f32 %v1861_v49, 0.0  ;;  %v1865_v15 = vadd.f32 %v1864_v59, %v12434_v48  ;;  %v1866_v43 = vpop.f32.mrb[183].mxu1  ;;  %3578 = vmatprep.mubr.bf16.mxu0 %v12647_v29 }
 0x348   : > { %v2124_v5 = vmax.f32 %v1863_v63, 0.0  ;;  %v1867_v56 = vadd.f32 %v1866_v43, %v12442_v19 }
 0x349   : > { %4042 = vmatmul.mubr.bf16.gmra.mrb[32].mxu1 %v14615_v0  ;;  %v2127_v6 = vmax.f32 %v1865_v15, 0.0 }
 0x34a   : > { %4051 = vmatprep.mubr.bf16.mxu1 %v14616_v10  ;;  %v2128_v57 = vmax.f32 %v1867_v56, 0.0  ;;  %v14618_v10 = vld [vmem:[#allocation83_spill] sm:$0xff] }
 0x34b   : > { %v12918_v55 = vpack.c.bf16 %v2127_v6, %v2123_v21  ;;  %v14617_v6 = vld [vmem:[#allocation77_spill] sm:$0xff] }
 0x34c   : > { %v1870_v49 = vpop.f32.mrb[184].mxu1  ;;  %v12920_v59 = vpack.c.bf16 %v2128_v57, %v2124_v5 }
 0x34d   : > { %v1871_v16 = vadd.f32 %v1870_v49, %v12434_v48  ;;  %v1872_v29 = vpop.f32.mrb[185].mxu1 }
 0x34e   : > { %v1873_v63 = vadd.f32 %v1872_v29, %v12442_v19  ;;  %v1874_v43 = vpop.f32.mrb[186].mxu1  ;;  %3579 = vmatmul.mubr.bf16.gmra.mrb[116].mxu0 %v12645_v61 }
 0x34f   : > { %v2131_v15 = vmax.f32 %v1871_v16, 0.0  ;;  %v1875_v4 = vadd.f32 %v1874_v43, %v12434_v48  ;;  %v1876_v0 = vpop.f32.mrb[187].mxu1  ;;  %3588 = vmatprep.mubr.bf16.mxu0 %v12659_v40 }
 0x350   : > { %v2132_v56 = vmax.f32 %v1873_v63, 0.0  ;;  %v1877_v21 = vadd.f32 %v1876_v0, %v12442_v19 }
 0x351   : > { %4052 = vmatmul.mubr.bf16.gmra.mrb[36].mxu1 %v14617_v6  ;;  %v2135_v5 = vmax.f32 %v1875_v4, 0.0  ;;  %v10756_v6 = vld [vmem:[#allocation6 + $0x78] sm:$0xff]  }
 0x352   : > { %4061 = vmatprep.mubr.bf16.mxu1 %v14618_v10  ;;  %v2136_v57 = vmax.f32 %v1877_v21, 0.0  ;;  %5153 = vmatpush1.bf16.msra.mxu0 %v10756_v6  ;;  %v14620_v10 = vld [vmem:[#allocation87_spill] sm:$0xff]  ;;  %v14629_v6 = vld [vmem:[#allocation101_spill] sm:$0xff] }
 0x353   : > { %v12930_v49 = vpack.c.bf16 %v2135_v5, %v2131_v15  ;;  %5411 = vmatprep.subr.bf16.mxu0 %v14527_v37 }
 0x354   : > { %v1880_v29 = vpop.f32.mrb[188].mxu1  ;;  %v12932_v27 = vpack.c.bf16 %v2136_v57, %v2132_v56  ;;  %v14619_v56 = vld [vmem:[#allocation81_spill] sm:$0xff] }
 0x355   : > { %v1881_v16 = vadd.f32 %v1880_v29, %v12434_v48  ;;  %v1882_v43 = vpop.f32.mrb[189].mxu1 }
 0x356   : > { %v1883_v61 = vadd.f32 %v1882_v43, %v12442_v19  ;;  %v1884_v40 = vpop.f32.mrb[190].mxu1  ;;  %3589 = vmatmul.mubr.bf16.gmra.mrb[120].mxu0 %v12657_v32  ;;  %v14625_v43 = vld [vmem:[#allocation93_spill] sm:$0xff] }
 0x357   : > { %v2139_v63 = vmax.f32 %v1881_v16, 0.0  ;;  %v1885_v0 = vadd.f32 %v1884_v40, %v12434_v48  ;;  %v1886_v4 = vpop.f32.mrb[191].mxu1  ;;  %3598 = vmatprep.mubr.bf16.mxu0 %v12677_v9  ;;  %v14621_v48 = vld [vmem:[#allocation85_spill] sm:$0xff]  ;;  %v14624_v40 = vld [vmem:[#allocation95_spill] sm:$0xff] }
 0x358   : > { %v2140_v15 = vmax.f32 %v1883_v61, 0.0  ;;  %v1887_v21 = vadd.f32 %v1886_v4, %v12442_v19  ;;  %v14622_v19 = vld [vmem:[#allocation91_spill] sm:$0xff]  ;;  %v14623_v61 = vld [vmem:[#allocation89_spill] sm:$0xff]  ;;  %v14628_v4 = vld [vmem:[#allocation100_spill] sm:$0xff] }
 0x359   : > { %4062 = vmatmul.mubr.bf16.gmra.mrb[40].mxu1 %v14619_v56  ;;  %v2143_v5 = vmax.f32 %v1885_v0, 0.0  ;;  %v14627_v0 = vld [vmem:[#allocation97_spill] sm:$0xff]  ;;  %v14632_v56 = vld [vmem:[#allocation103_spill] sm:$0xff] }
 0x35a   : > { %4071 = vmatprep.mubr.bf16.mxu1 %v14620_v10  ;;  %v2144_v57 = vmax.f32 %v1887_v21, 0.0  ;;  %v14631_v21 = vld [vmem:[#allocation104_spill] sm:$0xff]  ;;  %v14634_v10 = vld [vmem:[#allocation106_spill] sm:$0xff] }
 0x35b   : > { %v12943_v29 = vpack.c.bf16 %v2143_v5, %v2139_v63  ;;  %v14626_v63 = vld [vmem:[#allocation99_spill] sm:$0xff]  ;;  %v14633_v5 = vld [vmem:[#allocation105_spill] sm:$0xff] }
 0x35c   : > { %v12945_v16 = vpack.c.bf16 %v2144_v57, %v2140_v15  ;;  %v14630_v15 = vld [vmem:[#allocation102_spill] sm:$0xff] }
 0x35e   : > { %3599 = vmatmul.mubr.bf16.gmra.mrb[124].mxu0 %v12675_v17 }
 0x35f   : > { %3608 = vmatprep.mubr.bf16.mxu0 %v12701_v39 }
 0x361   : > { %4072 = vmatmul.mubr.bf16.gmra.mrb[44].mxu1 %v14621_v48 }
 0x362   : > { %4081 = vmatprep.mubr.bf16.mxu1 %v14622_v19 }
 0x366   : > { %3609 = vmatmul.mubr.bf16.gmra.mrb[128].mxu0 %v12699_v22 }
 0x367   : > { %3618 = vmatprep.mubr.bf16.mxu0 %v12726_v26 }
 0x369   : > { %4082 = vmatmul.mubr.bf16.gmra.mrb[48].mxu1 %v14623_v61 }
 0x36a   : > { %4091 = vmatprep.mubr.bf16.mxu1 %v14624_v40 }
 0x36e   : > { %3619 = vmatmul.mubr.bf16.gmra.mrb[132].mxu0 %v12724_v42 }
 0x36f   : > { %3628 = vmatprep.mubr.bf16.mxu0 %v12752_v46 }
 0x371   : > { %4092 = vmatmul.mubr.bf16.gmra.mrb[52].mxu1 %v14625_v43 }
 0x372   : > { %4101 = vmatprep.mubr.bf16.mxu1 %v14626_v63 }
 0x376   : > { %3629 = vmatmul.mubr.bf16.gmra.mrb[136].mxu0 %v12750_v1 }
 0x377   : > { %3638 = vmatprep.mubr.bf16.mxu0 %v12778_v28 }
 0x379   : > { %4102 = vmatmul.mubr.bf16.gmra.mrb[56].mxu1 %v14627_v0 }
 0x37a   : > { %4111 = vmatprep.mubr.bf16.mxu1 %v14628_v4 }
 0x37e   : > { %3639 = vmatmul.mubr.bf16.gmra.mrb[140].mxu0 %v12776_v35 }
 0x37f   : > { %3648 = vmatprep.mubr.bf16.mxu0 %v12804_v50 }
 0x381   : > { %4112 = vmatmul.mubr.bf16.gmra.mrb[60].mxu1 %v14629_v6 }
 0x382   : > { %4154 = vmatprep.mubr.bf16.mxu1 %v14630_v15 }
 0x386   : > { %3649 = vmatmul.mubr.bf16.gmra.mrb[144].mxu0 %v12802_v31 }
 0x387   : > { %3658 = vmatprep.mubr.bf16.mxu0 %v12818_v8 }
 0x389   : > { %4155 = vmatmul.mubr.bf16.vlgmr.msra.gmra.mrb[192].mxu1 %v12459_v13  ;;  %v14635_v13 = vld [vmem:[#allocation107_spill] sm:$0xff] }
 0x38a   : > { %4164 = vmatprep.mubr.bf16.mxu1 %v14631_v21  ;;  %v14639_v21 = vld [vmem:[#allocation108_spill] sm:$0xff] }
 0x38e   : > { %3659 = vmatmul.mubr.bf16.gmra.mrb[148].mxu0 %v12816_v60 }
 0x38f   : > { %3668 = vmatprep.mubr.bf16.mxu0 %v12832_v58 }
 0x391   : > { %4165 = vmatmul.mubr.bf16.gmra.mrb[196].mxu1 %v14632_v56 }
 0x392   : > { %4174 = vmatprep.mubr.bf16.mxu1 %v14633_v5  ;;  %v14640_v5 = vld [vmem:[#allocation109_spill] sm:$0xff] }
 0x396   : > { %3669 = vmatmul.mubr.bf16.gmra.mrb[152].mxu0 %v12830_v33 }
 0x397   : > { %3678 = vmatprep.mubr.bf16.mxu0 %v12845_v41 }
 0x399   : > { %4175 = vmatmul.mubr.bf16.gmra.mrb[200].mxu1 %v12483_v20  ;;  %v12994_v20 = vld [vmem:[%s14328_s4] sm:$0xf] }
 0x39a   : > { %4184 = vmatprep.mubr.bf16.mxu1 %v14634_v10 }
 0x39e   : > { %3679 = vmatmul.mubr.bf16.gmra.mrb[156].mxu0 %v12843_v34 }
 0x39f   : > { %3688 = vmatprep.mubr.bf16.mxu0 %v12857_v47 }
 0x3a1   : > { %4185 = vmatmul.mubr.bf16.gmra.mrb[204].mxu1 %v12495_v53  ;;  %v14636_v53 = vld [vmem:[#allocation61_spill] sm:$0xff] }
 0x3a2   : > { %4194 = vmatprep.mubr.bf16.mxu1 %v12509_v24  ;;  %v14637_v24 = vsub.s32 0, %v14636_v53 }
 0x3a6   : > { %3689 = vmatmul.mubr.bf16.gmra.mrb[160].mxu0 %v12855_v25 }
 0x3a7   : > { %3698 = vmatprep.mubr.bf16.mxu0 %v12870_v38 }
 0x3a9   : > { %4195 = vmatmul.mubr.bf16.gmra.mrb[208].mxu1 %v12507_v7  ;;  %v13000_v7 = vrot.slane %v12994_v20, %v14637_v24 }
 0x3aa   : > { %4204 = vmatprep.mubr.bf16.mxu1 %v12527_v54  ;;  %v14638_v54 = vsub.s32 1, %v14636_v53 }
 0x3ac   : > { %v13005_v57 = vrot.slane %v12994_v20, %v14638_v54 }
 0x3ae   : > { %3699 = vmatmul.mubr.bf16.gmra.mrb[164].mxu0 %v12868_v18 }
 0x3af   : > { %3708 = vmatprep.mubr.bf16.mxu0 %v12882_v2 }
 0x3b1   : > { %4205 = vmatmul.mubr.bf16.gmra.mrb[212].mxu1 %v12525_v44 }
 0x3b2   : > { %4214 = vmatprep.mubr.bf16.mxu1 %v14635_v13 }
 0x3b6   : > { %3709 = vmatmul.mubr.bf16.gmra.mrb[168].mxu0 %v12880_v12 }
 0x3b7   : > { %3718 = vmatprep.mubr.bf16.mxu0 %v12895_v23 }
 0x3b9   : > { %4215 = vmatmul.mubr.bf16.gmra.mrb[216].mxu1 %v12537_v36  ;;  %v3450_v44 = vpop.f32.mrb[64].mxu0 }
 0x3ba   : > { %4224 = vmatprep.mubr.bf16.mxu1 %v12557_v45  ;;  %v9615_v48 = vadd.f32 %v3450_v44, %v13000_v7  ;;  %v3452_v19 = vpop.f32.mrb[65].mxu0 }
 0x3bb   : > { %v9616_v61 = vadd.f32 %v3452_v19, %v13005_v57  ;;  %v3454_v40 = vpop.f32.mrb[66].mxu0 }
 0x3bc   : > { %v9617_v43 = vadd.f32 %v3454_v40, %v13000_v7  ;;  %v3456_v63 = vpop.f32.mrb[67].mxu0  ;;  %v4475_v4 = vmax.f32 %v9615_v48, 0.0 }
 0x3bd   : > { %v9618_v0 = vadd.f32 %v3456_v63, %v13005_v57  ;;  %v4476_v36 = vmax.f32 %v9616_v61, 0.0 }
 0x3be   : > { %v4479_v6 = vmax.f32 %v9617_v43, 0.0  ;;  %3719 = vmatmul.mubr.bf16.gmra.mrb[172].mxu0 %v12893_v30 }
 0x3bf   : > { %3728 = vmatprep.mubr.bf16.mxu0 %v12907_v14  ;;  %v4480_v15 = vmax.f32 %v9618_v0, 0.0 }
 0x3c0   : > { %v13016_v45 = vpack.c.bf16 %v4479_v6, %v4475_v4 }
 0x3c1   : > { %4225 = vmatmul.mubr.bf16.gmra.mrb[220].mxu1 %v14639_v21  ;;  %v3460_v56 = vpop.f32.mrb[68].mxu0  ;;  %v13020_v10 = vpack.c.bf16 %v4480_v15, %v4476_v36 }
 0x3c2   : > { %4234 = vmatprep.mubr.bf16.mxu1 %v14640_v5  ;;  %v9619_v13 = vadd.f32 %v3460_v56, %v13000_v7  ;;  %v3462_v24 = vpop.f32.mrb[69].mxu0 }
 0x3c3   : > { %v9620_v54 = vadd.f32 %v3462_v24, %v13005_v57  ;;  %v3464_v44 = vpop.f32.mrb[70].mxu0 }
 0x3c4   : > { %v9621_v48 = vadd.f32 %v3464_v44, %v13000_v7  ;;  %v3466_v19 = vpop.f32.mrb[71].mxu0  ;;  %v4483_v40 = vmax.f32 %v9619_v13, 0.0 }
 0x3c5   : > { %v9622_v61 = vadd.f32 %v3466_v19, %v13005_v57  ;;  %v4484_v63 = vmax.f32 %v9620_v54, 0.0 }
 0x3c6   : > { %3729 = vmatmul.mubr.bf16.gmra.mrb[176].mxu0 %v12905_v52  ;;  %v4487_v43 = vmax.f32 %v9621_v48, 0.0 }
 0x3c7   : > { %3738 = vmatprep.mubr.bf16.mxu0 %v12920_v59  ;;  %v4488_v0 = vmax.f32 %v9622_v61, 0.0 }
 0x3c8   : > { %v13029_v4 = vpack.c.bf16 %v4487_v43, %v4483_v40 }
 0x3c9   : > { %4235 = vmatmul.mubr.bf16.gmra.mrb[224].mxu1 %v12567_v51  ;;  %v3470_v6 = vpop.f32.mrb[72].mxu0  ;;  %v13032_v36 = vpack.c.bf16 %v4488_v0, %v4484_v63 }
 0x3ca   : > { %4244 = vmatprep.mubr.bf16.mxu1 %v12587_v62  ;;  %v9623_v15 = vadd.f32 %v3470_v6, %v13000_v7  ;;  %v3472_v21 = vpop.f32.mrb[73].mxu0 }
 0x3cb   : > { %v9624_v56 = vadd.f32 %v3472_v21, %v13005_v57  ;;  %v3474_v5 = vpop.f32.mrb[74].mxu0 }
 0x3cc   : > { %v9625_v13 = vadd.f32 %v3474_v5, %v13000_v7  ;;  %v3476_v24 = vpop.f32.mrb[75].mxu0  ;;  %v4491_v51 = vmax.f32 %v9623_v15, 0.0 }
 0x3cd   : > { %v9626_v54 = vadd.f32 %v3476_v24, %v13005_v57  ;;  %v4492_v62 = vmax.f32 %v9624_v56, 0.0  ;;  %v14641_v24 = vld [vmem:[#allocation63_spill] sm:$0xff] }
 0x3ce   : > { %3739 = vmatmul.mubr.bf16.gmra.mrb[180].mxu0 %v12918_v55  ;;  %v4495_v44 = vmax.f32 %v9625_v13, 0.0 }
 0x3cf   : > { %3748 = vmatprep.mubr.bf16.mxu0 %v12932_v27  ;;  %v4496_v48 = vmax.f32 %v9626_v54, 0.0 }
 0x3d0   : > { %v13041_v19 = vpack.c.bf16 %v4495_v44, %v4491_v51  ;;  %v14642_v44 = vld [vmem:[#allocation65_spill] sm:$0xff] }
 0x3d1   : > { %4245 = vmatmul.mubr.bf16.gmra.mrb[228].mxu1 %v12585_v3  ;;  %v3480_v61 = vpop.f32.mrb[76].mxu0  ;;  %v13044_v40 = vpack.c.bf16 %v4496_v48, %v4492_v62 }
 0x3d2   : > { %4254 = vmatprep.mubr.bf16.mxu1 %v12599_v11  ;;  %v9627_v43 = vadd.f32 %v3480_v61, %v13000_v7  ;;  %v3482_v63 = vpop.f32.mrb[77].mxu0 }
 0x3d3   : > { %v9628_v0 = vadd.f32 %v3482_v63, %v13005_v57  ;;  %v3484_v6 = vpop.f32.mrb[78].mxu0 }
 0x3d4   : > { %v9629_v15 = vadd.f32 %v3484_v6, %v13000_v7  ;;  %v3486_v21 = vpop.f32.mrb[79].mxu0  ;;  %v4499_v3 = vmax.f32 %v9627_v43, 0.0 }
 0x3d5   : > { %v9630_v56 = vadd.f32 %v3486_v21, %v13005_v57  ;;  %v4500_v11 = vmax.f32 %v9628_v0, 0.0 }
 0x3d6   : > { %3749 = vmatmul.mubr.bf16.gmra.mrb[184].mxu0 %v12930_v49  ;;  %v4503_v5 = vmax.f32 %v9629_v15, 0.0 }
 0x3d7   : > { %3758 = vmatprep.mubr.bf16.mxu0 %v12945_v16  ;;  %v4504_v13 = vmax.f32 %v9630_v56, 0.0 }
 0x3d8   : > { %v13053_v54 = vpack.c.bf16 %v4503_v5, %v4499_v3 }
 0x3d9   : > { %4255 = vmatmul.mubr.bf16.gmra.mrb[232].mxu1 %v14641_v24  ;;  %v3490_v51 = vpop.f32.mrb[80].mxu0  ;;  %v13056_v62 = vpack.c.bf16 %v4504_v13, %v4500_v11  ;;  %v14643_v11 = vld [vmem:[#allocation66_spill] sm:$0xff] }
 0x3da   : > { %4264 = vmatprep.mubr.bf16.mxu1 %v14642_v44  ;;  %v9631_v48 = vadd.f32 %v3490_v51, %v13000_v7  ;;  %v3492_v61 = vpop.f32.mrb[81].mxu0  ;;  %v14644_v51 = vld [vmem:[#allocation67_spill] sm:$0xff] }
 0x3db   : > { %v9632_v63 = vadd.f32 %v3492_v61, %v13005_v57  ;;  %v3494_v43 = vpop.f32.mrb[82].mxu0 }
 0x3dc   : > { %v9633_v6 = vadd.f32 %v3494_v43, %v13000_v7  ;;  %v3496_v15 = vpop.f32.mrb[83].mxu0  ;;  %v4507_v21 = vmax.f32 %v9631_v48, 0.0 }
 0x3dd   : > { %v9634_v0 = vadd.f32 %v3496_v15, %v13005_v57  ;;  %v4508_v3 = vmax.f32 %v9632_v63, 0.0 }
 0x3de   : > { %3759 = vmatmul.mubr.bf16.gmra.mrb[188].mxu0 %v12943_v29  ;;  %v4511_v56 = vmax.f32 %v9633_v6, 0.0  ;;  %v10757_v6 = vld [vmem:[#allocation6 + $0x80] sm:$0xff]  }
 0x3df   : > { %5154 = vmatprep.mubr.bf16.mxu0 %v13020_v10  ;;  %v4512_v5 = vmax.f32 %v9634_v0, 0.0 }
 0x3e0   : > { %v13065_v13 = vpack.c.bf16 %v4511_v56, %v4507_v21 }
 0x3e1   : > { %4265 = vmatmul.mubr.bf16.gmra.mrb[236].mxu1 %v14643_v11  ;;  %v3500_v24 = vpop.f32.mrb[84].mxu0  ;;  %v13068_v44 = vpack.c.bf16 %v4512_v5, %v4508_v3  ;;  %v10758_v3 = vld [vmem:[#allocation6 + $0x88] sm:$0xff]  }
 0x3e2   : > { %4274 = vmatprep.mubr.bf16.mxu1 %v14644_v51  ;;  %v9635_v61 = vadd.f32 %v3500_v24, %v13000_v7  ;;  %v3502_v43 = vpop.f32.mrb[85].mxu0  ;;  %v14645_v24 = vld [vmem:[#allocation68_spill] sm:$0xff] }
 0x3e3   : > { %v9636_v15 = vadd.f32 %v3502_v43, %v13005_v57  ;;  %v3504_v48 = vpop.f32.mrb[86].mxu0 }
 0x3e4   : > { %v9637_v10 = vadd.f32 %v3504_v48, %v13000_v7  ;;  %v3506_v63 = vpop.f32.mrb[87].mxu0  ;;  %v4515_v21 = vmax.f32 %v9635_v61, 0.0  ;;  %v14646_v48 = vld [vmem:[#allocation69_spill] sm:$0xff] }
 0x3e5   : > { %v9638_v0 = vadd.f32 %v3506_v63, %v13005_v57  ;;  %v4516_v5 = vmax.f32 %v9636_v15, 0.0  ;;  %v10759_v15 = vld [vmem:[#allocation6 + $0x90] sm:$0xff]  }
 0x3e6   : > { %5155 = vmatmul.mubr.bf16.vlgmr.msra.gmra.mrb[192].mxu0 %v13016_v45  ;;  %v4519_v56 = vmax.f32 %v9637_v10, 0.0 }
 0x3e7   : > { %5412 = vmatpush1.bf16.msra.mxu0 %v10757_v6  ;;  %5162 = vmatprep.mubr.bf16.mxu0 %v13032_v36  ;;  %v4520_v11 = vmax.f32 %v9638_v0, 0.0 }
 0x3e8   : > { %5413 = vmatprep.subr.bf16.mxu0 %v14527_v37  ;;  %v13078_v51 = vpack.c.bf16 %v4519_v56, %v4515_v21 }
 0x3e9   : > { %4275 = vmatmul.mubr.bf16.gmra.mrb[240].mxu1 %v14645_v24  ;;  %v3510_v43 = vpop.f32.mrb[88].mxu0  ;;  %v13081_v63 = vpack.c.bf16 %v4520_v11, %v4516_v5 }
 0x3ea   : > { %4284 = vmatprep.mubr.bf16.mxu1 %v14646_v48  ;;  %v9639_v45 = vadd.f32 %v3510_v43, %v13000_v7  ;;  %v3512_v61 = vpop.f32.mrb[89].mxu0  ;;  %v10760_v43 = vld [vmem:[#allocation6 + $0x98] sm:$0xff]   ;;  %v14647_v48 = vld [vmem:[#allocation71_spill] sm:$0xff] }
 0x3eb   : > { %v9640_v6 = vadd.f32 %v3512_v61, %v13005_v57  ;;  %v3514_v36 = vpop.f32.mrb[90].mxu0  ;;  %5414 = vmatpush1.bf16.msra.mxu0 %v10758_v3 }
 0x3ec   : > { %v9641_v10 = vadd.f32 %v3514_v36, %v13000_v7  ;;  %v3516_v0 = vpop.f32.mrb[91].mxu0  ;;  %5415 = vmatprep.subr.bf16.mxu0 %v14527_v37  ;;  %v4523_v56 = vmax.f32 %v9639_v45, 0.0  ;;  %v14648_v36 = vld [vmem:[#allocation74_spill] sm:$0xff] }
 0x3ed   : > { %v9642_v21 = vadd.f32 %v3516_v0, %v13005_v57  ;;  %v4524_v11 = vmax.f32 %v9640_v6, 0.0  ;;  %v10761_v6 = vld [vmem:[#allocation6 + $0xa0] sm:$0xff]  }
 0x3ee   : > { %5163 = vmatmul.mubr.bf16.gmra.mrb[196].mxu0 %v13029_v4  ;;  %v4527_v5 = vmax.f32 %v9641_v10, 0.0 }
 0x3ef   : > { %5170 = vmatprep.mubr.bf16.mxu0 %v13044_v40  ;;  %5416 = vmatpush1.bf16.msra.mxu0 %v10759_v15  ;;  %v4528_v24 = vmax.f32 %v9642_v21, 0.0 }
 0x3f0   : > { %5417 = vmatprep.subr.bf16.mxu0 %v14527_v37  ;;  %v13092_v3 = vpack.c.bf16 %v4527_v5, %v4523_v56 }
 0x3f1   : > { %4285 = vmatmul.mubr.bf16.gmra.mrb[244].mxu1 %v14647_v48  ;;  %v3520_v61 = vpop.f32.mrb[92].mxu0  ;;  %v13095_v0 = vpack.c.bf16 %v4528_v24, %v4524_v11 }
 0x3f2   : > { %4294 = vmatprep.mubr.bf16.mxu1 %v14648_v36  ;;  %v9643_v4 = vadd.f32 %v3520_v61, %v13000_v7  ;;  %v3522_v45 = vpop.f32.mrb[93].mxu0  ;;  %v10762_v61 = vld [vmem:[#allocation6 + $0xa8] sm:$0xff]  }
 0x3f3   : > { %v9644_v40 = vadd.f32 %v3522_v45, %v13005_v57  ;;  %v3524_v15 = vpop.f32.mrb[94].mxu0  ;;  %5418 = vmatpush1.bf16.msra.mxu0 %v10760_v43 }
 0x3f4   : > { %v9645_v10 = vadd.f32 %v3524_v15, %v13000_v7  ;;  %v3526_v21 = vpop.f32.mrb[95].mxu0  ;;  %5419 = vmatprep.subr.bf16.mxu0 %v14527_v37  ;;  %v4531_v5 = vmax.f32 %v9643_v4, 0.0  ;;  %v10763_v15 = vld [vmem:[#allocation6 + $0xb0] sm:$0xff]  }
 0x3f5   : > { %v9646_v56 = vadd.f32 %v3526_v21, %v13005_v57  ;;  %v4532_v24 = vmax.f32 %v9644_v40, 0.0 }
 0x3f6   : > { %5171 = vmatmul.mubr.bf16.gmra.mrb[200].mxu0 %v13041_v19  ;;  %v4535_v11 = vmax.f32 %v9645_v10, 0.0 }
 0x3f7   : > { %5178 = vmatprep.mubr.bf16.mxu0 %v13056_v62  ;;  %v4536_v48 = vmax.f32 %v9646_v56, 0.0  ;;  %5420 = vmatpush1.bf16.msra.mxu0 %v10761_v6 }
 0x3f8   : > { %v13105_v43 = vpack.c.bf16 %v4535_v11, %v4531_v5  ;;  %5421 = vmatprep.subr.bf16.mxu0 %v14527_v37  ;;  %v10764_v11 = vld [vmem:[#allocation6 + $0xb8] sm:$0xff]  }
 0x3f9   : > { %4295 = vmatmul.mubr.bf16.gmra.mrb[248].mxu1 %v12657_v32  ;;  %v3530_v36 = vpop.f32.mrb[96].mxu0  ;;  %v13109_v45 = vpack.c.bf16 %v4536_v48, %v4532_v24 }
 0x3fa   : > { %4304 = vmatprep.mubr.bf16.mxu1 %v12677_v9  ;;  %v9647_v19 = vadd.f32 %v3530_v36, %v13000_v7  ;;  %v3532_v4 = vpop.f32.mrb[97].mxu0 }
 0x3fb   : > { %v9648_v62 = vadd.f32 %v3532_v4, %v13005_v57  ;;  %v3534_v40 = vpop.f32.mrb[98].mxu0  ;;  %5422 = vmatpush1.bf16.msra.mxu0 %v10762_v61  ;;  %v10765_v4 = vld [vmem:[#allocation6 + $0xc0] sm:$0xff]  }
 0x3fc   : > { %v9649_v6 = vadd.f32 %v3534_v40, %v13000_v7  ;;  %v3536_v32 = vpop.f32.mrb[99].mxu0  ;;  %5423 = vmatprep.subr.bf16.mxu0 %v14527_v37  ;;  %v4539_v9 = vmax.f32 %v9647_v19, 0.0 }
 0x3fd   : > { %v9650_v10 = vadd.f32 %v3536_v32, %v13005_v57  ;;  %v4540_v56 = vmax.f32 %v9648_v62, 0.0 }
 0x3fe   : > { %5179 = vmatmul.mubr.bf16.gmra.mrb[204].mxu0 %v13053_v54  ;;  %v4543_v21 = vmax.f32 %v9649_v6, 0.0 }
 0x3ff   : > { %5186 = vmatprep.mubr.bf16.mxu0 %v13068_v44  ;;  %v4544_v5 = vmax.f32 %v9650_v10, 0.0  ;;  %5424 = vmatpush1.bf16.msra.mxu0 %v10763_v15  ;;  %v10766_v10 = vld [vmem:[#allocation6 + $0xc8] sm:$0xff]  }
 0x400   : > { %v13119_v24 = vpack.c.bf16 %v4543_v21, %v4539_v9  ;;  %5425 = vmatprep.subr.bf16.mxu0 %v14527_v37 }
 0x401   : > { %4305 = vmatmul.mubr.bf16.gmra.mrb[252].mxu1 %v12675_v17  ;;  %v3540_v48 = vpop.f32.mrb[100].mxu0  ;;  %v13123_v61 = vpack.c.bf16 %v4544_v5, %v4540_v56 }
 0x402   : > { %4314 = vmatprep.mubr.bf16.mxu1 %v12701_v39  ;;  %v9651_v54 = vadd.f32 %v3540_v48, %v13000_v7  ;;  %v3542_v36 = vpop.f32.mrb[101].mxu0  ;;  %v10767_v48 = vld [vmem:[#allocation6 + $0xd0] sm:$0xff]  }
 0x403   : > { %v9652_v44 = vadd.f32 %v3542_v36, %v13005_v57  ;;  %v3544_v19 = vpop.f32.mrb[102].mxu0  ;;  %5426 = vmatpush1.bf16.msra.mxu0 %v10764_v11 }
 0x404   : > { %v9653_v62 = vadd.f32 %v3544_v19, %v13000_v7  ;;  %v3546_v17 = vpop.f32.mrb[103].mxu0  ;;  %5427 = vmatprep.subr.bf16.mxu0 %v14527_v37  ;;  %v4547_v39 = vmax.f32 %v9651_v54, 0.0 }
 0x405   : > { %v9654_v40 = vadd.f32 %v3546_v17, %v13005_v57  ;;  %v4548_v6 = vmax.f32 %v9652_v44, 0.0 }
 0x406   : > { %5187 = vmatmul.mubr.bf16.gmra.mrb[208].mxu0 %v13065_v13  ;;  %v4551_v15 = vmax.f32 %v9653_v62, 0.0 }
 0x407   : > { %5194 = vmatprep.mubr.bf16.mxu0 %v13081_v63  ;;  %v4552_v32 = vmax.f32 %v9654_v40, 0.0  ;;  %5428 = vmatpush1.bf16.msra.mxu0 %v10765_v4 }
 0x408   : > { %v13133_v9 = vpack.c.bf16 %v4551_v15, %v4547_v39  ;;  %5429 = vmatprep.subr.bf16.mxu0 %v14527_v37 }
 0x409   : > { %4315 = vmatmul.mubr.bf16.gmra.mrb[0].mxu1 %v12699_v22  ;;  %v3550_v21 = vpop.f32.mrb[104].mxu0  ;;  %v13137_v56 = vpack.c.bf16 %v4552_v32, %v4548_v6 }
 0x40a   : > { %4324 = vmatprep.mubr.bf16.mxu1 %v12726_v26  ;;  %v9655_v13 = vadd.f32 %v3550_v21, %v13000_v7  ;;  %v3552_v5 = vpop.f32.mrb[105].mxu0 }
 0x40b   : > { %v9656_v63 = vadd.f32 %v3552_v5, %v13005_v57  ;;  %v3554_v11 = vpop.f32.mrb[106].mxu0  ;;  %5430 = vmatpush1.bf16.msra.mxu0 %v10766_v10 }
 0x40c   : > { %v9657_v54 = vadd.f32 %v3554_v11, %v13000_v7  ;;  %v3556_v22 = vpop.f32.mrb[107].mxu0  ;;  %5431 = vmatprep.subr.bf16.mxu0 %v14527_v37  ;;  %v4555_v26 = vmax.f32 %v9655_v13, 0.0 }
 0x40d   : > { %v9658_v36 = vadd.f32 %v3556_v22, %v13005_v57  ;;  %v4556_v19 = vmax.f32 %v9656_v63, 0.0 }
 0x40e   : > { %5195 = vmatmul.mubr.bf16.gmra.mrb[212].mxu0 %v13078_v51  ;;  %v4559_v44 = vmax.f32 %v9657_v54, 0.0 }
 0x40f   : > { %5202 = vmatprep.mubr.bf16.mxu0 %v13095_v0  ;;  %v4560_v4 = vmax.f32 %v9658_v36, 0.0  ;;  %5432 = vmatpush1.bf16.msra.mxu0 %v10767_v48  ;;  %v10768_v48 = vld [vmem:[#allocation6 + $0xd8] sm:$0xff]  }
 0x410   : > { %v13147_v62 = vpack.c.bf16 %v4559_v44, %v4555_v26  ;;  %5433 = vmatprep.subr.bf16.mxu0 %v14527_v37 }
 0x411   : > { %4325 = vmatmul.mubr.bf16.gmra.mrb[4].mxu1 %v12724_v42  ;;  %v3560_v17 = vpop.f32.mrb[108].mxu0  ;;  %v13151_v40 = vpack.c.bf16 %v4560_v4, %v4556_v19 }
 0x412   : > { %4334 = vmatprep.mubr.bf16.mxu1 %v12752_v46  ;;  %v9659_v51 = vadd.f32 %v3560_v17, %v13000_v7  ;;  %v3562_v39 = vpop.f32.mrb[109].mxu0 }
 0x413   : > { %v9660_v15 = vadd.f32 %v3562_v39, %v13005_v57  ;;  %v3564_v0 = vpop.f32.mrb[110].mxu0  ;;  %5434 = vmatpush1.bf16.msra.mxu0 %v10768_v48  ;;  %v10769_v48 = vld [vmem:[#allocation6 + $0xe0] sm:$0xff]  }
 0x414   : > { %v9661_v6 = vadd.f32 %v3564_v0, %v13000_v7  ;;  %v3566_v32 = vpop.f32.mrb[111].mxu0  ;;  %v4563_v10 = vmax.f32 %v9659_v51, 0.0  ;;  %5435 = vmatprep.subr.bf16.mxu0 %v14527_v37 }
 0x415   : > { %v9662_v42 = vadd.f32 %v3566_v32, %v13005_v57  ;;  %v4564_v46 = vmax.f32 %v9660_v15, 0.0 }
 0x416   : > { %5203 = vmatmul.mubr.bf16.gmra.mrb[216].mxu0 %v13092_v3  ;;  %v4567_v21 = vmax.f32 %v9661_v6, 0.0 }
 0x417   : > { %5210 = vmatprep.mubr.bf16.mxu0 %v13109_v45  ;;  %v4568_v13 = vmax.f32 %v9662_v42, 0.0  ;;  %5436 = vmatpush1.bf16.msra.mxu0 %v10769_v48 }
 0x418   : > { %v13160_v5 = vpack.c.bf16 %v4567_v21, %v4563_v10  ;;  %5437 = vmatprep.subr.bf16.mxu0 %v14527_v37 }
 0x419   : > { %4335 = vmatmul.mubr.bf16.gmra.mrb[8].mxu1 %v12750_v1  ;;  %v3570_v63 = vpop.f32.mrb[112].mxu0  ;;  %v13163_v11 = vpack.c.bf16 %v4568_v13, %v4564_v46 }
 0x41a   : > { %4344 = vmatprep.mubr.bf16.mxu1 %v12778_v28  ;;  %v9663_v54 = vadd.f32 %v3570_v63, %v13000_v7  ;;  %v3572_v22 = vpop.f32.mrb[113].mxu0 }
 0x41b   : > { %v9664_v3 = vadd.f32 %v3572_v22, %v13005_v57  ;;  %v3574_v36 = vpop.f32.mrb[114].mxu0 }
 0x41c   : > { %v9665_v45 = vadd.f32 %v3574_v36, %v13000_v7  ;;  %v3576_v26 = vpop.f32.mrb[115].mxu0  ;;  %v4571_v28 = vmax.f32 %v9663_v54, 0.0 }
 0x41d   : > { %v9666_v1 = vadd.f32 %v3576_v26, %v13005_v57  ;;  %v4572_v19 = vmax.f32 %v9664_v3, 0.0 }
 0x41e   : > { %5211 = vmatmul.mubr.bf16.gmra.mrb[220].mxu0 %v13105_v43  ;;  %v4575_v44 = vmax.f32 %v9665_v45, 0.0 }
 0x41f   : > { %5218 = vmatprep.mubr.bf16.mxu0 %v13123_v61  ;;  %v4576_v4 = vmax.f32 %v9666_v1, 0.0 }
 0x420   : > { %v13173_v17 = vpack.c.bf16 %v4575_v44, %v4571_v28 }
 0x421   : > { %4345 = vmatmul.mubr.bf16.gmra.mrb[12].mxu1 %v12776_v35  ;;  %v3580_v51 = vpop.f32.mrb[116].mxu0  ;;  %v13176_v39 = vpack.c.bf16 %v4576_v4, %v4572_v19 }
 0x422   : > { %4354 = vmatprep.mubr.bf16.mxu1 %v12804_v50  ;;  %v9667_v15 = vadd.f32 %v3580_v51, %v13000_v7  ;;  %v3582_v0 = vpop.f32.mrb[117].mxu0 }
 0x423   : > { %v9668_v43 = vadd.f32 %v3582_v0, %v13005_v57  ;;  %v3584_v6 = vpop.f32.mrb[118].mxu0 }
 0x424   : > { %v9669_v32 = vadd.f32 %v3584_v6, %v13000_v7  ;;  %v3586_v61 = vpop.f32.mrb[119].mxu0  ;;  %v4579_v35 = vmax.f32 %v9667_v15, 0.0 }
 0x425   : > { %v9670_v42 = vadd.f32 %v3586_v61, %v13005_v57  ;;  %v4580_v50 = vmax.f32 %v9668_v43, 0.0 }
 0x426   : > { %5219 = vmatmul.mubr.bf16.gmra.mrb[224].mxu0 %v13119_v24  ;;  %v4583_v10 = vmax.f32 %v9669_v32, 0.0 }
 0x427   : > { %5226 = vmatprep.mubr.bf16.mxu0 %v13137_v56  ;;  %v4584_v21 = vmax.f32 %v9670_v42, 0.0 }
 0x428   : > { %v13185_v46 = vpack.c.bf16 %v4583_v10, %v4579_v35  ;;  %v10770_v10 = vld [vmem:[#allocation6 + $0xe8] sm:$0xff]  }
 0x429   : > { %4355 = vmatmul.mubr.bf16.gmra.mrb[16].mxu1 %v12802_v31  ;;  %v3590_v13 = vpop.f32.mrb[120].mxu0  ;;  %v13188_v63 = vpack.c.bf16 %v4584_v21, %v4580_v50  ;;  %5438 = vmatpush1.bf16.msra.mxu0 %v10770_v10 }
 0x42a   : > { %4364 = vmatprep.mubr.bf16.mxu1 %v12818_v8  ;;  %v9671_v54 = vadd.f32 %v3590_v13, %v13000_v7  ;;  %v3592_v22 = vpop.f32.mrb[121].mxu0  ;;  %5439 = vmatprep.subr.bf16.mxu0 %v14527_v37 }
 0x42b   : > { %v9672_v24 = vadd.f32 %v3592_v22, %v13005_v57  ;;  %v3594_v3 = vpop.f32.mrb[122].mxu0 }
 0x42c   : > { %v9673_v56 = vadd.f32 %v3594_v3, %v13000_v7  ;;  %v3596_v36 = vpop.f32.mrb[123].mxu0  ;;  %v4587_v8 = vmax.f32 %v9671_v54, 0.0 }
 0x42d   : > { %v9674_v31 = vadd.f32 %v3596_v36, %v13005_v57  ;;  %v4588_v26 = vmax.f32 %v9672_v24, 0.0 }
 0x42e   : > { %5227 = vmatmul.mubr.bf16.gmra.mrb[228].mxu0 %v13133_v9  ;;  %v4591_v45 = vmax.f32 %v9673_v56, 0.0 }
 0x42f   : > { %5234 = vmatprep.mubr.bf16.mxu0 %v13151_v40  ;;  %v4592_v1 = vmax.f32 %v9674_v31, 0.0 }
 0x430   : > { %v13198_v28 = vpack.c.bf16 %v4591_v45, %v4587_v8 }
 0x431   : > { %4365 = vmatmul.mubr.bf16.gmra.mrb[20].mxu1 %v12816_v60  ;;  %v3600_v44 = vpop.f32.mrb[124].mxu0  ;;  %v13201_v19 = vpack.c.bf16 %v4592_v1, %v4588_v26 }
 0x432   : > { %4374 = vmatprep.mubr.bf16.mxu1 %v12832_v58  ;;  %v9675_v4 = vadd.f32 %v3600_v44, %v13000_v7  ;;  %v3602_v51 = vpop.f32.mrb[125].mxu0 }
 0x433   : > { %v9676_v9 = vadd.f32 %v3602_v51, %v13005_v57  ;;  %v3604_v15 = vpop.f32.mrb[126].mxu0 }
 0x434   : > { %v9677_v0 = vadd.f32 %v3604_v15, %v13000_v7  ;;  %v3606_v40 = vpop.f32.mrb[127].mxu0  ;;  %v4595_v60 = vmax.f32 %v9675_v4, 0.0 }
 0x435   : > { %v9678_v43 = vadd.f32 %v3606_v40, %v13005_v57  ;;  %v4596_v58 = vmax.f32 %v9676_v9, 0.0 }
 0x436   : > { %5235 = vmatmul.mubr.bf16.gmra.mrb[232].mxu0 %v13147_v62  ;;  %v4599_v6 = vmax.f32 %v9677_v0, 0.0  ;;  %v10771_v0 = vld [vmem:[#allocation6 + $0xf0] sm:$0xff]  }
 0x437   : > { %5242 = vmatprep.mubr.bf16.mxu0 %v13163_v11  ;;  %v4600_v32 = vmax.f32 %v9678_v43, 0.0  ;;  %5440 = vmatpush1.bf16.msra.mxu0 %v10771_v0 }
 0x438   : > { %v13210_v61 = vpack.c.bf16 %v4599_v6, %v4595_v60  ;;  %5441 = vmatprep.subr.bf16.mxu0 %v14527_v37 }
 0x439   : > { %4375 = vmatmul.mubr.bf16.gmra.mrb[24].mxu1 %v12830_v33  ;;  %v3610_v42 = vpop.f32.mrb[128].mxu0  ;;  %v13213_v35 = vpack.c.bf16 %v4600_v32, %v4596_v58 }
 0x43a   : > { %4384 = vmatprep.mubr.bf16.mxu1 %v12845_v41  ;;  %v9679_v50 = vadd.f32 %v3610_v42, %v13000_v7  ;;  %v3612_v21 = vpop.f32.mrb[129].mxu0 }
 0x43b   : > { %v9680_v62 = vadd.f32 %v3612_v21, %v13005_v57  ;;  %v3614_v13 = vpop.f32.mrb[130].mxu0 }
 0x43c   : > { %v9681_v11 = vadd.f32 %v3614_v13, %v13000_v7  ;;  %v3616_v48 = vpop.f32.mrb[131].mxu0  ;;  %v4603_v54 = vmax.f32 %v9679_v50, 0.0 }
 0x43d   : > { %v9682_v33 = vadd.f32 %v3616_v48, %v13005_v57  ;;  %v4604_v41 = vmax.f32 %v9680_v62, 0.0 }
 0x43e   : > { %v4607_v22 = vmax.f32 %v9681_v11, 0.0  ;;  %5243 = vmatmul.mubr.bf16.gmra.mrb[236].mxu0 %v13160_v5 }
 0x43f   : > { %v4608_v24 = vmax.f32 %v9682_v33, 0.0  ;;  %5250 = vmatprep.mubr.bf16.mxu0 %v13176_v39 }
 0x440   : > { %v13222_v3 = vpack.c.bf16 %v4607_v22, %v4603_v54 }
 0x441   : > { %4385 = vmatmul.mubr.bf16.gmra.mrb[28].mxu1 %v12843_v34  ;;  %v13225_v56 = vpack.c.bf16 %v4608_v24, %v4604_v41  ;;  %v3620_v36 = vpop.f32.mrb[132].mxu0  ;;  %v14649_v41 = vsub.s32 2, %v14636_v53 }
 0x442   : > { %4394 = vmatprep.mubr.bf16.mxu1 %v12857_v47  ;;  %v9683_v31 = vadd.f32 %v3620_v36, %v13000_v7  ;;  %v3622_v8 = vpop.f32.mrb[133].mxu0 }
 0x443   : > { %v9684_v45 = vadd.f32 %v3622_v8, %v13005_v57  ;;  %v3624_v26 = vpop.f32.mrb[134].mxu0  ;;  %v13265_v24 = vrot.slane %v12994_v20, %v14649_v41 }
 0x444   : > { %v9685_v5 = vadd.f32 %v3624_v26, %v13000_v7  ;;  %v3626_v1 = vpop.f32.mrb[135].mxu0  ;;  %v4611_v44 = vmax.f32 %v9683_v31, 0.0 }
 0x445   : > { %v9686_v39 = vadd.f32 %v3626_v1, %v13005_v57  ;;  %v4612_v34 = vmax.f32 %v9684_v45, 0.0 }
 0x446   : > { %v4615_v4 = vmax.f32 %v9685_v5, 0.0  ;;  %5251 = vmatmul.mubr.bf16.gmra.mrb[240].mxu0 %v13173_v17 }
 0x447   : > { %v4616_v51 = vmax.f32 %v9686_v39, 0.0  ;;  %5258 = vmatprep.mubr.bf16.mxu0 %v13188_v63 }
 0x448   : > { %v13234_v47 = vpack.c.bf16 %v4615_v4, %v4611_v44 }
 0x449   : > { %4395 = vmatmul.mubr.bf16.gmra.mrb[32].mxu1 %v12855_v25  ;;  %v13237_v9 = vpack.c.bf16 %v4616_v51, %v4612_v34  ;;  %v3630_v15 = vpop.f32.mrb[136].mxu0 }
 0x44a   : > { %4404 = vmatprep.mubr.bf16.mxu1 %v12870_v38  ;;  %v9687_v40 = vadd.f32 %v3630_v15, %v13000_v7  ;;  %v3632_v43 = vpop.f32.mrb[137].mxu0 }
 0x44b   : > { %v9688_v60 = vadd.f32 %v3632_v43, %v13005_v57  ;;  %v3634_v17 = vpop.f32.mrb[138].mxu0 }
 0x44c   : > { %v9689_v6 = vadd.f32 %v3634_v17, %v13000_v7  ;;  %v3636_v63 = vpop.f32.mrb[139].mxu0  ;;  %v4619_v58 = vmax.f32 %v9687_v40, 0.0 }
 0x44d   : > { %v9690_v25 = vadd.f32 %v3636_v63, %v13005_v57  ;;  %v4620_v38 = vmax.f32 %v9688_v60, 0.0 }
 0x44e   : > { %v4623_v32 = vmax.f32 %v9689_v6, 0.0  ;;  %5259 = vmatmul.mubr.bf16.gmra.mrb[244].mxu0 %v13185_v46 }
 0x44f   : > { %v4624_v42 = vmax.f32 %v9690_v25, 0.0  ;;  %5266 = vmatprep.mubr.bf16.mxu0 %v13201_v19 }
 0x450   : > { %v13247_v10 = vpack.c.bf16 %v4623_v32, %v4619_v58 }
 0x451   : > { %4405 = vmatmul.mubr.bf16.gmra.mrb[36].mxu1 %v12868_v18  ;;  %v13250_v50 = vpack.c.bf16 %v4624_v42, %v4620_v38  ;;  %v3640_v21 = vpop.f32.mrb[140].mxu0 }
 0x452   : > { %4414 = vmatprep.mubr.bf16.mxu1 %v12882_v2  ;;  %v9691_v37 = vadd.f32 %v3640_v21, %v13000_v7  ;;  %v3642_v62 = vpop.f32.mrb[141].mxu0 }
 0x453   : > { %v9692_v13 = vadd.f32 %v3642_v62, %v13005_v57  ;;  %v3644_v11 = vpop.f32.mrb[142].mxu0 }
 0x454   : > { %v9693_v46 = vadd.f32 %v3644_v11, %v13000_v7  ;;  %v3646_v48 = vpop.f32.mrb[143].mxu0  ;;  %v4627_v33 = vmax.f32 %v9691_v37, 0.0 }
 0x455   : > { %v9694_v19 = vadd.f32 %v3646_v48, %v13005_v57  ;;  %v4628_v18 = vmax.f32 %v9692_v13, 0.0 }
 0x456   : > { %v4631_v54 = vmax.f32 %v9693_v46, 0.0  ;;  %5267 = vmatmul.mubr.bf16.gmra.mrb[248].mxu0 %v13198_v28  ;;  %v14650_v28 = vsub.s32 3, %v14636_v53 }
 0x457   : > { %v4632_v22 = vmax.f32 %v9694_v19, 0.0  ;;  %5274 = vmatprep.mubr.bf16.mxu0 %v13213_v35  ;;  %v10772_v35 = vld [vmem:[#allocation6 + $0xf8] sm:$0xff]  }
 0x458   : > { %v13259_v2 = vpack.c.bf16 %v4631_v54, %v4627_v33  ;;  %v13273_v8 = vrot.slane %v12994_v20, %v14650_v28  ;;  %5442 = vmatpush1.bf16.msra.mxu0 %v10772_v35 }
 0x459   : > { %4415 = vmatmul.mubr.bf16.gmra.mrb[40].mxu1 %v12880_v12  ;;  %v13267_v36 = vpack.c.bf16 %v4632_v22, %v4628_v18  ;;  %v3650_v31 = vpop.f32.mrb[144].mxu0 }
 0x45a   : > { %4424 = vmatprep.mubr.bf16.mxu1 %v12895_v23  ;;  %v9695_v45 = vadd.f32 %v3650_v31, %v13000_v7  ;;  %v3652_v26 = vpop.f32.mrb[145].mxu0 }
 0x45b   : > { %v9696_v12 = vadd.f32 %v3652_v26, %v13005_v57  ;;  %v3654_v5 = vpop.f32.mrb[146].mxu0 }
 0x45c   : > { %v4156_v1 = vpop.f32.mrb[192].mxu1  ;;  %v9697_v39 = vadd.f32 %v3654_v5, %v13000_v7  ;;  %v3656_v4 = vpop.f32.mrb[147].mxu0  ;;  %v4635_v51 = vmax.f32 %v9695_v45, 0.0 }
 0x45d   : > { %v9743_v44 = vadd.f32 %v4156_v1, %v13265_v24  ;;  %v4158_v23 = vpop.f32.mrb[193].mxu1  ;;  %v9698_v53 = vadd.f32 %v3656_v4, %v13005_v57  ;;  %v4636_v43 = vmax.f32 %v9696_v12, 0.0 }
 0x45e   : > { %v9744_v20 = vadd.f32 %v4158_v23, %v13273_v8  ;;  %v4160_v34 = vpop.f32.mrb[194].mxu1  ;;  %v4639_v15 = vmax.f32 %v9697_v39, 0.0  ;;  %5275 = vmatmul.mubr.bf16.gmra.mrb[252].mxu0 %v13210_v61 }
 0x45f   : > { %v9745_v0 = vadd.f32 %v4160_v34, %v13265_v24  ;;  %v4162_v40 = vpop.f32.mrb[195].mxu1  ;;  %v4640_v60 = vmax.f32 %v9698_v53, 0.0  ;;  %5282 = vmatprep.mubr.bf16.mxu0 %v13225_v56  ;;  %v4477_v63 = vmax.f32 %v9743_v44, 0.0 }
 0x460   : > { %v9746_v17 = vadd.f32 %v4162_v40, %v13273_v8  ;;  %v13285_v6 = vpack.c.bf16 %v4639_v15, %v4635_v51  ;;  %v4478_v32 = vmax.f32 %v9744_v20, 0.0 }
 0x461   : > { %v4481_v25 = vmax.f32 %v9745_v0, 0.0  ;;  %4425 = vmatmul.mubr.bf16.gmra.mrb[44].mxu1 %v12893_v30  ;;  %v13288_v58 = vpack.c.bf16 %v4640_v60, %v4636_v43  ;;  %v3660_v42 = vpop.f32.mrb[148].mxu0 }
 0x462   : > { %v4482_v38 = vmax.f32 %v9746_v17, 0.0  ;;  %4434 = vmatprep.mubr.bf16.mxu1 %v12907_v14  ;;  %v9699_v21 = vadd.f32 %v3660_v42, %v13000_v7  ;;  %v3662_v37 = vpop.f32.mrb[149].mxu0 }
 0x463   : > { %v13291_v61 = vpack.c.bf16 %v4481_v25, %v4477_v63  ;;  %v9700_v56 = vadd.f32 %v3662_v37, %v13005_v57  ;;  %v3664_v62 = vpop.f32.mrb[150].mxu0 }
 0x464   : > { %v4166_v13 = vpop.f32.mrb[196].mxu1  ;;  %v13295_v11 = vpack.c.bf16 %v4482_v38, %v4478_v32  ;;  %v9701_v30 = vadd.f32 %v3664_v62, %v13000_v7  ;;  %v3666_v48 = vpop.f32.mrb[151].mxu0  ;;  %v4643_v18 = vmax.f32 %v9699_v21, 0.0 }
 0x465   : > { %v9747_v46 = vadd.f32 %v4166_v13, %v13265_v24  ;;  %v4168_v19 = vpop.f32.mrb[197].mxu1  ;;  %v9702_v33 = vadd.f32 %v3666_v48, %v13005_v57  ;;  %v4644_v28 = vmax.f32 %v9700_v56, 0.0 }
 0x466   : > { %v9748_v14 = vadd.f32 %v4168_v19, %v13273_v8  ;;  %v4170_v54 = vpop.f32.mrb[198].mxu1  ;;  %v4647_v22 = vmax.f32 %v9701_v30, 0.0  ;;  %5283 = vmatmul.mubr.bf16.gmra.mrb[0].mxu0 %v13222_v3 }
 0x467   : > { %v9749_v41 = vadd.f32 %v4170_v54, %v13265_v24  ;;  %v4172_v31 = vpop.f32.mrb[199].mxu1  ;;  %v4648_v35 = vmax.f32 %v9702_v33, 0.0  ;;  %5290 = vmatprep.mubr.bf16.mxu0 %v13237_v9  ;;  %v4485_v12 = vmax.f32 %v9747_v46, 0.0 }
 0x468   : > { %v9750_v45 = vadd.f32 %v4172_v31, %v13273_v8  ;;  %v13305_v26 = vpack.c.bf16 %v4647_v22, %v4643_v18  ;;  %v4486_v39 = vmax.f32 %v9748_v14, 0.0 }
 0x469   : > { %v4489_v5 = vmax.f32 %v9749_v41, 0.0  ;;  %4435 = vmatmul.mubr.bf16.gmra.mrb[48].mxu1 %v12905_v52  ;;  %v13308_v1 = vpack.c.bf16 %v4648_v35, %v4644_v28  ;;  %v3670_v4 = vpop.f32.mrb[152].mxu0 }
 0x46a   : > { %v4490_v44 = vmax.f32 %v9750_v45, 0.0  ;;  %4444 = vmatprep.mubr.bf16.mxu1 %v12920_v59  ;;  %v9703_v3 = vadd.f32 %v3670_v4, %v13000_v7  ;;  %v3672_v23 = vpop.f32.mrb[153].mxu0 }
 0x46b   : > { %v13312_v53 = vpack.c.bf16 %v4489_v5, %v4485_v12  ;;  %v9704_v9 = vadd.f32 %v3672_v23, %v13005_v57  ;;  %v3674_v20 = vpop.f32.mrb[154].mxu0 }
 0x46c   : > { %v4176_v34 = vpop.f32.mrb[200].mxu1  ;;  %v13315_v51 = vpack.c.bf16 %v4490_v44, %v4486_v39  ;;  %v9705_v52 = vadd.f32 %v3674_v20, %v13000_v7  ;;  %v3676_v0 = vpop.f32.mrb[155].mxu0  ;;  %v4651_v17 = vmax.f32 %v9703_v3, 0.0 }
 0x46d   : > { %v9751_v15 = vadd.f32 %v4176_v34, %v13265_v24  ;;  %v4178_v40 = vpop.f32.mrb[201].mxu1  ;;  %v9706_v43 = vadd.f32 %v3676_v0, %v13005_v57  ;;  %v4652_v38 = vmax.f32 %v9704_v9, 0.0 }
 0x46e   : > { %v9752_v59 = vadd.f32 %v4178_v40, %v13273_v8  ;;  %v4180_v60 = vpop.f32.mrb[202].mxu1  ;;  %v4655_v63 = vmax.f32 %v9705_v52, 0.0  ;;  %5291 = vmatmul.mubr.bf16.gmra.mrb[4].mxu0 %v13234_v47 }
 0x46f   : > { %v9753_v25 = vadd.f32 %v4180_v60, %v13265_v24  ;;  %v4182_v32 = vpop.f32.mrb[203].mxu1  ;;  %v4656_v42 = vmax.f32 %v9706_v43, 0.0  ;;  %5298 = vmatprep.mubr.bf16.mxu0 %v13250_v50  ;;  %v4493_v56 = vmax.f32 %v9751_v15, 0.0 }
 0x470   : > { %v9754_v21 = vadd.f32 %v4182_v32, %v13273_v8  ;;  %v13325_v37 = vpack.c.bf16 %v4655_v63, %v4651_v17  ;;  %v4494_v30 = vmax.f32 %v9752_v59, 0.0 }
 0x471   : > { %v4497_v62 = vmax.f32 %v9753_v25, 0.0  ;;  %4445 = vmatmul.mubr.bf16.gmra.mrb[52].mxu1 %v12918_v55  ;;  %v13328_v13 = vpack.c.bf16 %v4656_v42, %v4652_v38  ;;  %v3680_v48 = vpop.f32.mrb[156].mxu0 }
 0x472   : > { %v4498_v46 = vmax.f32 %v9754_v21, 0.0  ;;  %4454 = vmatprep.mubr.bf16.mxu1 %v12932_v27  ;;  %v9707_v47 = vadd.f32 %v3680_v48, %v13000_v7  ;;  %v3682_v19 = vpop.f32.mrb[157].mxu0 }
 0x473   : > { %v13332_v33 = vpack.c.bf16 %v4497_v62, %v4493_v56  ;;  %v9708_v50 = vadd.f32 %v3682_v19, %v13005_v57  ;;  %v3684_v14 = vpop.f32.mrb[158].mxu0 }
 0x474   : > { %v4186_v54 = vpop.f32.mrb[204].mxu1  ;;  %v13335_v18 = vpack.c.bf16 %v4498_v46, %v4494_v30  ;;  %v9709_v55 = vadd.f32 %v3684_v14, %v13000_v7  ;;  %v3686_v41 = vpop.f32.mrb[159].mxu0  ;;  %v4659_v45 = vmax.f32 %v9707_v47, 0.0 }
 0x475   : > { %v9755_v22 = vadd.f32 %v4186_v54, %v13265_v24  ;;  %v4188_v31 = vpop.f32.mrb[205].mxu1  ;;  %v9710_v28 = vadd.f32 %v3686_v41, %v13005_v57  ;;  %v4660_v44 = vmax.f32 %v9708_v50, 0.0 }
 0x476   : > { %v9756_v27 = vadd.f32 %v4188_v31, %v13273_v8  ;;  %v4190_v35 = vpop.f32.mrb[206].mxu1  ;;  %v4663_v12 = vmax.f32 %v9709_v55, 0.0  ;;  %5299 = vmatmul.mubr.bf16.gmra.mrb[8].mxu0 %v13247_v10 }
 0x477   : > { %v9757_v5 = vadd.f32 %v4190_v35, %v13265_v24  ;;  %v4192_v39 = vpop.f32.mrb[207].mxu1  ;;  %v4664_v4 = vmax.f32 %v9710_v28, 0.0  ;;  %5306 = vmatprep.mubr.bf16.mxu0 %v13267_v36  ;;  %v4501_v9 = vmax.f32 %v9755_v22, 0.0 }
 0x478   : > { %v9758_v3 = vadd.f32 %v4192_v39, %v13273_v8  ;;  %v13345_v23 = vpack.c.bf16 %v4663_v12, %v4659_v45  ;;  %v4502_v52 = vmax.f32 %v9756_v27, 0.0 }
 0x479   : > { %v4505_v20 = vmax.f32 %v9757_v5, 0.0  ;;  %4455 = vmatmul.mubr.bf16.gmra.mrb[56].mxu1 %v12930_v49  ;;  %v13348_v34 = vpack.c.bf16 %v4664_v4, %v4660_v44  ;;  %v3690_v0 = vpop.f32.mrb[160].mxu0 }
 0x47a   : > { %v4506_v15 = vmax.f32 %v9758_v3, 0.0  ;;  %4464 = vmatprep.mubr.bf16.mxu1 %v12945_v16  ;;  %v9711_v10 = vadd.f32 %v3690_v0, %v13000_v7  ;;  %v3692_v40 = vpop.f32.mrb[161].mxu0 }
 0x47b   : > { %v13352_v43 = vpack.c.bf16 %v4505_v20, %v4501_v9  ;;  %v9712_v36 = vadd.f32 %v3692_v40, %v13005_v57  ;;  %v3694_v59 = vpop.f32.mrb[162].mxu0 }
 0x47c   : > { %v4196_v60 = vpop.f32.mrb[208].mxu1  ;;  %v13355_v17 = vpack.c.bf16 %v4506_v15, %v4502_v52  ;;  %v9713_v49 = vadd.f32 %v3694_v59, %v13000_v7  ;;  %v3696_v25 = vpop.f32.mrb[163].mxu0  ;;  %v4667_v21 = vmax.f32 %v9711_v10, 0.0 }
 0x47d   : > { %v9759_v63 = vadd.f32 %v4196_v60, %v13265_v24  ;;  %v4198_v32 = vpop.f32.mrb[209].mxu1  ;;  %v9714_v38 = vadd.f32 %v3696_v25, %v13005_v57  ;;  %v4668_v46 = vmax.f32 %v9712_v36, 0.0 }
 0x47e   : > { %v9760_v16 = vadd.f32 %v4198_v32, %v13273_v8  ;;  %v4200_v42 = vpop.f32.mrb[210].mxu1  ;;  %v4671_v56 = vmax.f32 %v9713_v49, 0.0  ;;  %5307 = vmatmul.mubr.bf16.gmra.mrb[12].mxu0 %v13259_v2 }
 0x47f   : > { %v9761_v62 = vadd.f32 %v4200_v42, %v13265_v24  ;;  %v4202_v30 = vpop.f32.mrb[211].mxu1  ;;  %v4672_v48 = vmax.f32 %v9714_v38, 0.0  ;;  %5314 = vmatprep.mubr.bf16.mxu0 %v13288_v58  ;;  %v4509_v50 = vmax.f32 %v9759_v63, 0.0 }
 0x480   : > { %v9762_v47 = vadd.f32 %v4202_v30, %v13273_v8  ;;  %v13365_v19 = vpack.c.bf16 %v4671_v56, %v4667_v21  ;;  %v4510_v55 = vmax.f32 %v9760_v16, 0.0 }
 0x481   : > { %v4513_v14 = vmax.f32 %v9761_v62, 0.0  ;;  %4465 = vmatmul.mubr.bf16.gmra.mrb[60].mxu1 %v12943_v29  ;;  %v13368_v54 = vpack.c.bf16 %v4672_v48, %v4668_v46  ;;  %v3700_v41 = vpop.f32.mrb[164].mxu0 }
 0x482   : > { %v4514_v22 = vmax.f32 %v9762_v47, 0.0  ;;  %v9715_v31 = vadd.f32 %v3700_v41, %v13000_v7  ;;  %v3702_v2 = vpop.f32.mrb[165].mxu0 }
 0x483   : > { %v13371_v28 = vpack.c.bf16 %v4513_v14, %v4509_v50  ;;  %v9716_v27 = vadd.f32 %v3702_v2, %v13005_v57  ;;  %v3704_v35 = vpop.f32.mrb[166].mxu0 }
 0x484   : > { %v4206_v58 = vpop.f32.mrb[212].mxu1  ;;  %v13374_v45 = vpack.c.bf16 %v4514_v22, %v4510_v55  ;;  %v9717_v12 = vadd.f32 %v3704_v35, %v13000_v7  ;;  %v3706_v5 = vpop.f32.mrb[167].mxu0  ;;  %v4675_v9 = vmax.f32 %v9715_v31, 0.0 }
 0x485   : > { %v9763_v29 = vadd.f32 %v4206_v58, %v13265_v24  ;;  %v4208_v39 = vpop.f32.mrb[213].mxu1  ;;  %v9718_v44 = vadd.f32 %v3706_v5, %v13005_v57  ;;  %v4676_v0 = vmax.f32 %v9716_v27, 0.0 }
 0x486   : > { %v9764_v4 = vadd.f32 %v4208_v39, %v13273_v8  ;;  %v4210_v3 = vpop.f32.mrb[214].mxu1  ;;  %v4679_v20 = vmax.f32 %v9717_v12, 0.0  ;;  %5315 = vmatmul.mubr.bf16.gmra.mrb[16].mxu0 %v13285_v6 }
 0x487   : > { %v9765_v52 = vadd.f32 %v4210_v3, %v13265_v24  ;;  %v4212_v15 = vpop.f32.mrb[215].mxu1  ;;  %v4680_v10 = vmax.f32 %v9718_v44, 0.0  ;;  %5322 = vmatprep.mubr.bf16.mxu0 %v13308_v1  ;;  %v4517_v59 = vmax.f32 %v9763_v29, 0.0 }
 0x488   : > { %v9766_v40 = vadd.f32 %v4212_v15, %v13273_v8  ;;  %v13384_v36 = vpack.c.bf16 %v4679_v20, %v4675_v9  ;;  %v4518_v63 = vmax.f32 %v9764_v4, 0.0 }
 0x489   : > { %v4521_v60 = vmax.f32 %v9765_v52, 0.0  ;;  %v13386_v49 = vpack.c.bf16 %v4680_v10, %v4676_v0  ;;  %v3710_v32 = vpop.f32.mrb[168].mxu0 }
 0x48a   : > { %v4522_v25 = vmax.f32 %v9766_v40, 0.0  ;;  %v9719_v38 = vadd.f32 %v3710_v32, %v13000_v7  ;;  %v3712_v16 = vpop.f32.mrb[169].mxu0 }
 0x48b   : > { %v13389_v42 = vpack.c.bf16 %v4521_v60, %v4517_v59  ;;  %v9720_v6 = vadd.f32 %v3712_v16, %v13005_v57  ;;  %v3714_v21 = vpop.f32.mrb[170].mxu0 }
 0x48c   : > { %v4216_v56 = vpop.f32.mrb[216].mxu1  ;;  %v13392_v62 = vpack.c.bf16 %v4522_v25, %v4518_v63  ;;  %v9721_v1 = vadd.f32 %v3714_v21, %v13000_v7  ;;  %v3716_v46 = vpop.f32.mrb[171].mxu0  ;;  %v4683_v55 = vmax.f32 %v9719_v38, 0.0 }
 0x48d   : > { %v9767_v30 = vadd.f32 %v4216_v56, %v13265_v24  ;;  %v4218_v48 = vpop.f32.mrb[217].mxu1  ;;  %v9722_v47 = vadd.f32 %v3716_v46, %v13005_v57  ;;  %v4684_v2 = vmax.f32 %v9720_v6, 0.0 }
 0x48e   : > { %v9768_v50 = vadd.f32 %v4218_v48, %v13273_v8  ;;  %v4220_v14 = vpop.f32.mrb[218].mxu1  ;;  %v4687_v22 = vmax.f32 %v9721_v1, 0.0  ;;  %5323 = vmatmul.mubr.bf16.gmra.mrb[20].mxu0 %v13305_v26 }
 0x48f   : > { %v9769_v41 = vadd.f32 %v4220_v14, %v13265_v24  ;;  %v4222_v31 = vpop.f32.mrb[219].mxu1  ;;  %v4688_v27 = vmax.f32 %v9722_v47, 0.0  ;;  %5330 = vmatprep.mubr.bf16.mxu0 %v13328_v13  ;;  %v4525_v12 = vmax.f32 %v9767_v30, 0.0 }
 0x490   : > { %v9770_v35 = vadd.f32 %v4222_v31, %v13273_v8  ;;  %v13402_v58 = vpack.c.bf16 %v4687_v22, %v4683_v55  ;;  %v4526_v39 = vmax.f32 %v9768_v50, 0.0 }
 0x491   : > { %v4529_v29 = vmax.f32 %v9769_v41, 0.0  ;;  %v13404_v5 = vpack.c.bf16 %v4688_v27, %v4684_v2  ;;  %v3720_v4 = vpop.f32.mrb[172].mxu0 }
 0x492   : > { %v4530_v44 = vmax.f32 %v9770_v35, 0.0  ;;  %v9723_v3 = vadd.f32 %v3720_v4, %v13000_v7  ;;  %v3722_v9 = vpop.f32.mrb[173].mxu0 }
 0x493   : > { %v13407_v20 = vpack.c.bf16 %v4529_v29, %v4525_v12  ;;  %v9724_v26 = vadd.f32 %v3722_v9, %v13005_v57  ;;  %v3724_v52 = vpop.f32.mrb[174].mxu0 }
 0x494   : > { %v4226_v15 = vpop.f32.mrb[220].mxu1  ;;  %v13410_v0 = vpack.c.bf16 %v4530_v44, %v4526_v39  ;;  %v9725_v13 = vadd.f32 %v3724_v52, %v13000_v7  ;;  %v3726_v40 = vpop.f32.mrb[175].mxu0  ;;  %v4691_v32 = vmax.f32 %v9723_v3, 0.0 }
 0x495   : > { %v9771_v10 = vadd.f32 %v4226_v15, %v13265_v24  ;;  %v4228_v59 = vpop.f32.mrb[221].mxu1  ;;  %v9726_v60 = vadd.f32 %v3726_v40, %v13005_v57  ;;  %v4692_v21 = vmax.f32 %v9724_v26, 0.0 }
 0x496   : > { %v9772_v63 = vadd.f32 %v4228_v59, %v13273_v8  ;;  %v4230_v25 = vpop.f32.mrb[222].mxu1  ;;  %v4695_v38 = vmax.f32 %v9725_v13, 0.0  ;;  %5331 = vmatmul.mubr.bf16.gmra.mrb[24].mxu0 %v13325_v37 }
 0x497   : > { %v9773_v16 = vadd.f32 %v4230_v25, %v13265_v24  ;;  %v4232_v6 = vpop.f32.mrb[223].mxu1  ;;  %v4696_v56 = vmax.f32 %v9726_v60, 0.0  ;;  %5338 = vmatprep.mubr.bf16.mxu0 %v13348_v34  ;;  %v4533_v46 = vmax.f32 %v9771_v10, 0.0 }
 0x498   : > { %v9774_v1 = vadd.f32 %v4232_v6, %v13273_v8  ;;  %v13420_v30 = vpack.c.bf16 %v4695_v38, %v4691_v32  ;;  %v4534_v50 = vmax.f32 %v9772_v63, 0.0 }
 0x499   : > { %v4537_v48 = vmax.f32 %v9773_v16, 0.0  ;;  %v13422_v47 = vpack.c.bf16 %v4696_v56, %v4692_v21  ;;  %v3730_v55 = vpop.f32.mrb[176].mxu0 }
 0x49a   : > { %v4538_v14 = vmax.f32 %v9774_v1, 0.0  ;;  %v9727_v22 = vadd.f32 %v3730_v55, %v13000_v7  ;;  %v3732_v41 = vpop.f32.mrb[177].mxu0 }
 0x49b   : > { %v13425_v31 = vpack.c.bf16 %v4537_v48, %v4533_v46  ;;  %v9728_v37 = vadd.f32 %v3732_v41, %v13005_v57  ;;  %v3734_v2 = vpop.f32.mrb[178].mxu0 }
 0x49c   : > { %v4236_v27 = vpop.f32.mrb[224].mxu1  ;;  %v13428_v35 = vpack.c.bf16 %v4538_v14, %v4534_v50  ;;  %v9729_v34 = vadd.f32 %v3734_v2, %v13000_v7  ;;  %v3736_v29 = vpop.f32.mrb[179].mxu0  ;;  %v4699_v9 = vmax.f32 %v9727_v22, 0.0 }
 0x49d   : > { %v9775_v12 = vadd.f32 %v4236_v27, %v13265_v24  ;;  %v4238_v39 = vpop.f32.mrb[225].mxu1  ;;  %v9730_v44 = vadd.f32 %v3736_v29, %v13005_v57  ;;  %v4700_v13 = vmax.f32 %v9728_v37, 0.0 }
 0x49e   : > { %v9776_v4 = vadd.f32 %v4238_v39, %v13273_v8  ;;  %v4240_v3 = vpop.f32.mrb[226].mxu1  ;;  %v4703_v26 = vmax.f32 %v9729_v34, 0.0  ;;  %5339 = vmatmul.mubr.bf16.gmra.mrb[28].mxu0 %v13345_v23 }
 0x49f   : > { %v9777_v52 = vadd.f32 %v4240_v3, %v13265_v24  ;;  %v4242_v15 = vpop.f32.mrb[227].mxu1  ;;  %v4704_v10 = vmax.f32 %v9730_v44, 0.0  ;;  %5346 = vmatprep.mubr.bf16.mxu0 %v13368_v54  ;;  %v4541_v60 = vmax.f32 %v9775_v12, 0.0 }
 0x4a0   : > { %v9778_v40 = vadd.f32 %v4242_v15, %v13273_v8  ;;  %v13438_v59 = vpack.c.bf16 %v4703_v26, %v4699_v9  ;;  %v4542_v32 = vmax.f32 %v9776_v4, 0.0 }
 0x4a1   : > { %v4545_v63 = vmax.f32 %v9777_v52, 0.0  ;;  %v13440_v25 = vpack.c.bf16 %v4704_v10, %v4700_v13  ;;  %v3740_v16 = vpop.f32.mrb[180].mxu0 }
 0x4a2   : > { %v4546_v38 = vmax.f32 %v9778_v40, 0.0  ;;  %v9731_v6 = vadd.f32 %v3740_v16, %v13000_v7  ;;  %v3742_v21 = vpop.f32.mrb[181].mxu0 }
 0x4a3   : > { %v13443_v56 = vpack.c.bf16 %v4545_v63, %v4541_v60  ;;  %v9732_v23 = vadd.f32 %v3742_v21, %v13005_v57  ;;  %v3744_v1 = vpop.f32.mrb[182].mxu0 }
 0x4a4   : > { %v4246_v46 = vpop.f32.mrb[228].mxu1  ;;  %v13446_v48 = vpack.c.bf16 %v4546_v38, %v4542_v32  ;;  %v9733_v54 = vadd.f32 %v3744_v1, %v13000_v7  ;;  %v3746_v14 = vpop.f32.mrb[183].mxu0  ;;  %v4707_v2 = vmax.f32 %v9731_v6, 0.0 }
 0x4a5   : > { %v9779_v50 = vadd.f32 %v4246_v46, %v13265_v24  ;;  %v4248_v55 = vpop.f32.mrb[229].mxu1  ;;  %v9734_v22 = vadd.f32 %v3746_v14, %v13005_v57  ;;  %v4708_v29 = vmax.f32 %v9732_v23, 0.0 }
 0x4a6   : > { %v9780_v41 = vadd.f32 %v4248_v55, %v13273_v8  ;;  %v4250_v37 = vpop.f32.mrb[230].mxu1  ;;  %v4711_v27 = vmax.f32 %v9733_v54, 0.0  ;;  %5347 = vmatmul.mubr.bf16.gmra.mrb[32].mxu0 %v13365_v19 }
 0x4a7   : > { %v9781_v34 = vadd.f32 %v4250_v37, %v13265_v24  ;;  %v4252_v12 = vpop.f32.mrb[231].mxu1  ;;  %v4712_v39 = vmax.f32 %v9734_v22, 0.0  ;;  %5354 = vmatprep.mubr.bf16.mxu0 %v13386_v49  ;;  %v4549_v3 = vmax.f32 %v9779_v50, 0.0 }
 0x4a8   : > { %v9782_v44 = vadd.f32 %v4252_v12, %v13273_v8  ;;  %v13456_v4 = vpack.c.bf16 %v4711_v27, %v4707_v2  ;;  %v4550_v52 = vmax.f32 %v9780_v41, 0.0 }
 0x4a9   : > { %v4553_v9 = vmax.f32 %v9781_v34, 0.0  ;;  %v13458_v26 = vpack.c.bf16 %v4712_v39, %v4708_v29  ;;  %v3750_v13 = vpop.f32.mrb[184].mxu0 }
 0x4aa   : > { %v4554_v15 = vmax.f32 %v9782_v44, 0.0  ;;  %v9735_v10 = vadd.f32 %v3750_v13, %v13000_v7  ;;  %v3752_v40 = vpop.f32.mrb[185].mxu0 }
 0x4ab   : > { %v13461_v60 = vpack.c.bf16 %v4553_v9, %v4549_v3  ;;  %v9736_v19 = vadd.f32 %v3752_v40, %v13005_v57  ;;  %v3754_v63 = vpop.f32.mrb[186].mxu0 }
 0x4ac   : > { %v4256_v32 = vpop.f32.mrb[232].mxu1  ;;  %v13464_v38 = vpack.c.bf16 %v4554_v15, %v4550_v52  ;;  %v9737_v49 = vadd.f32 %v3754_v63, %v13000_v7  ;;  %v3756_v6 = vpop.f32.mrb[187].mxu0  ;;  %v4715_v54 = vmax.f32 %v9735_v10, 0.0 }
 0x4ad   : > { %v9783_v16 = vadd.f32 %v4256_v32, %v13265_v24  ;;  %v4258_v21 = vpop.f32.mrb[233].mxu1  ;;  %v9738_v23 = vadd.f32 %v3756_v6, %v13005_v57  ;;  %v4716_v22 = vmax.f32 %v9736_v19, 0.0 }
 0x4ae   : > { %v9784_v1 = vadd.f32 %v4258_v21, %v13273_v8  ;;  %v4260_v46 = vpop.f32.mrb[234].mxu1  ;;  %v4719_v50 = vmax.f32 %v9737_v49, 0.0  ;;  %5355 = vmatmul.mubr.bf16.gmra.mrb[36].mxu0 %v13384_v36 }
 0x4af   : > { %v9785_v14 = vadd.f32 %v4260_v46, %v13265_v24  ;;  %v4262_v55 = vpop.f32.mrb[235].mxu1  ;;  %v4720_v41 = vmax.f32 %v9738_v23, 0.0  ;;  %5362 = vmatprep.mubr.bf16.mxu0 %v13404_v5  ;;  %v4557_v27 = vmax.f32 %v9783_v16, 0.0 }
 0x4b0   : > { %v9786_v37 = vadd.f32 %v4262_v55, %v13273_v8  ;;  %v13474_v2 = vpack.c.bf16 %v4719_v50, %v4715_v54  ;;  %v4558_v29 = vmax.f32 %v9784_v1, 0.0 }
 0x4b1   : > { %v4561_v34 = vmax.f32 %v9785_v14, 0.0  ;;  %v13476_v12 = vpack.c.bf16 %v4720_v41, %v4716_v22  ;;  %v3760_v44 = vpop.f32.mrb[188].mxu0 }
 0x4b2   : > { %v4562_v39 = vmax.f32 %v9786_v37, 0.0  ;;  %v9739_v3 = vadd.f32 %v3760_v44, %v13000_v7  ;;  %v3762_v9 = vpop.f32.mrb[189].mxu0 }
 0x4b3   : > { %v13479_v52 = vpack.c.bf16 %v4561_v34, %v4557_v27  ;;  %v9740_v36 = vadd.f32 %v3762_v9, %v13005_v57  ;;  %v3764_v15 = vpop.f32.mrb[190].mxu0 }
 0x4b4   : > { %v4266_v13 = vpop.f32.mrb[236].mxu1  ;;  %v13482_v10 = vpack.c.bf16 %v4562_v39, %v4558_v29  ;;  %v9741_v5 = vadd.f32 %v3764_v15, %v13000_v7  ;;  %v3766_v19 = vpop.f32.mrb[191].mxu0  ;;  %v4723_v6 = vmax.f32 %v9739_v3, 0.0 }
 0x4b5   : > { %v9787_v40 = vadd.f32 %v4266_v13, %v13265_v24  ;;  %v4268_v63 = vpop.f32.mrb[237].mxu1  ;;  %v9742_v32 = vadd.f32 %v3766_v19, %v13005_v57  ;;  %v4724_v46 = vmax.f32 %v9740_v36, 0.0 }
 0x4b6   : > { %v9788_v49 = vadd.f32 %v4268_v63, %v13273_v8  ;;  %v4270_v16 = vpop.f32.mrb[238].mxu1  ;;  %v4727_v21 = vmax.f32 %v9741_v5, 0.0  ;;  %5363 = vmatmul.mubr.bf16.gmra.mrb[40].mxu0 %v13402_v58 }
 0x4b7   : > { %v9789_v23 = vadd.f32 %v4270_v16, %v13265_v24  ;;  %v4272_v1 = vpop.f32.mrb[239].mxu1  ;;  %v4728_v54 = vmax.f32 %v9742_v32, 0.0  ;;  %5370 = vmatprep.mubr.bf16.mxu0 %v13422_v47  ;;  %v4565_v14 = vmax.f32 %v9787_v40, 0.0  ;;  %v10773_v40 = vld [vmem:[%s14331_s7] sm:$0xff]  }
 0x4b8   : > { %v9790_v7 = vadd.f32 %v4272_v1, %v13273_v8  ;;  %v13492_v50 = vpack.c.bf16 %v4727_v21, %v4723_v6  ;;  %v4566_v22 = vmax.f32 %v9788_v49, 0.0  ;;  %9119 = vmatprep.subr.bf16.mxu1 %v10773_v40 }
 0x4b9   : > { %v4569_v57 = vmax.f32 %v9789_v23, 0.0  ;;  %v13494_v55 = vpack.c.bf16 %v4728_v54, %v4724_v46  ;;  %9120 = vmatpush3.bf16.msra.mxu1 %v10773_v40 }
 0x4ba   : > { %v4570_v41 = vmax.f32 %v9790_v7, 0.0 }
 0x4bb   : > { %v13496_v37 = vpack.c.bf16 %v4569_v57, %v4565_v14 }
 0x4bc   : > { %v4276_v27 = vpop.f32.mrb[240].mxu1  ;;  %v13498_v34 = vpack.c.bf16 %v4570_v41, %v4566_v22 }
 0x4bd   : > { %v9791_v58 = vadd.f32 %v4276_v27, %v13265_v24  ;;  %v4278_v29 = vpop.f32.mrb[241].mxu1 }
 0x4be   : > { %v9792_v39 = vadd.f32 %v4278_v29, %v13273_v8  ;;  %v4280_v44 = vpop.f32.mrb[242].mxu1  ;;  %5371 = vmatmul.mubr.bf16.gmra.mrb[44].mxu0 %v13420_v30 }
 0x4bf   : > { %v9793_v47 = vadd.f32 %v4280_v44, %v13265_v24  ;;  %v4282_v3 = vpop.f32.mrb[243].mxu1  ;;  %5378 = vmatprep.mubr.bf16.mxu0 %v13440_v25  ;;  %v4573_v36 = vmax.f32 %v9791_v58, 0.0 }
 0x4c0   : > { %v9794_v9 = vadd.f32 %v4282_v3, %v13273_v8  ;;  %v4574_v13 = vmax.f32 %v9792_v39, 0.0 }
 0x4c1   : > { %v4577_v15 = vmax.f32 %v9793_v47, 0.0 }
 0x4c2   : > { %v4578_v5 = vmax.f32 %v9794_v9, 0.0 }
 0x4c3   : > { %v13509_v19 = vpack.c.bf16 %v4577_v15, %v4573_v36 }
 0x4c4   : > { %v4286_v63 = vpop.f32.mrb[244].mxu1  ;;  %v13511_v32 = vpack.c.bf16 %v4578_v5, %v4574_v13 }
 0x4c5   : > { %v9795_v49 = vadd.f32 %v4286_v63, %v13265_v24  ;;  %v4288_v30 = vpop.f32.mrb[245].mxu1 }
 0x4c6   : > { %v9796_v16 = vadd.f32 %v4288_v30, %v13273_v8  ;;  %v4290_v25 = vpop.f32.mrb[246].mxu1  ;;  %5379 = vmatmul.mubr.bf16.gmra.mrb[48].mxu0 %v13438_v59 }
 0x4c7   : > { %v9797_v6 = vadd.f32 %v4290_v25, %v13265_v24  ;;  %v4292_v21 = vpop.f32.mrb[247].mxu1  ;;  %5386 = vmatprep.mubr.bf16.mxu0 %v13458_v26  ;;  %v4581_v1 = vmax.f32 %v9795_v49, 0.0 }
 0x4c8   : > { %v9798_v23 = vadd.f32 %v4292_v21, %v13273_v8  ;;  %v4582_v54 = vmax.f32 %v9796_v16, 0.0 }
 0x4c9   : > { %v4585_v46 = vmax.f32 %v9797_v6, 0.0 }
 0x4ca   : > { %v4586_v7 = vmax.f32 %v9798_v23, 0.0 }
 0x4cb   : > { %v13519_v14 = vpack.c.bf16 %v4585_v46, %v4581_v1 }
 0x4cc   : > { %v4296_v57 = vpop.f32.mrb[248].mxu1  ;;  %v13521_v22 = vpack.c.bf16 %v4586_v7, %v4582_v54 }
 0x4cd   : > { %v9799_v41 = vadd.f32 %v4296_v57, %v13265_v24  ;;  %v4298_v27 = vpop.f32.mrb[249].mxu1 }
 0x4ce   : > { %v9800_v58 = vadd.f32 %v4298_v27, %v13273_v8  ;;  %v4300_v29 = vpop.f32.mrb[250].mxu1  ;;  %5387 = vmatmul.mubr.bf16.gmra.mrb[52].mxu0 %v13456_v4 }
 0x4cf   : > { %v9801_v59 = vadd.f32 %v4300_v29, %v13265_v24  ;;  %v4302_v39 = vpop.f32.mrb[251].mxu1  ;;  %5394 = vmatprep.mubr.bf16.mxu0 %v13476_v12  ;;  %v4589_v44 = vmax.f32 %v9799_v41, 0.0 }
 0x4d0   : > { %v9802_v26 = vadd.f32 %v4302_v39, %v13273_v8  ;;  %v4590_v3 = vmax.f32 %v9800_v58, 0.0  ;;  %v10774_v58 = vld [vmem:[%s14331_s7 + $0x8] sm:$0xff]  }
 0x4d1   : > { %v4593_v47 = vmax.f32 %v9801_v59, 0.0  ;;  %9121 = vmatprep.subr.bf16.mxu1 %v10774_v58 }
 0x4d2   : > { %v4594_v9 = vmax.f32 %v9802_v26, 0.0  ;;  %9122 = vmatpush3.bf16.msra.mxu1 %v10774_v58 }
 0x4d3   : > { %v13529_v36 = vpack.c.bf16 %v4593_v47, %v4589_v44 }
 0x4d4   : > { %v4306_v15 = vpop.f32.mrb[252].mxu1  ;;  %v13531_v13 = vpack.c.bf16 %v4594_v9, %v4590_v3 }
 0x4d5   : > { %v9803_v5 = vadd.f32 %v4306_v15, %v13265_v24  ;;  %v4308_v40 = vpop.f32.mrb[253].mxu1 }
 0x4d6   : > { %v9804_v63 = vadd.f32 %v4308_v40, %v13273_v8  ;;  %v4310_v49 = vpop.f32.mrb[254].mxu1  ;;  %5395 = vmatmul.mubr.bf16.gmra.mrb[56].mxu0 %v13474_v2 }
 0x4d7   : > { %v9805_v4 = vadd.f32 %v4310_v49, %v13265_v24  ;;  %v4312_v30 = vpop.f32.mrb[255].mxu1  ;;  %5402 = vmatprep.mubr.bf16.mxu0 %v13494_v55  ;;  %v4597_v16 = vmax.f32 %v9803_v5, 0.0 }
 0x4d8   : > { %v9806_v12 = vadd.f32 %v4312_v30, %v13273_v8  ;;  %v4598_v6 = vmax.f32 %v9804_v63, 0.0 }
 0x4d9   : > { %v4601_v25 = vmax.f32 %v9805_v4, 0.0 }
 0x4da   : > { %v4602_v21 = vmax.f32 %v9806_v12, 0.0 }
 0x4db   : > { %v13539_v23 = vpack.c.bf16 %v4601_v25, %v4597_v16 }
 0x4dc   : > { %v4316_v1 = vpop.f32.mrb[0].mxu1  ;;  %v13541_v46 = vpack.c.bf16 %v4602_v21, %v4598_v6 }
 0x4dd   : > { %v9807_v54 = vadd.f32 %v4316_v1, %v13265_v24  ;;  %v4318_v7 = vpop.f32.mrb[1].mxu1 }
 0x4de   : > { %v9808_v57 = vadd.f32 %v4318_v7, %v13273_v8  ;;  %v4320_v41 = vpop.f32.mrb[2].mxu1  ;;  %5403 = vmatmul.mubr.bf16.gmra.mrb[60].mxu0 %v13492_v50 }
 0x4df   : > { %v9809_v2 = vadd.f32 %v4320_v41, %v13265_v24  ;;  %v4322_v27 = vpop.f32.mrb[3].mxu1  ;;  %5443 = vmatprep.mubr.bf16.mxu0 %v13295_v11  ;;  %v4605_v29 = vmax.f32 %v9807_v54, 0.0 }
 0x4e0   : > { %v9810_v55 = vadd.f32 %v4322_v27, %v13273_v8  ;;  %v4606_v39 = vmax.f32 %v9808_v57, 0.0 }
 0x4e1   : > { %v4609_v59 = vmax.f32 %v9809_v2, 0.0 }
 0x4e2   : > { %v4610_v26 = vmax.f32 %v9810_v55, 0.0 }
 0x4e3   : > { %v13552_v44 = vpack.c.bf16 %v4609_v59, %v4605_v29 }
 0x4e4   : > { %v4326_v47 = vpop.f32.mrb[4].mxu1  ;;  %v13554_v3 = vpack.c.bf16 %v4610_v26, %v4606_v39 }
 0x4e5   : > { %v9811_v50 = vadd.f32 %v4326_v47, %v13265_v24  ;;  %v4328_v9 = vpop.f32.mrb[5].mxu1 }
 0x4e6   : > { %v9812_v11 = vadd.f32 %v4328_v9, %v13273_v8  ;;  %v4330_v15 = vpop.f32.mrb[6].mxu1  ;;  %5444 = vmatmul.mubr.bf16.vlgmr.msra.gmra.mrb[192].mxu0 %v13291_v61 }
 0x4e7   : > { %v9813_v5 = vadd.f32 %v4330_v15, %v13265_v24  ;;  %v4332_v40 = vpop.f32.mrb[7].mxu1  ;;  %5451 = vmatprep.mubr.bf16.mxu0 %v13315_v51  ;;  %v4613_v49 = vmax.f32 %v9811_v50, 0.0 }
 0x4e8   : > { %v9814_v63 = vadd.f32 %v4332_v40, %v13273_v8  ;;  %v4614_v30 = vmax.f32 %v9812_v11, 0.0 }
 0x4e9   : > { %v4617_v4 = vmax.f32 %v9813_v5, 0.0 }
 0x4ea   : > { %v4618_v12 = vmax.f32 %v9814_v63, 0.0 }
 0x4eb   : > { %v13562_v16 = vpack.c.bf16 %v4617_v4, %v4613_v49 }
 0x4ec   : > { %v4336_v25 = vpop.f32.mrb[8].mxu1  ;;  %v13564_v6 = vpack.c.bf16 %v4618_v12, %v4614_v30 }
 0x4ed   : > { %v9815_v21 = vadd.f32 %v4336_v25, %v13265_v24  ;;  %v4338_v1 = vpop.f32.mrb[9].mxu1 }
 0x4ee   : > { %v9816_v54 = vadd.f32 %v4338_v1, %v13273_v8  ;;  %v4340_v7 = vpop.f32.mrb[10].mxu1  ;;  %5452 = vmatmul.mubr.bf16.gmra.mrb[196].mxu0 %v13312_v53 }
 0x4ef   : > { %v9817_v61 = vadd.f32 %v4340_v7, %v13265_v24  ;;  %v4342_v57 = vpop.f32.mrb[11].mxu1  ;;  %5459 = vmatprep.mubr.bf16.mxu0 %v13335_v18  ;;  %v4621_v41 = vmax.f32 %v9815_v21, 0.0 }
 0x4f0   : > { %v9818_v51 = vadd.f32 %v4342_v57, %v13273_v8  ;;  %v4622_v27 = vmax.f32 %v9816_v54, 0.0  ;;  %v10775_v54 = vld [vmem:[%s14331_s7 + $0x10] sm:$0xff]  }
 0x4f1   : > { %v4625_v2 = vmax.f32 %v9817_v61, 0.0  ;;  %9123 = vmatprep.subr.bf16.mxu1 %v10775_v54 }
 0x4f2   : > { %v4626_v55 = vmax.f32 %v9818_v51, 0.0  ;;  %9124 = vmatpush3.bf16.msra.mxu1 %v10775_v54 }
 0x4f3   : > { %v13572_v58 = vpack.c.bf16 %v4625_v2, %v4621_v41 }
 0x4f4   : > { %v4346_v29 = vpop.f32.mrb[12].mxu1  ;;  %v13574_v59 = vpack.c.bf16 %v4626_v55, %v4622_v27 }
 0x4f5   : > { %v9819_v39 = vadd.f32 %v4346_v29, %v13265_v24  ;;  %v4348_v26 = vpop.f32.mrb[13].mxu1 }
 0x4f6   : > { %v9820_v47 = vadd.f32 %v4348_v26, %v13273_v8  ;;  %v4350_v50 = vpop.f32.mrb[14].mxu1  ;;  %5460 = vmatmul.mubr.bf16.gmra.mrb[200].mxu0 %v13332_v33 }
 0x4f7   : > { %v9821_v53 = vadd.f32 %v4350_v50, %v13265_v24  ;;  %v4352_v9 = vpop.f32.mrb[15].mxu1  ;;  %5467 = vmatprep.mubr.bf16.mxu0 %v13355_v17  ;;  %v4629_v11 = vmax.f32 %v9819_v39, 0.0 }
 0x4f8   : > { %v9822_v18 = vadd.f32 %v4352_v9, %v13273_v8  ;;  %v4630_v5 = vmax.f32 %v9820_v47, 0.0 }
 0x4f9   : > { %v4633_v15 = vmax.f32 %v9821_v53, 0.0 }
 0x4fa   : > { %v4634_v40 = vmax.f32 %v9822_v18, 0.0 }
 0x4fb   : > { %v13582_v63 = vpack.c.bf16 %v4633_v15, %v4629_v11 }
 0x4fc   : > { %v4356_v49 = vpop.f32.mrb[16].mxu1  ;;  %v13584_v4 = vpack.c.bf16 %v4634_v40, %v4630_v5 }
 0x4fd   : > { %v9823_v30 = vadd.f32 %v4356_v49, %v13265_v24  ;;  %v4358_v12 = vpop.f32.mrb[17].mxu1 }
 0x4fe   : > { %v9824_v25 = vadd.f32 %v4358_v12, %v13273_v8  ;;  %v4360_v21 = vpop.f32.mrb[18].mxu1  ;;  %5468 = vmatmul.mubr.bf16.gmra.mrb[204].mxu0 %v13352_v43 }
 0x4ff   : > { %v9825_v33 = vadd.f32 %v4360_v21, %v13265_v24  ;;  %v4362_v1 = vpop.f32.mrb[19].mxu1  ;;  %5475 = vmatprep.mubr.bf16.mxu0 %v13374_v45  ;;  %v4637_v7 = vmax.f32 %v9823_v30, 0.0 }
 0x500   : > { %v9826_v17 = vadd.f32 %v4362_v1, %v13273_v8  ;;  %v4638_v57 = vmax.f32 %v9824_v25, 0.0 }
 0x501   : > { %v4641_v61 = vmax.f32 %v9825_v33, 0.0 }
 0x502   : > { %v4642_v51 = vmax.f32 %v9826_v17, 0.0 }
 0x503   : > { %v13595_v41 = vpack.c.bf16 %v4641_v61, %v4637_v7 }
 0x504   : > { %v4366_v2 = vpop.f32.mrb[20].mxu1  ;;  %v13597_v27 = vpack.c.bf16 %v4642_v51, %v4638_v57 }
 0x505   : > { %v9827_v43 = vadd.f32 %v4366_v2, %v13265_v24  ;;  %v4368_v55 = vpop.f32.mrb[21].mxu1 }
 0x506   : > { %v9828_v45 = vadd.f32 %v4368_v55, %v13273_v8  ;;  %v4370_v29 = vpop.f32.mrb[22].mxu1  ;;  %5476 = vmatmul.mubr.bf16.gmra.mrb[208].mxu0 %v13371_v28 }
 0x507   : > { %v9829_v39 = vadd.f32 %v4370_v29, %v13265_v24  ;;  %v4372_v26 = vpop.f32.mrb[23].mxu1  ;;  %5483 = vmatprep.mubr.bf16.mxu0 %v13392_v62  ;;  %v4645_v50 = vmax.f32 %v9827_v43, 0.0 }
 0x508   : > { %v9830_v47 = vadd.f32 %v4372_v26, %v13273_v8  ;;  %v4646_v9 = vmax.f32 %v9828_v45, 0.0 }
 0x509   : > { %v4649_v53 = vmax.f32 %v9829_v39, 0.0 }
 0x50a   : > { %v4650_v18 = vmax.f32 %v9830_v47, 0.0 }
 0x50b   : > { %v13605_v11 = vpack.c.bf16 %v4649_v53, %v4645_v50 }
 0x50c   : > { %v4376_v15 = vpop.f32.mrb[24].mxu1  ;;  %v13607_v5 = vpack.c.bf16 %v4650_v18, %v4646_v9 }
 0x50d   : > { %v9831_v40 = vadd.f32 %v4376_v15, %v13265_v24  ;;  %v4378_v49 = vpop.f32.mrb[25].mxu1 }
 0x50e   : > { %v9832_v30 = vadd.f32 %v4378_v49, %v13273_v8  ;;  %v4380_v12 = vpop.f32.mrb[26].mxu1  ;;  %5484 = vmatmul.mubr.bf16.gmra.mrb[212].mxu0 %v13389_v42 }
 0x50f   : > { %v9833_v28 = vadd.f32 %v4380_v12, %v13265_v24  ;;  %v4382_v25 = vpop.f32.mrb[27].mxu1  ;;  %5491 = vmatprep.mubr.bf16.mxu0 %v13410_v0  ;;  %v4653_v21 = vmax.f32 %v9831_v40, 0.0 }
 0x510   : > { %v9834_v62 = vadd.f32 %v4382_v25, %v13273_v8  ;;  %v4654_v1 = vmax.f32 %v9832_v30, 0.0  ;;  %v10776_v30 = vld [vmem:[%s14331_s7 + $0x18] sm:$0xff]  }
 0x511   : > { %v4657_v33 = vmax.f32 %v9833_v28, 0.0  ;;  %9125 = vmatprep.subr.bf16.mxu1 %v10776_v30 }
 0x512   : > { %v4658_v17 = vmax.f32 %v9834_v62, 0.0  ;;  %9126 = vmatpush3.bf16.msra.mxu1 %v10776_v30 }
 0x513   : > { %v13615_v54 = vpack.c.bf16 %v4657_v33, %v4653_v21 }
 0x514   : > { %v4386_v7 = vpop.f32.mrb[28].mxu1  ;;  %v13617_v61 = vpack.c.bf16 %v4658_v17, %v4654_v1 }
 0x515   : > { %v9835_v57 = vadd.f32 %v4386_v7, %v13265_v24  ;;  %v4388_v51 = vpop.f32.mrb[29].mxu1 }
 0x516   : > { %v9836_v2 = vadd.f32 %v4388_v51, %v13273_v8  ;;  %v4390_v43 = vpop.f32.mrb[30].mxu1  ;;  %5492 = vmatmul.mubr.bf16.gmra.mrb[216].mxu0 %v13407_v20 }
 0x517   : > { %v9837_v42 = vadd.f32 %v4390_v43, %v13265_v24  ;;  %v4392_v55 = vpop.f32.mrb[31].mxu1  ;;  %5499 = vmatprep.mubr.bf16.mxu0 %v13428_v35  ;;  %v4661_v45 = vmax.f32 %v9835_v57, 0.0 }
 0x518   : > { %v9838_v0 = vadd.f32 %v4392_v55, %v13273_v8  ;;  %v4662_v39 = vmax.f32 %v9836_v2, 0.0 }
 0x519   : > { %v4665_v29 = vmax.f32 %v9837_v42, 0.0 }
 0x51a   : > { %v4666_v26 = vmax.f32 %v9838_v0, 0.0 }
 0x51b   : > { %v13625_v47 = vpack.c.bf16 %v4665_v29, %v4661_v45 }
 0x51c   : > { %v4396_v50 = vpop.f32.mrb[32].mxu1  ;;  %v13627_v53 = vpack.c.bf16 %v4666_v26, %v4662_v39 }
 0x51d   : > { %v9839_v9 = vadd.f32 %v4396_v50, %v13265_v24  ;;  %v4398_v18 = vpop.f32.mrb[33].mxu1 }
 0x51e   : > { %v9840_v15 = vadd.f32 %v4398_v18, %v13273_v8  ;;  %v4400_v40 = vpop.f32.mrb[34].mxu1  ;;  %5500 = vmatmul.mubr.bf16.gmra.mrb[220].mxu0 %v13425_v31 }
 0x51f   : > { %v9841_v20 = vadd.f32 %v4400_v40, %v13265_v24  ;;  %v4402_v49 = vpop.f32.mrb[35].mxu1  ;;  %5507 = vmatprep.mubr.bf16.mxu0 %v13446_v48  ;;  %v4669_v12 = vmax.f32 %v9839_v9, 0.0 }
 0x520   : > { %v9842_v35 = vadd.f32 %v4402_v49, %v13273_v8  ;;  %v4670_v25 = vmax.f32 %v9840_v15, 0.0 }
 0x521   : > { %v4673_v28 = vmax.f32 %v9841_v20, 0.0 }
 0x522   : > { %v4674_v62 = vmax.f32 %v9842_v35, 0.0 }
 0x523   : > { %v13638_v21 = vpack.c.bf16 %v4673_v28, %v4669_v12 }
 0x524   : > { %v4406_v33 = vpop.f32.mrb[36].mxu1  ;;  %v13640_v1 = vpack.c.bf16 %v4674_v62, %v4670_v25 }
 0x525   : > { %v9843_v31 = vadd.f32 %v4406_v33, %v13265_v24  ;;  %v4408_v17 = vpop.f32.mrb[37].mxu1 }
 0x526   : > { %v9844_v48 = vadd.f32 %v4408_v17, %v13273_v8  ;;  %v4410_v7 = vpop.f32.mrb[38].mxu1  ;;  %5508 = vmatmul.mubr.bf16.gmra.mrb[224].mxu0 %v13443_v56 }
 0x527   : > { %v9845_v57 = vadd.f32 %v4410_v7, %v13265_v24  ;;  %v4412_v51 = vpop.f32.mrb[39].mxu1  ;;  %5515 = vmatprep.mubr.bf16.mxu0 %v13464_v38  ;;  %v4677_v43 = vmax.f32 %v9843_v31, 0.0 }
 0x528   : > { %v9846_v2 = vadd.f32 %v4412_v51, %v13273_v8  ;;  %v4678_v55 = vmax.f32 %v9844_v48, 0.0 }
 0x529   : > { %v4681_v42 = vmax.f32 %v9845_v57, 0.0  ;;  %v10777_v57 = vld [vmem:[%s14331_s7 + $0x20] sm:$0xff]  }
 0x52a   : > { %v4682_v0 = vmax.f32 %v9846_v2, 0.0  ;;  %9127 = vmatprep.subr.bf16.mxu1 %v10777_v57 }
 0x52b   : > { %v13648_v45 = vpack.c.bf16 %v4681_v42, %v4677_v43  ;;  %9128 = vmatpush3.bf16.msra.mxu1 %v10777_v57 }
 0x52c   : > { %v4416_v29 = vpop.f32.mrb[40].mxu1  ;;  %v13650_v39 = vpack.c.bf16 %v4682_v0, %v4678_v55 }
 0x52d   : > { %v9847_v26 = vadd.f32 %v4416_v29, %v13265_v24  ;;  %v4418_v50 = vpop.f32.mrb[41].mxu1 }
 0x52e   : > { %v9848_v9 = vadd.f32 %v4418_v50, %v13273_v8  ;;  %v4420_v18 = vpop.f32.mrb[42].mxu1  ;;  %5516 = vmatmul.mubr.bf16.gmra.mrb[228].mxu0 %v13461_v60 }
 0x52f   : > { %v9849_v56 = vadd.f32 %v4420_v18, %v13265_v24  ;;  %v4422_v15 = vpop.f32.mrb[43].mxu1  ;;  %5523 = vmatprep.mubr.bf16.mxu0 %v13482_v10  ;;  %v4685_v40 = vmax.f32 %v9847_v26, 0.0 }
 0x530   : > { %v9850_v38 = vadd.f32 %v4422_v15, %v13273_v8  ;;  %v4686_v49 = vmax.f32 %v9848_v9, 0.0 }
 0x531   : > { %v4689_v20 = vmax.f32 %v9849_v56, 0.0 }
 0x532   : > { %v4690_v35 = vmax.f32 %v9850_v38, 0.0  ;;  %v10779_v38 = vld [vmem:[%s14331_s7 + $0x30] sm:$0xff]  }
 0x533   : > { %v13658_v30 = vpack.c.bf16 %v4689_v20, %v4685_v40 }
 0x534   : > { %v4426_v12 = vpop.f32.mrb[44].mxu1  ;;  %v13660_v28 = vpack.c.bf16 %v4690_v35, %v4686_v49 }
 0x535   : > { %v9851_v25 = vadd.f32 %v4426_v12, %v13265_v24  ;;  %v4428_v62 = vpop.f32.mrb[45].mxu1 }
 0x536   : > { %v9852_v33 = vadd.f32 %v4428_v62, %v13273_v8  ;;  %v4430_v31 = vpop.f32.mrb[46].mxu1  ;;  %5524 = vmatmul.mubr.bf16.gmra.mrb[232].mxu0 %v13479_v52 }
 0x537   : > { %v9853_v60 = vadd.f32 %v4430_v31, %v13265_v24  ;;  %v4432_v17 = vpop.f32.mrb[47].mxu1  ;;  %5531 = vmatprep.mubr.bf16.mxu0 %v13498_v34  ;;  %v4693_v48 = vmax.f32 %v9851_v25, 0.0  ;;  %v10778_v34 = vld [vmem:[%s14331_s7 + $0x28] sm:$0xff]  }
 0x538   : > { %v9854_v10 = vadd.f32 %v4432_v17, %v13273_v8  ;;  %v4694_v51 = vmax.f32 %v9852_v33, 0.0  ;;  %9129 = vmatprep.subr.bf16.mxu1 %v10778_v34 }
 0x539   : > { %v4697_v7 = vmax.f32 %v9853_v60, 0.0  ;;  %9130 = vmatpush3.bf16.msra.mxu1 %v10778_v34 }
 0x53a   : > { %v4698_v2 = vmax.f32 %v9854_v10, 0.0  ;;  %9131 = vmatprep.subr.bf16.mxu1 %v10779_v38 }
 0x53b   : > { %v13671_v43 = vpack.c.bf16 %v4697_v7, %v4693_v48 }
 0x53c   : > { %v4436_v42 = vpop.f32.mrb[48].mxu1  ;;  %v13673_v55 = vpack.c.bf16 %v4698_v2, %v4694_v51 }
 0x53d   : > { %v9855_v52 = vadd.f32 %v4436_v42, %v13265_v24  ;;  %v4438_v0 = vpop.f32.mrb[49].mxu1  ;;  %9132 = vmatpush3.bf16.msra.mxu1 %v10779_v38 }
 0x53e   : > { %v9856_v29 = vadd.f32 %v4438_v0, %v13273_v8  ;;  %v4440_v26 = vpop.f32.mrb[50].mxu1  ;;  %5532 = vmatmul.mubr.bf16.gmra.mrb[236].mxu0 %v13496_v37 }
 0x53f   : > { %v9857_v50 = vadd.f32 %v4440_v26, %v13265_v24  ;;  %v4442_v9 = vpop.f32.mrb[51].mxu1  ;;  %5539 = vmatprep.mubr.bf16.mxu0 %v13511_v32  ;;  %v4701_v56 = vmax.f32 %v9855_v52, 0.0  ;;  %v10780_v32 = vld [vmem:[%s14331_s7 + $0x38] sm:$0xff]  }
 0x540   : > { %v9858_v18 = vadd.f32 %v4442_v9, %v13273_v8  ;;  %v4702_v40 = vmax.f32 %v9856_v29, 0.0  ;;  %9133 = vmatprep.subr.bf16.mxu1 %v10780_v32 }
 0x541   : > { %v4705_v15 = vmax.f32 %v9857_v50, 0.0  ;;  %9134 = vmatpush3.bf16.msra.mxu1 %v10780_v32 }
 0x542   : > { %v4706_v20 = vmax.f32 %v9858_v18, 0.0 }
 0x543   : > { %v13687_v49 = vpack.c.bf16 %v4705_v15, %v4701_v56 }
 0x544   : > { %v4446_v35 = vpop.f32.mrb[52].mxu1  ;;  %v13689_v12 = vpack.c.bf16 %v4706_v20, %v4702_v40 }
 0x545   : > { %v9859_v37 = vadd.f32 %v4446_v35, %v13265_v24  ;;  %v4448_v25 = vpop.f32.mrb[53].mxu1 }
 0x546   : > { %v9860_v62 = vadd.f32 %v4448_v25, %v13273_v8  ;;  %v4450_v33 = vpop.f32.mrb[54].mxu1  ;;  %5540 = vmatmul.mubr.bf16.gmra.mrb[240].mxu0 %v13509_v19 }
 0x547   : > { %v9861_v31 = vadd.f32 %v4450_v33, %v13265_v24  ;;  %v4452_v60 = vpop.f32.mrb[55].mxu1  ;;  %5547 = vmatprep.mubr.bf16.mxu0 %v13521_v22  ;;  %v4709_v10 = vmax.f32 %v9859_v37, 0.0 }
 0x548   : > { %v9862_v17 = vadd.f32 %v4452_v60, %v13273_v8  ;;  %v4710_v7 = vmax.f32 %v9860_v62, 0.0 }
 0x549   : > { %v4713_v48 = vmax.f32 %v9861_v31, 0.0 }
 0x54a   : > { %v4714_v57 = vmax.f32 %v9862_v17, 0.0 }
 0x54b   : > { %v13700_v51 = vpack.c.bf16 %v4713_v48, %v4709_v10 }
 0x54c   : > { %v4456_v2 = vpop.f32.mrb[56].mxu1  ;;  %v13702_v42 = vpack.c.bf16 %v4714_v57, %v4710_v7 }
 0x54d   : > { %v9863_v52 = vadd.f32 %v4456_v2, %v13265_v24  ;;  %v4458_v0 = vpop.f32.mrb[57].mxu1 }
 0x54e   : > { %v9864_v19 = vadd.f32 %v4458_v0, %v13273_v8  ;;  %v4460_v34 = vpop.f32.mrb[58].mxu1  ;;  %5548 = vmatmul.mubr.bf16.gmra.mrb[244].mxu0 %v13519_v14 }
 0x54f   : > { %v9865_v29 = vadd.f32 %v4460_v34, %v13265_v24  ;;  %v4462_v26 = vpop.f32.mrb[59].mxu1  ;;  %5555 = vmatprep.mubr.bf16.mxu0 %v13531_v13  ;;  %v4717_v50 = vmax.f32 %v9863_v52, 0.0 }
 0x550   : > { %v9866_v22 = vadd.f32 %v4462_v26, %v13273_v8  ;;  %v4718_v18 = vmax.f32 %v9864_v19, 0.0 }
 0x551   : > { %v4721_v9 = vmax.f32 %v9865_v29, 0.0 }
 0x552   : > { %v4722_v56 = vmax.f32 %v9866_v22, 0.0 }
 0x553   : > { %v13710_v15 = vpack.c.bf16 %v4721_v9, %v4717_v50  ;;  %v14651_v9 = vld [vmem:[#allocation29_spill] sm:$0xff] }
 0x554   : > { %v4466_v38 = vpop.f32.mrb[60].mxu1  ;;  %v13712_v40 = vpack.c.bf16 %v4722_v56, %v4718_v18 }
 0x555   : > { %v9867_v20 = vadd.f32 %v4466_v38, %v13265_v24  ;;  %v4468_v35 = vpop.f32.mrb[61].mxu1 }
 0x556   : > { %v9868_v37 = vadd.f32 %v4468_v35, %v13273_v8  ;;  %v4470_v25 = vpop.f32.mrb[62].mxu1  ;;  %5556 = vmatmul.mubr.bf16.gmra.mrb[248].mxu0 %v13529_v36 }
 0x557   : > { %v9869_v14 = vadd.f32 %v4470_v25, %v13265_v24  ;;  %v4472_v32 = vpop.f32.mrb[63].mxu1  ;;  %5563 = vmatprep.mubr.bf16.mxu0 %v13541_v46  ;;  %v4725_v62 = vmax.f32 %v9867_v20, 0.0  ;;  %v13751_v24 = vld [vmem:[%s14330_s6] ss:$0 sm:$0xff] }
 0x558   : > { %v9870_v13 = vadd.f32 %v4472_v32, %v13273_v8  ;;  %v4726_v31 = vmax.f32 %v9868_v37, 0.0 }
 0x559   : > { %v4729_v33 = vmax.f32 %v9869_v14, 0.0 }
 0x55a   : > { %v4730_v60 = vmax.f32 %v9870_v13, 0.0 }
 0x55b   : > { %v13720_v17 = vpack.c.bf16 %v4729_v33, %v4725_v62 }
 0x55c   : > { %v13722_v10 = vpack.c.bf16 %v4730_v60, %v4726_v31 }
 0x55e   : > { %5564 = vmatmul.mubr.bf16.gmra.mrb[252].mxu0 %v13539_v23 }
 0x55f   : > { %5571 = vmatprep.mubr.bf16.mxu0 %v13554_v3 }
 0x566   : > { %5572 = vmatmul.mubr.bf16.gmra.mrb[0].mxu0 %v13552_v44 }
 0x567   : > { %5579 = vmatprep.mubr.bf16.mxu0 %v13564_v6 }
 0x56e   : > { %5580 = vmatmul.mubr.bf16.gmra.mrb[4].mxu0 %v13562_v16 }
 0x56f   : > { %5587 = vmatprep.mubr.bf16.mxu0 %v13574_v59 }
 0x576   : > { %5588 = vmatmul.mubr.bf16.gmra.mrb[8].mxu0 %v13572_v58 }
 0x577   : > { %5595 = vmatprep.mubr.bf16.mxu0 %v13584_v4 }
 0x57e   : > { %5596 = vmatmul.mubr.bf16.gmra.mrb[12].mxu0 %v13582_v63 }
 0x57f   : > { %5603 = vmatprep.mubr.bf16.mxu0 %v13597_v27 }
 0x586   : > { %5604 = vmatmul.mubr.bf16.gmra.mrb[16].mxu0 %v13595_v41 }
 0x587   : > { %5611 = vmatprep.mubr.bf16.mxu0 %v13607_v5 }
 0x58e   : > { %5612 = vmatmul.mubr.bf16.gmra.mrb[20].mxu0 %v13605_v11 }
 0x58f   : > { %5619 = vmatprep.mubr.bf16.mxu0 %v13617_v61 }
 0x596   : > { %5620 = vmatmul.mubr.bf16.gmra.mrb[24].mxu0 %v13615_v54 }
 0x597   : > { %5627 = vmatprep.mubr.bf16.mxu0 %v13627_v53 }
 0x59e   : > { %5628 = vmatmul.mubr.bf16.gmra.mrb[28].mxu0 %v13625_v47 }
 0x59f   : > { %5635 = vmatprep.mubr.bf16.mxu0 %v13640_v1 }
 0x5a6   : > { %5636 = vmatmul.mubr.bf16.gmra.mrb[32].mxu0 %v13638_v21 }
 0x5a7   : > { %5643 = vmatprep.mubr.bf16.mxu0 %v13650_v39 }
 0x5ae   : > { %5644 = vmatmul.mubr.bf16.gmra.mrb[36].mxu0 %v13648_v45 }
 0x5af   : > { %5651 = vmatprep.mubr.bf16.mxu0 %v13660_v28 }
 0x5b6   : > { %5652 = vmatmul.mubr.bf16.gmra.mrb[40].mxu0 %v13658_v30 }
 0x5b7   : > { %5659 = vmatprep.mubr.bf16.mxu0 %v13673_v55 }
 0x5b9   : > { %v5445_v8 = vpop.f32.mrb[192].mxu0 }
 0x5ba   : > { %v9871_v36 = vadd.f32 %v13751_v24, %v5445_v8  ;;  %v5447_v23 = vpop.f32.mrb[193].mxu0 }
 0x5bb   : > { %v5448_v46 = vpop.f32.mrb[194].mxu0 }
 0x5bc   : > { %v9872_v44 = vadd.f32 %v13751_v24, %v5448_v46  ;;  %v5450_v3 = vpop.f32.mrb[195].mxu0  ;;  %v5700_v16 = vmax.f32 %v9871_v36, 0.0 }
 0x5be   : > { %v5701_v6 = vmax.f32 %v9872_v44, 0.0  ;;  %5660 = vmatmul.mubr.bf16.gmra.mrb[44].mxu0 %v13671_v43 }
 0x5bf   : > { %5667 = vmatprep.mubr.bf16.mxu0 %v13689_v12 }
 0x5c0   : > { %v5764_v58 = vpack.c.bf16 %v5701_v6, %v5700_v16 }
 0x5c1   : > { %v5453_v59 = vpop.f32.mrb[196].mxu0 }
 0x5c2   : > { %v9873_v63 = vadd.f32 %v13751_v24, %v5453_v59  ;;  %v5455_v4 = vpop.f32.mrb[197].mxu0  ;;  %9135 = vmatprep.mubr.bf16.mxu1 %v5764_v58 }
 0x5c3   : > { %v5456_v41 = vpop.f32.mrb[198].mxu0 }
 0x5c4   : > { %v9874_v27 = vadd.f32 %v13751_v24, %v5456_v41  ;;  %v5458_v11 = vpop.f32.mrb[199].mxu0  ;;  %v5702_v5 = vmax.f32 %v9873_v63, 0.0 }
 0x5c6   : > { %v5703_v54 = vmax.f32 %v9874_v27, 0.0  ;;  %5668 = vmatmul.mubr.bf16.gmra.mrb[48].mxu0 %v13687_v49 }
 0x5c7   : > { %5675 = vmatprep.mubr.bf16.mxu0 %v13702_v42 }
 0x5c8   : > { %v5765_v61 = vpack.c.bf16 %v5703_v54, %v5702_v5 }
 0x5c9   : > { %v5461_v47 = vpop.f32.mrb[200].mxu0 }
 0x5ca   : > { %v9875_v53 = vadd.f32 %v13751_v24, %v5461_v47  ;;  %v5463_v21 = vpop.f32.mrb[201].mxu0  ;;  %9136 = vmatmul.mubr.bf16.vlgmr.msra.gmra.mrb[64].mxu1 %v5765_v61 }
 0x5cb   : > { %v5464_v1 = vpop.f32.mrb[202].mxu0 }
 0x5cc   : > { %v9876_v45 = vadd.f32 %v13751_v24, %v5464_v1  ;;  %v5466_v39 = vpop.f32.mrb[203].mxu0  ;;  %v5704_v30 = vmax.f32 %v9875_v53, 0.0 }
 0x5ce   : > { %v5705_v28 = vmax.f32 %v9876_v45, 0.0  ;;  %5676 = vmatmul.mubr.bf16.gmra.mrb[52].mxu0 %v13700_v51 }
 0x5cf   : > { %5683 = vmatprep.mubr.bf16.mxu0 %v13712_v40 }
 0x5d0   : > { %v5766_v43 = vpack.c.bf16 %v5705_v28, %v5704_v30 }
 0x5d1   : > { %v5469_v55 = vpop.f32.mrb[204].mxu0 }
 0x5d2   : > { %v9877_v49 = vadd.f32 %v13751_v24, %v5469_v55  ;;  %v5471_v12 = vpop.f32.mrb[205].mxu0  ;;  %9139 = vmatprep.mubr.bf16.mxu1 %v5766_v43 }
 0x5d3   : > { %v5472_v48 = vpop.f32.mrb[206].mxu0 }
 0x5d4   : > { %v9878_v7 = vadd.f32 %v13751_v24, %v5472_v48  ;;  %v5474_v57 = vpop.f32.mrb[207].mxu0  ;;  %v5706_v2 = vmax.f32 %v9877_v49, 0.0 }
 0x5d6   : > { %v5707_v42 = vmax.f32 %v9878_v7, 0.0  ;;  %5684 = vmatmul.mubr.bf16.gmra.mrb[56].mxu0 %v13710_v15 }
 0x5d7   : > { %5691 = vmatprep.mubr.bf16.mxu0 %v13722_v10 }
 0x5d8   : > { %v5767_v52 = vpack.c.bf16 %v5707_v42, %v5706_v2 }
 0x5d9   : > { %v5477_v51 = vpop.f32.mrb[208].mxu0 }
 0x5da   : > { %v9879_v0 = vadd.f32 %v13751_v24, %v5477_v51  ;;  %v5479_v19 = vpop.f32.mrb[209].mxu0  ;;  %9140 = vmatmul.mubr.bf16.gmra.mrb[68].mxu1 %v5767_v52 }
 0x5db   : > { %v5480_v34 = vpop.f32.mrb[210].mxu0 }
 0x5dc   : > { %v9880_v29 = vadd.f32 %v13751_v24, %v5480_v34  ;;  %v5482_v26 = vpop.f32.mrb[211].mxu0  ;;  %v5708_v22 = vmax.f32 %v9879_v0, 0.0 }
 0x5de   : > { %v5709_v50 = vmax.f32 %v9880_v29, 0.0  ;;  %5692 = vmatmul.mubr.bf16.gmra.mrb[60].mxu0 %v13720_v17 }
 0x5df   : > { %9455 = vmatprep.mubr.bf16.mxu0 %v14651_v9 }
 0x5e0   : > { %v5768_v18 = vpack.c.bf16 %v5709_v50, %v5708_v22 }
 0x5e1   : > { %v5485_v56 = vpop.f32.mrb[212].mxu0 }
 0x5e2   : > { %v9881_v15 = vadd.f32 %v13751_v24, %v5485_v56  ;;  %v5487_v38 = vpop.f32.mrb[213].mxu0  ;;  %9143 = vmatprep.mubr.bf16.mxu1 %v5768_v18 }
 0x5e3   : > { %v5488_v40 = vpop.f32.mrb[214].mxu0 }
 0x5e4   : > { %v9882_v20 = vadd.f32 %v13751_v24, %v5488_v40  ;;  %v5490_v35 = vpop.f32.mrb[215].mxu0  ;;  %v5710_v37 = vmax.f32 %v9881_v15, 0.0 }
 0x5e6   : > { %v5711_v25 = vmax.f32 %v9882_v20, 0.0 }
 0x5e8   : > { %v5769_v14 = vpack.c.bf16 %v5711_v25, %v5710_v37 }
 0x5e9   : > { %v5493_v32 = vpop.f32.mrb[216].mxu0 }
 0x5ea   : > { %v9883_v13 = vadd.f32 %v13751_v24, %v5493_v32  ;;  %v5495_v62 = vpop.f32.mrb[217].mxu0  ;;  %9144 = vmatmul.mubr.bf16.gmra.mrb[72].mxu1 %v5769_v14  ;;  %v10781_v32 = vld [vmem:[#allocation8] sm:$0xff]  }
 0x5eb   : > { %v5496_v33 = vpop.f32.mrb[218].mxu0  ;;  %9199 = vmatprep.subr.bf16.mxu1 %v10781_v32 }
 0x5ec   : > { %v9884_v31 = vadd.f32 %v13751_v24, %v5496_v33  ;;  %v5498_v60 = vpop.f32.mrb[219].mxu0  ;;  %v5712_v17 = vmax.f32 %v9883_v13, 0.0  ;;  %9200 = vmatpush3.bf16.msra.mxu1 %v10781_v32 }
 0x5ee   : > { %v5713_v10 = vmax.f32 %v9884_v31, 0.0 }
 0x5f0   : > { %v5770_v8 = vpack.c.bf16 %v5713_v10, %v5712_v17  ;;  %v10782_v10 = vld [vmem:[#allocation8 + $0x8] sm:$0xff]  }
 0x5f1   : > { %v5501_v36 = vpop.f32.mrb[220].mxu0  ;;  %9201 = vmatprep.subr.bf16.mxu1 %v10782_v10 }
 0x5f2   : > { %v9885_v23 = vadd.f32 %v13751_v24, %v5501_v36  ;;  %v5503_v46 = vpop.f32.mrb[221].mxu0  ;;  %9147 = vmatprep.mubr.bf16.mxu1 %v5770_v8  ;;  %9202 = vmatpush3.bf16.msra.mxu1 %v10782_v10 }
 0x5f3   : > { %v5504_v44 = vpop.f32.mrb[222].mxu0  ;;  %v10783_v46 = vld [vmem:[#allocation8 + $0x10] sm:$0xff]  }
 0x5f4   : > { %v9886_v3 = vadd.f32 %v13751_v24, %v5504_v44  ;;  %v5506_v16 = vpop.f32.mrb[223].mxu0  ;;  %v5714_v6 = vmax.f32 %v9885_v23, 0.0  ;;  %9203 = vmatprep.subr.bf16.mxu1 %v10783_v46 }
 0x5f6   : > { %v5715_v58 = vmax.f32 %v9886_v3, 0.0  ;;  %9204 = vmatpush3.bf16.msra.mxu1 %v10783_v46 }
 0x5f8   : > { %v5771_v59 = vpack.c.bf16 %v5715_v58, %v5714_v6 }
 0x5f9   : > { %v5509_v63 = vpop.f32.mrb[224].mxu0 }
 0x5fa   : > { %v9887_v4 = vadd.f32 %v13751_v24, %v5509_v63  ;;  %v5511_v41 = vpop.f32.mrb[225].mxu0  ;;  %9148 = vmatmul.mubr.bf16.gmra.mrb[76].mxu1 %v5771_v59  ;;  %v10784_v63 = vld [vmem:[#allocation8 + $0x18] sm:$0xff]  }
 0x5fb   : > { %v5512_v27 = vpop.f32.mrb[226].mxu0  ;;  %9205 = vmatprep.subr.bf16.mxu1 %v10784_v63 }
 0x5fc   : > { %v9888_v11 = vadd.f32 %v13751_v24, %v5512_v27  ;;  %v5514_v5 = vpop.f32.mrb[227].mxu0  ;;  %v5716_v54 = vmax.f32 %v9887_v4, 0.0  ;;  %9206 = vmatpush3.bf16.msra.mxu1 %v10784_v63 }
 0x5fe   : > { %v5717_v61 = vmax.f32 %v9888_v11, 0.0  ;;  %v10785_v11 = vld [vmem:[#allocation8 + $0x20] sm:$0xff]  }
 0x5ff   : > { %9207 = vmatprep.subr.bf16.mxu1 %v10785_v11 }
 0x600   : > { %v5772_v47 = vpack.c.bf16 %v5717_v61, %v5716_v54  ;;  %9208 = vmatpush3.bf16.msra.mxu1 %v10785_v11 }
 0x601   : > { %v5517_v53 = vpop.f32.mrb[228].mxu0 }
 0x602   : > { %v9889_v21 = vadd.f32 %v13751_v24, %v5517_v53  ;;  %v5519_v1 = vpop.f32.mrb[229].mxu0  ;;  %9151 = vmatprep.mubr.bf16.mxu1 %v5772_v47 }
 0x603   : > { %v5520_v45 = vpop.f32.mrb[230].mxu0  ;;  %v10786_v1 = vld [vmem:[#allocation8 + $0x28] sm:$0xff]  }
 0x604   : > { %v9890_v39 = vadd.f32 %v13751_v24, %v5520_v45  ;;  %v5522_v30 = vpop.f32.mrb[231].mxu0  ;;  %v5718_v28 = vmax.f32 %v9889_v21, 0.0  ;;  %9209 = vmatprep.subr.bf16.mxu1 %v10786_v1 }
 0x605   : > { %9210 = vmatpush3.bf16.msra.mxu1 %v10786_v1 }
 0x606   : > { %v5719_v43 = vmax.f32 %v9890_v39, 0.0 }
 0x608   : > { %v5773_v55 = vpack.c.bf16 %v5719_v43, %v5718_v28  ;;  %v10787_v28 = vld [vmem:[#allocation8 + $0x30] sm:$0xff]  }
 0x609   : > { %v5525_v49 = vpop.f32.mrb[232].mxu0  ;;  %9211 = vmatprep.subr.bf16.mxu1 %v10787_v28 }
 0x60a   : > { %v9891_v12 = vadd.f32 %v13751_v24, %v5525_v49  ;;  %v5527_v48 = vpop.f32.mrb[233].mxu0  ;;  %9152 = vmatmul.mubr.bf16.gmra.mrb[80].mxu1 %v5773_v55 }
 0x60b   : > { %v5528_v7 = vpop.f32.mrb[234].mxu0  ;;  %9212 = vmatpush3.bf16.msra.mxu1 %v10787_v28 }
 0x60c   : > { %v9892_v57 = vadd.f32 %v13751_v24, %v5528_v7  ;;  %v5530_v2 = vpop.f32.mrb[235].mxu0  ;;  %v5720_v42 = vmax.f32 %v9891_v12, 0.0 }
 0x60e   : > { %v5721_v52 = vmax.f32 %v9892_v57, 0.0  ;;  %v10788_v57 = vld [vmem:[#allocation8 + $0x38] sm:$0xff]  }
 0x60f   : > { %9213 = vmatprep.subr.bf16.mxu1 %v10788_v57 }
 0x610   : > { %v5774_v51 = vpack.c.bf16 %v5721_v52, %v5720_v42  ;;  %9214 = vmatpush3.bf16.msra.mxu1 %v10788_v57 }
 0x611   : > { %v5533_v0 = vpop.f32.mrb[236].mxu0 }
 0x612   : > { %v9893_v19 = vadd.f32 %v13751_v24, %v5533_v0  ;;  %v5535_v34 = vpop.f32.mrb[237].mxu0  ;;  %9155 = vmatprep.mubr.bf16.mxu1 %v5774_v51 }
 0x613   : > { %v5536_v29 = vpop.f32.mrb[238].mxu0 }
 0x614   : > { %v9894_v26 = vadd.f32 %v13751_v24, %v5536_v29  ;;  %v5538_v22 = vpop.f32.mrb[239].mxu0  ;;  %v5722_v50 = vmax.f32 %v9893_v19, 0.0 }
 0x616   : > { %v5723_v9 = vmax.f32 %v9894_v26, 0.0 }
 0x618   : > { %v5775_v18 = vpack.c.bf16 %v5723_v9, %v5722_v50 }
 0x619   : > { %v5541_v56 = vpop.f32.mrb[240].mxu0 }
 0x61a   : > { %v9895_v15 = vadd.f32 %v13751_v24, %v5541_v56  ;;  %v5543_v38 = vpop.f32.mrb[241].mxu0  ;;  %9156 = vmatmul.mubr.bf16.gmra.mrb[84].mxu1 %v5775_v18 }
 0x61b   : > { %v5544_v40 = vpop.f32.mrb[242].mxu0 }
 0x61c   : > { %v9896_v20 = vadd.f32 %v13751_v24, %v5544_v40  ;;  %v5546_v35 = vpop.f32.mrb[243].mxu0  ;;  %v5724_v37 = vmax.f32 %v9895_v15, 0.0 }
 0x61e   : > { %v5725_v25 = vmax.f32 %v9896_v20, 0.0 }
 0x620   : > { %v5776_v14 = vpack.c.bf16 %v5725_v25, %v5724_v37 }
 0x621   : > { %v5549_v13 = vpop.f32.mrb[244].mxu0 }
 0x622   : > { %v9897_v62 = vadd.f32 %v13751_v24, %v5549_v13  ;;  %v5551_v33 = vpop.f32.mrb[245].mxu0  ;;  %9159 = vmatprep.mubr.bf16.mxu1 %v5776_v14 }
 0x623   : > { %v5552_v31 = vpop.f32.mrb[246].mxu0 }
 0x624   : > { %v9898_v60 = vadd.f32 %v13751_v24, %v5552_v31  ;;  %v5554_v17 = vpop.f32.mrb[247].mxu0  ;;  %v5726_v8 = vmax.f32 %v9897_v62, 0.0 }
 0x626   : > { %v5727_v36 = vmax.f32 %v9898_v60, 0.0 }
 0x628   : > { %v5777_v23 = vpack.c.bf16 %v5727_v36, %v5726_v8 }
 0x629   : > { %v5557_v44 = vpop.f32.mrb[248].mxu0 }
 0x62a   : > { %v9899_v3 = vadd.f32 %v13751_v24, %v5557_v44  ;;  %v5559_v16 = vpop.f32.mrb[249].mxu0  ;;  %9160 = vmatmul.mubr.bf16.gmra.mrb[88].mxu1 %v5777_v23 }
 0x62b   : > { %v5560_v6 = vpop.f32.mrb[250].mxu0 }
 0x62c   : > { %v9900_v58 = vadd.f32 %v13751_v24, %v5560_v6  ;;  %v5562_v59 = vpop.f32.mrb[251].mxu0  ;;  %v5728_v4 = vmax.f32 %v9899_v3, 0.0 }
 0x62e   : > { %v5729_v41 = vmax.f32 %v9900_v58, 0.0 }
 0x630   : > { %v5778_v27 = vpack.c.bf16 %v5729_v41, %v5728_v4 }
 0x631   : > { %v5565_v5 = vpop.f32.mrb[252].mxu0 }
 0x632   : > { %v9901_v54 = vadd.f32 %v13751_v24, %v5565_v5  ;;  %v5567_v61 = vpop.f32.mrb[253].mxu0  ;;  %9163 = vmatprep.mubr.bf16.mxu1 %v5778_v27 }
 0x633   : > { %v5568_v47 = vpop.f32.mrb[254].mxu0 }
 0x634   : > { %v9902_v53 = vadd.f32 %v13751_v24, %v5568_v47  ;;  %v5570_v21 = vpop.f32.mrb[255].mxu0  ;;  %v5730_v45 = vmax.f32 %v9901_v54, 0.0 }
 0x636   : > { %v5731_v39 = vmax.f32 %v9902_v53, 0.0 }
 0x638   : > { %v5779_v30 = vpack.c.bf16 %v5731_v39, %v5730_v45 }
 0x639   : > { %v5573_v43 = vpop.f32.mrb[0].mxu0 }
 0x63a   : > { %v9903_v55 = vadd.f32 %v13751_v24, %v5573_v43  ;;  %v5575_v49 = vpop.f32.mrb[1].mxu0  ;;  %9164 = vmatmul.mubr.bf16.gmra.mrb[92].mxu1 %v5779_v30 }
 0x63b   : > { %v5576_v12 = vpop.f32.mrb[2].mxu0 }
 0x63c   : > { %v9904_v48 = vadd.f32 %v13751_v24, %v5576_v12  ;;  %v5578_v7 = vpop.f32.mrb[3].mxu0  ;;  %v5732_v2 = vmax.f32 %v9903_v55, 0.0 }
 0x63e   : > { %v5733_v42 = vmax.f32 %v9904_v48, 0.0 }
 0x640   : > { %v5780_v52 = vpack.c.bf16 %v5733_v42, %v5732_v2 }
 0x641   : > { %v5581_v51 = vpop.f32.mrb[4].mxu0 }
 0x642   : > { %v9905_v0 = vadd.f32 %v13751_v24, %v5581_v51  ;;  %v5583_v19 = vpop.f32.mrb[5].mxu0  ;;  %9167 = vmatprep.mubr.bf16.mxu1 %v5780_v52 }
 0x643   : > { %v5584_v34 = vpop.f32.mrb[6].mxu0 }
 0x644   : > { %v9906_v29 = vadd.f32 %v13751_v24, %v5584_v34  ;;  %v5586_v26 = vpop.f32.mrb[7].mxu0  ;;  %v5734_v22 = vmax.f32 %v9905_v0, 0.0 }
 0x646   : > { %v5735_v50 = vmax.f32 %v9906_v29, 0.0 }
 0x648   : > { %v5781_v9 = vpack.c.bf16 %v5735_v50, %v5734_v22 }
 0x649   : > { %v5589_v18 = vpop.f32.mrb[8].mxu0 }
 0x64a   : > { %v9907_v56 = vadd.f32 %v13751_v24, %v5589_v18  ;;  %v5591_v15 = vpop.f32.mrb[9].mxu0  ;;  %9168 = vmatmul.mubr.bf16.gmra.mrb[96].mxu1 %v5781_v9 }
 0x64b   : > { %v5592_v38 = vpop.f32.mrb[10].mxu0 }
 0x64c   : > { %v9908_v40 = vadd.f32 %v13751_v24, %v5592_v38  ;;  %v5594_v20 = vpop.f32.mrb[11].mxu0  ;;  %v5736_v35 = vmax.f32 %v9907_v56, 0.0 }
 0x64e   : > { %v5737_v37 = vmax.f32 %v9908_v40, 0.0 }
 0x650   : > { %v5782_v25 = vpack.c.bf16 %v5737_v37, %v5736_v35 }
 0x651   : > { %v5597_v14 = vpop.f32.mrb[12].mxu0 }
 0x652   : > { %v9909_v32 = vadd.f32 %v13751_v24, %v5597_v14  ;;  %v5599_v13 = vpop.f32.mrb[13].mxu0  ;;  %9171 = vmatprep.mubr.bf16.mxu1 %v5782_v25 }
 0x653   : > { %v5600_v62 = vpop.f32.mrb[14].mxu0 }
 0x654   : > { %v9910_v33 = vadd.f32 %v13751_v24, %v5600_v62  ;;  %v5602_v31 = vpop.f32.mrb[15].mxu0  ;;  %v5738_v60 = vmax.f32 %v9909_v32, 0.0 }
 0x656   : > { %v5739_v17 = vmax.f32 %v9910_v33, 0.0 }
 0x658   : > { %v5783_v10 = vpack.c.bf16 %v5739_v17, %v5738_v60 }
 0x659   : > { %v5605_v8 = vpop.f32.mrb[16].mxu0 }
 0x65a   : > { %v9911_v36 = vadd.f32 %v13751_v24, %v5605_v8  ;;  %v5607_v23 = vpop.f32.mrb[17].mxu0  ;;  %9172 = vmatmul.mubr.bf16.gmra.mrb[100].mxu1 %v5783_v10 }
 0x65b   : > { %v5608_v46 = vpop.f32.mrb[18].mxu0 }
 0x65c   : > { %v9912_v44 = vadd.f32 %v13751_v24, %v5608_v46  ;;  %v5610_v3 = vpop.f32.mrb[19].mxu0  ;;  %v5740_v16 = vmax.f32 %v9911_v36, 0.0 }
 0x65e   : > { %v5741_v6 = vmax.f32 %v9912_v44, 0.0 }
 0x660   : > { %v5784_v58 = vpack.c.bf16 %v5741_v6, %v5740_v16 }
 0x661   : > { %v5613_v59 = vpop.f32.mrb[20].mxu0 }
 0x662   : > { %v9913_v63 = vadd.f32 %v13751_v24, %v5613_v59  ;;  %v5615_v4 = vpop.f32.mrb[21].mxu0  ;;  %9175 = vmatprep.mubr.bf16.mxu1 %v5784_v58 }
 0x663   : > { %v5616_v41 = vpop.f32.mrb[22].mxu0 }
 0x664   : > { %v9914_v27 = vadd.f32 %v13751_v24, %v5616_v41  ;;  %v5618_v11 = vpop.f32.mrb[23].mxu0  ;;  %v5742_v5 = vmax.f32 %v9913_v63, 0.0 }
 0x666   : > { %v5743_v54 = vmax.f32 %v9914_v27, 0.0  ;;  %v13823_v27 = vld [vmem:[%s14332_s8] ss:$0 sm:$0xff] }
 0x668   : > { %v5785_v61 = vpack.c.bf16 %v5743_v54, %v5742_v5 }
 0x669   : > { %v5621_v47 = vpop.f32.mrb[24].mxu0 }
 0x66a   : > { %v9915_v53 = vadd.f32 %v13751_v24, %v5621_v47  ;;  %v5623_v21 = vpop.f32.mrb[25].mxu0  ;;  %9176 = vmatmul.mubr.bf16.gmra.mrb[104].mxu1 %v5785_v61 }
 0x66b   : > { %v5624_v1 = vpop.f32.mrb[26].mxu0 }
 0x66c   : > { %v9916_v45 = vadd.f32 %v13751_v24, %v5624_v1  ;;  %v5626_v39 = vpop.f32.mrb[27].mxu0  ;;  %v5744_v30 = vmax.f32 %v9915_v53, 0.0 }
 0x66e   : > { %v5745_v28 = vmax.f32 %v9916_v45, 0.0 }
 0x670   : > { %v5786_v43 = vpack.c.bf16 %v5745_v28, %v5744_v30 }
 0x671   : > { %v5629_v55 = vpop.f32.mrb[28].mxu0 }
 0x672   : > { %v9917_v49 = vadd.f32 %v13751_v24, %v5629_v55  ;;  %v5631_v12 = vpop.f32.mrb[29].mxu0  ;;  %9179 = vmatprep.mubr.bf16.mxu1 %v5786_v43 }
 0x673   : > { %v5632_v48 = vpop.f32.mrb[30].mxu0 }
 0x674   : > { %v9918_v7 = vadd.f32 %v13751_v24, %v5632_v48  ;;  %v5634_v57 = vpop.f32.mrb[31].mxu0  ;;  %v5746_v2 = vmax.f32 %v9917_v49, 0.0 }
 0x676   : > { %v5747_v42 = vmax.f32 %v9918_v7, 0.0 }
 0x678   : > { %v5787_v52 = vpack.c.bf16 %v5747_v42, %v5746_v2 }
 0x679   : > { %v5637_v51 = vpop.f32.mrb[32].mxu0 }
 0x67a   : > { %v9919_v0 = vadd.f32 %v13751_v24, %v5637_v51  ;;  %v5639_v19 = vpop.f32.mrb[33].mxu0  ;;  %9180 = vmatmul.mubr.bf16.gmra.mrb[108].mxu1 %v5787_v52 }
 0x67b   : > { %v5640_v34 = vpop.f32.mrb[34].mxu0 }
 0x67c   : > { %v9920_v29 = vadd.f32 %v13751_v24, %v5640_v34  ;;  %v5642_v26 = vpop.f32.mrb[35].mxu0  ;;  %v5748_v22 = vmax.f32 %v9919_v0, 0.0 }
 0x67e   : > { %v5749_v50 = vmax.f32 %v9920_v29, 0.0 }
 0x680   : > { %v5788_v9 = vpack.c.bf16 %v5749_v50, %v5748_v22 }
 0x681   : > { %v5645_v18 = vpop.f32.mrb[36].mxu0 }
 0x682   : > { %v9921_v56 = vadd.f32 %v13751_v24, %v5645_v18  ;;  %v5647_v15 = vpop.f32.mrb[37].mxu0  ;;  %9183 = vmatprep.mubr.bf16.mxu1 %v5788_v9 }
 0x683   : > { %v5648_v38 = vpop.f32.mrb[38].mxu0 }
 0x684   : > { %v9922_v40 = vadd.f32 %v13751_v24, %v5648_v38  ;;  %v5650_v20 = vpop.f32.mrb[39].mxu0  ;;  %v5750_v35 = vmax.f32 %v9921_v56, 0.0 }
 0x686   : > { %v5751_v37 = vmax.f32 %v9922_v40, 0.0 }
 0x688   : > { %v5789_v25 = vpack.c.bf16 %v5751_v37, %v5750_v35 }
 0x689   : > { %v5653_v14 = vpop.f32.mrb[40].mxu0 }
 0x68a   : > { %v9923_v32 = vadd.f32 %v13751_v24, %v5653_v14  ;;  %v5655_v13 = vpop.f32.mrb[41].mxu0  ;;  %9184 = vmatmul.mubr.bf16.gmra.mrb[112].mxu1 %v5789_v25 }
 0x68b   : > { %v5656_v62 = vpop.f32.mrb[42].mxu0 }
 0x68c   : > { %v9924_v33 = vadd.f32 %v13751_v24, %v5656_v62  ;;  %v5658_v31 = vpop.f32.mrb[43].mxu0  ;;  %v5752_v60 = vmax.f32 %v9923_v32, 0.0 }
 0x68e   : > { %v5753_v17 = vmax.f32 %v9924_v33, 0.0 }
 0x690   : > { %v5790_v10 = vpack.c.bf16 %v5753_v17, %v5752_v60 }
 0x691   : > { %v5661_v8 = vpop.f32.mrb[44].mxu0 }
 0x692   : > { %v9925_v36 = vadd.f32 %v13751_v24, %v5661_v8  ;;  %v5663_v23 = vpop.f32.mrb[45].mxu0  ;;  %9187 = vmatprep.mubr.bf16.mxu1 %v5790_v10 }
 0x693   : > { %v5664_v46 = vpop.f32.mrb[46].mxu0 }
 0x694   : > { %v9926_v44 = vadd.f32 %v13751_v24, %v5664_v46  ;;  %v5666_v3 = vpop.f32.mrb[47].mxu0  ;;  %v5754_v16 = vmax.f32 %v9925_v36, 0.0 }
 0x696   : > { %v5755_v6 = vmax.f32 %v9926_v44, 0.0 }
 0x698   : > { %v5791_v58 = vpack.c.bf16 %v5755_v6, %v5754_v16 }
 0x699   : > { %v5669_v59 = vpop.f32.mrb[48].mxu0 }
 0x69a   : > { %v9927_v63 = vadd.f32 %v13751_v24, %v5669_v59  ;;  %v5671_v4 = vpop.f32.mrb[49].mxu0  ;;  %9188 = vmatmul.mubr.bf16.gmra.mrb[116].mxu1 %v5791_v58 }
 0x69b   : > { %v5672_v41 = vpop.f32.mrb[50].mxu0 }
 0x69c   : > { %v9928_v11 = vadd.f32 %v13751_v24, %v5672_v41  ;;  %v5674_v5 = vpop.f32.mrb[51].mxu0  ;;  %v5756_v61 = vmax.f32 %v9927_v63, 0.0 }
 0x69d   : > { %v9137_v54 = vpop.f32.mrb[64].mxu1 }
 0x69e   : > { %v5757_v47 = vmax.f32 %v9928_v11, 0.0  ;;  %v5910_v53 = vadd.f32 %v9137_v54, %v13823_v27  ;;  %v5901_v21 = vpop.f32.mrb[65].mxu1 }
 0x69f   : > { %v5902_v1 = vadd.f32 %v13823_v27, %v5901_v21  ;;  %v9138_v45 = vpop.f32.mrb[66].mxu1 }
 0x6a0   : > { %v5792_v39 = vpack.c.bf16 %v5757_v47, %v5756_v61  ;;  %v5913_v30 = vadd.f32 %v9138_v45, %v13823_v27  ;;  %v5904_v28 = vpop.f32.mrb[67].mxu1  ;;  %v6158_v49 = vmax.f32 %v5910_v53, 0.0 }
 0x6a1   : > { %v5905_v43 = vadd.f32 %v13823_v27, %v5904_v28  ;;  %v5677_v55 = vpop.f32.mrb[52].mxu0  ;;  %v6156_v57 = vmax.f32 %v5902_v1, 0.0 }
 0x6a2   : > { %v6159_v12 = vmax.f32 %v5913_v30, 0.0  ;;  %v9929_v48 = vadd.f32 %v13751_v24, %v5677_v55  ;;  %v5679_v7 = vpop.f32.mrb[53].mxu0  ;;  %9191 = vmatprep.mubr.bf16.mxu1 %v5792_v39 }
 0x6a3   : > { %v6157_v2 = vmax.f32 %v5905_v43, 0.0  ;;  %v5680_v42 = vpop.f32.mrb[54].mxu0 }
 0x6a4   : > { %v6221_v52 = vpack.c.bf16 %v6159_v12, %v6158_v49  ;;  %v9930_v51 = vadd.f32 %v13751_v24, %v5680_v42  ;;  %v5682_v0 = vpop.f32.mrb[55].mxu0  ;;  %v5758_v34 = vmax.f32 %v9929_v48, 0.0 }
 0x6a5   : > { %v6220_v19 = vpack.c.bf16 %v6157_v2, %v6156_v57 }
 0x6a6   : > { %v5759_v29 = vmax.f32 %v9930_v51, 0.0 }
 0x6a8   : > { %v5793_v26 = vpack.c.bf16 %v5759_v29, %v5758_v34 }
 0x6a9   : > { %v5685_v22 = vpop.f32.mrb[56].mxu0 }
 0x6aa   : > { %v9931_v50 = vadd.f32 %v13751_v24, %v5685_v22  ;;  %v5687_v9 = vpop.f32.mrb[57].mxu0  ;;  %9192 = vmatmul.mubr.bf16.gmra.mrb[120].mxu1 %v5793_v26 }
 0x6ab   : > { %v5688_v18 = vpop.f32.mrb[58].mxu0 }
 0x6ac   : > { %v9932_v56 = vadd.f32 %v13751_v24, %v5688_v18  ;;  %v5690_v15 = vpop.f32.mrb[59].mxu0  ;;  %v5760_v40 = vmax.f32 %v9931_v50, 0.0 }
 0x6ad   : > { %v9141_v38 = vpop.f32.mrb[68].mxu1 }
 0x6ae   : > { %v5761_v20 = vmax.f32 %v9932_v56, 0.0  ;;  %v5926_v35 = vadd.f32 %v9141_v38, %v13823_v27  ;;  %v5917_v37 = vpop.f32.mrb[69].mxu1 }
 0x6af   : > { %v5918_v25 = vadd.f32 %v13823_v27, %v5917_v37  ;;  %v9142_v14 = vpop.f32.mrb[70].mxu1 }
 0x6b0   : > { %v5794_v32 = vpack.c.bf16 %v5761_v20, %v5760_v40  ;;  %v5929_v13 = vadd.f32 %v9142_v14, %v13823_v27  ;;  %v5920_v62 = vpop.f32.mrb[71].mxu1  ;;  %v6162_v60 = vmax.f32 %v5926_v35, 0.0 }
 0x6b1   : > { %v5921_v33 = vadd.f32 %v13823_v27, %v5920_v62  ;;  %v5693_v31 = vpop.f32.mrb[60].mxu0  ;;  %v6160_v36 = vmax.f32 %v5918_v25, 0.0 }
 0x6b2   : > { %v6163_v17 = vmax.f32 %v5929_v13, 0.0  ;;  %v9933_v10 = vadd.f32 %v13751_v24, %v5693_v31  ;;  %v5695_v8 = vpop.f32.mrb[61].mxu0  ;;  %9195 = vmatprep.mubr.bf16.mxu1 %v5794_v32 }
 0x6b3   : > { %v6161_v23 = vmax.f32 %v5921_v33, 0.0  ;;  %v5696_v46 = vpop.f32.mrb[62].mxu0 }
 0x6b4   : > { %v6223_v44 = vpack.c.bf16 %v6163_v17, %v6162_v60  ;;  %v9934_v3 = vadd.f32 %v13751_v24, %v5696_v46  ;;  %v5698_v16 = vpop.f32.mrb[63].mxu0  ;;  %v5762_v58 = vmax.f32 %v9933_v10, 0.0 }
 0x6b5   : > { %v6222_v6 = vpack.c.bf16 %v6161_v23, %v6160_v36 }
 0x6b6   : > { %v5763_v59 = vmax.f32 %v9934_v3, 0.0 }
 0x6b8   : > { %v5795_v63 = vpack.c.bf16 %v5763_v59, %v5762_v58 }
 0x6ba   : > { %9196 = vmatmul.mubr.bf16.gmra.mrb[124].mxu1 %v5795_v63 }
 0x6bb   : > { %9215 = vmatprep.mubr.bf16.mxu1 %v6220_v19 }
 0x6bd   : > { %v9145_v4 = vpop.f32.mrb[72].mxu1 }
 0x6be   : > { %v5942_v41 = vadd.f32 %v9145_v4, %v13823_v27  ;;  %v5933_v11 = vpop.f32.mrb[73].mxu1 }
 0x6bf   : > { %v5934_v5 = vadd.f32 %v13823_v27, %v5933_v11  ;;  %v9146_v54 = vpop.f32.mrb[74].mxu1 }
 0x6c0   : > { %v5945_v61 = vadd.f32 %v9146_v54, %v13823_v27  ;;  %v5936_v47 = vpop.f32.mrb[75].mxu1  ;;  %v6166_v24 = vmax.f32 %v5942_v41, 0.0  ;;  %v10790_v54 = vld [vmem:[#allocation9 + $0x8] sm:$0xff]  }
 0x6c1   : > { %v5937_v53 = vadd.f32 %v13823_v27, %v5936_v47  ;;  %v6164_v1 = vmax.f32 %v5934_v5, 0.0 }
 0x6c2   : > { %v6167_v21 = vmax.f32 %v5945_v61, 0.0  ;;  %9216 = vmatmul.mubr.bf16.vlgmr.msra.gmra.mrb[128].mxu1 %v6221_v52 }
 0x6c3   : > { %v6165_v45 = vmax.f32 %v5937_v53, 0.0  ;;  %9219 = vmatprep.mubr.bf16.mxu1 %v6222_v6  ;;  %v10789_v6 = vld [vmem:[#allocation9] sm:$0xff]  }
 0x6c4   : > { %v6225_v39 = vpack.c.bf16 %v6167_v21, %v6166_v24  ;;  %9279 = vmatprep.subr.bf16.mxu1 %v10789_v6  ;;  %v10791_v21 = vld [vmem:[#allocation9 + $0x10] sm:$0xff]  }
 0x6c5   : > { %v6224_v30 = vpack.c.bf16 %v6165_v45, %v6164_v1  ;;  %9280 = vmatpush3.bf16.msra.mxu1 %v10789_v6  ;;  %v10792_v1 = vld [vmem:[#allocation9 + $0x18] sm:$0xff]  }
 0x6c6   : > { %9281 = vmatprep.subr.bf16.mxu1 %v10790_v54 }
 0x6c9   : > { %9282 = vmatpush3.bf16.msra.mxu1 %v10790_v54 }
 0x6ca   : > { %9220 = vmatmul.mubr.bf16.gmra.mrb[132].mxu1 %v6223_v44  ;;  %9283 = vmatprep.subr.bf16.mxu1 %v10791_v21 }
 0x6cb   : > { %9223 = vmatprep.mubr.bf16.mxu1 %v6224_v30 }
 0x6cd   : > { %v9149_v28 = vpop.f32.mrb[76].mxu1  ;;  %9284 = vmatpush3.bf16.msra.mxu1 %v10791_v21 }
 0x6ce   : > { %v5958_v43 = vadd.f32 %v9149_v28, %v13823_v27  ;;  %v5949_v55 = vpop.f32.mrb[77].mxu1  ;;  %9285 = vmatprep.subr.bf16.mxu1 %v10792_v1  ;;  %v10793_v28 = vld [vmem:[#allocation9 + $0x20] sm:$0xff]  }
 0x6cf   : > { %v5950_v49 = vadd.f32 %v13823_v27, %v5949_v55  ;;  %v9150_v12 = vpop.f32.mrb[78].mxu1 }
 0x6d0   : > { %v5961_v48 = vadd.f32 %v9150_v12, %v13823_v27  ;;  %v5952_v7 = vpop.f32.mrb[79].mxu1  ;;  %v6170_v2 = vmax.f32 %v5958_v43, 0.0 }
 0x6d1   : > { %v5953_v57 = vadd.f32 %v13823_v27, %v5952_v7  ;;  %v6168_v52 = vmax.f32 %v5950_v49, 0.0  ;;  %9286 = vmatpush3.bf16.msra.mxu1 %v10792_v1 }
 0x6d2   : > { %v6171_v42 = vmax.f32 %v5961_v48, 0.0  ;;  %9224 = vmatmul.mubr.bf16.gmra.mrb[136].mxu1 %v6225_v39  ;;  %9287 = vmatprep.subr.bf16.mxu1 %v10793_v28 }
 0x6d3   : > { %v6169_v51 = vmax.f32 %v5953_v57, 0.0 }
 0x6d4   : > { %v6227_v0 = vpack.c.bf16 %v6171_v42, %v6170_v2  ;;  %v10794_v2 = vld [vmem:[#allocation9 + $0x28] sm:$0xff]  }
 0x6d5   : > { %v6226_v19 = vpack.c.bf16 %v6169_v51, %v6168_v52  ;;  %9288 = vmatpush3.bf16.msra.mxu1 %v10793_v28 }
 0x6d6   : > { %9289 = vmatprep.subr.bf16.mxu1 %v10794_v2 }
 0x6d7   : > { %9227 = vmatprep.mubr.bf16.mxu1 %v6226_v19  ;;  %v10795_v19 = vld [vmem:[#allocation9 + $0x30] sm:$0xff]  }
 0x6d9   : > { %9290 = vmatpush3.bf16.msra.mxu1 %v10794_v2 }
 0x6da   : > { %9228 = vmatmul.mubr.bf16.gmra.mrb[140].mxu1 %v6227_v0  ;;  %9291 = vmatprep.subr.bf16.mxu1 %v10795_v19 }
 0x6dd   : > { %v9153_v34 = vpop.f32.mrb[80].mxu1  ;;  %9292 = vmatpush3.bf16.msra.mxu1 %v10795_v19 }
 0x6de   : > { %v5974_v29 = vadd.f32 %v9153_v34, %v13823_v27  ;;  %v5965_v26 = vpop.f32.mrb[81].mxu1  ;;  %v10796_v34 = vld [vmem:[#allocation9 + $0x38] sm:$0xff]  }
 0x6df   : > { %v5966_v22 = vadd.f32 %v13823_v27, %v5965_v26  ;;  %v9154_v50 = vpop.f32.mrb[82].mxu1  ;;  %9293 = vmatprep.subr.bf16.mxu1 %v10796_v34 }
 0x6e0   : > { %v5977_v9 = vadd.f32 %v9154_v50, %v13823_v27  ;;  %v5968_v18 = vpop.f32.mrb[83].mxu1  ;;  %v6174_v15 = vmax.f32 %v5974_v29, 0.0 }
 0x6e1   : > { %v5969_v56 = vadd.f32 %v13823_v27, %v5968_v18  ;;  %v6172_v40 = vmax.f32 %v5966_v22, 0.0  ;;  %9294 = vmatpush3.bf16.msra.mxu1 %v10796_v34 }
 0x6e2   : > { %v6175_v38 = vmax.f32 %v5977_v9, 0.0 }
 0x6e3   : > { %v6173_v20 = vmax.f32 %v5969_v56, 0.0 }
 0x6e4   : > { %v6229_v35 = vpack.c.bf16 %v6175_v38, %v6174_v15 }
 0x6e5   : > { %v6228_v37 = vpack.c.bf16 %v6173_v20, %v6172_v40 }
 0x6e7   : > { %9231 = vmatprep.mubr.bf16.mxu1 %v6228_v37 }
 0x6e8   : > { %9232 = vmatmul.mubr.bf16.gmra.mrb[144].mxu1 %v6229_v35 }
 0x6ed   : > { %v9157_v25 = vpop.f32.mrb[84].mxu1 }
 0x6ee   : > { %v5990_v14 = vadd.f32 %v9157_v25, %v13823_v27  ;;  %v5981_v32 = vpop.f32.mrb[85].mxu1 }
 0x6ef   : > { %v5982_v13 = vadd.f32 %v13823_v27, %v5981_v32  ;;  %v9158_v62 = vpop.f32.mrb[86].mxu1 }
 0x6f0   : > { %v5993_v33 = vadd.f32 %v9158_v62, %v13823_v27  ;;  %v5984_v31 = vpop.f32.mrb[87].mxu1  ;;  %v6178_v17 = vmax.f32 %v5990_v14, 0.0 }
 0x6f1   : > { %v5985_v60 = vadd.f32 %v13823_v27, %v5984_v31  ;;  %v6176_v8 = vmax.f32 %v5982_v13, 0.0 }
 0x6f2   : > { %v6179_v10 = vmax.f32 %v5993_v33, 0.0 }
 0x6f3   : > { %v6177_v36 = vmax.f32 %v5985_v60, 0.0 }
 0x6f4   : > { %v6231_v23 = vpack.c.bf16 %v6179_v10, %v6178_v17 }
 0x6f5   : > { %v6230_v46 = vpack.c.bf16 %v6177_v36, %v6176_v8 }
 0x6f7   : > { %9235 = vmatprep.mubr.bf16.mxu1 %v6230_v46 }
 0x6f8   : > { %9236 = vmatmul.mubr.bf16.gmra.mrb[148].mxu1 %v6231_v23 }
 0x6fd   : > { %v9161_v44 = vpop.f32.mrb[88].mxu1 }
 0x6fe   : > { %v6006_v3 = vadd.f32 %v9161_v44, %v13823_v27  ;;  %v5997_v16 = vpop.f32.mrb[89].mxu1 }
 0x6ff   : > { %v5998_v58 = vadd.f32 %v13823_v27, %v5997_v16  ;;  %v9162_v59 = vpop.f32.mrb[90].mxu1 }
 0x700   : > { %v6009_v63 = vadd.f32 %v9162_v59, %v13823_v27  ;;  %v6000_v4 = vpop.f32.mrb[91].mxu1  ;;  %v6182_v11 = vmax.f32 %v6006_v3, 0.0 }
 0x701   : > { %v6001_v41 = vadd.f32 %v13823_v27, %v6000_v4  ;;  %v6180_v61 = vmax.f32 %v5998_v58, 0.0 }
 0x702   : > { %v6183_v5 = vmax.f32 %v6009_v63, 0.0 }
 0x703   : > { %v6181_v47 = vmax.f32 %v6001_v41, 0.0 }
 0x704   : > { %v6233_v53 = vpack.c.bf16 %v6183_v5, %v6182_v11 }
 0x705   : > { %v6232_v24 = vpack.c.bf16 %v6181_v47, %v6180_v61 }
 0x707   : > { %9239 = vmatprep.mubr.bf16.mxu1 %v6232_v24 }
 0x708   : > { %9240 = vmatmul.mubr.bf16.gmra.mrb[152].mxu1 %v6233_v53 }
 0x70d   : > { %v9165_v45 = vpop.f32.mrb[92].mxu1 }
 0x70e   : > { %v6022_v39 = vadd.f32 %v9165_v45, %v13823_v27  ;;  %v6013_v30 = vpop.f32.mrb[93].mxu1 }
 0x70f   : > { %v6014_v43 = vadd.f32 %v13823_v27, %v6013_v30  ;;  %v9166_v55 = vpop.f32.mrb[94].mxu1 }
 0x710   : > { %v6025_v49 = vadd.f32 %v9166_v55, %v13823_v27  ;;  %v6016_v12 = vpop.f32.mrb[95].mxu1  ;;  %v6186_v7 = vmax.f32 %v6022_v39, 0.0 }
 0x711   : > { %v6017_v48 = vadd.f32 %v13823_v27, %v6016_v12  ;;  %v6184_v42 = vmax.f32 %v6014_v43, 0.0 }
 0x712   : > { %v6187_v57 = vmax.f32 %v6025_v49, 0.0 }
 0x713   : > { %v6185_v52 = vmax.f32 %v6017_v48, 0.0 }
 0x714   : > { %v6235_v51 = vpack.c.bf16 %v6187_v57, %v6186_v7 }
 0x715   : > { %v6234_v0 = vpack.c.bf16 %v6185_v52, %v6184_v42 }
 0x717   : > { %9243 = vmatprep.mubr.bf16.mxu1 %v6234_v0 }
 0x718   : > { %9244 = vmatmul.mubr.bf16.gmra.mrb[156].mxu1 %v6235_v51 }
 0x71d   : > { %v9169_v29 = vpop.f32.mrb[96].mxu1 }
 0x71e   : > { %v6038_v26 = vadd.f32 %v9169_v29, %v13823_v27  ;;  %v6029_v22 = vpop.f32.mrb[97].mxu1 }
 0x71f   : > { %v6030_v50 = vadd.f32 %v13823_v27, %v6029_v22  ;;  %v9170_v9 = vpop.f32.mrb[98].mxu1 }
 0x720   : > { %v6041_v18 = vadd.f32 %v9170_v9, %v13823_v27  ;;  %v6032_v56 = vpop.f32.mrb[99].mxu1  ;;  %v6190_v38 = vmax.f32 %v6038_v26, 0.0 }
 0x721   : > { %v6033_v15 = vadd.f32 %v13823_v27, %v6032_v56  ;;  %v6188_v20 = vmax.f32 %v6030_v50, 0.0 }
 0x722   : > { %v6191_v40 = vmax.f32 %v6041_v18, 0.0 }
 0x723   : > { %v6189_v35 = vmax.f32 %v6033_v15, 0.0 }
 0x724   : > { %v6237_v37 = vpack.c.bf16 %v6191_v40, %v6190_v38 }
 0x725   : > { %v6236_v25 = vpack.c.bf16 %v6189_v35, %v6188_v20 }
 0x727   : > { %9247 = vmatprep.mubr.bf16.mxu1 %v6236_v25 }
 0x728   : > { %9248 = vmatmul.mubr.bf16.gmra.mrb[160].mxu1 %v6237_v37 }
 0x72d   : > { %v9173_v14 = vpop.f32.mrb[100].mxu1 }
 0x72e   : > { %v6054_v32 = vadd.f32 %v9173_v14, %v13823_v27  ;;  %v6045_v13 = vpop.f32.mrb[101].mxu1 }
 0x72f   : > { %v6046_v62 = vadd.f32 %v13823_v27, %v6045_v13  ;;  %v9174_v33 = vpop.f32.mrb[102].mxu1 }
 0x730   : > { %v6057_v31 = vadd.f32 %v9174_v33, %v13823_v27  ;;  %v6048_v60 = vpop.f32.mrb[103].mxu1  ;;  %v6194_v10 = vmax.f32 %v6054_v32, 0.0 }
 0x731   : > { %v6049_v17 = vadd.f32 %v13823_v27, %v6048_v60  ;;  %v6192_v36 = vmax.f32 %v6046_v62, 0.0 }
 0x732   : > { %v6195_v8 = vmax.f32 %v6057_v31, 0.0 }
 0x733   : > { %v6193_v23 = vmax.f32 %v6049_v17, 0.0 }
 0x734   : > { %v6239_v46 = vpack.c.bf16 %v6195_v8, %v6194_v10 }
 0x735   : > { %v6238_v44 = vpack.c.bf16 %v6193_v23, %v6192_v36 }
 0x737   : > { %9251 = vmatprep.mubr.bf16.mxu1 %v6238_v44 }
 0x738   : > { %9252 = vmatmul.mubr.bf16.gmra.mrb[164].mxu1 %v6239_v46 }
 0x73d   : > { %v9177_v3 = vpop.f32.mrb[104].mxu1 }
 0x73e   : > { %v6070_v16 = vadd.f32 %v9177_v3, %v13823_v27  ;;  %v6061_v6 = vpop.f32.mrb[105].mxu1 }
 0x73f   : > { %v6062_v58 = vadd.f32 %v13823_v27, %v6061_v6  ;;  %v9178_v59 = vpop.f32.mrb[106].mxu1 }
 0x740   : > { %v6073_v63 = vadd.f32 %v9178_v59, %v13823_v27  ;;  %v6064_v4 = vpop.f32.mrb[107].mxu1  ;;  %v6198_v11 = vmax.f32 %v6070_v16, 0.0 }
 0x741   : > { %v6065_v41 = vadd.f32 %v13823_v27, %v6064_v4  ;;  %v6196_v54 = vmax.f32 %v6062_v58, 0.0 }
 0x742   : > { %v6199_v5 = vmax.f32 %v6073_v63, 0.0 }
 0x743   : > { %v6197_v61 = vmax.f32 %v6065_v41, 0.0 }
 0x744   : > { %v6241_v47 = vpack.c.bf16 %v6199_v5, %v6198_v11 }
 0x745   : > { %v6240_v53 = vpack.c.bf16 %v6197_v61, %v6196_v54 }
 0x747   : > { %9255 = vmatprep.mubr.bf16.mxu1 %v6240_v53 }
 0x748   : > { %9256 = vmatmul.mubr.bf16.gmra.mrb[168].mxu1 %v6241_v47 }
 0x74d   : > { %v9181_v24 = vpop.f32.mrb[108].mxu1 }
 0x74e   : > { %v6086_v21 = vadd.f32 %v9181_v24, %v13823_v27  ;;  %v6077_v1 = vpop.f32.mrb[109].mxu1 }
 0x74f   : > { %v6078_v45 = vadd.f32 %v13823_v27, %v6077_v1  ;;  %v9182_v39 = vpop.f32.mrb[110].mxu1 }
 0x750   : > { %v6089_v30 = vadd.f32 %v9182_v39, %v13823_v27  ;;  %v6080_v28 = vpop.f32.mrb[111].mxu1  ;;  %v6202_v55 = vmax.f32 %v6086_v21, 0.0 }
 0x751   : > { %v6081_v43 = vadd.f32 %v13823_v27, %v6080_v28  ;;  %v6200_v12 = vmax.f32 %v6078_v45, 0.0 }
 0x752   : > { %v6203_v49 = vmax.f32 %v6089_v30, 0.0  ;;  %v13899_v30 = vld [vmem:[%s14334_s10] ss:$0 sm:$0xff] }
 0x753   : > { %v6201_v48 = vmax.f32 %v6081_v43, 0.0 }
 0x754   : > { %v6243_v7 = vpack.c.bf16 %v6203_v49, %v6202_v55 }
 0x755   : > { %v6242_v57 = vpack.c.bf16 %v6201_v48, %v6200_v12 }
 0x757   : > { %9259 = vmatprep.mubr.bf16.mxu1 %v6242_v57 }
 0x758   : > { %9260 = vmatmul.mubr.bf16.gmra.mrb[172].mxu1 %v6243_v7 }
 0x75d   : > { %v9185_v2 = vpop.f32.mrb[112].mxu1 }
 0x75e   : > { %v6102_v42 = vadd.f32 %v9185_v2, %v13823_v27  ;;  %v6093_v52 = vpop.f32.mrb[113].mxu1 }
 0x75f   : > { %v6094_v51 = vadd.f32 %v13823_v27, %v6093_v52  ;;  %v9186_v0 = vpop.f32.mrb[114].mxu1 }
 0x760   : > { %v6105_v19 = vadd.f32 %v9186_v0, %v13823_v27  ;;  %v6096_v34 = vpop.f32.mrb[115].mxu1  ;;  %v6206_v26 = vmax.f32 %v6102_v42, 0.0 }
 0x761   : > { %v6097_v29 = vadd.f32 %v13823_v27, %v6096_v34  ;;  %v6204_v50 = vmax.f32 %v6094_v51, 0.0 }
 0x762   : > { %v6207_v22 = vmax.f32 %v6105_v19, 0.0 }
 0x763   : > { %v6205_v9 = vmax.f32 %v6097_v29, 0.0 }
 0x764   : > { %v6245_v18 = vpack.c.bf16 %v6207_v22, %v6206_v26 }
 0x765   : > { %v6244_v56 = vpack.c.bf16 %v6205_v9, %v6204_v50 }
 0x767   : > { %9263 = vmatprep.mubr.bf16.mxu1 %v6244_v56 }
 0x768   : > { %9264 = vmatmul.mubr.bf16.gmra.mrb[176].mxu1 %v6245_v18 }
 0x76d   : > { %v9189_v15 = vpop.f32.mrb[116].mxu1 }
 0x76e   : > { %v6118_v38 = vadd.f32 %v9189_v15, %v13823_v27  ;;  %v6109_v40 = vpop.f32.mrb[117].mxu1 }
 0x76f   : > { %v6110_v20 = vadd.f32 %v13823_v27, %v6109_v40  ;;  %v9190_v35 = vpop.f32.mrb[118].mxu1 }
 0x770   : > { %v6121_v37 = vadd.f32 %v9190_v35, %v13823_v27  ;;  %v6112_v25 = vpop.f32.mrb[119].mxu1  ;;  %v6210_v32 = vmax.f32 %v6118_v38, 0.0 }
 0x771   : > { %v6113_v14 = vadd.f32 %v13823_v27, %v6112_v25  ;;  %v6208_v62 = vmax.f32 %v6110_v20, 0.0 }
 0x772   : > { %v6211_v13 = vmax.f32 %v6121_v37, 0.0 }
 0x773   : > { %v6209_v33 = vmax.f32 %v6113_v14, 0.0 }
 0x774   : > { %v6247_v31 = vpack.c.bf16 %v6211_v13, %v6210_v32 }
 0x775   : > { %v6246_v60 = vpack.c.bf16 %v6209_v33, %v6208_v62 }
 0x777   : > { %9267 = vmatprep.mubr.bf16.mxu1 %v6246_v60 }
 0x778   : > { %9268 = vmatmul.mubr.bf16.gmra.mrb[180].mxu1 %v6247_v31 }
 0x77d   : > { %v9193_v17 = vpop.f32.mrb[120].mxu1 }
 0x77e   : > { %v6134_v10 = vadd.f32 %v9193_v17, %v13823_v27  ;;  %v6125_v8 = vpop.f32.mrb[121].mxu1 }
 0x77f   : > { %v6126_v36 = vadd.f32 %v13823_v27, %v6125_v8  ;;  %v9194_v23 = vpop.f32.mrb[122].mxu1 }
 0x780   : > { %v6137_v46 = vadd.f32 %v9194_v23, %v13823_v27  ;;  %v6128_v44 = vpop.f32.mrb[123].mxu1  ;;  %v6214_v16 = vmax.f32 %v6134_v10, 0.0 }
 0x781   : > { %v6129_v3 = vadd.f32 %v13823_v27, %v6128_v44  ;;  %v6212_v58 = vmax.f32 %v6126_v36, 0.0 }
 0x782   : > { %v6215_v6 = vmax.f32 %v6137_v46, 0.0 }
 0x783   : > { %v6213_v59 = vmax.f32 %v6129_v3, 0.0 }
 0x784   : > { %v6249_v63 = vpack.c.bf16 %v6215_v6, %v6214_v16 }
 0x785   : > { %v6248_v4 = vpack.c.bf16 %v6213_v59, %v6212_v58 }
 0x787   : > { %9271 = vmatprep.mubr.bf16.mxu1 %v6248_v4 }
 0x788   : > { %9272 = vmatmul.mubr.bf16.gmra.mrb[184].mxu1 %v6249_v63 }
 0x78d   : > { %v9197_v41 = vpop.f32.mrb[124].mxu1 }
 0x78e   : > { %v6150_v11 = vadd.f32 %v9197_v41, %v13823_v27  ;;  %v6141_v5 = vpop.f32.mrb[125].mxu1 }
 0x78f   : > { %v6142_v54 = vadd.f32 %v13823_v27, %v6141_v5  ;;  %v9198_v61 = vpop.f32.mrb[126].mxu1 }
 0x790   : > { %v6153_v47 = vadd.f32 %v9198_v61, %v13823_v27  ;;  %v6144_v53 = vpop.f32.mrb[127].mxu1  ;;  %v6218_v21 = vmax.f32 %v6150_v11, 0.0 }
 0x791   : > { %v6145_v24 = vadd.f32 %v13823_v27, %v6144_v53  ;;  %v6216_v45 = vmax.f32 %v6142_v54, 0.0 }
 0x792   : > { %v6219_v1 = vmax.f32 %v6153_v47, 0.0 }
 0x793   : > { %v6217_v39 = vmax.f32 %v6145_v24, 0.0  ;;  %v10797_v24 = vld [vmem:[#allocation14] sm:$0xff]  }
 0x794   : > { %v6251_v28 = vpack.c.bf16 %v6219_v1, %v6218_v21  ;;  %9439 = vmatprep.subr.bf16.mxu0 %v10797_v24 }
 0x795   : > { %v6250_v43 = vpack.c.bf16 %v6217_v39, %v6216_v45  ;;  %v9217_v55 = vpop.f32.mrb[128].mxu1  ;;  %9440 = vmatpush3.bf16.msra.mxu0 %v10797_v24 }
 0x796   : > { %v6366_v49 = vadd.f32 %v9217_v55, %v13899_v30  ;;  %v6357_v12 = vpop.f32.mrb[129].mxu1 }
 0x797   : > { %v6358_v48 = vadd.f32 %v13899_v30, %v6357_v12  ;;  %v9218_v7 = vpop.f32.mrb[130].mxu1  ;;  %9275 = vmatprep.mubr.bf16.mxu1 %v6250_v43 }
 0x798   : > { %v6369_v27 = vadd.f32 %v9218_v7, %v13899_v30  ;;  %v6360_v57 = vpop.f32.mrb[131].mxu1  ;;  %9276 = vmatmul.mubr.bf16.gmra.mrb[188].mxu1 %v6251_v28  ;;  %v6614_v42 = vmax.f32 %v6366_v49, 0.0 }
 0x799   : > { %v6361_v2 = vadd.f32 %v13899_v30, %v6360_v57  ;;  %v6612_v51 = vmax.f32 %v6358_v48, 0.0 }
 0x79a   : > { %v6615_v52 = vmax.f32 %v6369_v27, 0.0 }
 0x79b   : > { %v6613_v0 = vmax.f32 %v6361_v2, 0.0 }
 0x79c   : > { %v6677_v19 = vpack.c.bf16 %v6615_v52, %v6614_v42 }
 0x79d   : > { %v6676_v34 = vpack.c.bf16 %v6613_v0, %v6612_v51  ;;  %v9221_v29 = vpop.f32.mrb[132].mxu1 }
 0x79e   : > { %v6382_v26 = vadd.f32 %v9221_v29, %v13899_v30  ;;  %v6373_v22 = vpop.f32.mrb[133].mxu1 }
 0x79f   : > { %v6374_v50 = vadd.f32 %v13899_v30, %v6373_v22  ;;  %v9222_v9 = vpop.f32.mrb[134].mxu1  ;;  %9295 = vmatprep.mubr.bf16.mxu1 %v6676_v34 }
 0x7a0   : > { %v6385_v18 = vadd.f32 %v9222_v9, %v13899_v30  ;;  %v6376_v56 = vpop.f32.mrb[135].mxu1  ;;  %9296 = vmatmul.mubr.bf16.vlgmr.msra.gmra.mrb[192].mxu1 %v6677_v19  ;;  %v6618_v38 = vmax.f32 %v6382_v26, 0.0 }
 0x7a1   : > { %v6377_v15 = vadd.f32 %v13899_v30, %v6376_v56  ;;  %v6616_v20 = vmax.f32 %v6374_v50, 0.0 }
 0x7a2   : > { %v6619_v40 = vmax.f32 %v6385_v18, 0.0 }
 0x7a3   : > { %v6617_v35 = vmax.f32 %v6377_v15, 0.0 }
 0x7a4   : > { %v6679_v37 = vpack.c.bf16 %v6619_v40, %v6618_v38  ;;  %v10798_v38 = vld [vmem:[#allocation14 + $0x8] sm:$0xff]  }
 0x7a5   : > { %v6678_v25 = vpack.c.bf16 %v6617_v35, %v6616_v20  ;;  %v9225_v14 = vpop.f32.mrb[136].mxu1  ;;  %9441 = vmatprep.subr.bf16.mxu0 %v10798_v38 }
 0x7a6   : > { %v6398_v32 = vadd.f32 %v9225_v14, %v13899_v30  ;;  %v6389_v13 = vpop.f32.mrb[137].mxu1  ;;  %9442 = vmatpush3.bf16.msra.mxu0 %v10798_v38 }
 0x7a7   : > { %v6390_v62 = vadd.f32 %v13899_v30, %v6389_v13  ;;  %v9226_v33 = vpop.f32.mrb[138].mxu1  ;;  %9299 = vmatprep.mubr.bf16.mxu1 %v6678_v25 }
 0x7a8   : > { %v6401_v31 = vadd.f32 %v9226_v33, %v13899_v30  ;;  %v6392_v60 = vpop.f32.mrb[139].mxu1  ;;  %9300 = vmatmul.mubr.bf16.gmra.mrb[196].mxu1 %v6679_v37  ;;  %v6622_v10 = vmax.f32 %v6398_v32, 0.0  ;;  %v10799_v37 = vld [vmem:[#allocation11] sm:$0xff]  }
 0x7a9   : > { %v6393_v17 = vadd.f32 %v13899_v30, %v6392_v60  ;;  %v6620_v36 = vmax.f32 %v6390_v62, 0.0  ;;  %9359 = vmatprep.subr.bf16.mxu1 %v10799_v37  ;;  %v10800_v60 = vld [vmem:[#allocation11 + $0x8] sm:$0xff]  }
 0x7aa   : > { %v6623_v8 = vmax.f32 %v6401_v31, 0.0  ;;  %9360 = vmatpush3.bf16.msra.mxu1 %v10799_v37 }
 0x7ab   : > { %v6621_v23 = vmax.f32 %v6393_v17, 0.0  ;;  %9361 = vmatprep.subr.bf16.mxu1 %v10800_v60 }
 0x7ac   : > { %v6681_v46 = vpack.c.bf16 %v6623_v8, %v6622_v10 }
 0x7ad   : > { %v6680_v44 = vpack.c.bf16 %v6621_v23, %v6620_v36  ;;  %v9229_v3 = vpop.f32.mrb[140].mxu1  ;;  %v10801_v23 = vld [vmem:[#allocation11 + $0x10] sm:$0xff]  }
 0x7ae   : > { %v6414_v16 = vadd.f32 %v9229_v3, %v13899_v30  ;;  %v6405_v6 = vpop.f32.mrb[141].mxu1  ;;  %9362 = vmatpush3.bf16.msra.mxu1 %v10800_v60 }
 0x7af   : > { %v6406_v58 = vadd.f32 %v13899_v30, %v6405_v6  ;;  %v9230_v59 = vpop.f32.mrb[142].mxu1  ;;  %9303 = vmatprep.mubr.bf16.mxu1 %v6680_v44  ;;  %9363 = vmatprep.subr.bf16.mxu1 %v10801_v23  ;;  %v10803_v6 = vld [vmem:[#allocation11 + $0x20] sm:$0xff]  }
 0x7b0   : > { %v6417_v63 = vadd.f32 %v9230_v59, %v13899_v30  ;;  %v6408_v4 = vpop.f32.mrb[143].mxu1  ;;  %9304 = vmatmul.mubr.bf16.gmra.mrb[200].mxu1 %v6681_v46  ;;  %v6626_v11 = vmax.f32 %v6414_v16, 0.0  ;;  %v10802_v46 = vld [vmem:[#allocation11 + $0x18] sm:$0xff]  }
 0x7b1   : > { %v6409_v41 = vadd.f32 %v13899_v30, %v6408_v4  ;;  %v6624_v54 = vmax.f32 %v6406_v58, 0.0 }
 0x7b2   : > { %v6627_v5 = vmax.f32 %v6417_v63, 0.0  ;;  %9364 = vmatpush3.bf16.msra.mxu1 %v10801_v23 }
 0x7b3   : > { %v6625_v61 = vmax.f32 %v6409_v41, 0.0  ;;  %9365 = vmatprep.subr.bf16.mxu1 %v10802_v46 }
 0x7b4   : > { %v6683_v47 = vpack.c.bf16 %v6627_v5, %v6626_v11 }
 0x7b5   : > { %v6682_v53 = vpack.c.bf16 %v6625_v61, %v6624_v54  ;;  %v10804_v54 = vld [vmem:[#allocation11 + $0x28] sm:$0xff]  }
 0x7b6   : > { %9366 = vmatpush3.bf16.msra.mxu1 %v10802_v46 }
 0x7b7   : > { %9307 = vmatprep.mubr.bf16.mxu1 %v6682_v53  ;;  %9367 = vmatprep.subr.bf16.mxu1 %v10803_v6 }
 0x7b8   : > { %9308 = vmatmul.mubr.bf16.gmra.mrb[204].mxu1 %v6683_v47 }
 0x7ba   : > { %9368 = vmatpush3.bf16.msra.mxu1 %v10803_v6 }
 0x7bb   : > { %v9233_v21 = vpop.f32.mrb[144].mxu1  ;;  %9369 = vmatprep.subr.bf16.mxu1 %v10804_v54 }
 0x7bc   : > { %v6430_v1 = vadd.f32 %v9233_v21, %v13899_v30  ;;  %v6421_v45 = vpop.f32.mrb[145].mxu1  ;;  %v10805_v21 = vld [vmem:[#allocation11 + $0x30] sm:$0xff]  }
 0x7bd   : > { %v6422_v39 = vadd.f32 %v13899_v30, %v6421_v45  ;;  %v9234_v28 = vpop.f32.mrb[146].mxu1 }
 0x7be   : > { %v6433_v43 = vadd.f32 %v9234_v28, %v13899_v30  ;;  %v6424_v55 = vpop.f32.mrb[147].mxu1  ;;  %v6630_v12 = vmax.f32 %v6430_v1, 0.0  ;;  %9370 = vmatpush3.bf16.msra.mxu1 %v10804_v54  ;;  %v10807_v1 = vld [vmem:[#allocation11 + $0x38] sm:$0xff]  }
 0x7bf   : > { %v6425_v49 = vadd.f32 %v13899_v30, %v6424_v55  ;;  %v6628_v7 = vmax.f32 %v6422_v39, 0.0  ;;  %9371 = vmatprep.subr.bf16.mxu1 %v10805_v21  ;;  %v10806_v39 = vld [vmem:[#allocation14 + $0x10] sm:$0xff]  }
 0x7c0   : > { %v6631_v48 = vmax.f32 %v6433_v43, 0.0  ;;  %9443 = vmatprep.subr.bf16.mxu0 %v10806_v39 }
 0x7c1   : > { %v6629_v27 = vmax.f32 %v6425_v49, 0.0  ;;  %9444 = vmatpush3.bf16.msra.mxu0 %v10806_v39 }
 0x7c2   : > { %v6685_v57 = vpack.c.bf16 %v6631_v48, %v6630_v12  ;;  %9372 = vmatpush3.bf16.msra.mxu1 %v10805_v21  ;;  %v10809_v21 = vld [vmem:[#allocation14 + $0x20] sm:$0xff]  }
 0x7c3   : > { %v6684_v2 = vpack.c.bf16 %v6629_v27, %v6628_v7  ;;  %9373 = vmatprep.subr.bf16.mxu1 %v10807_v1 }
 0x7c5   : > { %9311 = vmatprep.mubr.bf16.mxu1 %v6684_v2 }
 0x7c6   : > { %9312 = vmatmul.mubr.bf16.gmra.mrb[208].mxu1 %v6685_v57 }
 0x7c7   : > { %9374 = vmatpush3.bf16.msra.mxu1 %v10807_v1 }
 0x7cb   : > { %v9237_v42 = vpop.f32.mrb[148].mxu1 }
 0x7cc   : > { %v6446_v52 = vadd.f32 %v9237_v42, %v13899_v30  ;;  %v6437_v51 = vpop.f32.mrb[149].mxu1 }
 0x7cd   : > { %v6438_v0 = vadd.f32 %v13899_v30, %v6437_v51  ;;  %v9238_v19 = vpop.f32.mrb[150].mxu1 }
 0x7ce   : > { %v6449_v34 = vadd.f32 %v9238_v19, %v13899_v30  ;;  %v6440_v29 = vpop.f32.mrb[151].mxu1  ;;  %v6634_v22 = vmax.f32 %v6446_v52, 0.0 }
 0x7cf   : > { %v6441_v26 = vadd.f32 %v13899_v30, %v6440_v29  ;;  %v6632_v9 = vmax.f32 %v6438_v0, 0.0 }
 0x7d0   : > { %v6635_v50 = vmax.f32 %v6449_v34, 0.0 }
 0x7d1   : > { %v6633_v18 = vmax.f32 %v6441_v26, 0.0 }
 0x7d2   : > { %v6687_v56 = vpack.c.bf16 %v6635_v50, %v6634_v22 }
 0x7d3   : > { %v6686_v15 = vpack.c.bf16 %v6633_v18, %v6632_v9 }
 0x7d5   : > { %9315 = vmatprep.mubr.bf16.mxu1 %v6686_v15 }
 0x7d6   : > { %9316 = vmatmul.mubr.bf16.gmra.mrb[212].mxu1 %v6687_v56 }
 0x7db   : > { %v9241_v40 = vpop.f32.mrb[152].mxu1 }
 0x7dc   : > { %v6462_v20 = vadd.f32 %v9241_v40, %v13899_v30  ;;  %v6453_v35 = vpop.f32.mrb[153].mxu1 }
 0x7dd   : > { %v6454_v25 = vadd.f32 %v13899_v30, %v6453_v35  ;;  %v9242_v14 = vpop.f32.mrb[154].mxu1 }
 0x7de   : > { %v6465_v32 = vadd.f32 %v9242_v14, %v13899_v30  ;;  %v6456_v13 = vpop.f32.mrb[155].mxu1  ;;  %v6638_v33 = vmax.f32 %v6462_v20, 0.0  ;;  %v10808_v14 = vld [vmem:[#allocation14 + $0x18] sm:$0xff]  }
 0x7df   : > { %v6457_v62 = vadd.f32 %v13899_v30, %v6456_v13  ;;  %v6636_v17 = vmax.f32 %v6454_v25, 0.0  ;;  %9445 = vmatprep.subr.bf16.mxu0 %v10808_v14 }
 0x7e0   : > { %v6639_v31 = vmax.f32 %v6465_v32, 0.0  ;;  %9446 = vmatpush3.bf16.msra.mxu0 %v10808_v14 }
 0x7e1   : > { %v6637_v10 = vmax.f32 %v6457_v62, 0.0  ;;  %9447 = vmatprep.subr.bf16.mxu0 %v10809_v21 }
 0x7e2   : > { %v6689_v8 = vpack.c.bf16 %v6639_v31, %v6638_v33 }
 0x7e3   : > { %v6688_v36 = vpack.c.bf16 %v6637_v10, %v6636_v17 }
 0x7e4   : > { %9448 = vmatpush3.bf16.msra.mxu0 %v10809_v21 }
 0x7e5   : > { %9319 = vmatprep.mubr.bf16.mxu1 %v6688_v36 }
 0x7e6   : > { %9320 = vmatmul.mubr.bf16.gmra.mrb[216].mxu1 %v6689_v8 }
 0x7eb   : > { %v9245_v44 = vpop.f32.mrb[156].mxu1 }
 0x7ec   : > { %v6478_v3 = vadd.f32 %v9245_v44, %v13899_v30  ;;  %v6469_v16 = vpop.f32.mrb[157].mxu1 }
 0x7ed   : > { %v6470_v58 = vadd.f32 %v13899_v30, %v6469_v16  ;;  %v9246_v59 = vpop.f32.mrb[158].mxu1 }
 0x7ee   : > { %v6481_v63 = vadd.f32 %v9246_v59, %v13899_v30  ;;  %v6472_v4 = vpop.f32.mrb[159].mxu1  ;;  %v6642_v11 = vmax.f32 %v6478_v3, 0.0 }
 0x7ef   : > { %v6473_v41 = vadd.f32 %v13899_v30, %v6472_v4  ;;  %v6640_v61 = vmax.f32 %v6470_v58, 0.0 }
 0x7f0   : > { %v6643_v5 = vmax.f32 %v6481_v63, 0.0 }
 0x7f1   : > { %v6641_v47 = vmax.f32 %v6473_v41, 0.0 }
 0x7f2   : > { %v6691_v53 = vpack.c.bf16 %v6643_v5, %v6642_v11 }
 0x7f3   : > { %v6690_v24 = vpack.c.bf16 %v6641_v47, %v6640_v61 }
 0x7f5   : > { %9323 = vmatprep.mubr.bf16.mxu1 %v6690_v24 }
 0x7f6   : > { %9324 = vmatmul.mubr.bf16.gmra.mrb[220].mxu1 %v6691_v53 }
 0x7fb   : > { %v9249_v45 = vpop.f32.mrb[160].mxu1 }
 0x7fc   : > { %v6494_v28 = vadd.f32 %v9249_v45, %v13899_v30  ;;  %v6485_v43 = vpop.f32.mrb[161].mxu1 }
 0x7fd   : > { %v6486_v55 = vadd.f32 %v13899_v30, %v6485_v43  ;;  %v9250_v49 = vpop.f32.mrb[162].mxu1 }
 0x7fe   : > { %v6497_v12 = vadd.f32 %v9250_v49, %v13899_v30  ;;  %v6488_v48 = vpop.f32.mrb[163].mxu1  ;;  %v6646_v27 = vmax.f32 %v6494_v28, 0.0 }
 0x7ff   : > { %v6489_v7 = vadd.f32 %v13899_v30, %v6488_v48  ;;  %v6644_v2 = vmax.f32 %v6486_v55, 0.0 }
 0x800   : > { %v6647_v57 = vmax.f32 %v6497_v12, 0.0 }
 0x801   : > { %v6645_v42 = vmax.f32 %v6489_v7, 0.0 }
 0x802   : > { %v6693_v52 = vpack.c.bf16 %v6647_v57, %v6646_v27 }
 0x803   : > { %v6692_v51 = vpack.c.bf16 %v6645_v42, %v6644_v2 }
 0x805   : > { %9327 = vmatprep.mubr.bf16.mxu1 %v6692_v51 }
 0x806   : > { %9328 = vmatmul.mubr.bf16.gmra.mrb[224].mxu1 %v6693_v52 }
 0x80b   : > { %v9253_v0 = vpop.f32.mrb[164].mxu1 }
 0x80c   : > { %v6510_v19 = vadd.f32 %v9253_v0, %v13899_v30  ;;  %v6501_v34 = vpop.f32.mrb[165].mxu1 }
 0x80d   : > { %v6502_v29 = vadd.f32 %v13899_v30, %v6501_v34  ;;  %v9254_v26 = vpop.f32.mrb[166].mxu1  ;;  %v10810_v34 = vld [vmem:[#allocation14 + $0x28] sm:$0xff]  }
 0x80e   : > { %v6513_v22 = vadd.f32 %v9254_v26, %v13899_v30  ;;  %v6504_v50 = vpop.f32.mrb[167].mxu1  ;;  %v6650_v18 = vmax.f32 %v6510_v19, 0.0  ;;  %9449 = vmatprep.subr.bf16.mxu0 %v10810_v34 }
 0x80f   : > { %v6505_v9 = vadd.f32 %v13899_v30, %v6504_v50  ;;  %v6648_v15 = vmax.f32 %v6502_v29, 0.0  ;;  %9450 = vmatpush3.bf16.msra.mxu0 %v10810_v34  ;;  %v14660_v34 = vld [vmem:[#allocation47_spill] sm:$0xff] }
 0x810   : > { %v6651_v56 = vmax.f32 %v6513_v22, 0.0 }
 0x811   : > { %v6649_v38 = vmax.f32 %v6505_v9, 0.0 }
 0x812   : > { %v6695_v40 = vpack.c.bf16 %v6651_v56, %v6650_v18  ;;  %v10811_v56 = vld [vmem:[#allocation14 + $0x30] sm:$0xff]  }
 0x813   : > { %v6694_v20 = vpack.c.bf16 %v6649_v38, %v6648_v15  ;;  %9451 = vmatprep.subr.bf16.mxu0 %v10811_v56  ;;  %v10812_v38 = vld [vmem:[#allocation14 + $0x38] sm:$0xff]  }
 0x814   : > { %9452 = vmatpush3.bf16.msra.mxu0 %v10811_v56 }
 0x815   : > { %9331 = vmatprep.mubr.bf16.mxu1 %v6694_v20  ;;  %9453 = vmatprep.subr.bf16.mxu0 %v10812_v38 }
 0x816   : > { %9332 = vmatmul.mubr.bf16.gmra.mrb[228].mxu1 %v6695_v40 }
 0x818   : > { %9454 = vmatpush3.bf16.msra.mxu0 %v10812_v38 }
 0x81b   : > { %v9257_v35 = vpop.f32.mrb[168].mxu1 }
 0x81c   : > { %v6526_v37 = vadd.f32 %v9257_v35, %v13899_v30  ;;  %v6517_v25 = vpop.f32.mrb[169].mxu1 }
 0x81d   : > { %v6518_v32 = vadd.f32 %v13899_v30, %v6517_v25  ;;  %v9258_v13 = vpop.f32.mrb[170].mxu1 }
 0x81e   : > { %v6529_v62 = vadd.f32 %v9258_v13, %v13899_v30  ;;  %v6520_v33 = vpop.f32.mrb[171].mxu1  ;;  %v6654_v60 = vmax.f32 %v6526_v37, 0.0  ;;  %v14652_v37 = vld [vmem:[#allocation31_spill] sm:$0xff] }
 0x81f   : > { %v6521_v31 = vadd.f32 %v13899_v30, %v6520_v33  ;;  %v6652_v10 = vmax.f32 %v6518_v32, 0.0  ;;  %9456 = vmatmul.mubr.bf16.vlgmr.msra.gmra.mrb[64].mxu0 %v14652_v37  ;;  %v14653_v32 = vld [vmem:[#allocation33_spill] sm:$0xff] }
 0x820   : > { %v6655_v17 = vmax.f32 %v6529_v62, 0.0  ;;  %9459 = vmatprep.mubr.bf16.mxu0 %v14653_v32  ;;  %v14662_v32 = vld [vmem:[#allocation51_spill] sm:$0xff] }
 0x821   : > { %v6653_v8 = vmax.f32 %v6521_v31, 0.0 }
 0x822   : > { %v6697_v36 = vpack.c.bf16 %v6655_v17, %v6654_v60 }
 0x823   : > { %v6696_v23 = vpack.c.bf16 %v6653_v8, %v6652_v10 }
 0x825   : > { %9335 = vmatprep.mubr.bf16.mxu1 %v6696_v23  ;;  %v14654_v23 = vld [vmem:[#allocation35_spill] sm:$0xff] }
 0x826   : > { %9336 = vmatmul.mubr.bf16.gmra.mrb[232].mxu1 %v6697_v36 }
 0x827   : > { %9460 = vmatmul.mubr.bf16.gmra.mrb[68].mxu0 %v14654_v23 }
 0x82b   : > { %v9261_v46 = vpop.f32.mrb[172].mxu1 }
 0x82c   : > { %v6542_v44 = vadd.f32 %v9261_v46, %v13899_v30  ;;  %v6533_v3 = vpop.f32.mrb[173].mxu1  ;;  %v14655_v46 = vld [vmem:[#allocation37_spill] sm:$0xff] }
 0x82d   : > { %v6534_v16 = vadd.f32 %v13899_v30, %v6533_v3  ;;  %v9262_v6 = vpop.f32.mrb[174].mxu1  ;;  %9463 = vmatprep.mubr.bf16.mxu0 %v14655_v46 }
 0x82e   : > { %v6545_v58 = vadd.f32 %v9262_v6, %v13899_v30  ;;  %v6536_v59 = vpop.f32.mrb[175].mxu1  ;;  %v6658_v4 = vmax.f32 %v6542_v44, 0.0  ;;  %v14656_v6 = vld [vmem:[#allocation39_spill] sm:$0xff] }
 0x82f   : > { %v6537_v63 = vadd.f32 %v13899_v30, %v6536_v59  ;;  %v6656_v11 = vmax.f32 %v6534_v16, 0.0  ;;  %9464 = vmatmul.mubr.bf16.gmra.mrb[72].mxu0 %v14656_v6 }
 0x830   : > { %v6659_v41 = vmax.f32 %v6545_v58, 0.0 }
 0x831   : > { %v6657_v5 = vmax.f32 %v6537_v63, 0.0  ;;  %v14657_v63 = vld [vmem:[#allocation41_spill] sm:$0xff] }
 0x832   : > { %v6699_v54 = vpack.c.bf16 %v6659_v41, %v6658_v4  ;;  %9467 = vmatprep.mubr.bf16.mxu0 %v14657_v63 }
 0x833   : > { %v6698_v61 = vpack.c.bf16 %v6657_v5, %v6656_v11 }
 0x835   : > { %9339 = vmatprep.mubr.bf16.mxu1 %v6698_v61 }
 0x836   : > { %9340 = vmatmul.mubr.bf16.gmra.mrb[236].mxu1 %v6699_v54 }
 0x83b   : > { %v9265_v47 = vpop.f32.mrb[176].mxu1 }
 0x83c   : > { %v6558_v53 = vadd.f32 %v9265_v47, %v13899_v30  ;;  %v6549_v24 = vpop.f32.mrb[177].mxu1 }
 0x83d   : > { %v6550_v1 = vadd.f32 %v13899_v30, %v6549_v24  ;;  %v9266_v45 = vpop.f32.mrb[178].mxu1 }
 0x83e   : > { %v6561_v39 = vadd.f32 %v9266_v45, %v13899_v30  ;;  %v6552_v28 = vpop.f32.mrb[179].mxu1  ;;  %v6662_v55 = vmax.f32 %v6558_v53, 0.0  ;;  %v13974_v53 = vld [vmem:[%s14336_s12] ss:$0 sm:$0xff] }
 0x83f   : > { %v6553_v43 = vadd.f32 %v13899_v30, %v6552_v28  ;;  %v6660_v12 = vmax.f32 %v6550_v1, 0.0  ;;  %v14658_v28 = vld [vmem:[#allocation43_spill] sm:$0xff] }
 0x840   : > { %v6663_v49 = vmax.f32 %v6561_v39, 0.0  ;;  %9468 = vmatmul.mubr.bf16.gmra.mrb[76].mxu0 %v14658_v28 }
 0x841   : > { %v6661_v48 = vmax.f32 %v6553_v43, 0.0 }
 0x842   : > { %v6701_v7 = vpack.c.bf16 %v6663_v49, %v6662_v55  ;;  %v14659_v55 = vld [vmem:[#allocation45_spill] sm:$0xff] }
 0x843   : > { %v6700_v27 = vpack.c.bf16 %v6661_v48, %v6660_v12  ;;  %9471 = vmatprep.mubr.bf16.mxu0 %v14659_v55 }
 0x845   : > { %9343 = vmatprep.mubr.bf16.mxu1 %v6700_v27 }
 0x846   : > { %9344 = vmatmul.mubr.bf16.gmra.mrb[240].mxu1 %v6701_v7 }
 0x848   : > { %9472 = vmatmul.mubr.bf16.gmra.mrb[80].mxu0 %v14660_v34  ;;  %v14670_v34 = vld [vmem:[#allocation36_spill] sm:$0xff] }
 0x84b   : > { %v9269_v57 = vpop.f32.mrb[180].mxu1 }
 0x84c   : > { %v6574_v2 = vadd.f32 %v9269_v57, %v13899_v30  ;;  %v6565_v42 = vpop.f32.mrb[181].mxu1 }
 0x84d   : > { %v6566_v52 = vadd.f32 %v13899_v30, %v6565_v42  ;;  %v9270_v51 = vpop.f32.mrb[182].mxu1 }
 0x84e   : > { %v6577_v0 = vadd.f32 %v9270_v51, %v13899_v30  ;;  %v6568_v19 = vpop.f32.mrb[183].mxu1  ;;  %v6666_v26 = vmax.f32 %v6574_v2, 0.0 }
 0x84f   : > { %v6569_v29 = vadd.f32 %v13899_v30, %v6568_v19  ;;  %v6664_v50 = vmax.f32 %v6566_v52, 0.0 }
 0x850   : > { %v6667_v22 = vmax.f32 %v6577_v0, 0.0 }
 0x851   : > { %v6665_v9 = vmax.f32 %v6569_v29, 0.0 }
 0x852   : > { %v6703_v18 = vpack.c.bf16 %v6667_v22, %v6666_v26  ;;  %v14661_v22 = vld [vmem:[#allocation49_spill] sm:$0xff] }
 0x853   : > { %v6702_v15 = vpack.c.bf16 %v6665_v9, %v6664_v50  ;;  %9475 = vmatprep.mubr.bf16.mxu0 %v14661_v22 }
 0x854   : > { %9476 = vmatmul.mubr.bf16.gmra.mrb[84].mxu0 %v14662_v32 }
 0x855   : > { %9347 = vmatprep.mubr.bf16.mxu1 %v6702_v15 }
 0x856   : > { %9348 = vmatmul.mubr.bf16.gmra.mrb[244].mxu1 %v6703_v18 }
 0x85b   : > { %v9273_v40 = vpop.f32.mrb[184].mxu1 }
 0x85c   : > { %v6590_v20 = vadd.f32 %v9273_v40, %v13899_v30  ;;  %v6581_v35 = vpop.f32.mrb[185].mxu1 }
 0x85d   : > { %v6582_v25 = vadd.f32 %v13899_v30, %v6581_v35  ;;  %v9274_v14 = vpop.f32.mrb[186].mxu1 }
 0x85e   : > { %v6593_v13 = vadd.f32 %v9274_v14, %v13899_v30  ;;  %v6584_v62 = vpop.f32.mrb[187].mxu1  ;;  %v6670_v31 = vmax.f32 %v6590_v20, 0.0 }
 0x85f   : > { %v6585_v33 = vadd.f32 %v13899_v30, %v6584_v62  ;;  %v6668_v17 = vmax.f32 %v6582_v25, 0.0 }
 0x860   : > { %v6671_v60 = vmax.f32 %v6593_v13, 0.0 }
 0x861   : > { %v6669_v10 = vmax.f32 %v6585_v33, 0.0  ;;  %v14663_v33 = vld [vmem:[#allocation53_spill] sm:$0xff] }
 0x862   : > { %v6705_v8 = vpack.c.bf16 %v6671_v60, %v6670_v31  ;;  %9479 = vmatprep.mubr.bf16.mxu0 %v14663_v33  ;;  %v14675_v33 = vld [vmem:[#allocation46_spill] sm:$0xff] }
 0x863   : > { %v6704_v36 = vpack.c.bf16 %v6669_v10, %v6668_v17 }
 0x865   : > { %9351 = vmatprep.mubr.bf16.mxu1 %v6704_v36 }
 0x866   : > { %9352 = vmatmul.mubr.bf16.gmra.mrb[248].mxu1 %v6705_v8 }
 0x86b   : > { %v9277_v44 = vpop.f32.mrb[188].mxu1 }
 0x86c   : > { %v6606_v3 = vadd.f32 %v9277_v44, %v13899_v30  ;;  %v6597_v16 = vpop.f32.mrb[189].mxu1 }
 0x86d   : > { %v6598_v58 = vadd.f32 %v13899_v30, %v6597_v16  ;;  %v9278_v59 = vpop.f32.mrb[190].mxu1 }
 0x86e   : > { %v6609_v4 = vadd.f32 %v9278_v59, %v13899_v30  ;;  %v6600_v41 = vpop.f32.mrb[191].mxu1  ;;  %v6674_v5 = vmax.f32 %v6606_v3, 0.0 }
 0x86f   : > { %v6601_v11 = vadd.f32 %v13899_v30, %v6600_v41  ;;  %v6672_v61 = vmax.f32 %v6598_v58, 0.0  ;;  %v14664_v58 = vld [vmem:[#allocation55_spill] sm:$0xff] }
 0x870   : > { %v6675_v54 = vmax.f32 %v6609_v4, 0.0  ;;  %9480 = vmatmul.mubr.bf16.gmra.mrb[88].mxu0 %v14664_v58  ;;  %v14665_v4 = vld [vmem:[#allocation57_spill] sm:$0xff] }
 0x871   : > { %v6673_v47 = vmax.f32 %v6601_v11, 0.0  ;;  %9483 = vmatprep.mubr.bf16.mxu0 %v14665_v4 }
 0x872   : > { %v6707_v24 = vpack.c.bf16 %v6675_v54, %v6674_v5 }
 0x873   : > { %v6706_v21 = vpack.c.bf16 %v6673_v47, %v6672_v61  ;;  %v9297_v1 = vpop.f32.mrb[192].mxu1 }
 0x874   : > { %v6822_v45 = vadd.f32 %v9297_v1, %v13974_v53  ;;  %v6813_v39 = vpop.f32.mrb[193].mxu1 }
 0x875   : > { %v6814_v43 = vadd.f32 %v13974_v53, %v6813_v39  ;;  %v9298_v30 = vpop.f32.mrb[194].mxu1  ;;  %9355 = vmatprep.mubr.bf16.mxu1 %v6706_v21  ;;  %v14667_v39 = vld [vmem:[#allocation30_spill] sm:$0xff] }
 0x876   : > { %v6825_v49 = vadd.f32 %v9298_v30, %v13974_v53  ;;  %v6816_v12 = vpop.f32.mrb[195].mxu1  ;;  %9356 = vmatmul.mubr.bf16.gmra.mrb[252].mxu1 %v6707_v24  ;;  %v7070_v7 = vmax.f32 %v6822_v45, 0.0  ;;  %v14666_v45 = vld [vmem:[#allocation59_spill] sm:$0xff] }
 0x877   : > { %v6817_v48 = vadd.f32 %v13974_v53, %v6816_v12  ;;  %v7068_v57 = vmax.f32 %v6814_v43, 0.0 }
 0x878   : > { %v7071_v27 = vmax.f32 %v6825_v49, 0.0  ;;  %9484 = vmatmul.mubr.bf16.gmra.mrb[92].mxu0 %v14666_v45  ;;  %v10817_v45 = vld [vmem:[#allocation12 + $0x20] sm:$0xff]  }
 0x879   : > { %v7069_v2 = vmax.f32 %v6817_v48, 0.0  ;;  %9487 = vmatprep.mubr.bf16.mxu0 %v14667_v39 }
 0x87a   : > { %v7133_v42 = vpack.c.bf16 %v7071_v27, %v7070_v7  ;;  %v14668_v7 = vld [vmem:[#allocation32_spill] sm:$0xff] }
 0x87b   : > { %v7132_v52 = vpack.c.bf16 %v7069_v2, %v7068_v57  ;;  %v9301_v51 = vpop.f32.mrb[196].mxu1  ;;  %v14669_v57 = vld [vmem:[#allocation34_spill] sm:$0xff] }
 0x87c   : > { %v6838_v0 = vadd.f32 %v9301_v51, %v13974_v53  ;;  %v6829_v19 = vpop.f32.mrb[197].mxu1 }
 0x87d   : > { %v6830_v29 = vadd.f32 %v13974_v53, %v6829_v19  ;;  %v9302_v26 = vpop.f32.mrb[198].mxu1  ;;  %9375 = vmatprep.mubr.bf16.mxu1 %v7132_v52 }
 0x87e   : > { %v6841_v50 = vadd.f32 %v9302_v26, %v13974_v53  ;;  %v6832_v9 = vpop.f32.mrb[199].mxu1  ;;  %9376 = vmatmul.mubr.bf16.vlgmr.msra.gmra.mrb[0].mxu1 %v7133_v42  ;;  %v7074_v56 = vmax.f32 %v6838_v0, 0.0 }
 0x87f   : > { %v6833_v18 = vadd.f32 %v13974_v53, %v6832_v9  ;;  %v7072_v38 = vmax.f32 %v6830_v29, 0.0  ;;  %v14671_v29 = vld [vmem:[#allocation38_spill] sm:$0xff] }
 0x880   : > { %v7075_v15 = vmax.f32 %v6841_v50, 0.0  ;;  %9488 = vmatmul.mubr.bf16.gmra.mrb[96].mxu0 %v14668_v7 }
 0x881   : > { %v7073_v40 = vmax.f32 %v6833_v18, 0.0  ;;  %9491 = vmatprep.mubr.bf16.mxu0 %v14669_v57 }
 0x882   : > { %v7135_v20 = vpack.c.bf16 %v7075_v15, %v7074_v56 }
 0x883   : > { %v7134_v35 = vpack.c.bf16 %v7073_v40, %v7072_v38  ;;  %v9305_v37 = vpop.f32.mrb[200].mxu1  ;;  %v14672_v38 = vld [vmem:[#allocation40_spill] sm:$0xff] }
 0x884   : > { %v6854_v25 = vadd.f32 %v9305_v37, %v13974_v53  ;;  %v6845_v14 = vpop.f32.mrb[201].mxu1 }
 0x885   : > { %v6846_v13 = vadd.f32 %v13974_v53, %v6845_v14  ;;  %v9306_v62 = vpop.f32.mrb[202].mxu1  ;;  %9379 = vmatprep.mubr.bf16.mxu1 %v7134_v35 }
 0x886   : > { %v6857_v31 = vadd.f32 %v9306_v62, %v13974_v53  ;;  %v6848_v60 = vpop.f32.mrb[203].mxu1  ;;  %9380 = vmatmul.mubr.bf16.gmra.mrb[4].mxu1 %v7135_v20  ;;  %v7078_v10 = vmax.f32 %v6854_v25, 0.0  ;;  %v14673_v20 = vld [vmem:[#allocation42_spill] sm:$0xff]  ;;  %v14674_v62 = vld [vmem:[#allocation44_spill] sm:$0xff] }
 0x887   : > { %v6849_v17 = vadd.f32 %v13974_v53, %v6848_v60  ;;  %v7076_v36 = vmax.f32 %v6846_v13, 0.0 }
 0x888   : > { %v7079_v8 = vmax.f32 %v6857_v31, 0.0  ;;  %9492 = vmatmul.mubr.bf16.gmra.mrb[100].mxu0 %v14670_v34 }
 0x889   : > { %v7077_v23 = vmax.f32 %v6849_v17, 0.0  ;;  %9495 = vmatprep.mubr.bf16.mxu0 %v14671_v29 }
 0x88a   : > { %v7137_v46 = vpack.c.bf16 %v7079_v8, %v7078_v10  ;;  %v10813_v10 = vld [vmem:[#allocation12] sm:$0xff]  }
 0x88b   : > { %v7136_v44 = vpack.c.bf16 %v7077_v23, %v7076_v36  ;;  %v9309_v3 = vpop.f32.mrb[204].mxu1  ;;  %9519 = vmatprep.subr.bf16.mxu0 %v10813_v10 }
 0x88c   : > { %v6870_v16 = vadd.f32 %v9309_v3, %v13974_v53  ;;  %v6861_v6 = vpop.f32.mrb[205].mxu1  ;;  %9520 = vmatpush3.bf16.msra.mxu0 %v10813_v10 }
 0x88d   : > { %v6862_v59 = vadd.f32 %v13974_v53, %v6861_v6  ;;  %v9310_v63 = vpop.f32.mrb[206].mxu1  ;;  %9383 = vmatprep.mubr.bf16.mxu1 %v7136_v44  ;;  %v14676_v44 = vld [vmem:[#allocation48_spill] sm:$0xff] }
 0x88e   : > { %v6873_v41 = vadd.f32 %v9310_v63, %v13974_v53  ;;  %v6864_v11 = vpop.f32.mrb[207].mxu1  ;;  %9384 = vmatmul.mubr.bf16.gmra.mrb[8].mxu1 %v7137_v46  ;;  %v7082_v54 = vmax.f32 %v6870_v16, 0.0  ;;  %v14677_v16 = vld [vmem:[#allocation50_spill] sm:$0xff] }
 0x88f   : > { %v6865_v5 = vadd.f32 %v13974_v53, %v6864_v11  ;;  %v7080_v47 = vmax.f32 %v6862_v59, 0.0  ;;  %v10814_v59 = vld [vmem:[#allocation12 + $0x8] sm:$0xff]  }
 0x890   : > { %v7083_v61 = vmax.f32 %v6873_v41, 0.0  ;;  %9496 = vmatmul.mubr.bf16.gmra.mrb[104].mxu0 %v14672_v38  ;;  %9521 = vmatprep.subr.bf16.mxu0 %v10814_v59 }
 0x891   : > { %v7081_v24 = vmax.f32 %v6865_v5, 0.0  ;;  %9499 = vmatprep.mubr.bf16.mxu0 %v14673_v20  ;;  %9522 = vmatpush3.bf16.msra.mxu0 %v10814_v59  ;;  %v10815_v5 = vld [vmem:[#allocation12 + $0x10] sm:$0xff]  }
 0x892   : > { %v7139_v21 = vpack.c.bf16 %v7083_v61, %v7082_v54  ;;  %v14678_v54 = vld [vmem:[#allocation52_spill] sm:$0xff]  ;;  %9523 = vmatprep.subr.bf16.mxu0 %v10815_v5 }
 0x893   : > { %v7138_v1 = vpack.c.bf16 %v7081_v24, %v7080_v47  ;;  %v10816_v61 = vld [vmem:[#allocation12 + $0x18] sm:$0xff]   ;;  %v14679_v47 = vld [vmem:[#allocation54_spill] sm:$0xff] }
 0x895   : > { %9387 = vmatprep.mubr.bf16.mxu1 %v7138_v1  ;;  %9524 = vmatpush3.bf16.msra.mxu0 %v10815_v5 }
 0x896   : > { %9388 = vmatmul.mubr.bf16.gmra.mrb[12].mxu1 %v7139_v21  ;;  %9525 = vmatprep.subr.bf16.mxu0 %v10816_v61 }
 0x898   : > { %9500 = vmatmul.mubr.bf16.gmra.mrb[108].mxu0 %v14674_v62 }
 0x899   : > { %v9313_v28 = vpop.f32.mrb[208].mxu1  ;;  %9503 = vmatprep.mubr.bf16.mxu0 %v14675_v33  ;;  %9526 = vmatpush3.bf16.msra.mxu0 %v10816_v61 }
 0x89a   : > { %v6886_v43 = vadd.f32 %v9313_v28, %v13974_v53  ;;  %v6877_v30 = vpop.f32.mrb[209].mxu1  ;;  %9527 = vmatprep.subr.bf16.mxu0 %v10817_v45 }
 0x89b   : > { %v6878_v55 = vadd.f32 %v13974_v53, %v6877_v30  ;;  %v9314_v49 = vpop.f32.mrb[210].mxu1 }
 0x89c   : > { %v6889_v12 = vadd.f32 %v9314_v49, %v13974_v53  ;;  %v6880_v48 = vpop.f32.mrb[211].mxu1  ;;  %v7086_v2 = vmax.f32 %v6886_v43, 0.0 }
 0x89d   : > { %v6881_v27 = vadd.f32 %v13974_v53, %v6880_v48  ;;  %v7084_v52 = vmax.f32 %v6878_v55, 0.0  ;;  %v14680_v55 = vld [vmem:[#allocation56_spill] sm:$0xff]  ;;  %9528 = vmatpush3.bf16.msra.mxu0 %v10817_v45 }
 0x89e   : > { %v7087_v42 = vmax.f32 %v6889_v12, 0.0  ;;  %v14681_v12 = vld [vmem:[#allocation58_spill] sm:$0xff] }
 0x89f   : > { %v7085_v51 = vmax.f32 %v6881_v27, 0.0  ;;  %v10818_v27 = vld [vmem:[#allocation12 + $0x28] sm:$0xff]  }
 0x8a0   : > { %v7141_v0 = vpack.c.bf16 %v7087_v42, %v7086_v2  ;;  %9504 = vmatmul.mubr.bf16.gmra.mrb[112].mxu0 %v14676_v44  ;;  %9529 = vmatprep.subr.bf16.mxu0 %v10818_v27 }
 0x8a1   : > { %v7140_v19 = vpack.c.bf16 %v7085_v51, %v7084_v52  ;;  %9507 = vmatprep.mubr.bf16.mxu0 %v14677_v16  ;;  %9530 = vmatpush3.bf16.msra.mxu0 %v10818_v27  ;;  %v10819_v51 = vld [vmem:[#allocation12 + $0x30] sm:$0xff]  }
 0x8a2   : > { %9531 = vmatprep.subr.bf16.mxu0 %v10819_v51 }
 0x8a3   : > { %9391 = vmatprep.mubr.bf16.mxu1 %v7140_v19  ;;  %v10820_v19 = vld [vmem:[#allocation12 + $0x38] sm:$0xff]  }
 0x8a4   : > { %9392 = vmatmul.mubr.bf16.gmra.mrb[16].mxu1 %v7141_v0  ;;  %v14682_v0 = vld [vmem:[#allocation60_spill] sm:$0xff] }
 0x8a5   : > { %9532 = vmatpush3.bf16.msra.mxu0 %v10819_v51 }
 0x8a6   : > { %9533 = vmatprep.subr.bf16.mxu0 %v10820_v19 }
 0x8a8   : > { %9508 = vmatmul.mubr.bf16.gmra.mrb[116].mxu0 %v14678_v54 }
 0x8a9   : > { %v9317_v26 = vpop.f32.mrb[212].mxu1  ;;  %9511 = vmatprep.mubr.bf16.mxu0 %v14679_v47  ;;  %9534 = vmatpush3.bf16.msra.mxu0 %v10820_v19 }
 0x8aa   : > { %v6902_v22 = vadd.f32 %v9317_v26, %v13974_v53  ;;  %v6893_v50 = vpop.f32.mrb[213].mxu1 }
 0x8ab   : > { %v6894_v9 = vadd.f32 %v13974_v53, %v6893_v50  ;;  %v9318_v18 = vpop.f32.mrb[214].mxu1 }
 0x8ac   : > { %v6905_v56 = vadd.f32 %v9318_v18, %v13974_v53  ;;  %v6896_v15 = vpop.f32.mrb[215].mxu1  ;;  %v7090_v35 = vmax.f32 %v6902_v22, 0.0 }
 0x8ad   : > { %v6897_v40 = vadd.f32 %v13974_v53, %v6896_v15  ;;  %v7088_v25 = vmax.f32 %v6894_v9, 0.0 }
 0x8ae   : > { %v7091_v37 = vmax.f32 %v6905_v56, 0.0 }
 0x8af   : > { %v7089_v14 = vmax.f32 %v6897_v40, 0.0 }
 0x8b0   : > { %v7143_v32 = vpack.c.bf16 %v7091_v37, %v7090_v35  ;;  %9512 = vmatmul.mubr.bf16.gmra.mrb[120].mxu0 %v14680_v55 }
 0x8b1   : > { %v7142_v13 = vpack.c.bf16 %v7089_v14, %v7088_v25  ;;  %9515 = vmatprep.mubr.bf16.mxu0 %v14681_v12 }
 0x8b3   : > { %9395 = vmatprep.mubr.bf16.mxu1 %v7142_v13 }
 0x8b4   : > { %9396 = vmatmul.mubr.bf16.gmra.mrb[20].mxu1 %v7143_v32 }
 0x8b8   : > { %9516 = vmatmul.mubr.bf16.gmra.mrb[124].mxu0 %v14682_v0 }
 0x8b9   : > { %v9321_v31 = vpop.f32.mrb[216].mxu1 }
 0x8ba   : > { %v6918_v60 = vadd.f32 %v9321_v31, %v13974_v53  ;;  %v6909_v17 = vpop.f32.mrb[217].mxu1 }
 0x8bb   : > { %v6910_v8 = vadd.f32 %v13974_v53, %v6909_v17  ;;  %v9322_v36 = vpop.f32.mrb[218].mxu1 }
 0x8bc   : > { %v6921_v23 = vadd.f32 %v9322_v36, %v13974_v53  ;;  %v6912_v46 = vpop.f32.mrb[219].mxu1  ;;  %v7094_v6 = vmax.f32 %v6918_v60, 0.0 }
 0x8bd   : > { %v6913_v3 = vadd.f32 %v13974_v53, %v6912_v46  ;;  %v7092_v63 = vmax.f32 %v6910_v8, 0.0 }
 0x8be   : > { %v7095_v58 = vmax.f32 %v6921_v23, 0.0 }
 0x8bf   : > { %v7093_v4 = vmax.f32 %v6913_v3, 0.0 }
 0x8c0   : > { %v7145_v41 = vpack.c.bf16 %v7095_v58, %v7094_v6 }
 0x8c1   : > { %v7144_v11 = vpack.c.bf16 %v7093_v4, %v7092_v63 }
 0x8c3   : > { %9399 = vmatprep.mubr.bf16.mxu1 %v7144_v11 }
 0x8c4   : > { %9400 = vmatmul.mubr.bf16.gmra.mrb[24].mxu1 %v7145_v41 }
 0x8c9   : > { %v9325_v24 = vpop.f32.mrb[220].mxu1 }
 0x8ca   : > { %v6934_v21 = vadd.f32 %v9325_v24, %v13974_v53  ;;  %v6925_v1 = vpop.f32.mrb[221].mxu1 }
 0x8cb   : > { %v6926_v39 = vadd.f32 %v13974_v53, %v6925_v1  ;;  %v9326_v28 = vpop.f32.mrb[222].mxu1 }
 0x8cc   : > { %v6937_v43 = vadd.f32 %v9326_v28, %v13974_v53  ;;  %v6928_v30 = vpop.f32.mrb[223].mxu1  ;;  %v7098_v48 = vmax.f32 %v6934_v21, 0.0 }
 0x8cd   : > { %v6929_v49 = vadd.f32 %v13974_v53, %v6928_v30  ;;  %v7096_v57 = vmax.f32 %v6926_v39, 0.0 }
 0x8ce   : > { %v7099_v7 = vmax.f32 %v6937_v43, 0.0 }
 0x8cf   : > { %v7097_v2 = vmax.f32 %v6929_v49, 0.0 }
 0x8d0   : > { %v7147_v42 = vpack.c.bf16 %v7099_v7, %v7098_v48 }
 0x8d1   : > { %v7146_v52 = vpack.c.bf16 %v7097_v2, %v7096_v57 }
 0x8d3   : > { %9403 = vmatprep.mubr.bf16.mxu1 %v7146_v52 }
 0x8d4   : > { %9404 = vmatmul.mubr.bf16.gmra.mrb[28].mxu1 %v7147_v42 }
 0x8d9   : > { %v9329_v34 = vpop.f32.mrb[224].mxu1 }
 0x8da   : > { %v6950_v29 = vadd.f32 %v9329_v34, %v13974_v53  ;;  %v6941_v26 = vpop.f32.mrb[225].mxu1 }
 0x8db   : > { %v6942_v22 = vadd.f32 %v13974_v53, %v6941_v26  ;;  %v9330_v50 = vpop.f32.mrb[226].mxu1 }
 0x8dc   : > { %v6953_v9 = vadd.f32 %v9330_v50, %v13974_v53  ;;  %v6944_v18 = vpop.f32.mrb[227].mxu1  ;;  %v7102_v15 = vmax.f32 %v6950_v29, 0.0 }
 0x8dd   : > { %v6945_v56 = vadd.f32 %v13974_v53, %v6944_v18  ;;  %v7100_v40 = vmax.f32 %v6942_v22, 0.0 }
 0x8de   : > { %v7103_v38 = vmax.f32 %v6953_v9, 0.0 }
 0x8df   : > { %v7101_v20 = vmax.f32 %v6945_v56, 0.0 }
 0x8e0   : > { %v7149_v35 = vpack.c.bf16 %v7103_v38, %v7102_v15 }
 0x8e1   : > { %v7148_v37 = vpack.c.bf16 %v7101_v20, %v7100_v40 }
 0x8e3   : > { %9407 = vmatprep.mubr.bf16.mxu1 %v7148_v37 }
 0x8e4   : > { %9408 = vmatmul.mubr.bf16.gmra.mrb[32].mxu1 %v7149_v35 }
 0x8e9   : > { %v9333_v25 = vpop.f32.mrb[228].mxu1 }
 0x8ea   : > { %v6966_v14 = vadd.f32 %v9333_v25, %v13974_v53  ;;  %v6957_v32 = vpop.f32.mrb[229].mxu1 }
 0x8eb   : > { %v6958_v13 = vadd.f32 %v13974_v53, %v6957_v32  ;;  %v9334_v62 = vpop.f32.mrb[230].mxu1 }
 0x8ec   : > { %v6969_v33 = vadd.f32 %v9334_v62, %v13974_v53  ;;  %v6960_v31 = vpop.f32.mrb[231].mxu1  ;;  %v7106_v17 = vmax.f32 %v6966_v14, 0.0 }
 0x8ed   : > { %v6961_v60 = vadd.f32 %v13974_v53, %v6960_v31  ;;  %v7104_v8 = vmax.f32 %v6958_v13, 0.0 }
 0x8ee   : > { %v7107_v10 = vmax.f32 %v6969_v33, 0.0 }
 0x8ef   : > { %v7105_v36 = vmax.f32 %v6961_v60, 0.0 }
 0x8f0   : > { %v7151_v23 = vpack.c.bf16 %v7107_v10, %v7106_v17 }
 0x8f1   : > { %v7150_v46 = vpack.c.bf16 %v7105_v36, %v7104_v8 }
 0x8f3   : > { %9411 = vmatprep.mubr.bf16.mxu1 %v7150_v46 }
 0x8f4   : > { %9412 = vmatmul.mubr.bf16.gmra.mrb[36].mxu1 %v7151_v23 }
 0x8f9   : > { %v9337_v44 = vpop.f32.mrb[232].mxu1 }
 0x8fa   : > { %v6982_v3 = vadd.f32 %v9337_v44, %v13974_v53  ;;  %v6973_v16 = vpop.f32.mrb[233].mxu1 }
 0x8fb   : > { %v6974_v6 = vadd.f32 %v13974_v53, %v6973_v16  ;;  %v9338_v58 = vpop.f32.mrb[234].mxu1 }
 0x8fc   : > { %v6985_v59 = vadd.f32 %v9338_v58, %v13974_v53  ;;  %v6976_v63 = vpop.f32.mrb[235].mxu1  ;;  %v7110_v41 = vmax.f32 %v6982_v3, 0.0 }
 0x8fd   : > { %v6977_v4 = vadd.f32 %v13974_v53, %v6976_v63  ;;  %v7108_v5 = vmax.f32 %v6974_v6, 0.0 }
 0x8fe   : > { %v7111_v11 = vmax.f32 %v6985_v59, 0.0 }
 0x8ff   : > { %v7109_v54 = vmax.f32 %v6977_v4, 0.0 }
 0x900   : > { %v7153_v61 = vpack.c.bf16 %v7111_v11, %v7110_v41 }
 0x901   : > { %v7152_v47 = vpack.c.bf16 %v7109_v54, %v7108_v5 }
 0x903   : > { %9415 = vmatprep.mubr.bf16.mxu1 %v7152_v47 }
 0x904   : > { %9416 = vmatmul.mubr.bf16.gmra.mrb[40].mxu1 %v7153_v61 }
 0x909   : > { %v9341_v24 = vpop.f32.mrb[236].mxu1 }
 0x90a   : > { %v6998_v21 = vadd.f32 %v9341_v24, %v13974_v53  ;;  %v6989_v1 = vpop.f32.mrb[237].mxu1 }
 0x90b   : > { %v6990_v45 = vadd.f32 %v13974_v53, %v6989_v1  ;;  %v9342_v39 = vpop.f32.mrb[238].mxu1 }
 0x90c   : > { %v7001_v28 = vadd.f32 %v9342_v39, %v13974_v53  ;;  %v6992_v43 = vpop.f32.mrb[239].mxu1  ;;  %v7114_v55 = vmax.f32 %v6998_v21, 0.0 }
 0x90d   : > { %v6993_v30 = vadd.f32 %v13974_v53, %v6992_v43  ;;  %v7112_v12 = vmax.f32 %v6990_v45, 0.0 }
 0x90e   : > { %v7115_v49 = vmax.f32 %v7001_v28, 0.0  ;;  %v14068_v28 = vld [vmem:[%s14683_s24] ss:$0 sm:$0xff]  ;;  %s11111_s24 = smov [#allocation15]  }
 0x90f   : > { %v7113_v48 = vmax.f32 %v6993_v30, 0.0  ;;  %s11022_s1 = sshll.u32 %s11111_s24, 4  ;;  %s11023_s1 = int_to_ptr.vmem [resolvable:$false] %s11022_s1 }
 0x910   : > { %v7155_v7 = vpack.c.bf16 %v7115_v49, %v7114_v55  ;;  %s11024_s17 = scalar_lea.vmem %s11023_s1, 16384  ;;  %p11025_p5 = scmp.lt.s32.totalorder %s14275_s5, %s11023_s1 }
 0x911   : > { %v7154_v27 = vpack.c.bf16 %v7113_v48, %v7112_v12  ;;  %p11026_p0 = scmp.lt.s32.totalorder %s11024_s17, %s11018_s18 }
 0x913   : > { %9419 = vmatprep.mubr.bf16.mxu1 %v7154_v27  ;;  %p11027_p10 = por %p11026_p0, %p11025_p5 }
 0x914   : > { %9420 = vmatmul.mubr.bf16.gmra.mrb[44].mxu1 %v7155_v7 }
 0x915   : > { %p11028_p2 = pnand %p11027_p10, %p11021_p9 }
 0x919   : > { %v9345_v57 = vpop.f32.mrb[240].mxu1 }
 0x91a   : > { %v7014_v2 = vadd.f32 %v9345_v57, %v13974_v53  ;;  %v7005_v42 = vpop.f32.mrb[241].mxu1 }
 0x91b   : > { %v7006_v52 = vadd.f32 %v13974_v53, %v7005_v42  ;;  %v9346_v51 = vpop.f32.mrb[242].mxu1 }
 0x91c   : > { %v7017_v0 = vadd.f32 %v9346_v51, %v13974_v53  ;;  %v7008_v19 = vpop.f32.mrb[243].mxu1  ;;  %v7118_v29 = vmax.f32 %v7014_v2, 0.0 }
 0x91d   : > { %v7009_v34 = vadd.f32 %v13974_v53, %v7008_v19  ;;  %v7116_v22 = vmax.f32 %v7006_v52, 0.0 }
 0x91e   : > { %v7119_v26 = vmax.f32 %v7017_v0, 0.0 }
 0x91f   : > { %v7117_v50 = vmax.f32 %v7009_v34, 0.0 }
 0x920   : > { %v7157_v9 = vpack.c.bf16 %v7119_v26, %v7118_v29 }
 0x921   : > { %v7156_v18 = vpack.c.bf16 %v7117_v50, %v7116_v22 }
 0x923   : > { %9423 = vmatprep.mubr.bf16.mxu1 %v7156_v18 }
 0x924   : > { %9424 = vmatmul.mubr.bf16.gmra.mrb[48].mxu1 %v7157_v9 }
 0x929   : > { %v9349_v56 = vpop.f32.mrb[244].mxu1 }
 0x92a   : > { %v7030_v15 = vadd.f32 %v9349_v56, %v13974_v53  ;;  %v7021_v38 = vpop.f32.mrb[245].mxu1 }
 0x92b   : > { %v7022_v40 = vadd.f32 %v13974_v53, %v7021_v38  ;;  %v9350_v20 = vpop.f32.mrb[246].mxu1 }
 0x92c   : > { %v7033_v35 = vadd.f32 %v9350_v20, %v13974_v53  ;;  %v7024_v37 = vpop.f32.mrb[247].mxu1  ;;  %v7122_v14 = vmax.f32 %v7030_v15, 0.0 }
 0x92d   : > { %v7025_v25 = vadd.f32 %v13974_v53, %v7024_v37  ;;  %v7120_v13 = vmax.f32 %v7022_v40, 0.0 }
 0x92e   : > { %v7123_v32 = vmax.f32 %v7033_v35, 0.0 }
 0x92f   : > { %v7121_v62 = vmax.f32 %v7025_v25, 0.0 }
 0x930   : > { %v7159_v33 = vpack.c.bf16 %v7123_v32, %v7122_v14 }
 0x931   : > { %v7158_v31 = vpack.c.bf16 %v7121_v62, %v7120_v13 }
 0x933   : > { %9427 = vmatprep.mubr.bf16.mxu1 %v7158_v31 }
 0x934   : > { %9428 = vmatmul.mubr.bf16.gmra.mrb[52].mxu1 %v7159_v33 }
 0x939   : > { %v9353_v60 = vpop.f32.mrb[248].mxu1 }
 0x93a   : > { %v7046_v17 = vadd.f32 %v9353_v60, %v13974_v53  ;;  %v7037_v10 = vpop.f32.mrb[249].mxu1 }
 0x93b   : > { %v7038_v8 = vadd.f32 %v13974_v53, %v7037_v10  ;;  %v9354_v36 = vpop.f32.mrb[250].mxu1 }
 0x93c   : > { %v7049_v23 = vadd.f32 %v9354_v36, %v13974_v53  ;;  %v7040_v46 = vpop.f32.mrb[251].mxu1  ;;  %v7126_v3 = vmax.f32 %v7046_v17, 0.0 }
 0x93d   : > { %v7041_v44 = vadd.f32 %v13974_v53, %v7040_v46  ;;  %v7124_v6 = vmax.f32 %v7038_v8, 0.0 }
 0x93e   : > { %v7127_v16 = vmax.f32 %v7049_v23, 0.0 }
 0x93f   : > { %v7125_v58 = vmax.f32 %v7041_v44, 0.0 }
 0x940   : > { %v7161_v59 = vpack.c.bf16 %v7127_v16, %v7126_v3 }
 0x941   : > { %v7160_v63 = vpack.c.bf16 %v7125_v58, %v7124_v6 }
 0x943   : > { %9431 = vmatprep.mubr.bf16.mxu1 %v7160_v63 }
 0x944   : > { %9432 = vmatmul.mubr.bf16.gmra.mrb[56].mxu1 %v7161_v59 }
 0x949   : > { %v9357_v4 = vpop.f32.mrb[252].mxu1 }
 0x94a   : > { %v7062_v41 = vadd.f32 %v9357_v4, %v13974_v53  ;;  %v7053_v11 = vpop.f32.mrb[253].mxu1 }
 0x94b   : > { %v7054_v5 = vadd.f32 %v13974_v53, %v7053_v11  ;;  %v9358_v54 = vpop.f32.mrb[254].mxu1 }
 0x94c   : > { %v7065_v61 = vadd.f32 %v9358_v54, %v13974_v53  ;;  %v7056_v47 = vpop.f32.mrb[255].mxu1  ;;  %v7130_v21 = vmax.f32 %v7062_v41, 0.0 }
 0x94d   : > { %v7057_v24 = vadd.f32 %v13974_v53, %v7056_v47  ;;  %v7128_v45 = vmax.f32 %v7054_v5, 0.0 }
 0x94e   : > { %v7131_v1 = vmax.f32 %v7065_v61, 0.0 }
 0x94f   : > { %v7129_v39 = vmax.f32 %v7057_v24, 0.0 }
 0x950   : > { %v7163_v43 = vpack.c.bf16 %v7131_v1, %v7130_v21 }
 0x951   : > { %v7162_v30 = vpack.c.bf16 %v7129_v39, %v7128_v45  ;;  %v9377_v55 = vpop.f32.mrb[0].mxu1 }
 0x952   : > { %v7278_v49 = vadd.f32 %v9377_v55, %v14068_v28  ;;  %v7269_v12 = vpop.f32.mrb[1].mxu1 }
 0x953   : > { %v7270_v48 = vadd.f32 %v14068_v28, %v7269_v12  ;;  %v9378_v7 = vpop.f32.mrb[2].mxu1  ;;  %9435 = vmatprep.mubr.bf16.mxu1 %v7162_v30 }
 0x954   : > { %v7281_v53 = vadd.f32 %v9378_v7, %v14068_v28  ;;  %v7272_v27 = vpop.f32.mrb[3].mxu1  ;;  %9436 = vmatmul.mubr.bf16.gmra.mrb[60].mxu1 %v7163_v43  ;;  %v7526_v2 = vmax.f32 %v7278_v49, 0.0 }
 0x955   : > { %v7273_v57 = vadd.f32 %v14068_v28, %v7272_v27  ;;  %v7524_v52 = vmax.f32 %v7270_v48, 0.0 }
 0x956   : > { %v7527_v42 = vmax.f32 %v7281_v53, 0.0 }
 0x957   : > { %v7525_v51 = vmax.f32 %v7273_v57, 0.0 }
 0x958   : > { %v7589_v0 = vpack.c.bf16 %v7527_v42, %v7526_v2 }
 0x959   : > { %v7588_v19 = vpack.c.bf16 %v7525_v51, %v7524_v52  ;;  %v9381_v34 = vpop.f32.mrb[4].mxu1 }
 0x95a   : > { %v7294_v29 = vadd.f32 %v9381_v34, %v14068_v28  ;;  %v7285_v26 = vpop.f32.mrb[5].mxu1 }
 0x95b   : > { %v7286_v22 = vadd.f32 %v14068_v28, %v7285_v26  ;;  %v9382_v50 = vpop.f32.mrb[6].mxu1  ;;  %9535 = vmatprep.mubr.bf16.mxu0 %v7588_v19 }
 0x95c   : > { %v7297_v9 = vadd.f32 %v9382_v50, %v14068_v28  ;;  %v7288_v18 = vpop.f32.mrb[7].mxu1  ;;  %9536 = vmatmul.mubr.bf16.vlgmr.msra.gmra.mrb[64].mxu0 %v7589_v0  ;;  %v7530_v15 = vmax.f32 %v7294_v29, 0.0 }
 0x95d   : > { %v7289_v56 = vadd.f32 %v14068_v28, %v7288_v18  ;;  %v7528_v40 = vmax.f32 %v7286_v22, 0.0 }
 0x95e   : > { %v7531_v38 = vmax.f32 %v7297_v9, 0.0 }
 0x95f   : > { %v7529_v20 = vmax.f32 %v7289_v56, 0.0 }
 0x960   : > { %v7591_v35 = vpack.c.bf16 %v7531_v38, %v7530_v15 }
 0x961   : > { %v7590_v37 = vpack.c.bf16 %v7529_v20, %v7528_v40  ;;  %v9385_v25 = vpop.f32.mrb[8].mxu1 }
 0x962   : > { %v7310_v14 = vadd.f32 %v9385_v25, %v14068_v28  ;;  %v7301_v32 = vpop.f32.mrb[9].mxu1 }
 0x963   : > { %v7302_v13 = vadd.f32 %v14068_v28, %v7301_v32  ;;  %v9386_v62 = vpop.f32.mrb[10].mxu1  ;;  %9539 = vmatprep.mubr.bf16.mxu0 %v7590_v37 }
 0x964   : > { %v7313_v33 = vadd.f32 %v9386_v62, %v14068_v28  ;;  %v7304_v31 = vpop.f32.mrb[11].mxu1  ;;  %9540 = vmatmul.mubr.bf16.gmra.mrb[68].mxu0 %v7591_v35  ;;  %v7534_v17 = vmax.f32 %v7310_v14, 0.0 }
 0x965   : > { %v7305_v60 = vadd.f32 %v14068_v28, %v7304_v31  ;;  %v7532_v8 = vmax.f32 %v7302_v13, 0.0 }
 0x966   : > { %v7535_v10 = vmax.f32 %v7313_v33, 0.0 }
 0x967   : > { %v7533_v36 = vmax.f32 %v7305_v60, 0.0 }
 0x968   : > { %v7593_v23 = vpack.c.bf16 %v7535_v10, %v7534_v17 }
 0x969   : > { %v7592_v46 = vpack.c.bf16 %v7533_v36, %v7532_v8  ;;  %v9389_v44 = vpop.f32.mrb[12].mxu1 }
 0x96a   : > { %v7326_v3 = vadd.f32 %v9389_v44, %v14068_v28  ;;  %v7317_v16 = vpop.f32.mrb[13].mxu1 }
 0x96b   : > { %v7318_v6 = vadd.f32 %v14068_v28, %v7317_v16  ;;  %v9390_v58 = vpop.f32.mrb[14].mxu1  ;;  %9543 = vmatprep.mubr.bf16.mxu0 %v7592_v46 }
 0x96c   : > { %v7329_v59 = vadd.f32 %v9390_v58, %v14068_v28  ;;  %v7320_v63 = vpop.f32.mrb[15].mxu1  ;;  %9544 = vmatmul.mubr.bf16.gmra.mrb[72].mxu0 %v7593_v23  ;;  %v7538_v41 = vmax.f32 %v7326_v3, 0.0 }
 0x96d   : > { %v7321_v4 = vadd.f32 %v14068_v28, %v7320_v63  ;;  %v7536_v5 = vmax.f32 %v7318_v6, 0.0 }
 0x96e   : > { %v7539_v11 = vmax.f32 %v7329_v59, 0.0 }
 0x96f   : > { %v7537_v54 = vmax.f32 %v7321_v4, 0.0 }
 0x970   : > { %v7595_v61 = vpack.c.bf16 %v7539_v11, %v7538_v41 }
 0x971   : > { %v7594_v47 = vpack.c.bf16 %v7537_v54, %v7536_v5 }
 0x973   : > { %9547 = vmatprep.mubr.bf16.mxu0 %v7594_v47 }
 0x974   : > { %9548 = vmatmul.mubr.bf16.gmra.mrb[76].mxu0 %v7595_v61 }
 0x977   : > { %v9393_v24 = vpop.f32.mrb[16].mxu1 }
 0x978   : > { %v7342_v21 = vadd.f32 %v9393_v24, %v14068_v28  ;;  %v7333_v1 = vpop.f32.mrb[17].mxu1 }
 0x979   : > { %v7334_v45 = vadd.f32 %v14068_v28, %v7333_v1  ;;  %v9394_v39 = vpop.f32.mrb[18].mxu1 }
 0x97a   : > { %v7345_v43 = vadd.f32 %v9394_v39, %v14068_v28  ;;  %v7336_v30 = vpop.f32.mrb[19].mxu1  ;;  %v7542_v49 = vmax.f32 %v7342_v21, 0.0 }
 0x97b   : > { %v7337_v55 = vadd.f32 %v14068_v28, %v7336_v30  ;;  %v7540_v48 = vmax.f32 %v7334_v45, 0.0 }
 0x97c   : > { %v7543_v12 = vmax.f32 %v7345_v43, 0.0 }
 0x97d   : > { %v7541_v7 = vmax.f32 %v7337_v55, 0.0 }
 0x97e   : > { %v7597_v53 = vpack.c.bf16 %v7543_v12, %v7542_v49 }
 0x97f   : > { %v7596_v27 = vpack.c.bf16 %v7541_v7, %v7540_v48 }
 0x981   : > { %9551 = vmatprep.mubr.bf16.mxu0 %v7596_v27 }
 0x982   : > { %9552 = vmatmul.mubr.bf16.gmra.mrb[80].mxu0 %v7597_v53 }
 0x987   : > { %v9397_v57 = vpop.f32.mrb[20].mxu1 }
 0x988   : > { %v7358_v2 = vadd.f32 %v9397_v57, %v14068_v28  ;;  %v7349_v42 = vpop.f32.mrb[21].mxu1 }
 0x989   : > { %v7350_v52 = vadd.f32 %v14068_v28, %v7349_v42  ;;  %v9398_v51 = vpop.f32.mrb[22].mxu1 }
 0x98a   : > { %v7361_v0 = vadd.f32 %v9398_v51, %v14068_v28  ;;  %v7352_v19 = vpop.f32.mrb[23].mxu1  ;;  %v7546_v29 = vmax.f32 %v7358_v2, 0.0 }
 0x98b   : > { %v7353_v34 = vadd.f32 %v14068_v28, %v7352_v19  ;;  %v7544_v22 = vmax.f32 %v7350_v52, 0.0 }
 0x98c   : > { %v7547_v26 = vmax.f32 %v7361_v0, 0.0 }
 0x98d   : > { %v7545_v50 = vmax.f32 %v7353_v34, 0.0 }
 0x98e   : > { %v7599_v9 = vpack.c.bf16 %v7547_v26, %v7546_v29 }
 0x98f   : > { %v7598_v18 = vpack.c.bf16 %v7545_v50, %v7544_v22 }
 0x991   : > { %9555 = vmatprep.mubr.bf16.mxu0 %v7598_v18 }
 0x992   : > { %9556 = vmatmul.mubr.bf16.gmra.mrb[84].mxu0 %v7599_v9 }
 0x997   : > { %v9401_v56 = vpop.f32.mrb[24].mxu1 }
 0x998   : > { %v7374_v15 = vadd.f32 %v9401_v56, %v14068_v28  ;;  %v7365_v38 = vpop.f32.mrb[25].mxu1 }
 0x999   : > { %v7366_v40 = vadd.f32 %v14068_v28, %v7365_v38  ;;  %v9402_v20 = vpop.f32.mrb[26].mxu1 }
 0x99a   : > { %v7377_v35 = vadd.f32 %v9402_v20, %v14068_v28  ;;  %v7368_v37 = vpop.f32.mrb[27].mxu1  ;;  %v7550_v14 = vmax.f32 %v7374_v15, 0.0 }
 0x99b   : > { %v7369_v25 = vadd.f32 %v14068_v28, %v7368_v37  ;;  %v7548_v13 = vmax.f32 %v7366_v40, 0.0 }
 0x99c   : > { %v7551_v32 = vmax.f32 %v7377_v35, 0.0 }
 0x99d   : > { %v7549_v62 = vmax.f32 %v7369_v25, 0.0 }
 0x99e   : > { %v7601_v33 = vpack.c.bf16 %v7551_v32, %v7550_v14 }
 0x99f   : > { %v7600_v31 = vpack.c.bf16 %v7549_v62, %v7548_v13 }
 0x9a1   : > { %9559 = vmatprep.mubr.bf16.mxu0 %v7600_v31 }
 0x9a2   : > { %9560 = vmatmul.mubr.bf16.gmra.mrb[88].mxu0 %v7601_v33 }
 0x9a7   : > { %v9405_v60 = vpop.f32.mrb[28].mxu1 }
 0x9a8   : > { %v7390_v17 = vadd.f32 %v9405_v60, %v14068_v28  ;;  %v7381_v10 = vpop.f32.mrb[29].mxu1 }
 0x9a9   : > { %v7382_v8 = vadd.f32 %v14068_v28, %v7381_v10  ;;  %v9406_v36 = vpop.f32.mrb[30].mxu1 }
 0x9aa   : > { %v7393_v23 = vadd.f32 %v9406_v36, %v14068_v28  ;;  %v7384_v46 = vpop.f32.mrb[31].mxu1  ;;  %v7554_v3 = vmax.f32 %v7390_v17, 0.0 }
 0x9ab   : > { %v7385_v44 = vadd.f32 %v14068_v28, %v7384_v46  ;;  %v7552_v6 = vmax.f32 %v7382_v8, 0.0 }
 0x9ac   : > { %v7555_v16 = vmax.f32 %v7393_v23, 0.0 }
 0x9ad   : > { %v7553_v58 = vmax.f32 %v7385_v44, 0.0 }
 0x9ae   : > { %v7603_v59 = vpack.c.bf16 %v7555_v16, %v7554_v3 }
 0x9af   : > { %v7602_v63 = vpack.c.bf16 %v7553_v58, %v7552_v6 }
 0x9b1   : > { %9563 = vmatprep.mubr.bf16.mxu0 %v7602_v63 }
 0x9b2   : > { %9564 = vmatmul.mubr.bf16.gmra.mrb[92].mxu0 %v7603_v59 }
 0x9b7   : > { %v9409_v4 = vpop.f32.mrb[32].mxu1 }
 0x9b8   : > { %v7406_v41 = vadd.f32 %v9409_v4, %v14068_v28  ;;  %v7397_v11 = vpop.f32.mrb[33].mxu1 }
 0x9b9   : > { %v7398_v5 = vadd.f32 %v14068_v28, %v7397_v11  ;;  %v9410_v54 = vpop.f32.mrb[34].mxu1 }
 0x9ba   : > { %v7409_v61 = vadd.f32 %v9410_v54, %v14068_v28  ;;  %v7400_v47 = vpop.f32.mrb[35].mxu1  ;;  %v7558_v21 = vmax.f32 %v7406_v41, 0.0 }
 0x9bb   : > { %v7401_v24 = vadd.f32 %v14068_v28, %v7400_v47  ;;  %v7556_v45 = vmax.f32 %v7398_v5, 0.0 }
 0x9bc   : > { %v7559_v1 = vmax.f32 %v7409_v61, 0.0 }
 0x9bd   : > { %v7557_v39 = vmax.f32 %v7401_v24, 0.0 }
 0x9be   : > { %v7605_v43 = vpack.c.bf16 %v7559_v1, %v7558_v21 }
 0x9bf   : > { %v7604_v30 = vpack.c.bf16 %v7557_v39, %v7556_v45 }
 0x9c1   : > { %9567 = vmatprep.mubr.bf16.mxu0 %v7604_v30 }
 0x9c2   : > { %9568 = vmatmul.mubr.bf16.gmra.mrb[96].mxu0 %v7605_v43 }
 0x9c7   : > { %v9413_v55 = vpop.f32.mrb[36].mxu1 }
 0x9c8   : > { %v7422_v49 = vadd.f32 %v9413_v55, %v14068_v28  ;;  %v7413_v12 = vpop.f32.mrb[37].mxu1 }
 0x9c9   : > { %v7414_v48 = vadd.f32 %v14068_v28, %v7413_v12  ;;  %v9414_v7 = vpop.f32.mrb[38].mxu1 }
 0x9ca   : > { %v7425_v53 = vadd.f32 %v9414_v7, %v14068_v28  ;;  %v7416_v27 = vpop.f32.mrb[39].mxu1  ;;  %v7562_v2 = vmax.f32 %v7422_v49, 0.0 }
 0x9cb   : > { %v7417_v57 = vadd.f32 %v14068_v28, %v7416_v27  ;;  %v7560_v52 = vmax.f32 %v7414_v48, 0.0 }
 0x9cc   : > { %v7563_v42 = vmax.f32 %v7425_v53, 0.0 }
 0x9cd   : > { %v7561_v51 = vmax.f32 %v7417_v57, 0.0 }
 0x9ce   : > { %v7607_v0 = vpack.c.bf16 %v7563_v42, %v7562_v2 }
 0x9cf   : > { %v7606_v19 = vpack.c.bf16 %v7561_v51, %v7560_v52 }
 0x9d1   : > { %9571 = vmatprep.mubr.bf16.mxu0 %v7606_v19 }
 0x9d2   : > { %9572 = vmatmul.mubr.bf16.gmra.mrb[100].mxu0 %v7607_v0 }
 0x9d7   : > { %v9417_v34 = vpop.f32.mrb[40].mxu1 }
 0x9d8   : > { %v7438_v29 = vadd.f32 %v9417_v34, %v14068_v28  ;;  %v7429_v26 = vpop.f32.mrb[41].mxu1 }
 0x9d9   : > { %v7430_v22 = vadd.f32 %v14068_v28, %v7429_v26  ;;  %v9418_v50 = vpop.f32.mrb[42].mxu1 }
 0x9da   : > { %v7441_v9 = vadd.f32 %v9418_v50, %v14068_v28  ;;  %v7432_v18 = vpop.f32.mrb[43].mxu1  ;;  %v7566_v15 = vmax.f32 %v7438_v29, 0.0 }
 0x9db   : > { %v7433_v56 = vadd.f32 %v14068_v28, %v7432_v18  ;;  %v7564_v40 = vmax.f32 %v7430_v22, 0.0 }
 0x9dc   : > { %v7567_v38 = vmax.f32 %v7441_v9, 0.0 }
 0x9dd   : > { %v7565_v20 = vmax.f32 %v7433_v56, 0.0 }
 0x9de   : > { %v7609_v35 = vpack.c.bf16 %v7567_v38, %v7566_v15 }
 0x9df   : > { %v7608_v37 = vpack.c.bf16 %v7565_v20, %v7564_v40 }
 0x9e1   : > { %9575 = vmatprep.mubr.bf16.mxu0 %v7608_v37 }
 0x9e2   : > { %9576 = vmatmul.mubr.bf16.gmra.mrb[104].mxu0 %v7609_v35 }
 0x9e7   : > { %v9421_v25 = vpop.f32.mrb[44].mxu1 }
 0x9e8   : > { %v7454_v14 = vadd.f32 %v9421_v25, %v14068_v28  ;;  %v7445_v32 = vpop.f32.mrb[45].mxu1 }
 0x9e9   : > { %v7446_v13 = vadd.f32 %v14068_v28, %v7445_v32  ;;  %v9422_v62 = vpop.f32.mrb[46].mxu1 }
 0x9ea   : > { %v7457_v33 = vadd.f32 %v9422_v62, %v14068_v28  ;;  %v7448_v31 = vpop.f32.mrb[47].mxu1  ;;  %v7570_v17 = vmax.f32 %v7454_v14, 0.0 }
 0x9eb   : > { %v7449_v60 = vadd.f32 %v14068_v28, %v7448_v31  ;;  %v7568_v8 = vmax.f32 %v7446_v13, 0.0 }
 0x9ec   : > { %v7571_v10 = vmax.f32 %v7457_v33, 0.0  ;;  %v14140_v33 = vld [vmem:[%s14685_s20] ss:$0 sm:$0xff] }
 0x9ed   : > { %v7569_v36 = vmax.f32 %v7449_v60, 0.0 }
 0x9ee   : > { %v7611_v23 = vpack.c.bf16 %v7571_v10, %v7570_v17 }
 0x9ef   : > { %v7610_v46 = vpack.c.bf16 %v7569_v36, %v7568_v8 }
 0x9f1   : > { %9579 = vmatprep.mubr.bf16.mxu0 %v7610_v46 }
 0x9f2   : > { %9580 = vmatmul.mubr.bf16.gmra.mrb[108].mxu0 %v7611_v23 }
 0x9f7   : > { %v9425_v44 = vpop.f32.mrb[48].mxu1 }
 0x9f8   : > { %v7470_v3 = vadd.f32 %v9425_v44, %v14068_v28  ;;  %v7461_v16 = vpop.f32.mrb[49].mxu1 }
 0x9f9   : > { %v7462_v6 = vadd.f32 %v14068_v28, %v7461_v16  ;;  %v9426_v58 = vpop.f32.mrb[50].mxu1 }
 0x9fa   : > { %v7473_v59 = vadd.f32 %v9426_v58, %v14068_v28  ;;  %v7464_v63 = vpop.f32.mrb[51].mxu1  ;;  %v7574_v41 = vmax.f32 %v7470_v3, 0.0 }
 0x9fb   : > { %v7465_v4 = vadd.f32 %v14068_v28, %v7464_v63  ;;  %v7572_v5 = vmax.f32 %v7462_v6, 0.0 }
 0x9fc   : > { %v7575_v11 = vmax.f32 %v7473_v59, 0.0 }
 0x9fd   : > { %v7573_v54 = vmax.f32 %v7465_v4, 0.0 }
 0x9fe   : > { %v7613_v61 = vpack.c.bf16 %v7575_v11, %v7574_v41 }
 0x9ff   : > { %v7612_v47 = vpack.c.bf16 %v7573_v54, %v7572_v5 }
 0xa01   : > { %9583 = vmatprep.mubr.bf16.mxu0 %v7612_v47 }
 0xa02   : > { %9584 = vmatmul.mubr.bf16.gmra.mrb[112].mxu0 %v7613_v61 }
 0xa07   : > { %v9429_v24 = vpop.f32.mrb[52].mxu1 }
 0xa08   : > { %v7486_v21 = vadd.f32 %v9429_v24, %v14068_v28  ;;  %v7477_v1 = vpop.f32.mrb[53].mxu1 }
 0xa09   : > { %v7478_v45 = vadd.f32 %v14068_v28, %v7477_v1  ;;  %v9430_v39 = vpop.f32.mrb[54].mxu1 }
 0xa0a   : > { %v7489_v43 = vadd.f32 %v9430_v39, %v14068_v28  ;;  %v7480_v30 = vpop.f32.mrb[55].mxu1  ;;  %v7578_v49 = vmax.f32 %v7486_v21, 0.0 }
 0xa0b   : > { %v7481_v55 = vadd.f32 %v14068_v28, %v7480_v30  ;;  %v7576_v48 = vmax.f32 %v7478_v45, 0.0 }
 0xa0c   : > { %v7579_v12 = vmax.f32 %v7489_v43, 0.0 }
 0xa0d   : > { %v7577_v7 = vmax.f32 %v7481_v55, 0.0 }
 0xa0e   : > { %v7615_v53 = vpack.c.bf16 %v7579_v12, %v7578_v49 }
 0xa0f   : > { %v7614_v27 = vpack.c.bf16 %v7577_v7, %v7576_v48 }
 0xa11   : > { %9587 = vmatprep.mubr.bf16.mxu0 %v7614_v27 }
 0xa12   : > { %9588 = vmatmul.mubr.bf16.gmra.mrb[116].mxu0 %v7615_v53 }
 0xa17   : > { %v9433_v57 = vpop.f32.mrb[56].mxu1 }
 0xa18   : > { %v7502_v2 = vadd.f32 %v9433_v57, %v14068_v28  ;;  %v7493_v42 = vpop.f32.mrb[57].mxu1 }
 0xa19   : > { %v7494_v52 = vadd.f32 %v14068_v28, %v7493_v42  ;;  %v9434_v51 = vpop.f32.mrb[58].mxu1 }
 0xa1a   : > { %v7505_v0 = vadd.f32 %v9434_v51, %v14068_v28  ;;  %v7496_v19 = vpop.f32.mrb[59].mxu1  ;;  %v7582_v29 = vmax.f32 %v7502_v2, 0.0 }
 0xa1b   : > { %v7497_v34 = vadd.f32 %v14068_v28, %v7496_v19  ;;  %v7580_v22 = vmax.f32 %v7494_v52, 0.0 }
 0xa1c   : > { %v7583_v26 = vmax.f32 %v7505_v0, 0.0 }
 0xa1d   : > { %v7581_v50 = vmax.f32 %v7497_v34, 0.0 }
 0xa1e   : > { %v7617_v9 = vpack.c.bf16 %v7583_v26, %v7582_v29 }
 0xa1f   : > { %v7616_v18 = vpack.c.bf16 %v7581_v50, %v7580_v22 }
 0xa21   : > { %9591 = vmatprep.mubr.bf16.mxu0 %v7616_v18 }
 0xa22   : > { %9592 = vmatmul.mubr.bf16.gmra.mrb[120].mxu0 %v7617_v9 }
 0xa27   : > { %v9437_v56 = vpop.f32.mrb[60].mxu1 }
 0xa28   : > { %v7518_v15 = vadd.f32 %v9437_v56, %v14068_v28  ;;  %v7509_v38 = vpop.f32.mrb[61].mxu1 }
 0xa29   : > { %v7510_v40 = vadd.f32 %v14068_v28, %v7509_v38  ;;  %v9438_v20 = vpop.f32.mrb[62].mxu1 }
 0xa2a   : > { %v7521_v35 = vadd.f32 %v9438_v20, %v14068_v28  ;;  %v7512_v37 = vpop.f32.mrb[63].mxu1  ;;  %v7586_v14 = vmax.f32 %v7518_v15, 0.0 }
 0xa2b   : > { %v7513_v25 = vadd.f32 %v14068_v28, %v7512_v37  ;;  %v7584_v13 = vmax.f32 %v7510_v40, 0.0 }
 0xa2c   : > { %v7587_v32 = vmax.f32 %v7521_v35, 0.0 }
 0xa2d   : > { %v7585_v62 = vmax.f32 %v7513_v25, 0.0 }
 0xa2e   : > { %v7619_v31 = vpack.c.bf16 %v7587_v32, %v7586_v14 }
 0xa2f   : > { %v7618_v60 = vpack.c.bf16 %v7585_v62, %v7584_v13  ;;  %v9537_v17 = vpop.f32.mrb[64].mxu0 }
 0xa30   : > { %v8335_v10 = vadd.f32 %v9537_v17, %v14140_v33  ;;  %v8071_v8 = vpop.f32.mrb[65].mxu0 }
 0xa31   : > { %v8333_v36 = vadd.f32 %v14140_v33, %v8071_v8  ;;  %v9538_v28 = vpop.f32.mrb[66].mxu0  ;;  %9595 = vmatprep.mubr.bf16.mxu0 %v7618_v60 }
 0xa32   : > { %8399 = vst [vmem:[%s14144_s27 + $0x10] sm:$0xff] %v8335_v10  ;;  %v8336_v23 = vadd.f32 %v9538_v28, %v14140_v33  ;;  %v8074_v46 = vpop.f32.mrb[67].mxu0  ;;  %9596 = vmatmul.mubr.bf16.gmra.mrb[124].mxu0 %v7619_v31 }
 0xa33   : > { %8397 = vst [vmem:[%s14144_s27] sm:$0xff] %v8333_v36  ;;  %v8334_v44 = vadd.f32 %v14140_v33, %v8074_v46 }
 0xa34   : > { %8400 = vst [vmem:[%s14144_s27 + $0x18] sm:$0xff] %v8336_v23 }
 0xa35   : > { %8398 = vst [vmem:[%s14144_s27 + $0x8] sm:$0xff] %v8334_v44 }
 0xa37   : > { %v9541_v3 = vpop.f32.mrb[68].mxu0 }
 0xa38   : > { %v8339_v16 = vadd.f32 %v9541_v3, %v14140_v33  ;;  %v8087_v6 = vpop.f32.mrb[69].mxu0 }
 0xa39   : > { %v8337_v58 = vadd.f32 %v14140_v33, %v8087_v6  ;;  %v9542_v59 = vpop.f32.mrb[70].mxu0 }
 0xa3a   : > { %8403 = vst [vmem:[%s14144_s27 + $0x30] sm:$0xff] %v8339_v16  ;;  %v8340_v63 = vadd.f32 %v9542_v59, %v14140_v33  ;;  %v8090_v4 = vpop.f32.mrb[71].mxu0 }
 0xa3b   : > { %8401 = vst [vmem:[%s14144_s27 + $0x20] sm:$0xff] %v8337_v58  ;;  %v8338_v41 = vadd.f32 %v14140_v33, %v8090_v4 }
 0xa3c   : > { %8404 = vst [vmem:[%s14144_s27 + $0x38] sm:$0xff] %v8340_v63 }
 0xa3d   : > { %8402 = vst [vmem:[%s14144_s27 + $0x28] sm:$0xff] %v8338_v41 }
 0xa3f   : > { %v9545_v11 = vpop.f32.mrb[72].mxu0 }
 0xa40   : > { %v8343_v5 = vadd.f32 %v9545_v11, %v14140_v33  ;;  %v8103_v54 = vpop.f32.mrb[73].mxu0 }
 0xa41   : > { %v8341_v61 = vadd.f32 %v14140_v33, %v8103_v54  ;;  %v9546_v47 = vpop.f32.mrb[74].mxu0 }
 0xa42   : > { %8407 = vst [vmem:[%s14144_s27 + $0x50] sm:$0xff] %v8343_v5  ;;  %v8344_v24 = vadd.f32 %v9546_v47, %v14140_v33  ;;  %v8106_v21 = vpop.f32.mrb[75].mxu0 }
 0xa43   : > { %8405 = vst [vmem:[%s14144_s27 + $0x40] sm:$0xff] %v8341_v61  ;;  %v8342_v1 = vadd.f32 %v14140_v33, %v8106_v21 }
 0xa44   : > { %8408 = vst [vmem:[%s14144_s27 + $0x58] sm:$0xff] %v8344_v24 }
 0xa45   : > { %8406 = vst [vmem:[%s14144_s27 + $0x48] sm:$0xff] %v8342_v1 }
 0xa47   : > { %v9549_v45 = vpop.f32.mrb[76].mxu0 }
 0xa48   : > { %v8347_v39 = vadd.f32 %v9549_v45, %v14140_v33  ;;  %v8119_v43 = vpop.f32.mrb[77].mxu0 }
 0xa49   : > { %v8345_v30 = vadd.f32 %v14140_v33, %v8119_v43  ;;  %v9550_v55 = vpop.f32.mrb[78].mxu0 }
 0xa4a   : > { %8411 = vst [vmem:[%s14144_s27 + $0x70] sm:$0xff] %v8347_v39  ;;  %v8348_v49 = vadd.f32 %v9550_v55, %v14140_v33  ;;  %v8122_v12 = vpop.f32.mrb[79].mxu0 }
 0xa4b   : > { %8409 = vst [vmem:[%s14144_s27 + $0x60] sm:$0xff] %v8345_v30  ;;  %v8346_v48 = vadd.f32 %v14140_v33, %v8122_v12 }
 0xa4c   : > { %8412 = vst [vmem:[%s14144_s27 + $0x78] sm:$0xff] %v8348_v49 }
 0xa4d   : > { %8410 = vst [vmem:[%s14144_s27 + $0x68] sm:$0xff] %v8346_v48 }
 0xa55   : > { %v9553_v7 = vpop.f32.mrb[80].mxu0 }
 0xa56   : > { %v8351_v53 = vadd.f32 %v9553_v7, %v14140_v33  ;;  %v8135_v27 = vpop.f32.mrb[81].mxu0 }
 0xa57   : > { %v8349_v57 = vadd.f32 %v14140_v33, %v8135_v27  ;;  %v9554_v2 = vpop.f32.mrb[82].mxu0 }
 0xa58   : > { %8415 = vst [vmem:[%s14144_s27 + $0x90] sm:$0xff] %v8351_v53  ;;  %v8352_v42 = vadd.f32 %v9554_v2, %v14140_v33  ;;  %v8138_v52 = vpop.f32.mrb[83].mxu0 }
 0xa59   : > { %8413 = vst [vmem:[%s14144_s27 + $0x80] sm:$0xff] %v8349_v57  ;;  %v8350_v51 = vadd.f32 %v14140_v33, %v8138_v52 }
 0xa5a   : > { %8416 = vst [vmem:[%s14144_s27 + $0x98] sm:$0xff] %v8352_v42 }
 0xa5b   : > { %8414 = vst [vmem:[%s14144_s27 + $0x88] sm:$0xff] %v8350_v51 }
 0xa65   : > { %v9557_v0 = vpop.f32.mrb[84].mxu0 }
 0xa66   : > { %v8355_v19 = vadd.f32 %v9557_v0, %v14140_v33  ;;  %v8151_v34 = vpop.f32.mrb[85].mxu0 }
 0xa67   : > { %v8353_v29 = vadd.f32 %v14140_v33, %v8151_v34  ;;  %v9558_v26 = vpop.f32.mrb[86].mxu0 }
 0xa68   : > { %8419 = vst [vmem:[%s14144_s27 + $0xb0] sm:$0xff] %v8355_v19  ;;  %v8356_v22 = vadd.f32 %v9558_v26, %v14140_v33  ;;  %v8154_v50 = vpop.f32.mrb[87].mxu0 }
 0xa69   : > { %8417 = vst [vmem:[%s14144_s27 + $0xa0] sm:$0xff] %v8353_v29  ;;  %v8354_v9 = vadd.f32 %v14140_v33, %v8154_v50 }
 0xa6a   : > { %8420 = vst [vmem:[%s14144_s27 + $0xb8] sm:$0xff] %v8356_v22 }
 0xa6b   : > { %8418 = vst [vmem:[%s14144_s27 + $0xa8] sm:$0xff] %v8354_v9 }
 0xa75   : > { %v9561_v18 = vpop.f32.mrb[88].mxu0 }
 0xa76   : > { %v8359_v56 = vadd.f32 %v9561_v18, %v14140_v33  ;;  %v8167_v15 = vpop.f32.mrb[89].mxu0 }
 0xa77   : > { %v8357_v38 = vadd.f32 %v14140_v33, %v8167_v15  ;;  %v9562_v40 = vpop.f32.mrb[90].mxu0 }
 0xa78   : > { %8423 = vst [vmem:[%s14144_s27 + $0xd0] sm:$0xff] %v8359_v56  ;;  %v8360_v20 = vadd.f32 %v9562_v40, %v14140_v33  ;;  %v8170_v35 = vpop.f32.mrb[91].mxu0 }
 0xa79   : > { %8421 = vst [vmem:[%s14144_s27 + $0xc0] sm:$0xff] %v8357_v38  ;;  %v8358_v37 = vadd.f32 %v14140_v33, %v8170_v35 }
 0xa7a   : > { %8424 = vst [vmem:[%s14144_s27 + $0xd8] sm:$0xff] %v8360_v20 }
 0xa7b   : > { %8422 = vst [vmem:[%s14144_s27 + $0xc8] sm:$0xff] %v8358_v37 }
 0xa85   : > { %v9565_v25 = vpop.f32.mrb[92].mxu0 }
 0xa86   : > { %v8363_v14 = vadd.f32 %v9565_v25, %v14140_v33  ;;  %v8183_v32 = vpop.f32.mrb[93].mxu0 }
 0xa87   : > { %v8361_v13 = vadd.f32 %v14140_v33, %v8183_v32  ;;  %v9566_v62 = vpop.f32.mrb[94].mxu0 }
 0xa88   : > { %8427 = vst [vmem:[%s14144_s27 + $0xf0] sm:$0xff] %v8363_v14  ;;  %v8364_v31 = vadd.f32 %v9566_v62, %v14140_v33  ;;  %v8186_v60 = vpop.f32.mrb[95].mxu0 }
 0xa89   : > { %8425 = vst [vmem:[%s14144_s27 + $0xe0] sm:$0xff] %v8361_v13  ;;  %v8362_v17 = vadd.f32 %v14140_v33, %v8186_v60 }
 0xa8a   : > { %8428 = vst [vmem:[%s14144_s27 + $0xf8] sm:$0xff] %v8364_v31 }
 0xa8b   : > { %8426 = vst [vmem:[%s14144_s27 + $0xe8] sm:$0xff] %v8362_v17 }
 0xa95   : > { %v9569_v10 = vpop.f32.mrb[96].mxu0 }
 0xa96   : > { %v8367_v8 = vadd.f32 %v9569_v10, %v14140_v33  ;;  %v8199_v36 = vpop.f32.mrb[97].mxu0 }
 0xa97   : > { %v8365_v28 = vadd.f32 %v14140_v33, %v8199_v36  ;;  %v9570_v23 = vpop.f32.mrb[98].mxu0 }
 0xa98   : > { %8431 = vst [vmem:[%s14144_s27 + $0x110] sm:$0xff] %v8367_v8  ;;  %v8368_v46 = vadd.f32 %v9570_v23, %v14140_v33  ;;  %v8202_v44 = vpop.f32.mrb[99].mxu0 }
 0xa99   : > { %8429 = vst [vmem:[%s14144_s27 + $0x100] sm:$0xff] %v8365_v28  ;;  %v8366_v3 = vadd.f32 %v14140_v33, %v8202_v44 }
 0xa9a   : > { %8432 = vst [vmem:[%s14144_s27 + $0x118] sm:$0xff] %v8368_v46 }
 0xa9b   : > { %8430 = vst [vmem:[%s14144_s27 + $0x108] sm:$0xff] %v8366_v3 }
 0xaa5   : > { %v9573_v16 = vpop.f32.mrb[100].mxu0 }
 0xaa6   : > { %v8371_v6 = vadd.f32 %v9573_v16, %v14140_v33  ;;  %v8215_v58 = vpop.f32.mrb[101].mxu0 }
 0xaa7   : > { %v8369_v59 = vadd.f32 %v14140_v33, %v8215_v58  ;;  %v9574_v63 = vpop.f32.mrb[102].mxu0 }
 0xaa8   : > { %8435 = vst [vmem:[%s14144_s27 + $0x130] sm:$0xff] %v8371_v6  ;;  %v8372_v4 = vadd.f32 %v9574_v63, %v14140_v33  ;;  %v8218_v41 = vpop.f32.mrb[103].mxu0 }
 0xaa9   : > { %8433 = vst [vmem:[%s14144_s27 + $0x120] sm:$0xff] %v8369_v59  ;;  %v8370_v11 = vadd.f32 %v14140_v33, %v8218_v41 }
 0xaaa   : > { %8436 = vst [vmem:[%s14144_s27 + $0x138] sm:$0xff] %v8372_v4 }
 0xaab   : > { %8434 = vst [vmem:[%s14144_s27 + $0x128] sm:$0xff] %v8370_v11 }
 0xab5   : > { %v9577_v5 = vpop.f32.mrb[104].mxu0 }
 0xab6   : > { %v8375_v54 = vadd.f32 %v9577_v5, %v14140_v33  ;;  %v8231_v61 = vpop.f32.mrb[105].mxu0 }
 0xab7   : > { %v8373_v47 = vadd.f32 %v14140_v33, %v8231_v61  ;;  %v9578_v24 = vpop.f32.mrb[106].mxu0 }
 0xab8   : > { %8439 = vst [vmem:[%s14144_s27 + $0x150] sm:$0xff] %v8375_v54  ;;  %v8376_v21 = vadd.f32 %v9578_v24, %v14140_v33  ;;  %v8234_v1 = vpop.f32.mrb[107].mxu0 }
 0xab9   : > { %8437 = vst [vmem:[%s14144_s27 + $0x140] sm:$0xff] %v8373_v47  ;;  %v8374_v45 = vadd.f32 %v14140_v33, %v8234_v1 }
 0xaba   : > { %8440 = vst [vmem:[%s14144_s27 + $0x158] sm:$0xff] %v8376_v21 }
 0xabb   : > { %8438 = vst [vmem:[%s14144_s27 + $0x148] sm:$0xff] %v8374_v45 }
 0xac5   : > { %v9581_v39 = vpop.f32.mrb[108].mxu0 }
 0xac6   : > { %v8379_v43 = vadd.f32 %v9581_v39, %v14140_v33  ;;  %v8247_v30 = vpop.f32.mrb[109].mxu0 }
 0xac7   : > { %v8377_v55 = vadd.f32 %v14140_v33, %v8247_v30  ;;  %v9582_v49 = vpop.f32.mrb[110].mxu0 }
 0xac8   : > { %8443 = vst [vmem:[%s14144_s27 + $0x170] sm:$0xff] %v8379_v43  ;;  %v8380_v12 = vadd.f32 %v9582_v49, %v14140_v33  ;;  %v8250_v48 = vpop.f32.mrb[111].mxu0 }
 0xac9   : > { %8441 = vst [vmem:[%s14144_s27 + $0x160] sm:$0xff] %v8377_v55  ;;  %v8378_v7 = vadd.f32 %v14140_v33, %v8250_v48 }
 0xaca   : > { %8444 = vst [vmem:[%s14144_s27 + $0x178] sm:$0xff] %v8380_v12 }
 0xacb   : > { %8442 = vst [vmem:[%s14144_s27 + $0x168] sm:$0xff] %v8378_v7 }
 0xad5   : > { %v9585_v53 = vpop.f32.mrb[112].mxu0 }
 0xad6   : > { %v8383_v27 = vadd.f32 %v9585_v53, %v14140_v33  ;;  %v8263_v57 = vpop.f32.mrb[113].mxu0 }
 0xad7   : > { %v8381_v2 = vadd.f32 %v14140_v33, %v8263_v57  ;;  %v9586_v42 = vpop.f32.mrb[114].mxu0 }
 0xad8   : > { %8447 = vst [vmem:[%s14144_s27 + $0x190] sm:$0xff] %v8383_v27  ;;  %v8384_v52 = vadd.f32 %v9586_v42, %v14140_v33  ;;  %v8266_v51 = vpop.f32.mrb[115].mxu0 }
 0xad9   : > { %8445 = vst [vmem:[%s14144_s27 + $0x180] sm:$0xff] %v8381_v2  ;;  %v8382_v0 = vadd.f32 %v14140_v33, %v8266_v51 }
 0xada   : > { %8448 = vst [vmem:[%s14144_s27 + $0x198] sm:$0xff] %v8384_v52 }
 0xadb   : > { %8446 = vst [vmem:[%s14144_s27 + $0x188] sm:$0xff] %v8382_v0 }
 0xae5   : > { %v9589_v19 = vpop.f32.mrb[116].mxu0 }
 0xae6   : > { %v8387_v34 = vadd.f32 %v9589_v19, %v14140_v33  ;;  %v8279_v29 = vpop.f32.mrb[117].mxu0 }
 0xae7   : > { %v8385_v26 = vadd.f32 %v14140_v33, %v8279_v29  ;;  %v9590_v22 = vpop.f32.mrb[118].mxu0 }
 0xae8   : > { %8451 = vst [vmem:[%s14144_s27 + $0x1b0] sm:$0xff] %v8387_v34  ;;  %v8388_v50 = vadd.f32 %v9590_v22, %v14140_v33  ;;  %v8282_v9 = vpop.f32.mrb[119].mxu0 }
 0xae9   : > { %8449 = vst [vmem:[%s14144_s27 + $0x1a0] sm:$0xff] %v8385_v26  ;;  %v8386_v18 = vadd.f32 %v14140_v33, %v8282_v9 }
 0xaea   : > { %8452 = vst [vmem:[%s14144_s27 + $0x1b8] sm:$0xff] %v8388_v50 }
 0xaeb   : > { %8450 = vst [vmem:[%s14144_s27 + $0x1a8] sm:$0xff] %v8386_v18 }
 0xaf5   : > { %v9593_v56 = vpop.f32.mrb[120].mxu0 }
 0xaf6   : > { %v8391_v15 = vadd.f32 %v9593_v56, %v14140_v33  ;;  %v8295_v38 = vpop.f32.mrb[121].mxu0 }
 0xaf7   : > { %v8389_v40 = vadd.f32 %v14140_v33, %v8295_v38  ;;  %v9594_v20 = vpop.f32.mrb[122].mxu0 }
 0xaf8   : > { %8455 = vst [vmem:[%s14144_s27 + $0x1d0] sm:$0xff] %v8391_v15  ;;  %v8392_v35 = vadd.f32 %v9594_v20, %v14140_v33  ;;  %v8298_v37 = vpop.f32.mrb[123].mxu0 }
 0xaf9   : > { %8453 = vst [vmem:[%s14144_s27 + $0x1c0] sm:$0xff] %v8389_v40  ;;  %v8390_v25 = vadd.f32 %v14140_v33, %v8298_v37 }
 0xafa   : > { %8456 = vst [vmem:[%s14144_s27 + $0x1d8] sm:$0xff] %v8392_v35 }
 0xafb   : > { %8454 = vst [vmem:[%s14144_s27 + $0x1c8] sm:$0xff] %v8390_v25 }
 0xb05   : > { %v9597_v14 = vpop.f32.mrb[124].mxu0 }
 0xb06   : > { %v8395_v32 = vadd.f32 %v9597_v14, %v14140_v33  ;;  %v8311_v13 = vpop.f32.mrb[125].mxu0 }
 0xb07   : > { %v8393_v62 = vadd.f32 %v14140_v33, %v8311_v13  ;;  %v9598_v31 = vpop.f32.mrb[126].mxu0 }
 0xb08   : > { %8459 = vst [vmem:[%s14144_s27 + $0x1f0] sm:$0xff] %v8395_v32  ;;  %v8396_v60 = vadd.f32 %v9598_v31, %v14140_v33  ;;  %v8314_v17 = vpop.f32.mrb[127].mxu0 }
 0xb09   : > { %8457 = vst [vmem:[%s14144_s27 + $0x1e0] sm:$0xff] %v8393_v62  ;;  %v8394_v10 = vadd.f32 %v14140_v33, %v8314_v17 }
 0xb0a   : > { %8460 = vst [vmem:[%s14144_s27 + $0x1f8] sm:$0xff] %v8396_v60 }
 0xb0b   : > { %8458 = vst [vmem:[%s14144_s27 + $0x1e8] sm:$0xff] %v8394_v10 }
 0xb0c   : > { %11031 = shalt.err (!%p11028_p2)
}
 0xb0d   : > { %s11032_s19 = scalar_lea.hbm %s14273_s14, 8192  ;;  %s11036_s20 = scalar_lea.hbm %s14687_s21, 16384 }
 0xb0e   : > { %p11033_p3 = scmp.ne.s32.totalorder %s14273_s14, %s11032_s19  ;;  %p11037_p7 = scmp.lt.u32.totalorder %s14273_s14, %s14687_s21 }
 0xb0f   : > { %p11038_p8 = scmp.lt.u32.totalorder %s11036_s20, %s11032_s19  ;;  %p11040_p13 = scmp.lt.u32.totalorder %s11032_s19, %s14273_s14 }
 0xb10   : > { %p11034_p4 = pnand %p11033_p3, %p14688_p1 }
 0xb11   : > { %p11039_p11 = por %p11038_p8, %p11037_p7 }
 0xb12   : > { %p11035_p12 = pneg %p11034_p4 }
 0xb13   : > { %p11041_p6 = por %p11040_p13, %p11039_p11 }
 0xb15   : > { %p11042_p9 = pnand %p11041_p6, %p11035_p12 }
 0xb17   : > { %11045 = shalt.err (!%p11042_p9)
}
 0xb18   : > { %s11112_s23 = smov 128   ;;  %s11113_s22 = smov 8  }
 0xb19   : > { %10411 = dma.vmem_to_hbm [thread:$0]  (%p14688_p1), %s14275_s5, 8192, %s14273_s14, %s14283_s0, %s11112_s23, %s11112_s23, %s11113_s22  }
 0xb1a PF: > { %s14689_s18 = sld [smem:[#allocation24_spill]]  ;;  %s14690_s24 = sld [smem:[#allocation21_spill]] }
 0xb1b   : > { %s14691_s1 = sld [smem:[#allocation28_spill]] }
 0xb20   : > { %p10453_p5 = scmp.ge.s32.totalorder %s14689_s18, 2  ;;  %s8490_s17 = sand.u32 1, %s14690_s24  }
 0xb21   : > { %p14692_p0 = scmp.ne.s32.totalorder %s14691_s1, 0  ;;  %s8491_s19 = scalar_lea.sflag [#allocation5], %s8490_s17 }
 0xb23   : > { %p10436_p10 = pnand %p10453_p5, %p14692_p0 }
 0xb25   : > { %11079 = dma.done.wait (!%p10436_p10), %s8491_s19, 8192  }
 0xb26   : > { %11081 = vsyncadd (!%p10436_p10), %s8491_s19, 4294959104  ;;  %s14693_s30 = sld [smem:[#allocation25_spill]]  ;;  %s14694_s27 = sld [smem:[#allocation22_spill]] }
 0xb27   : > { %s14695_s28 = sld [smem:[#allocation23_spill]]  ;;  %s14696_s29 = sld [smem:[#allocation26_spill]] }
 0xb2c   : > { %p32_p2 = scmp.ge.s32.totalorder %s14693_s30, 4  }
 0xb2e   :  { %34 = sbr.rel (!%p32_p2) target bundleno = 15 (0xf), region = 156 }
 0xb35   :  { %8496 = vsyncpa [#allocation4], 1 }
 0xb36   :  { %8498 = vsyncpa [#allocation4 + $0x1], 1 }
 0xb37   :  { %8499 = vsyncpa [#allocation7], 1 }
 0xb38   :  { %8500 = vsyncpa [#allocation10], 1 }
 0xb39   :  { %8501 = vsyncpa [#allocation13], 1 }
 0xb3a   :  { %8502 = vsyncpa [#allocation5], 1 }
 0xb3b   :  { %8504 = vsyncpa [#allocation5 + $0x1], 1 }

</bundles_post_ra>
